<compile_context>
chip_gen: v7x
topology: tpu7x:2x2x1
jax: 0.10.0
libtpu: 0.0.40
codegen_flags: <defaults>
</compile_context>

<pallas_src>
import functools

import jax
import jax.numpy as jnp
from jax.experimental import pallas as pl
from jax.experimental.pallas import tpu as pltpu

INPUT_SIZE = 16
HIDDEN = 128
NUM_LAYERS = 3
BATCH = 2
SEQ = 8
SUBLANE = 8


def _sigmoid_via_tanh(z):
    # sigmoid(x) == 0.5 * (1 + tanh(x / 2)) : one EUP push instead of exp+recip.
    return 0.5 * (1.0 + jnp.tanh(0.5 * z))


def _lstm_kernel(
    x_ref,                          # (T*Bp, D)   time-major flattened input, f32
    w_ih0_ref, w_hh0_ref, b0_ref,   # layer 0: (D, 4H) f32, (H, 4H) bf16, (1, 4H) f32
    w_ih1_ref, w_hh1_ref, b1_ref,   # layer 1: (H, 4H) bf16, (H, 4H) bf16, (1, 4H) f32
    w_ih2_ref, w_hh2_ref, b2_ref,   # layer 2: (H, 4H) bf16, (H, 4H) bf16, (1, 4H) f32
    w_fc_ref, b_fc_ref,             # fc: (H, 1) f32, (1, 1) f32
    out_ref,                        # (Bp, 1) f32
    *, bp, seq, hidden,
):
    # Inter-layer dropout (p=0.3) is train-only -> identity at inference.
    num_layers = NUM_LAYERS
    h3 = 3 * hidden
    w_ih = (w_ih0_ref[...], w_ih1_ref[...], w_ih2_ref[...])
    w_hh = (w_hh0_ref[...], w_hh1_ref[...], w_hh2_ref[...])
    # Hoist the layer-1/2 bias broadcasts out of the unrolled loop.
    bias = (None,
            jnp.broadcast_to(b1_ref[...], (bp, 4 * hidden)),
            jnp.broadcast_to(b2_ref[...], (bp, 4 * hidden)))

    # Layer-0 input projection + bias hoisted off the recurrence (K = 16).
    pre0 = (jnp.dot(x_ref[...], w_ih[0], preferred_element_type=jnp.float32)
            + b0_ref[...])                                        # (T*Bp, 4H)

    def cell(layer, t, gates_in, h_prev, c_prev):
        """One LSTM cell; gates_in already holds x_t @ W_ih + b (f32, (Bp, 4H))."""
        if t == 0:
            gates = gates_in            # h_prev == c_prev == 0: skip W_hh matmul
        else:
            gates = gates_in + jnp.dot(
                h_prev.astype(jnp.bfloat16), w_hh[layer],
                preferred_element_type=jnp.float32)
        s = _sigmoid_via_tanh(gates[:, :h3])                      # [i | f | o]
        i_g = s[:, :hidden]
        f_g = s[:, hidden:2 * hidden]
        o_g = s[:, 2 * hidden:h3]
        g_g = jnp.tanh(gates[:, h3:])
        c_new = i_g * g_g if t == 0 else f_g * c_prev + i_g * g_g
        h_new = o_g * jnp.tanh(c_new)
        return h_new, c_new

    h = [None] * num_layers
    c = [None] * num_layers
    h_b16 = [None] * num_layers     # bf16 copy feeding the next layer's in-proj

    # Wavefront emission: cell (l, t) sits on diagonal d = l + t.  Cells on one
    # diagonal are independent; layers are visited in DESCENDING order so each
    # cell reads the previous layer's state from the previous diagonal.
    for d in range(seq + num_layers - 1):
        for layer in range(num_layers - 1, -1, -1):
            t = d - layer
            if t < 0 or t >= seq:
                continue
            if layer == 0:
                # Aligned (Bp, 4H) sublane-group view of the hoisted projection.
                gates_in = pre0[t * bp:(t + 1) * bp, :]
            else:
                gates_in = bias[layer] + jnp.dot(
                    h_b16[layer - 1], w_ih[layer],
                    preferred_element_type=jnp.float32)
            h[layer], c[layer] = cell(layer, t, gates_in, h[layer], c[layer])
            if layer < num_layers - 1:
                h_b16[layer] = h[layer].astype(jnp.bfloat16)

    # fc(lstm_out[:, -1, :]) on the last layer's final hidden state only.
    out_ref[...] = (
        jnp.dot(h[num_layers - 1], w_fc_ref[...],
                preferred_element_type=jnp.float32)
        + b_fc_ref[...]
    )


def lstm_model_forward(x, kparams):
    """x: (B, T, D) float32 (batch_first, like PyTorch). Returns (B, 1) f32."""
    b, t, d = x.shape
    h = HIDDEN
    bp = ((b + SUBLANE - 1) // SUBLANE) * SUBLANE   # pad batch to a sublane group
    # Zero-pad the batch, then time-major flatten: rows [ti*bp:(ti+1)*bp] = step ti.
    x_pad = jnp.zeros((bp, t, d), x.dtype).at[:b].set(x)
    x2d = jnp.transpose(x_pad, (1, 0, 2)).reshape(t * bp, d)

    kernel = functools.partial(_lstm_kernel, bp=bp, seq=t, hidden=h)
    vmem = pl.BlockSpec(memory_space=pltpu.MemorySpace.VMEM)

    args = (
        x2d,
        kparams["w_ih0"], kparams["w_hh0"], kparams["b0"],
        kparams["w_ih1"], kparams["w_hh1"], kparams["b1"],
        kparams["w_ih2"], kparams["w_hh2"], kparams["b2"],
        kparams["w_fc"], kparams["b_fc"],
    )
    out = pl.pallas_call(
        kernel,
        out_shape=jax.ShapeDtypeStruct((bp, 1), jnp.float32),
        in_specs=[vmem] * len(args),
        out_specs=vmem,
    )(*args)
    return out[:b]                      # drop padded batch rows


def init_torch_params(key, input_size=INPUT_SIZE, hidden=HIDDEN):
    """Synthetic parameters in PyTorch's native layout and gate order (i,f,g,o)."""
    scale = 1.0 / jnp.sqrt(jnp.float32(hidden))
    keys = jax.random.split(key, 4 * NUM_LAYERS + 2)
    ki = iter(range(len(keys)))

    def u(k, shape):
        return jax.random.uniform(k, shape, jnp.float32, -scale, scale)

    p = {}
    in_sizes = [input_size] + [hidden] * (NUM_LAYERS - 1)
    for layer in range(NUM_LAYERS):
        d_in = in_sizes[layer]
        p[f"weight_ih_l{layer}"] = u(keys[next(ki)], (4 * hidden, d_in))
        p[f"weight_hh_l{layer}"] = u(keys[next(ki)], (4 * hidden, hidden))
        p[f"bias_ih_l{layer}"] = u(keys[next(ki)], (4 * hidden,))
        p[f"bias_hh_l{layer}"] = u(keys[next(ki)], (4 * hidden,))
    p["fc_weight"] = u(keys[next(ki)], (1, hidden))   # nn.Linear(hidden, 1)
    p["fc_bias"] = u(keys[next(ki)], (1,))
    return p


def pack_params_for_kernel(tp, hidden=HIDDEN):
    """PyTorch layout (gate rows [i,f,g,o]) -> kernel layout: transposed
    matrices with gate *columns* reordered to [i,f,o,g], biases pre-summed,
    and every matmul operand on the recurrence critical path cast to bf16
    (layer-0 W_ih stays f32: K=16 and it is hoisted off the chain)."""
    def regate(w_rows):  # rows [i|f|g|o] -> [i|f|o|g]
        i, f, g, o = jnp.split(w_rows, 4, axis=0)
        return jnp.concatenate([i, f, o, g], axis=0)

    kp = {}
    for layer in range(NUM_LAYERS):
        w_ih = jnp.transpose(regate(tp[f"weight_ih_l{layer}"]))      # (D_in, 4H)
        w_hh = jnp.transpose(regate(tp[f"weight_hh_l{layer}"]))      # (H, 4H)
        b = jnp.transpose(regate(
            (tp[f"bias_ih_l{layer}"] + tp[f"bias_hh_l{layer}"])[:, None]))  # (1, 4H)
        kp[f"w_ih{layer}"] = w_ih if layer == 0 else w_ih.astype(jnp.bfloat16)
        kp[f"w_hh{layer}"] = w_hh.astype(jnp.bfloat16)
        kp[f"b{layer}"] = b
    kp["w_fc"] = jnp.transpose(tp["fc_weight"])                      # (H, 1)
    kp["b_fc"] = tp["fc_bias"].reshape(1, 1)                         # (1, 1)
    return kp


def reference_forward(x, tp, hidden=HIDDEN):
    """Pure-JAX f32 reference with PyTorch nn.LSTM semantics (gate order i,f,g,o)."""
    b, t, _ = x.shape
    seq = x
    for layer in range(NUM_LAYERS):
        w_ih = tp[f"weight_ih_l{layer}"]
        w_hh = tp[f"weight_hh_l{layer}"]
        bias = tp[f"bias_ih_l{layer}"] + tp[f"bias_hh_l{layer}"]
        h = jnp.zeros((b, hidden), jnp.float32)
        c = jnp.zeros((b, hidden), jnp.float32)
        outs = []
        for ti in range(t):
            gates = seq[:, ti, :] @ w_ih.T + h @ w_hh.T + bias
            i_g = jax.nn.sigmoid(gates[:, 0 * hidden:1 * hidden])
            f_g = jax.nn.sigmoid(gates[:, 1 * hidden:2 * hidden])
            g_g = jnp.tanh(gates[:, 2 * hidden:3 * hidden])
            o_g = jax.nn.sigmoid(gates[:, 3 * hidden:4 * hidden])
            c = f_g * c + i_g * g_g
            h = o_g * jnp.tanh(c)
            outs.append(h)
        seq = jnp.stack(outs, axis=1)
    return seq[:, -1, :] @ tp["fc_weight"].T + tp["fc_bias"]


if __name__ == "__main__":
    key = jax.random.PRNGKey(0)
    k_x, k_p = jax.random.split(key)
    x = jax.random.normal(k_x, (BATCH, SEQ, INPUT_SIZE), jnp.float32)

    torch_params = init_torch_params(k_p)
    kernel_params = pack_params_for_kernel(torch_params)

    out = jax.block_until_ready(lstm_model_forward(x, kernel_params))
    ref = jax.block_until_ready(reference_forward(x, torch_params))

    assert out.shape == (BATCH, 1), out.shape
    # bf16 MXU operands on the recurrence -> tolerance relaxed from 1e-4 to 2e-2.
    assert jnp.allclose(out, ref, atol=2e-2, rtol=2e-2), (out, ref)
    print("KERNEL_OK")
</pallas_src>

<mosaic_0001>
module attributes {stable_mosaic.version = 11 : i64} {
  func.func @_lstm_kernel(%arg0: memref<64x16xf32, #tpu.memory_space<vmem>>, %arg1: memref<16x512xf32, #tpu.memory_space<vmem>>, %arg2: memref<128x512xbf16, #tpu.memory_space<vmem>>, %arg3: memref<1x512xf32, #tpu.memory_space<vmem>>, %arg4: memref<128x512xbf16, #tpu.memory_space<vmem>>, %arg5: memref<128x512xbf16, #tpu.memory_space<vmem>>, %arg6: memref<1x512xf32, #tpu.memory_space<vmem>>, %arg7: memref<128x512xbf16, #tpu.memory_space<vmem>>, %arg8: memref<128x512xbf16, #tpu.memory_space<vmem>>, %arg9: memref<1x512xf32, #tpu.memory_space<vmem>>, %arg10: memref<128x1xf32, #tpu.memory_space<vmem>>, %arg11: memref<1x1xf32, #tpu.memory_space<vmem>>, %arg12: memref<8x1xf32, #tpu.memory_space<vmem>>) attributes {dimension_semantics = [], scalar_prefetch = 0 : i64, scratch_operands = 0 : i64, tpu.core_type = #tpu.core_type<tc>} {
    %c0 = arith.constant 0 : index
    %c0_0 = arith.constant 0 : index
    %0 = vector.load %arg1[%c0, %c0_0] : memref<16x512xf32, #tpu.memory_space<vmem>>, vector<16x512xf32>
    %c0_1 = arith.constant 0 : index
    %c0_2 = arith.constant 0 : index
    %1 = vector.load %arg4[%c0_1, %c0_2] : memref<128x512xbf16, #tpu.memory_space<vmem>>, vector<128x512xbf16>
    %c0_3 = arith.constant 0 : index
    %c0_4 = arith.constant 0 : index
    %2 = vector.load %arg7[%c0_3, %c0_4] : memref<128x512xbf16, #tpu.memory_space<vmem>>, vector<128x512xbf16>
    %c0_5 = arith.constant 0 : index
    %c0_6 = arith.constant 0 : index
    %3 = vector.load %arg2[%c0_5, %c0_6] : memref<128x512xbf16, #tpu.memory_space<vmem>>, vector<128x512xbf16>
    %c0_7 = arith.constant 0 : index
    %c0_8 = arith.constant 0 : index
    %4 = vector.load %arg5[%c0_7, %c0_8] : memref<128x512xbf16, #tpu.memory_space<vmem>>, vector<128x512xbf16>
    %c0_9 = arith.constant 0 : index
    %c0_10 = arith.constant 0 : index
    %5 = vector.load %arg8[%c0_9, %c0_10] : memref<128x512xbf16, #tpu.memory_space<vmem>>, vector<128x512xbf16>
    %c0_11 = arith.constant 0 : index
    %c0_12 = arith.constant 0 : index
    %6 = vector.load %arg6[%c0_11, %c0_12] : memref<1x512xf32, #tpu.memory_space<vmem>>, vector<1x512xf32>
    %7 = vector.shape_cast %6 : vector<1x512xf32> to vector<1x512xf32>
    %8 = vector.broadcast %7 : vector<1x512xf32> to vector<8x512xf32>
    %c0_13 = arith.constant 0 : index
    %c0_14 = arith.constant 0 : index
    %9 = vector.load %arg9[%c0_13, %c0_14] : memref<1x512xf32, #tpu.memory_space<vmem>>, vector<1x512xf32>
    %10 = vector.shape_cast %9 : vector<1x512xf32> to vector<1x512xf32>
    %11 = vector.broadcast %10 : vector<1x512xf32> to vector<8x512xf32>
    %c0_15 = arith.constant 0 : index
    %c0_16 = arith.constant 0 : index
    %12 = vector.load %arg0[%c0_15, %c0_16] : memref<64x16xf32, #tpu.memory_space<vmem>>, vector<64x16xf32>
    %cst = arith.constant dense<0.000000e+00> : vector<64x512xf32>
    %13 = tpu.matmul %12, %0, %cst {dimension_numbers = #tpu.dot_dimension_numbers<[1], [0], [0], [1], [0, 0, 1, 1], [], []>} : vector<64x16xf32>, vector<16x512xf32>, vector<64x512xf32> -> vector<64x512xf32>
    %c0_17 = arith.constant 0 : index
    %c0_18 = arith.constant 0 : index
    %14 = vector.load %arg3[%c0_17, %c0_18] : memref<1x512xf32, #tpu.memory_space<vmem>>, vector<1x512xf32>
    %15 = vector.broadcast %14 : vector<1x512xf32> to vector<64x512xf32>
    %16 = arith.addf %13, %15 : vector<64x512xf32>
    %17 = vector.extract_strided_slice %16 {offsets = [0, 0], sizes = [8, 512], strides = [1, 1]} : vector<64x512xf32> to vector<8x512xf32>
    %18 = vector.extract_strided_slice %17 {offsets = [0, 0], sizes = [8, 384], strides = [1, 1]} : vector<8x512xf32> to vector<8x384xf32>
    %cst_19 = arith.constant 5.000000e-01 : f32
    %19 = vector.broadcast %cst_19 : f32 to vector<8x384xf32>
    %20 = arith.mulf %19, %18 : vector<8x384xf32>
    %21 = math.tanh %20 : vector<8x384xf32>
    %cst_20 = arith.constant 1.000000e+00 : f32
    %22 = vector.broadcast %cst_20 : f32 to vector<8x384xf32>
    %23 = arith.addf %22, %21 : vector<8x384xf32>
    %cst_21 = arith.constant 5.000000e-01 : f32
    %24 = vector.broadcast %cst_21 : f32 to vector<8x384xf32>
    %25 = arith.mulf %24, %23 : vector<8x384xf32>
    %26 = vector.extract_strided_slice %25 {offsets = [0, 0], sizes = [8, 128], strides = [1, 1]} : vector<8x384xf32> to vector<8x128xf32>
    %27 = vector.extract_strided_slice %25 {offsets = [0, 256], sizes = [8, 128], strides = [1, 1]} : vector<8x384xf32> to vector<8x128xf32>
    %28 = vector.extract_strided_slice %17 {offsets = [0, 384], sizes = [8, 128], strides = [1, 1]} : vector<8x512xf32> to vector<8x128xf32>
    %29 = math.tanh %28 : vector<8x128xf32>
    %30 = arith.mulf %26, %29 : vector<8x128xf32>
    %31 = math.tanh %30 : vector<8x128xf32>
    %32 = arith.mulf %27, %31 : vector<8x128xf32>
    %33 = arith.truncf %32 : vector<8x128xf32> to vector<8x128xbf16>
    %cst_22 = arith.constant dense<0.000000e+00> : vector<8x512xf32>
    %34 = tpu.matmul %33, %1, %cst_22 {dimension_numbers = #tpu.dot_dimension_numbers<[1], [0], [0], [1], [0, 0, 1, 1], [], []>} : vector<8x128xbf16>, vector<128x512xbf16>, vector<8x512xf32> -> vector<8x512xf32>
    %35 = arith.addf %8, %34 : vector<8x512xf32>
    %36 = vector.extract_strided_slice %35 {offsets = [0, 0], sizes = [8, 384], strides = [1, 1]} : vector<8x512xf32> to vector<8x384xf32>
    %cst_23 = arith.constant 5.000000e-01 : f32
    %37 = vector.broadcast %cst_23 : f32 to vector<8x384xf32>
    %38 = arith.mulf %37, %36 : vector<8x384xf32>
    %39 = math.tanh %38 : vector<8x384xf32>
    %cst_24 = arith.constant 1.000000e+00 : f32
    %40 = vector.broadcast %cst_24 : f32 to vector<8x384xf32>
    %41 = arith.addf %40, %39 : vector<8x384xf32>
    %cst_25 = arith.constant 5.000000e-01 : f32
    %42 = vector.broadcast %cst_25 : f32 to vector<8x384xf32>
    %43 = arith.mulf %42, %41 : vector<8x384xf32>
    %44 = vector.extract_strided_slice %43 {offsets = [0, 0], sizes = [8, 128], strides = [1, 1]} : vector<8x384xf32> to vector<8x128xf32>
    %45 = vector.extract_strided_slice %43 {offsets = [0, 256], sizes = [8, 128], strides = [1, 1]} : vector<8x384xf32> to vector<8x128xf32>
    %46 = vector.extract_strided_slice %35 {offsets = [0, 384], sizes = [8, 128], strides = [1, 1]} : vector<8x512xf32> to vector<8x128xf32>
    %47 = math.tanh %46 : vector<8x128xf32>
    %48 = arith.mulf %44, %47 : vector<8x128xf32>
    %49 = math.tanh %48 : vector<8x128xf32>
    %50 = arith.mulf %45, %49 : vector<8x128xf32>
    %51 = arith.truncf %50 : vector<8x128xf32> to vector<8x128xbf16>
    %52 = vector.extract_strided_slice %16 {offsets = [8, 0], sizes = [8, 512], strides = [1, 1]} : vector<64x512xf32> to vector<8x512xf32>
    %53 = arith.truncf %32 : vector<8x128xf32> to vector<8x128xbf16>
    %cst_26 = arith.constant dense<0.000000e+00> : vector<8x512xf32>
    %54 = tpu.matmul %53, %3, %cst_26 {dimension_numbers = #tpu.dot_dimension_numbers<[1], [0], [0], [1], [0, 0, 1, 1], [], []>} : vector<8x128xbf16>, vector<128x512xbf16>, vector<8x512xf32> -> vector<8x512xf32>
    %55 = arith.addf %52, %54 : vector<8x512xf32>
    %56 = vector.extract_strided_slice %55 {offsets = [0, 0], sizes = [8, 384], strides = [1, 1]} : vector<8x512xf32> to vector<8x384xf32>
    %cst_27 = arith.constant 5.000000e-01 : f32
    %57 = vector.broadcast %cst_27 : f32 to vector<8x384xf32>
    %58 = arith.mulf %57, %56 : vector<8x384xf32>
    %59 = math.tanh %58 : vector<8x384xf32>
    %cst_28 = arith.constant 1.000000e+00 : f32
    %60 = vector.broadcast %cst_28 : f32 to vector<8x384xf32>
    %61 = arith.addf %60, %59 : vector<8x384xf32>
    %cst_29 = arith.constant 5.000000e-01 : f32
    %62 = vector.broadcast %cst_29 : f32 to vector<8x384xf32>
    %63 = arith.mulf %62, %61 : vector<8x384xf32>
    %64 = vector.extract_strided_slice %63 {offsets = [0, 0], sizes = [8, 128], strides = [1, 1]} : vector<8x384xf32> to vector<8x128xf32>
    %65 = vector.extract_strided_slice %63 {offsets = [0, 128], sizes = [8, 128], strides = [1, 1]} : vector<8x384xf32> to vector<8x128xf32>
    %66 = vector.extract_strided_slice %63 {offsets = [0, 256], sizes = [8, 128], strides = [1, 1]} : vector<8x384xf32> to vector<8x128xf32>
    %67 = vector.extract_strided_slice %55 {offsets = [0, 384], sizes = [8, 128], strides = [1, 1]} : vector<8x512xf32> to vector<8x128xf32>
    %68 = math.tanh %67 : vector<8x128xf32>
    %69 = arith.mulf %65, %30 : vector<8x128xf32>
    %70 = arith.mulf %64, %68 : vector<8x128xf32>
    %71 = arith.addf %69, %70 : vector<8x128xf32>
    %72 = math.tanh %71 : vector<8x128xf32>
    %73 = arith.mulf %66, %72 : vector<8x128xf32>
    %74 = arith.truncf %73 : vector<8x128xf32> to vector<8x128xbf16>
    %cst_30 = arith.constant dense<0.000000e+00> : vector<8x512xf32>
    %75 = tpu.matmul %51, %2, %cst_30 {dimension_numbers = #tpu.dot_dimension_numbers<[1], [0], [0], [1], [0, 0, 1, 1], [], []>} : vector<8x128xbf16>, vector<128x512xbf16>, vector<8x512xf32> -> vector<8x512xf32>
    %76 = arith.addf %11, %75 : vector<8x512xf32>
    %77 = vector.extract_strided_slice %76 {offsets = [0, 0], sizes = [8, 384], strides = [1, 1]} : vector<8x512xf32> to vector<8x384xf32>
    %cst_31 = arith.constant 5.000000e-01 : f32
    %78 = vector.broadcast %cst_31 : f32 to vector<8x384xf32>
    %79 = arith.mulf %78, %77 : vector<8x384xf32>
    %80 = math.tanh %79 : vector<8x384xf32>
    %cst_32 = arith.constant 1.000000e+00 : f32
    %81 = vector.broadcast %cst_32 : f32 to vector<8x384xf32>
    %82 = arith.addf %81, %80 : vector<8x384xf32>
    %cst_33 = arith.constant 5.000000e-01 : f32
    %83 = vector.broadcast %cst_33 : f32 to vector<8x384xf32>
    %84 = arith.mulf %83, %82 : vector<8x384xf32>
    %85 = vector.extract_strided_slice %84 {offsets = [0, 0], sizes = [8, 128], strides = [1, 1]} : vector<8x384xf32> to vector<8x128xf32>
    %86 = vector.extract_strided_slice %84 {offsets = [0, 256], sizes = [8, 128], strides = [1, 1]} : vector<8x384xf32> to vector<8x128xf32>
    %87 = vector.extract_strided_slice %76 {offsets = [0, 384], sizes = [8, 128], strides = [1, 1]} : vector<8x512xf32> to vector<8x128xf32>
    %88 = math.tanh %87 : vector<8x128xf32>
    %89 = arith.mulf %85, %88 : vector<8x128xf32>
    %90 = math.tanh %89 : vector<8x128xf32>
    %91 = arith.mulf %86, %90 : vector<8x128xf32>
    %cst_34 = arith.constant dense<0.000000e+00> : vector<8x512xf32>
    %92 = tpu.matmul %74, %1, %cst_34 {dimension_numbers = #tpu.dot_dimension_numbers<[1], [0], [0], [1], [0, 0, 1, 1], [], []>} : vector<8x128xbf16>, vector<128x512xbf16>, vector<8x512xf32> -> vector<8x512xf32>
    %93 = arith.addf %8, %92 : vector<8x512xf32>
    %94 = arith.truncf %50 : vector<8x128xf32> to vector<8x128xbf16>
    %cst_35 = arith.constant dense<0.000000e+00> : vector<8x512xf32>
    %95 = tpu.matmul %94, %4, %cst_35 {dimension_numbers = #tpu.dot_dimension_numbers<[1], [0], [0], [1], [0, 0, 1, 1], [], []>} : vector<8x128xbf16>, vector<128x512xbf16>, vector<8x512xf32> -> vector<8x512xf32>
    %96 = arith.addf %93, %95 : vector<8x512xf32>
    %97 = vector.extract_strided_slice %96 {offsets = [0, 0], sizes = [8, 384], strides = [1, 1]} : vector<8x512xf32> to vector<8x384xf32>
    %cst_36 = arith.constant 5.000000e-01 : f32
    %98 = vector.broadcast %cst_36 : f32 to vector<8x384xf32>
    %99 = arith.mulf %98, %97 : vector<8x384xf32>
    %100 = math.tanh %99 : vector<8x384xf32>
    %cst_37 = arith.constant 1.000000e+00 : f32
    %101 = vector.broadcast %cst_37 : f32 to vector<8x384xf32>
    %102 = arith.addf %101, %100 : vector<8x384xf32>
    %cst_38 = arith.constant 5.000000e-01 : f32
    %103 = vector.broadcast %cst_38 : f32 to vector<8x384xf32>
    %104 = arith.mulf %103, %102 : vector<8x384xf32>
    %105 = vector.extract_strided_slice %104 {offsets = [0, 0], sizes = [8, 128], strides = [1, 1]} : vector<8x384xf32> to vector<8x128xf32>
    %106 = vector.extract_strided_slice %104 {offsets = [0, 128], sizes = [8, 128], strides = [1, 1]} : vector<8x384xf32> to vector<8x128xf32>
    %107 = vector.extract_strided_slice %104 {offsets = [0, 256], sizes = [8, 128], strides = [1, 1]} : vector<8x384xf32> to vector<8x128xf32>
    %108 = vector.extract_strided_slice %96 {offsets = [0, 384], sizes = [8, 128], strides = [1, 1]} : vector<8x512xf32> to vector<8x128xf32>
    %109 = math.tanh %108 : vector<8x128xf32>
    %110 = arith.mulf %106, %48 : vector<8x128xf32>
    %111 = arith.mulf %105, %109 : vector<8x128xf32>
    %112 = arith.addf %110, %111 : vector<8x128xf32>
    %113 = math.tanh %112 : vector<8x128xf32>
    %114 = arith.mulf %107, %113 : vector<8x128xf32>
    %115 = arith.truncf %114 : vector<8x128xf32> to vector<8x128xbf16>
    %116 = vector.extract_strided_slice %16 {offsets = [16, 0], sizes = [8, 512], strides = [1, 1]} : vector<64x512xf32> to vector<8x512xf32>
    %117 = arith.truncf %73 : vector<8x128xf32> to vector<8x128xbf16>
    %cst_39 = arith.constant dense<0.000000e+00> : vector<8x512xf32>
    %118 = tpu.matmul %117, %3, %cst_39 {dimension_numbers = #tpu.dot_dimension_numbers<[1], [0], [0], [1], [0, 0, 1, 1], [], []>} : vector<8x128xbf16>, vector<128x512xbf16>, vector<8x512xf32> -> vector<8x512xf32>
    %119 = arith.addf %116, %118 : vector<8x512xf32>
    %120 = vector.extract_strided_slice %119 {offsets = [0, 0], sizes = [8, 384], strides = [1, 1]} : vector<8x512xf32> to vector<8x384xf32>
    %cst_40 = arith.constant 5.000000e-01 : f32
    %121 = vector.broadcast %cst_40 : f32 to vector<8x384xf32>
    %122 = arith.mulf %121, %120 : vector<8x384xf32>
    %123 = math.tanh %122 : vector<8x384xf32>
    %cst_41 = arith.constant 1.000000e+00 : f32
    %124 = vector.broadcast %cst_41 : f32 to vector<8x384xf32>
    %125 = arith.addf %124, %123 : vector<8x384xf32>
    %cst_42 = arith.constant 5.000000e-01 : f32
    %126 = vector.broadcast %cst_42 : f32 to vector<8x384xf32>
    %127 = arith.mulf %126, %125 : vector<8x384xf32>
    %128 = vector.extract_strided_slice %127 {offsets = [0, 0], sizes = [8, 128], strides = [1, 1]} : vector<8x384xf32> to vector<8x128xf32>
    %129 = vector.extract_strided_slice %127 {offsets = [0, 128], sizes = [8, 128], strides = [1, 1]} : vector<8x384xf32> to vector<8x128xf32>
    %130 = vector.extract_strided_slice %127 {offsets = [0, 256], sizes = [8, 128], strides = [1, 1]} : vector<8x384xf32> to vector<8x128xf32>
    %131 = vector.extract_strided_slice %119 {offsets = [0, 384], sizes = [8, 128], strides = [1, 1]} : vector<8x512xf32> to vector<8x128xf32>
    %132 = math.tanh %131 : vector<8x128xf32>
    %133 = arith.mulf %129, %71 : vector<8x128xf32>
    %134 = arith.mulf %128, %132 : vector<8x128xf32>
    %135 = arith.addf %133, %134 : vector<8x128xf32>
    %136 = math.tanh %135 : vector<8x128xf32>
    %137 = arith.mulf %130, %136 : vector<8x128xf32>
    %138 = arith.truncf %137 : vector<8x128xf32> to vector<8x128xbf16>
    %cst_43 = arith.constant dense<0.000000e+00> : vector<8x512xf32>
    %139 = tpu.matmul %115, %2, %cst_43 {dimension_numbers = #tpu.dot_dimension_numbers<[1], [0], [0], [1], [0, 0, 1, 1], [], []>} : vector<8x128xbf16>, vector<128x512xbf16>, vector<8x512xf32> -> vector<8x512xf32>
    %140 = arith.addf %11, %139 : vector<8x512xf32>
    %141 = arith.truncf %91 : vector<8x128xf32> to vector<8x128xbf16>
    %cst_44 = arith.constant dense<0.000000e+00> : vector<8x512xf32>
    %142 = tpu.matmul %141, %5, %cst_44 {dimension_numbers = #tpu.dot_dimension_numbers<[1], [0], [0], [1], [0, 0, 1, 1], [], []>} : vector<8x128xbf16>, vector<128x512xbf16>, vector<8x512xf32> -> vector<8x512xf32>
    %143 = arith.addf %140, %142 : vector<8x512xf32>
    %144 = vector.extract_strided_slice %143 {offsets = [0, 0], sizes = [8, 384], strides = [1, 1]} : vector<8x512xf32> to vector<8x384xf32>
    %cst_45 = arith.constant 5.000000e-01 : f32
    %145 = vector.broadcast %cst_45 : f32 to vector<8x384xf32>
    %146 = arith.mulf %145, %144 : vector<8x384xf32>
    %147 = math.tanh %146 : vector<8x384xf32>
    %cst_46 = arith.constant 1.000000e+00 : f32
    %148 = vector.broadcast %cst_46 : f32 to vector<8x384xf32>
    %149 = arith.addf %148, %147 : vector<8x384xf32>
    %cst_47 = arith.constant 5.000000e-01 : f32
    %150 = vector.broadcast %cst_47 : f32 to vector<8x384xf32>
    %151 = arith.mulf %150, %149 : vector<8x384xf32>
    %152 = vector.extract_strided_slice %151 {offsets = [0, 0], sizes = [8, 128], strides = [1, 1]} : vector<8x384xf32> to vector<8x128xf32>
    %153 = vector.extract_strided_slice %151 {offsets = [0, 128], sizes = [8, 128], strides = [1, 1]} : vector<8x384xf32> to vector<8x128xf32>
    %154 = vector.extract_strided_slice %151 {offsets = [0, 256], sizes = [8, 128], strides = [1, 1]} : vector<8x384xf32> to vector<8x128xf32>
    %155 = vector.extract_strided_slice %143 {offsets = [0, 384], sizes = [8, 128], strides = [1, 1]} : vector<8x512xf32> to vector<8x128xf32>
    %156 = math.tanh %155 : vector<8x128xf32>
    %157 = arith.mulf %153, %89 : vector<8x128xf32>
    %158 = arith.mulf %152, %156 : vector<8x128xf32>
    %159 = arith.addf %157, %158 : vector<8x128xf32>
    %160 = math.tanh %159 : vector<8x128xf32>
    %161 = arith.mulf %154, %160 : vector<8x128xf32>
    %cst_48 = arith.constant dense<0.000000e+00> : vector<8x512xf32>
    %162 = tpu.matmul %138, %1, %cst_48 {dimension_numbers = #tpu.dot_dimension_numbers<[1], [0], [0], [1], [0, 0, 1, 1], [], []>} : vector<8x128xbf16>, vector<128x512xbf16>, vector<8x512xf32> -> vector<8x512xf32>
    %163 = arith.addf %8, %162 : vector<8x512xf32>
    %164 = arith.truncf %114 : vector<8x128xf32> to vector<8x128xbf16>
    %cst_49 = arith.constant dense<0.000000e+00> : vector<8x512xf32>
    %165 = tpu.matmul %164, %4, %cst_49 {dimension_numbers = #tpu.dot_dimension_numbers<[1], [0], [0], [1], [0, 0, 1, 1], [], []>} : vector<8x128xbf16>, vector<128x512xbf16>, vector<8x512xf32> -> vector<8x512xf32>
    %166 = arith.addf %163, %165 : vector<8x512xf32>
    %167 = vector.extract_strided_slice %166 {offsets = [0, 0], sizes = [8, 384], strides = [1, 1]} : vector<8x512xf32> to vector<8x384xf32>
    %cst_50 = arith.constant 5.000000e-01 : f32
    %168 = vector.broadcast %cst_50 : f32 to vector<8x384xf32>
    %169 = arith.mulf %168, %167 : vector<8x384xf32>
    %170 = math.tanh %169 : vector<8x384xf32>
    %cst_51 = arith.constant 1.000000e+00 : f32
    %171 = vector.broadcast %cst_51 : f32 to vector<8x384xf32>
    %172 = arith.addf %171, %170 : vector<8x384xf32>
    %cst_52 = arith.constant 5.000000e-01 : f32
    %173 = vector.broadcast %cst_52 : f32 to vector<8x384xf32>
    %174 = arith.mulf %173, %172 : vector<8x384xf32>
    %175 = vector.extract_strided_slice %174 {offsets = [0, 0], sizes = [8, 128], strides = [1, 1]} : vector<8x384xf32> to vector<8x128xf32>
    %176 = vector.extract_strided_slice %174 {offsets = [0, 128], sizes = [8, 128], strides = [1, 1]} : vector<8x384xf32> to vector<8x128xf32>
    %177 = vector.extract_strided_slice %174 {offsets = [0, 256], sizes = [8, 128], strides = [1, 1]} : vector<8x384xf32> to vector<8x128xf32>
    %178 = vector.extract_strided_slice %166 {offsets = [0, 384], sizes = [8, 128], strides = [1, 1]} : vector<8x512xf32> to vector<8x128xf32>
    %179 = math.tanh %178 : vector<8x128xf32>
    %180 = arith.mulf %176, %112 : vector<8x128xf32>
    %181 = arith.mulf %175, %179 : vector<8x128xf32>
    %182 = arith.addf %180, %181 : vector<8x128xf32>
    %183 = math.tanh %182 : vector<8x128xf32>
    %184 = arith.mulf %177, %183 : vector<8x128xf32>
    %185 = arith.truncf %184 : vector<8x128xf32> to vector<8x128xbf16>
    %186 = vector.extract_strided_slice %16 {offsets = [24, 0], sizes = [8, 512], strides = [1, 1]} : vector<64x512xf32> to vector<8x512xf32>
    %187 = arith.truncf %137 : vector<8x128xf32> to vector<8x128xbf16>
    %cst_53 = arith.constant dense<0.000000e+00> : vector<8x512xf32>
    %188 = tpu.matmul %187, %3, %cst_53 {dimension_numbers = #tpu.dot_dimension_numbers<[1], [0], [0], [1], [0, 0, 1, 1], [], []>} : vector<8x128xbf16>, vector<128x512xbf16>, vector<8x512xf32> -> vector<8x512xf32>
    %189 = arith.addf %186, %188 : vector<8x512xf32>
    %190 = vector.extract_strided_slice %189 {offsets = [0, 0], sizes = [8, 384], strides = [1, 1]} : vector<8x512xf32> to vector<8x384xf32>
    %cst_54 = arith.constant 5.000000e-01 : f32
    %191 = vector.broadcast %cst_54 : f32 to vector<8x384xf32>
    %192 = arith.mulf %191, %190 : vector<8x384xf32>
    %193 = math.tanh %192 : vector<8x384xf32>
    %cst_55 = arith.constant 1.000000e+00 : f32
    %194 = vector.broadcast %cst_55 : f32 to vector<8x384xf32>
    %195 = arith.addf %194, %193 : vector<8x384xf32>
    %cst_56 = arith.constant 5.000000e-01 : f32
    %196 = vector.broadcast %cst_56 : f32 to vector<8x384xf32>
    %197 = arith.mulf %196, %195 : vector<8x384xf32>
    %198 = vector.extract_strided_slice %197 {offsets = [0, 0], sizes = [8, 128], strides = [1, 1]} : vector<8x384xf32> to vector<8x128xf32>
    %199 = vector.extract_strided_slice %197 {offsets = [0, 128], sizes = [8, 128], strides = [1, 1]} : vector<8x384xf32> to vector<8x128xf32>
    %200 = vector.extract_strided_slice %197 {offsets = [0, 256], sizes = [8, 128], strides = [1, 1]} : vector<8x384xf32> to vector<8x128xf32>
    %201 = vector.extract_strided_slice %189 {offsets = [0, 384], sizes = [8, 128], strides = [1, 1]} : vector<8x512xf32> to vector<8x128xf32>
    %202 = math.tanh %201 : vector<8x128xf32>
    %203 = arith.mulf %199, %135 : vector<8x128xf32>
    %204 = arith.mulf %198, %202 : vector<8x128xf32>
    %205 = arith.addf %203, %204 : vector<8x128xf32>
    %206 = math.tanh %205 : vector<8x128xf32>
    %207 = arith.mulf %200, %206 : vector<8x128xf32>
    %208 = arith.truncf %207 : vector<8x128xf32> to vector<8x128xbf16>
    %cst_57 = arith.constant dense<0.000000e+00> : vector<8x512xf32>
    %209 = tpu.matmul %185, %2, %cst_57 {dimension_numbers = #tpu.dot_dimension_numbers<[1], [0], [0], [1], [0, 0, 1, 1], [], []>} : vector<8x128xbf16>, vector<128x512xbf16>, vector<8x512xf32> -> vector<8x512xf32>
    %210 = arith.addf %11, %209 : vector<8x512xf32>
    %211 = arith.truncf %161 : vector<8x128xf32> to vector<8x128xbf16>
    %cst_58 = arith.constant dense<0.000000e+00> : vector<8x512xf32>
    %212 = tpu.matmul %211, %5, %cst_58 {dimension_numbers = #tpu.dot_dimension_numbers<[1], [0], [0], [1], [0, 0, 1, 1], [], []>} : vector<8x128xbf16>, vector<128x512xbf16>, vector<8x512xf32> -> vector<8x512xf32>
    %213 = arith.addf %210, %212 : vector<8x512xf32>
    %214 = vector.extract_strided_slice %213 {offsets = [0, 0], sizes = [8, 384], strides = [1, 1]} : vector<8x512xf32> to vector<8x384xf32>
    %cst_59 = arith.constant 5.000000e-01 : f32
    %215 = vector.broadcast %cst_59 : f32 to vector<8x384xf32>
    %216 = arith.mulf %215, %214 : vector<8x384xf32>
    %217 = math.tanh %216 : vector<8x384xf32>
    %cst_60 = arith.constant 1.000000e+00 : f32
    %218 = vector.broadcast %cst_60 : f32 to vector<8x384xf32>
    %219 = arith.addf %218, %217 : vector<8x384xf32>
    %cst_61 = arith.constant 5.000000e-01 : f32
    %220 = vector.broadcast %cst_61 : f32 to vector<8x384xf32>
    %221 = arith.mulf %220, %219 : vector<8x384xf32>
    %222 = vector.extract_strided_slice %221 {offsets = [0, 0], sizes = [8, 128], strides = [1, 1]} : vector<8x384xf32> to vector<8x128xf32>
    %223 = vector.extract_strided_slice %221 {offsets = [0, 128], sizes = [8, 128], strides = [1, 1]} : vector<8x384xf32> to vector<8x128xf32>
    %224 = vector.extract_strided_slice %221 {offsets = [0, 256], sizes = [8, 128], strides = [1, 1]} : vector<8x384xf32> to vector<8x128xf32>
    %225 = vector.extract_strided_slice %213 {offsets = [0, 384], sizes = [8, 128], strides = [1, 1]} : vector<8x512xf32> to vector<8x128xf32>
    %226 = math.tanh %225 : vector<8x128xf32>
    %227 = arith.mulf %223, %159 : vector<8x128xf32>
    %228 = arith.mulf %222, %226 : vector<8x128xf32>
    %229 = arith.addf %227, %228 : vector<8x128xf32>
    %230 = math.tanh %229 : vector<8x128xf32>
    %231 = arith.mulf %224, %230 : vector<8x128xf32>
    %cst_62 = arith.constant dense<0.000000e+00> : vector<8x512xf32>
    %232 = tpu.matmul %208, %1, %cst_62 {dimension_numbers = #tpu.dot_dimension_numbers<[1], [0], [0], [1], [0, 0, 1, 1], [], []>} : vector<8x128xbf16>, vector<128x512xbf16>, vector<8x512xf32> -> vector<8x512xf32>
    %233 = arith.addf %8, %232 : vector<8x512xf32>
    %234 = arith.truncf %184 : vector<8x128xf32> to vector<8x128xbf16>
    %cst_63 = arith.constant dense<0.000000e+00> : vector<8x512xf32>
    %235 = tpu.matmul %234, %4, %cst_63 {dimension_numbers = #tpu.dot_dimension_numbers<[1], [0], [0], [1], [0, 0, 1, 1], [], []>} : vector<8x128xbf16>, vector<128x512xbf16>, vector<8x512xf32> -> vector<8x512xf32>
    %236 = arith.addf %233, %235 : vector<8x512xf32>
    %237 = vector.extract_strided_slice %236 {offsets = [0, 0], sizes = [8, 384], strides = [1, 1]} : vector<8x512xf32> to vector<8x384xf32>
    %cst_64 = arith.constant 5.000000e-01 : f32
    %238 = vector.broadcast %cst_64 : f32 to vector<8x384xf32>
    %239 = arith.mulf %238, %237 : vector<8x384xf32>
    %240 = math.tanh %239 : vector<8x384xf32>
    %cst_65 = arith.constant 1.000000e+00 : f32
    %241 = vector.broadcast %cst_65 : f32 to vector<8x384xf32>
    %242 = arith.addf %241, %240 : vector<8x384xf32>
    %cst_66 = arith.constant 5.000000e-01 : f32
    %243 = vector.broadcast %cst_66 : f32 to vector<8x384xf32>
    %244 = arith.mulf %243, %242 : vector<8x384xf32>
    %245 = vector.extract_strided_slice %244 {offsets = [0, 0], sizes = [8, 128], strides = [1, 1]} : vector<8x384xf32> to vector<8x128xf32>
    %246 = vector.extract_strided_slice %244 {offsets = [0, 128], sizes = [8, 128], strides = [1, 1]} : vector<8x384xf32> to vector<8x128xf32>
    %247 = vector.extract_strided_slice %244 {offsets = [0, 256], sizes = [8, 128], strides = [1, 1]} : vector<8x384xf32> to vector<8x128xf32>
    %248 = vector.extract_strided_slice %236 {offsets = [0, 384], sizes = [8, 128], strides = [1, 1]} : vector<8x512xf32> to vector<8x128xf32>
    %249 = math.tanh %248 : vector<8x128xf32>
    %250 = arith.mulf %246, %182 : vector<8x128xf32>
    %251 = arith.mulf %245, %249 : vector<8x128xf32>
    %252 = arith.addf %250, %251 : vector<8x128xf32>
    %253 = math.tanh %252 : vector<8x128xf32>
    %254 = arith.mulf %247, %253 : vector<8x128xf32>
    %255 = arith.truncf %254 : vector<8x128xf32> to vector<8x128xbf16>
    %256 = vector.extract_strided_slice %16 {offsets = [32, 0], sizes = [8, 512], strides = [1, 1]} : vector<64x512xf32> to vector<8x512xf32>
    %257 = arith.truncf %207 : vector<8x128xf32> to vector<8x128xbf16>
    %cst_67 = arith.constant dense<0.000000e+00> : vector<8x512xf32>
    %258 = tpu.matmul %257, %3, %cst_67 {dimension_numbers = #tpu.dot_dimension_numbers<[1], [0], [0], [1], [0, 0, 1, 1], [], []>} : vector<8x128xbf16>, vector<128x512xbf16>, vector<8x512xf32> -> vector<8x512xf32>
    %259 = arith.addf %256, %258 : vector<8x512xf32>
    %260 = vector.extract_strided_slice %259 {offsets = [0, 0], sizes = [8, 384], strides = [1, 1]} : vector<8x512xf32> to vector<8x384xf32>
    %cst_68 = arith.constant 5.000000e-01 : f32
    %261 = vector.broadcast %cst_68 : f32 to vector<8x384xf32>
    %262 = arith.mulf %261, %260 : vector<8x384xf32>
    %263 = math.tanh %262 : vector<8x384xf32>
    %cst_69 = arith.constant 1.000000e+00 : f32
    %264 = vector.broadcast %cst_69 : f32 to vector<8x384xf32>
    %265 = arith.addf %264, %263 : vector<8x384xf32>
    %cst_70 = arith.constant 5.000000e-01 : f32
    %266 = vector.broadcast %cst_70 : f32 to vector<8x384xf32>
    %267 = arith.mulf %266, %265 : vector<8x384xf32>
    %268 = vector.extract_strided_slice %267 {offsets = [0, 0], sizes = [8, 128], strides = [1, 1]} : vector<8x384xf32> to vector<8x128xf32>
    %269 = vector.extract_strided_slice %267 {offsets = [0, 128], sizes = [8, 128], strides = [1, 1]} : vector<8x384xf32> to vector<8x128xf32>
    %270 = vector.extract_strided_slice %267 {offsets = [0, 256], sizes = [8, 128], strides = [1, 1]} : vector<8x384xf32> to vector<8x128xf32>
    %271 = vector.extract_strided_slice %259 {offsets = [0, 384], sizes = [8, 128], strides = [1, 1]} : vector<8x512xf32> to vector<8x128xf32>
    %272 = math.tanh %271 : vector<8x128xf32>
    %273 = arith.mulf %269, %205 : vector<8x128xf32>
    %274 = arith.mulf %268, %272 : vector<8x128xf32>
    %275 = arith.addf %273, %274 : vector<8x128xf32>
    %276 = math.tanh %275 : vector<8x128xf32>
    %277 = arith.mulf %270, %276 : vector<8x128xf32>
    %278 = arith.truncf %277 : vector<8x128xf32> to vector<8x128xbf16>
    %cst_71 = arith.constant dense<0.000000e+00> : vector<8x512xf32>
    %279 = tpu.matmul %255, %2, %cst_71 {dimension_numbers = #tpu.dot_dimension_numbers<[1], [0], [0], [1], [0, 0, 1, 1], [], []>} : vector<8x128xbf16>, vector<128x512xbf16>, vector<8x512xf32> -> vector<8x512xf32>
    %280 = arith.addf %11, %279 : vector<8x512xf32>
    %281 = arith.truncf %231 : vector<8x128xf32> to vector<8x128xbf16>
    %cst_72 = arith.constant dense<0.000000e+00> : vector<8x512xf32>
    %282 = tpu.matmul %281, %5, %cst_72 {dimension_numbers = #tpu.dot_dimension_numbers<[1], [0], [0], [1], [0, 0, 1, 1], [], []>} : vector<8x128xbf16>, vector<128x512xbf16>, vector<8x512xf32> -> vector<8x512xf32>
    %283 = arith.addf %280, %282 : vector<8x512xf32>
    %284 = vector.extract_strided_slice %283 {offsets = [0, 0], sizes = [8, 384], strides = [1, 1]} : vector<8x512xf32> to vector<8x384xf32>
    %cst_73 = arith.constant 5.000000e-01 : f32
    %285 = vector.broadcast %cst_73 : f32 to vector<8x384xf32>
    %286 = arith.mulf %285, %284 : vector<8x384xf32>
    %287 = math.tanh %286 : vector<8x384xf32>
    %cst_74 = arith.constant 1.000000e+00 : f32
    %288 = vector.broadcast %cst_74 : f32 to vector<8x384xf32>
    %289 = arith.addf %288, %287 : vector<8x384xf32>
    %cst_75 = arith.constant 5.000000e-01 : f32
    %290 = vector.broadcast %cst_75 : f32 to vector<8x384xf32>
    %291 = arith.mulf %290, %289 : vector<8x384xf32>
    %292 = vector.extract_strided_slice %291 {offsets = [0, 0], sizes = [8, 128], strides = [1, 1]} : vector<8x384xf32> to vector<8x128xf32>
    %293 = vector.extract_strided_slice %291 {offsets = [0, 128], sizes = [8, 128], strides = [1, 1]} : vector<8x384xf32> to vector<8x128xf32>
    %294 = vector.extract_strided_slice %291 {offsets = [0, 256], sizes = [8, 128], strides = [1, 1]} : vector<8x384xf32> to vector<8x128xf32>
    %295 = vector.extract_strided_slice %283 {offsets = [0, 384], sizes = [8, 128], strides = [1, 1]} : vector<8x512xf32> to vector<8x128xf32>
    %296 = math.tanh %295 : vector<8x128xf32>
    %297 = arith.mulf %293, %229 : vector<8x128xf32>
    %298 = arith.mulf %292, %296 : vector<8x128xf32>
    %299 = arith.addf %297, %298 : vector<8x128xf32>
    %300 = math.tanh %299 : vector<8x128xf32>
    %301 = arith.mulf %294, %300 : vector<8x128xf32>
    %cst_76 = arith.constant dense<0.000000e+00> : vector<8x512xf32>
    %302 = tpu.matmul %278, %1, %cst_76 {dimension_numbers = #tpu.dot_dimension_numbers<[1], [0], [0], [1], [0, 0, 1, 1], [], []>} : vector<8x128xbf16>, vector<128x512xbf16>, vector<8x512xf32> -> vector<8x512xf32>
    %303 = arith.addf %8, %302 : vector<8x512xf32>
    %304 = arith.truncf %254 : vector<8x128xf32> to vector<8x128xbf16>
    %cst_77 = arith.constant dense<0.000000e+00> : vector<8x512xf32>
    %305 = tpu.matmul %304, %4, %cst_77 {dimension_numbers = #tpu.dot_dimension_numbers<[1], [0], [0], [1], [0, 0, 1, 1], [], []>} : vector<8x128xbf16>, vector<128x512xbf16>, vector<8x512xf32> -> vector<8x512xf32>
    %306 = arith.addf %303, %305 : vector<8x512xf32>
    %307 = vector.extract_strided_slice %306 {offsets = [0, 0], sizes = [8, 384], strides = [1, 1]} : vector<8x512xf32> to vector<8x384xf32>
    %cst_78 = arith.constant 5.000000e-01 : f32
    %308 = vector.broadcast %cst_78 : f32 to vector<8x384xf32>
    %309 = arith.mulf %308, %307 : vector<8x384xf32>
    %310 = math.tanh %309 : vector<8x384xf32>
    %cst_79 = arith.constant 1.000000e+00 : f32
    %311 = vector.broadcast %cst_79 : f32 to vector<8x384xf32>
    %312 = arith.addf %311, %310 : vector<8x384xf32>
    %cst_80 = arith.constant 5.000000e-01 : f32
    %313 = vector.broadcast %cst_80 : f32 to vector<8x384xf32>
    %314 = arith.mulf %313, %312 : vector<8x384xf32>
    %315 = vector.extract_strided_slice %314 {offsets = [0, 0], sizes = [8, 128], strides = [1, 1]} : vector<8x384xf32> to vector<8x128xf32>
    %316 = vector.extract_strided_slice %314 {offsets = [0, 128], sizes = [8, 128], strides = [1, 1]} : vector<8x384xf32> to vector<8x128xf32>
    %317 = vector.extract_strided_slice %314 {offsets = [0, 256], sizes = [8, 128], strides = [1, 1]} : vector<8x384xf32> to vector<8x128xf32>
    %318 = vector.extract_strided_slice %306 {offsets = [0, 384], sizes = [8, 128], strides = [1, 1]} : vector<8x512xf32> to vector<8x128xf32>
    %319 = math.tanh %318 : vector<8x128xf32>
    %320 = arith.mulf %316, %252 : vector<8x128xf32>
    %321 = arith.mulf %315, %319 : vector<8x128xf32>
    %322 = arith.addf %320, %321 : vector<8x128xf32>
    %323 = math.tanh %322 : vector<8x128xf32>
    %324 = arith.mulf %317, %323 : vector<8x128xf32>
    %325 = arith.truncf %324 : vector<8x128xf32> to vector<8x128xbf16>
    %326 = vector.extract_strided_slice %16 {offsets = [40, 0], sizes = [8, 512], strides = [1, 1]} : vector<64x512xf32> to vector<8x512xf32>
    %327 = arith.truncf %277 : vector<8x128xf32> to vector<8x128xbf16>
    %cst_81 = arith.constant dense<0.000000e+00> : vector<8x512xf32>
    %328 = tpu.matmul %327, %3, %cst_81 {dimension_numbers = #tpu.dot_dimension_numbers<[1], [0], [0], [1], [0, 0, 1, 1], [], []>} : vector<8x128xbf16>, vector<128x512xbf16>, vector<8x512xf32> -> vector<8x512xf32>
    %329 = arith.addf %326, %328 : vector<8x512xf32>
    %330 = vector.extract_strided_slice %329 {offsets = [0, 0], sizes = [8, 384], strides = [1, 1]} : vector<8x512xf32> to vector<8x384xf32>
    %cst_82 = arith.constant 5.000000e-01 : f32
    %331 = vector.broadcast %cst_82 : f32 to vector<8x384xf32>
    %332 = arith.mulf %331, %330 : vector<8x384xf32>
    %333 = math.tanh %332 : vector<8x384xf32>
    %cst_83 = arith.constant 1.000000e+00 : f32
    %334 = vector.broadcast %cst_83 : f32 to vector<8x384xf32>
    %335 = arith.addf %334, %333 : vector<8x384xf32>
    %cst_84 = arith.constant 5.000000e-01 : f32
    %336 = vector.broadcast %cst_84 : f32 to vector<8x384xf32>
    %337 = arith.mulf %336, %335 : vector<8x384xf32>
    %338 = vector.extract_strided_slice %337 {offsets = [0, 0], sizes = [8, 128], strides = [1, 1]} : vector<8x384xf32> to vector<8x128xf32>
    %339 = vector.extract_strided_slice %337 {offsets = [0, 128], sizes = [8, 128], strides = [1, 1]} : vector<8x384xf32> to vector<8x128xf32>
    %340 = vector.extract_strided_slice %337 {offsets = [0, 256], sizes = [8, 128], strides = [1, 1]} : vector<8x384xf32> to vector<8x128xf32>
    %341 = vector.extract_strided_slice %329 {offsets = [0, 384], sizes = [8, 128], strides = [1, 1]} : vector<8x512xf32> to vector<8x128xf32>
    %342 = math.tanh %341 : vector<8x128xf32>
    %343 = arith.mulf %339, %275 : vector<8x128xf32>
    %344 = arith.mulf %338, %342 : vector<8x128xf32>
    %345 = arith.addf %343, %344 : vector<8x128xf32>
    %346 = math.tanh %345 : vector<8x128xf32>
    %347 = arith.mulf %340, %346 : vector<8x128xf32>
    %348 = arith.truncf %347 : vector<8x128xf32> to vector<8x128xbf16>
    %cst_85 = arith.constant dense<0.000000e+00> : vector<8x512xf32>
    %349 = tpu.matmul %325, %2, %cst_85 {dimension_numbers = #tpu.dot_dimension_numbers<[1], [0], [0], [1], [0, 0, 1, 1], [], []>} : vector<8x128xbf16>, vector<128x512xbf16>, vector<8x512xf32> -> vector<8x512xf32>
    %350 = arith.addf %11, %349 : vector<8x512xf32>
    %351 = arith.truncf %301 : vector<8x128xf32> to vector<8x128xbf16>
    %cst_86 = arith.constant dense<0.000000e+00> : vector<8x512xf32>
    %352 = tpu.matmul %351, %5, %cst_86 {dimension_numbers = #tpu.dot_dimension_numbers<[1], [0], [0], [1], [0, 0, 1, 1], [], []>} : vector<8x128xbf16>, vector<128x512xbf16>, vector<8x512xf32> -> vector<8x512xf32>
    %353 = arith.addf %350, %352 : vector<8x512xf32>
    %354 = vector.extract_strided_slice %353 {offsets = [0, 0], sizes = [8, 384], strides = [1, 1]} : vector<8x512xf32> to vector<8x384xf32>
    %cst_87 = arith.constant 5.000000e-01 : f32
    %355 = vector.broadcast %cst_87 : f32 to vector<8x384xf32>
    %356 = arith.mulf %355, %354 : vector<8x384xf32>
    %357 = math.tanh %356 : vector<8x384xf32>
    %cst_88 = arith.constant 1.000000e+00 : f32
    %358 = vector.broadcast %cst_88 : f32 to vector<8x384xf32>
    %359 = arith.addf %358, %357 : vector<8x384xf32>
    %cst_89 = arith.constant 5.000000e-01 : f32
    %360 = vector.broadcast %cst_89 : f32 to vector<8x384xf32>
    %361 = arith.mulf %360, %359 : vector<8x384xf32>
    %362 = vector.extract_strided_slice %361 {offsets = [0, 0], sizes = [8, 128], strides = [1, 1]} : vector<8x384xf32> to vector<8x128xf32>
    %363 = vector.extract_strided_slice %361 {offsets = [0, 128], sizes = [8, 128], strides = [1, 1]} : vector<8x384xf32> to vector<8x128xf32>
    %364 = vector.extract_strided_slice %361 {offsets = [0, 256], sizes = [8, 128], strides = [1, 1]} : vector<8x384xf32> to vector<8x128xf32>
    %365 = vector.extract_strided_slice %353 {offsets = [0, 384], sizes = [8, 128], strides = [1, 1]} : vector<8x512xf32> to vector<8x128xf32>
    %366 = math.tanh %365 : vector<8x128xf32>
    %367 = arith.mulf %363, %299 : vector<8x128xf32>
    %368 = arith.mulf %362, %366 : vector<8x128xf32>
    %369 = arith.addf %367, %368 : vector<8x128xf32>
    %370 = math.tanh %369 : vector<8x128xf32>
    %371 = arith.mulf %364, %370 : vector<8x128xf32>
    %cst_90 = arith.constant dense<0.000000e+00> : vector<8x512xf32>
    %372 = tpu.matmul %348, %1, %cst_90 {dimension_numbers = #tpu.dot_dimension_numbers<[1], [0], [0], [1], [0, 0, 1, 1], [], []>} : vector<8x128xbf16>, vector<128x512xbf16>, vector<8x512xf32> -> vector<8x512xf32>
    %373 = arith.addf %8, %372 : vector<8x512xf32>
    %374 = arith.truncf %324 : vector<8x128xf32> to vector<8x128xbf16>
    %cst_91 = arith.constant dense<0.000000e+00> : vector<8x512xf32>
    %375 = tpu.matmul %374, %4, %cst_91 {dimension_numbers = #tpu.dot_dimension_numbers<[1], [0], [0], [1], [0, 0, 1, 1], [], []>} : vector<8x128xbf16>, vector<128x512xbf16>, vector<8x512xf32> -> vector<8x512xf32>
    %376 = arith.addf %373, %375 : vector<8x512xf32>
    %377 = vector.extract_strided_slice %376 {offsets = [0, 0], sizes = [8, 384], strides = [1, 1]} : vector<8x512xf32> to vector<8x384xf32>
    %cst_92 = arith.constant 5.000000e-01 : f32
    %378 = vector.broadcast %cst_92 : f32 to vector<8x384xf32>
    %379 = arith.mulf %378, %377 : vector<8x384xf32>
    %380 = math.tanh %379 : vector<8x384xf32>
    %cst_93 = arith.constant 1.000000e+00 : f32
    %381 = vector.broadcast %cst_93 : f32 to vector<8x384xf32>
    %382 = arith.addf %381, %380 : vector<8x384xf32>
    %cst_94 = arith.constant 5.000000e-01 : f32
    %383 = vector.broadcast %cst_94 : f32 to vector<8x384xf32>
    %384 = arith.mulf %383, %382 : vector<8x384xf32>
    %385 = vector.extract_strided_slice %384 {offsets = [0, 0], sizes = [8, 128], strides = [1, 1]} : vector<8x384xf32> to vector<8x128xf32>
    %386 = vector.extract_strided_slice %384 {offsets = [0, 128], sizes = [8, 128], strides = [1, 1]} : vector<8x384xf32> to vector<8x128xf32>
    %387 = vector.extract_strided_slice %384 {offsets = [0, 256], sizes = [8, 128], strides = [1, 1]} : vector<8x384xf32> to vector<8x128xf32>
    %388 = vector.extract_strided_slice %376 {offsets = [0, 384], sizes = [8, 128], strides = [1, 1]} : vector<8x512xf32> to vector<8x128xf32>
    %389 = math.tanh %388 : vector<8x128xf32>
    %390 = arith.mulf %386, %322 : vector<8x128xf32>
    %391 = arith.mulf %385, %389 : vector<8x128xf32>
    %392 = arith.addf %390, %391 : vector<8x128xf32>
    %393 = math.tanh %392 : vector<8x128xf32>
    %394 = arith.mulf %387, %393 : vector<8x128xf32>
    %395 = arith.truncf %394 : vector<8x128xf32> to vector<8x128xbf16>
    %396 = vector.extract_strided_slice %16 {offsets = [48, 0], sizes = [8, 512], strides = [1, 1]} : vector<64x512xf32> to vector<8x512xf32>
    %397 = arith.truncf %347 : vector<8x128xf32> to vector<8x128xbf16>
    %cst_95 = arith.constant dense<0.000000e+00> : vector<8x512xf32>
    %398 = tpu.matmul %397, %3, %cst_95 {dimension_numbers = #tpu.dot_dimension_numbers<[1], [0], [0], [1], [0, 0, 1, 1], [], []>} : vector<8x128xbf16>, vector<128x512xbf16>, vector<8x512xf32> -> vector<8x512xf32>
    %399 = arith.addf %396, %398 : vector<8x512xf32>
    %400 = vector.extract_strided_slice %399 {offsets = [0, 0], sizes = [8, 384], strides = [1, 1]} : vector<8x512xf32> to vector<8x384xf32>
    %cst_96 = arith.constant 5.000000e-01 : f32
    %401 = vector.broadcast %cst_96 : f32 to vector<8x384xf32>
    %402 = arith.mulf %401, %400 : vector<8x384xf32>
    %403 = math.tanh %402 : vector<8x384xf32>
    %cst_97 = arith.constant 1.000000e+00 : f32
    %404 = vector.broadcast %cst_97 : f32 to vector<8x384xf32>
    %405 = arith.addf %404, %403 : vector<8x384xf32>
    %cst_98 = arith.constant 5.000000e-01 : f32
    %406 = vector.broadcast %cst_98 : f32 to vector<8x384xf32>
    %407 = arith.mulf %406, %405 : vector<8x384xf32>
    %408 = vector.extract_strided_slice %407 {offsets = [0, 0], sizes = [8, 128], strides = [1, 1]} : vector<8x384xf32> to vector<8x128xf32>
    %409 = vector.extract_strided_slice %407 {offsets = [0, 128], sizes = [8, 128], strides = [1, 1]} : vector<8x384xf32> to vector<8x128xf32>
    %410 = vector.extract_strided_slice %407 {offsets = [0, 256], sizes = [8, 128], strides = [1, 1]} : vector<8x384xf32> to vector<8x128xf32>
    %411 = vector.extract_strided_slice %399 {offsets = [0, 384], sizes = [8, 128], strides = [1, 1]} : vector<8x512xf32> to vector<8x128xf32>
    %412 = math.tanh %411 : vector<8x128xf32>
    %413 = arith.mulf %409, %345 : vector<8x128xf32>
    %414 = arith.mulf %408, %412 : vector<8x128xf32>
    %415 = arith.addf %413, %414 : vector<8x128xf32>
    %416 = math.tanh %415 : vector<8x128xf32>
    %417 = arith.mulf %410, %416 : vector<8x128xf32>
    %418 = arith.truncf %417 : vector<8x128xf32> to vector<8x128xbf16>
    %cst_99 = arith.constant dense<0.000000e+00> : vector<8x512xf32>
    %419 = tpu.matmul %395, %2, %cst_99 {dimension_numbers = #tpu.dot_dimension_numbers<[1], [0], [0], [1], [0, 0, 1, 1], [], []>} : vector<8x128xbf16>, vector<128x512xbf16>, vector<8x512xf32> -> vector<8x512xf32>
    %420 = arith.addf %11, %419 : vector<8x512xf32>
    %421 = arith.truncf %371 : vector<8x128xf32> to vector<8x128xbf16>
    %cst_100 = arith.constant dense<0.000000e+00> : vector<8x512xf32>
    %422 = tpu.matmul %421, %5, %cst_100 {dimension_numbers = #tpu.dot_dimension_numbers<[1], [0], [0], [1], [0, 0, 1, 1], [], []>} : vector<8x128xbf16>, vector<128x512xbf16>, vector<8x512xf32> -> vector<8x512xf32>
    %423 = arith.addf %420, %422 : vector<8x512xf32>
    %424 = vector.extract_strided_slice %423 {offsets = [0, 0], sizes = [8, 384], strides = [1, 1]} : vector<8x512xf32> to vector<8x384xf32>
    %cst_101 = arith.constant 5.000000e-01 : f32
    %425 = vector.broadcast %cst_101 : f32 to vector<8x384xf32>
    %426 = arith.mulf %425, %424 : vector<8x384xf32>
    %427 = math.tanh %426 : vector<8x384xf32>
    %cst_102 = arith.constant 1.000000e+00 : f32
    %428 = vector.broadcast %cst_102 : f32 to vector<8x384xf32>
    %429 = arith.addf %428, %427 : vector<8x384xf32>
    %cst_103 = arith.constant 5.000000e-01 : f32
    %430 = vector.broadcast %cst_103 : f32 to vector<8x384xf32>
    %431 = arith.mulf %430, %429 : vector<8x384xf32>
    %432 = vector.extract_strided_slice %431 {offsets = [0, 0], sizes = [8, 128], strides = [1, 1]} : vector<8x384xf32> to vector<8x128xf32>
    %433 = vector.extract_strided_slice %431 {offsets = [0, 128], sizes = [8, 128], strides = [1, 1]} : vector<8x384xf32> to vector<8x128xf32>
    %434 = vector.extract_strided_slice %431 {offsets = [0, 256], sizes = [8, 128], strides = [1, 1]} : vector<8x384xf32> to vector<8x128xf32>
    %435 = vector.extract_strided_slice %423 {offsets = [0, 384], sizes = [8, 128], strides = [1, 1]} : vector<8x512xf32> to vector<8x128xf32>
    %436 = math.tanh %435 : vector<8x128xf32>
    %437 = arith.mulf %433, %369 : vector<8x128xf32>
    %438 = arith.mulf %432, %436 : vector<8x128xf32>
    %439 = arith.addf %437, %438 : vector<8x128xf32>
    %440 = math.tanh %439 : vector<8x128xf32>
    %441 = arith.mulf %434, %440 : vector<8x128xf32>
    %cst_104 = arith.constant dense<0.000000e+00> : vector<8x512xf32>
    %442 = tpu.matmul %418, %1, %cst_104 {dimension_numbers = #tpu.dot_dimension_numbers<[1], [0], [0], [1], [0, 0, 1, 1], [], []>} : vector<8x128xbf16>, vector<128x512xbf16>, vector<8x512xf32> -> vector<8x512xf32>
    %443 = arith.addf %8, %442 : vector<8x512xf32>
    %444 = arith.truncf %394 : vector<8x128xf32> to vector<8x128xbf16>
    %cst_105 = arith.constant dense<0.000000e+00> : vector<8x512xf32>
    %445 = tpu.matmul %444, %4, %cst_105 {dimension_numbers = #tpu.dot_dimension_numbers<[1], [0], [0], [1], [0, 0, 1, 1], [], []>} : vector<8x128xbf16>, vector<128x512xbf16>, vector<8x512xf32> -> vector<8x512xf32>
    %446 = arith.addf %443, %445 : vector<8x512xf32>
    %447 = vector.extract_strided_slice %446 {offsets = [0, 0], sizes = [8, 384], strides = [1, 1]} : vector<8x512xf32> to vector<8x384xf32>
    %cst_106 = arith.constant 5.000000e-01 : f32
    %448 = vector.broadcast %cst_106 : f32 to vector<8x384xf32>
    %449 = arith.mulf %448, %447 : vector<8x384xf32>
    %450 = math.tanh %449 : vector<8x384xf32>
    %cst_107 = arith.constant 1.000000e+00 : f32
    %451 = vector.broadcast %cst_107 : f32 to vector<8x384xf32>
    %452 = arith.addf %451, %450 : vector<8x384xf32>
    %cst_108 = arith.constant 5.000000e-01 : f32
    %453 = vector.broadcast %cst_108 : f32 to vector<8x384xf32>
    %454 = arith.mulf %453, %452 : vector<8x384xf32>
    %455 = vector.extract_strided_slice %454 {offsets = [0, 0], sizes = [8, 128], strides = [1, 1]} : vector<8x384xf32> to vector<8x128xf32>
    %456 = vector.extract_strided_slice %454 {offsets = [0, 128], sizes = [8, 128], strides = [1, 1]} : vector<8x384xf32> to vector<8x128xf32>
    %457 = vector.extract_strided_slice %454 {offsets = [0, 256], sizes = [8, 128], strides = [1, 1]} : vector<8x384xf32> to vector<8x128xf32>
    %458 = vector.extract_strided_slice %446 {offsets = [0, 384], sizes = [8, 128], strides = [1, 1]} : vector<8x512xf32> to vector<8x128xf32>
    %459 = math.tanh %458 : vector<8x128xf32>
    %460 = arith.mulf %456, %392 : vector<8x128xf32>
    %461 = arith.mulf %455, %459 : vector<8x128xf32>
    %462 = arith.addf %460, %461 : vector<8x128xf32>
    %463 = math.tanh %462 : vector<8x128xf32>
    %464 = arith.mulf %457, %463 : vector<8x128xf32>
    %465 = arith.truncf %464 : vector<8x128xf32> to vector<8x128xbf16>
    %466 = vector.extract_strided_slice %16 {offsets = [56, 0], sizes = [8, 512], strides = [1, 1]} : vector<64x512xf32> to vector<8x512xf32>
    %467 = arith.truncf %417 : vector<8x128xf32> to vector<8x128xbf16>
    %cst_109 = arith.constant dense<0.000000e+00> : vector<8x512xf32>
    %468 = tpu.matmul %467, %3, %cst_109 {dimension_numbers = #tpu.dot_dimension_numbers<[1], [0], [0], [1], [0, 0, 1, 1], [], []>} : vector<8x128xbf16>, vector<128x512xbf16>, vector<8x512xf32> -> vector<8x512xf32>
    %469 = arith.addf %466, %468 : vector<8x512xf32>
    %470 = vector.extract_strided_slice %469 {offsets = [0, 0], sizes = [8, 384], strides = [1, 1]} : vector<8x512xf32> to vector<8x384xf32>
    %cst_110 = arith.constant 5.000000e-01 : f32
    %471 = vector.broadcast %cst_110 : f32 to vector<8x384xf32>
    %472 = arith.mulf %471, %470 : vector<8x384xf32>
    %473 = math.tanh %472 : vector<8x384xf32>
    %cst_111 = arith.constant 1.000000e+00 : f32
    %474 = vector.broadcast %cst_111 : f32 to vector<8x384xf32>
    %475 = arith.addf %474, %473 : vector<8x384xf32>
    %cst_112 = arith.constant 5.000000e-01 : f32
    %476 = vector.broadcast %cst_112 : f32 to vector<8x384xf32>
    %477 = arith.mulf %476, %475 : vector<8x384xf32>
    %478 = vector.extract_strided_slice %477 {offsets = [0, 0], sizes = [8, 128], strides = [1, 1]} : vector<8x384xf32> to vector<8x128xf32>
    %479 = vector.extract_strided_slice %477 {offsets = [0, 128], sizes = [8, 128], strides = [1, 1]} : vector<8x384xf32> to vector<8x128xf32>
    %480 = vector.extract_strided_slice %477 {offsets = [0, 256], sizes = [8, 128], strides = [1, 1]} : vector<8x384xf32> to vector<8x128xf32>
    %481 = vector.extract_strided_slice %469 {offsets = [0, 384], sizes = [8, 128], strides = [1, 1]} : vector<8x512xf32> to vector<8x128xf32>
    %482 = math.tanh %481 : vector<8x128xf32>
    %483 = arith.mulf %479, %415 : vector<8x128xf32>
    %484 = arith.mulf %478, %482 : vector<8x128xf32>
    %485 = arith.addf %483, %484 : vector<8x128xf32>
    %486 = math.tanh %485 : vector<8x128xf32>
    %487 = arith.mulf %480, %486 : vector<8x128xf32>
    %488 = arith.truncf %487 : vector<8x128xf32> to vector<8x128xbf16>
    %cst_113 = arith.constant dense<0.000000e+00> : vector<8x512xf32>
    %489 = tpu.matmul %465, %2, %cst_113 {dimension_numbers = #tpu.dot_dimension_numbers<[1], [0], [0], [1], [0, 0, 1, 1], [], []>} : vector<8x128xbf16>, vector<128x512xbf16>, vector<8x512xf32> -> vector<8x512xf32>
    %490 = arith.addf %11, %489 : vector<8x512xf32>
    %491 = arith.truncf %441 : vector<8x128xf32> to vector<8x128xbf16>
    %cst_114 = arith.constant dense<0.000000e+00> : vector<8x512xf32>
    %492 = tpu.matmul %491, %5, %cst_114 {dimension_numbers = #tpu.dot_dimension_numbers<[1], [0], [0], [1], [0, 0, 1, 1], [], []>} : vector<8x128xbf16>, vector<128x512xbf16>, vector<8x512xf32> -> vector<8x512xf32>
    %493 = arith.addf %490, %492 : vector<8x512xf32>
    %494 = vector.extract_strided_slice %493 {offsets = [0, 0], sizes = [8, 384], strides = [1, 1]} : vector<8x512xf32> to vector<8x384xf32>
    %cst_115 = arith.constant 5.000000e-01 : f32
    %495 = vector.broadcast %cst_115 : f32 to vector<8x384xf32>
    %496 = arith.mulf %495, %494 : vector<8x384xf32>
    %497 = math.tanh %496 : vector<8x384xf32>
    %cst_116 = arith.constant 1.000000e+00 : f32
    %498 = vector.broadcast %cst_116 : f32 to vector<8x384xf32>
    %499 = arith.addf %498, %497 : vector<8x384xf32>
    %cst_117 = arith.constant 5.000000e-01 : f32
    %500 = vector.broadcast %cst_117 : f32 to vector<8x384xf32>
    %501 = arith.mulf %500, %499 : vector<8x384xf32>
    %502 = vector.extract_strided_slice %501 {offsets = [0, 0], sizes = [8, 128], strides = [1, 1]} : vector<8x384xf32> to vector<8x128xf32>
    %503 = vector.extract_strided_slice %501 {offsets = [0, 128], sizes = [8, 128], strides = [1, 1]} : vector<8x384xf32> to vector<8x128xf32>
    %504 = vector.extract_strided_slice %501 {offsets = [0, 256], sizes = [8, 128], strides = [1, 1]} : vector<8x384xf32> to vector<8x128xf32>
    %505 = vector.extract_strided_slice %493 {offsets = [0, 384], sizes = [8, 128], strides = [1, 1]} : vector<8x512xf32> to vector<8x128xf32>
    %506 = math.tanh %505 : vector<8x128xf32>
    %507 = arith.mulf %503, %439 : vector<8x128xf32>
    %508 = arith.mulf %502, %506 : vector<8x128xf32>
    %509 = arith.addf %507, %508 : vector<8x128xf32>
    %510 = math.tanh %509 : vector<8x128xf32>
    %511 = arith.mulf %504, %510 : vector<8x128xf32>
    %cst_118 = arith.constant dense<0.000000e+00> : vector<8x512xf32>
    %512 = tpu.matmul %488, %1, %cst_118 {dimension_numbers = #tpu.dot_dimension_numbers<[1], [0], [0], [1], [0, 0, 1, 1], [], []>} : vector<8x128xbf16>, vector<128x512xbf16>, vector<8x512xf32> -> vector<8x512xf32>
    %513 = arith.addf %8, %512 : vector<8x512xf32>
    %514 = arith.truncf %464 : vector<8x128xf32> to vector<8x128xbf16>
    %cst_119 = arith.constant dense<0.000000e+00> : vector<8x512xf32>
    %515 = tpu.matmul %514, %4, %cst_119 {dimension_numbers = #tpu.dot_dimension_numbers<[1], [0], [0], [1], [0, 0, 1, 1], [], []>} : vector<8x128xbf16>, vector<128x512xbf16>, vector<8x512xf32> -> vector<8x512xf32>
    %516 = arith.addf %513, %515 : vector<8x512xf32>
    %517 = vector.extract_strided_slice %516 {offsets = [0, 0], sizes = [8, 384], strides = [1, 1]} : vector<8x512xf32> to vector<8x384xf32>
    %cst_120 = arith.constant 5.000000e-01 : f32
    %518 = vector.broadcast %cst_120 : f32 to vector<8x384xf32>
    %519 = arith.mulf %518, %517 : vector<8x384xf32>
    %520 = math.tanh %519 : vector<8x384xf32>
    %cst_121 = arith.constant 1.000000e+00 : f32
    %521 = vector.broadcast %cst_121 : f32 to vector<8x384xf32>
    %522 = arith.addf %521, %520 : vector<8x384xf32>
    %cst_122 = arith.constant 5.000000e-01 : f32
    %523 = vector.broadcast %cst_122 : f32 to vector<8x384xf32>
    %524 = arith.mulf %523, %522 : vector<8x384xf32>
    %525 = vector.extract_strided_slice %524 {offsets = [0, 0], sizes = [8, 128], strides = [1, 1]} : vector<8x384xf32> to vector<8x128xf32>
    %526 = vector.extract_strided_slice %524 {offsets = [0, 128], sizes = [8, 128], strides = [1, 1]} : vector<8x384xf32> to vector<8x128xf32>
    %527 = vector.extract_strided_slice %524 {offsets = [0, 256], sizes = [8, 128], strides = [1, 1]} : vector<8x384xf32> to vector<8x128xf32>
    %528 = vector.extract_strided_slice %516 {offsets = [0, 384], sizes = [8, 128], strides = [1, 1]} : vector<8x512xf32> to vector<8x128xf32>
    %529 = math.tanh %528 : vector<8x128xf32>
    %530 = arith.mulf %526, %462 : vector<8x128xf32>
    %531 = arith.mulf %525, %529 : vector<8x128xf32>
    %532 = arith.addf %530, %531 : vector<8x128xf32>
    %533 = math.tanh %532 : vector<8x128xf32>
    %534 = arith.mulf %527, %533 : vector<8x128xf32>
    %535 = arith.truncf %534 : vector<8x128xf32> to vector<8x128xbf16>
    %cst_123 = arith.constant dense<0.000000e+00> : vector<8x512xf32>
    %536 = tpu.matmul %535, %2, %cst_123 {dimension_numbers = #tpu.dot_dimension_numbers<[1], [0], [0], [1], [0, 0, 1, 1], [], []>} : vector<8x128xbf16>, vector<128x512xbf16>, vector<8x512xf32> -> vector<8x512xf32>
    %537 = arith.addf %11, %536 : vector<8x512xf32>
    %538 = arith.truncf %511 : vector<8x128xf32> to vector<8x128xbf16>
    %cst_124 = arith.constant dense<0.000000e+00> : vector<8x512xf32>
    %539 = tpu.matmul %538, %5, %cst_124 {dimension_numbers = #tpu.dot_dimension_numbers<[1], [0], [0], [1], [0, 0, 1, 1], [], []>} : vector<8x128xbf16>, vector<128x512xbf16>, vector<8x512xf32> -> vector<8x512xf32>
    %540 = arith.addf %537, %539 : vector<8x512xf32>
    %541 = vector.extract_strided_slice %540 {offsets = [0, 0], sizes = [8, 384], strides = [1, 1]} : vector<8x512xf32> to vector<8x384xf32>
    %cst_125 = arith.constant 5.000000e-01 : f32
    %542 = vector.broadcast %cst_125 : f32 to vector<8x384xf32>
    %543 = arith.mulf %542, %541 : vector<8x384xf32>
    %544 = math.tanh %543 : vector<8x384xf32>
    %cst_126 = arith.constant 1.000000e+00 : f32
    %545 = vector.broadcast %cst_126 : f32 to vector<8x384xf32>
    %546 = arith.addf %545, %544 : vector<8x384xf32>
    %cst_127 = arith.constant 5.000000e-01 : f32
    %547 = vector.broadcast %cst_127 : f32 to vector<8x384xf32>
    %548 = arith.mulf %547, %546 : vector<8x384xf32>
    %549 = vector.extract_strided_slice %548 {offsets = [0, 0], sizes = [8, 128], strides = [1, 1]} : vector<8x384xf32> to vector<8x128xf32>
    %550 = vector.extract_strided_slice %548 {offsets = [0, 128], sizes = [8, 128], strides = [1, 1]} : vector<8x384xf32> to vector<8x128xf32>
    %551 = vector.extract_strided_slice %548 {offsets = [0, 256], sizes = [8, 128], strides = [1, 1]} : vector<8x384xf32> to vector<8x128xf32>
    %552 = vector.extract_strided_slice %540 {offsets = [0, 384], sizes = [8, 128], strides = [1, 1]} : vector<8x512xf32> to vector<8x128xf32>
    %553 = math.tanh %552 : vector<8x128xf32>
    %554 = arith.mulf %550, %509 : vector<8x128xf32>
    %555 = arith.mulf %549, %553 : vector<8x128xf32>
    %556 = arith.addf %554, %555 : vector<8x128xf32>
    %557 = math.tanh %556 : vector<8x128xf32>
    %558 = arith.mulf %551, %557 : vector<8x128xf32>
    %c0_128 = arith.constant 0 : index
    %c0_129 = arith.constant 0 : index
    %559 = vector.load %arg10[%c0_128, %c0_129] : memref<128x1xf32, #tpu.memory_space<vmem>>, vector<128x1xf32>
    %cst_130 = arith.constant dense<0.000000e+00> : vector<8x1xf32>
    %560 = tpu.matmul %558, %559, %cst_130 {dimension_numbers = #tpu.dot_dimension_numbers<[1], [0], [0], [1], [0, 0, 1, 1], [], []>} : vector<8x128xf32>, vector<128x1xf32>, vector<8x1xf32> -> vector<8x1xf32>
    %c0_131 = arith.constant 0 : index
    %c0_132 = arith.constant 0 : index
    %561 = vector.load %arg11[%c0_131, %c0_132] : memref<1x1xf32, #tpu.memory_space<vmem>>, vector<1x1xf32>
    %562 = vector.broadcast %561 : vector<1x1xf32> to vector<8x1xf32>
    %563 = arith.addf %560, %562 : vector<8x1xf32>
    %c0_133 = arith.constant 0 : index
    %c0_134 = arith.constant 0 : index
    %564 = vector.load %arg12[%c0_133, %c0_134] : memref<8x1xf32, #tpu.memory_space<vmem>>, vector<8x1xf32>
    tpu.vector_store %arg12[%c0_133, %c0_134], %563 {strides = array<i32>} : memref<8x1xf32, #tpu.memory_space<vmem>>, vector<8x1xf32>,
    return
  }
}

</mosaic_0001>

<bundles_post_ra>
// kernel: tpu_custom_call.1
= control target key start
LH: loop header
LB: loop body
LE: loop exit
PB: predicated region body
PF: predicated region fallthrough
CT: control target
= control target key end

     0   :  { %s9636_s0 = inlined_call_operand.vmem [shape: f32[64,16], index: 0, kind: input, shape index: {}]   ;;  %s9637_s1 = inlined_call_operand.vmem [shape: f32[16,512], index: 1, kind: input, shape index: {}]   ;;  %s9638_s2 = inlined_call_operand.hbm [shape: bf16[128,512], index: 2, kind: input, shape index: {}]   ;;  %s9639_s3 = inlined_call_operand.vmem [shape: f32[1,512], index: 3, kind: input, shape index: {}]   ;;  %s9640_s4 = inlined_call_operand.hbm [shape: bf16[128,512], index: 4, kind: input, shape index: {}]   ;;  %s9641_s5 = inlined_call_operand.hbm [shape: bf16[128,512], index: 5, kind: input, shape index: {}]   ;;  %s9642_s6 = inlined_call_operand.vmem [shape: f32[1,512], index: 6, kind: input, shape index: {}]   ;;  %s9643_s7 = inlined_call_operand.hbm [shape: bf16[128,512], index: 7, kind: input, shape index: {}]   ;;  %s9644_s8 = inlined_call_operand.hbm [shape: bf16[128,512], index: 8, kind: input, shape index: {}]   ;;  %s9645_s9 = inlined_call_operand.vmem [shape: f32[1,512], index: 9, kind: input, shape index: {}]   ;;  %s9646_s10 = inlined_call_operand.vmem [shape: f32[128,1], index: 10, kind: input, shape index: {}]   ;;  %s9647_s11 = inlined_call_operand.<no memory space> [shape: f32[1,1], index: 11, kind: input, shape index: {}]   ;;  %s9648_s12 = inlined_call_operand.vmem [shape: f32[8,1], index: 12, kind: output, shape index: {}]  }
   0x1   :  { %v17_v0 = vstv %s9647_s11 }
   0x2   :  { %18 = vst [vmem:[#allocation2] sm:$0x1] %v17_v0 }
   0x3   :  { %19 = vsyncpa [#allocation4], 0 }
   0x4   :  { %20 = vsyncpa [#allocation6], 0 }
   0x5   :  { %21 = vsyncpa [#allocation9], 0  ;;  %s6631_s23 = smov [#allocation5]   ;;  %s6632_s25 = smov [#allocation8]  }
   0x6   :  { %s45_s24 = sshll.u32 %s6631_s23, 4  ;;  %s71_s26 = sshll.u32 %s6632_s25, 4  ;;  %s46_s24 = int_to_ptr.vmem [resolvable:$true] %s45_s24  ;;  %s6710_s26 = int_to_ptr.vmem [resolvable:$true] %s71_s26 }
   0x7   :  { %s6515_s29 = scalar_lea.hbm %s9640_s4, 4096 }
   0x8   :  { %p6516_p0 = scmp.ne.s32.totalorder %s9640_s4, %s6515_s29  ;;  %p6519_p1 = scmp.lt.u32.totalorder %s6515_s29, %s9640_s4 }
   0xa   :  { %p6521_p2 = pnand %p6519_p1, %p6516_p0 }
   0xc   :  { %6524 = shalt.err (!%p6521_p2)
}
   0xd   :  { %s6525_s15 = scalar_lea.vmem %s46_s24, 4096  ;;  %p6530_p4 = scmp.lt.s32.totalorder %s46_s24, %s46_s24 }
   0xe   :  { %p6526_p3 = scmp.ne.s32.totalorder %s46_s24, %s6525_s15  ;;  %p6531_p5 = scmp.lt.s32.totalorder %s6525_s15, %s6525_s15 }
  0x10   :  { %p6532_p6 = por %p6531_p5, %p6530_p4 }
  0x12   :  { %p6533_p7 = pnand %p6532_p6, %p6526_p3 }
  0x14   :  { %6536 = shalt.err (!%p6533_p7)
}
  0x15   :  { %s6633_s16 = smov 256   ;;  %s6634_s17 = smov 16  }
  0x16   :  { %51 = dma.hbm_to_vmem [thread:$0]  %s9640_s4, 4096, %s46_s24, [#allocation6], %s6633_s16, %s6633_s16, %s6634_s17  }
  0x17   :  { %s6537_s22 = scalar_lea.hbm %s9643_s7, 4096 }
  0x18   :  { %p6538_p8 = scmp.ne.s32.totalorder %s9643_s7, %s6537_s22  ;;  %p6541_p9 = scmp.lt.u32.totalorder %s6537_s22, %s9643_s7 }
  0x1a   :  { %p6543_p10 = pnand %p6541_p9, %p6538_p8 }
  0x1c   :  { %6546 = shalt.err (!%p6543_p10)
}
  0x1d   :  { %s6547_s29 = scalar_lea.vmem %s6710_s26, 4096  ;;  %p6552_p12 = scmp.lt.s32.totalorder %s6710_s26, %s6710_s26 }
  0x1e   :  { %p6548_p11 = scmp.ne.s32.totalorder %s6710_s26, %s6547_s29  ;;  %p6553_p13 = scmp.lt.s32.totalorder %s6547_s29, %s6547_s29 }
  0x20   :  { %p6554_p0 = por %p6553_p13, %p6552_p12 }
  0x22   :  { %p6555_p1 = pnand %p6554_p0, %p6548_p11 }
  0x24   :  { %6558 = shalt.err (!%p6555_p1)
}
  0x25   :  { %77 = dma.hbm_to_vmem [thread:$0]  %s9643_s7, 4096, %s6710_s26, [#allocation9], %s6633_s16, %s6633_s16, %s6634_s17  }
  0x26   :  { %s6635_s30 = smov [#allocation3]   ;;  %s6636_s11 = smov [#allocation7]  }
  0x27   :  { %s31_s13 = sshll.u32 %s6635_s30, 4  ;;  %s57_s14 = sshll.u32 %s6636_s11, 4  ;;  %s32_s13 = int_to_ptr.vmem [resolvable:$true] %s31_s13  ;;  %s6747_s14 = int_to_ptr.vmem [resolvable:$true] %s57_s14 }
  0x28   :  { %s6559_s19 = scalar_lea.hbm %s9638_s2, 4096 }
  0x29   :  { %p6560_p2 = scmp.ne.s32.totalorder %s9638_s2, %s6559_s19  ;;  %p6563_p3 = scmp.lt.u32.totalorder %s6559_s19, %s9638_s2 }
  0x2b   :  { %p6565_p4 = pnand %p6563_p3, %p6560_p2 }
  0x2d   :  { %6568 = shalt.err (!%p6565_p4)
}
  0x2e   :  { %s6569_s7 = scalar_lea.vmem %s32_s13, 4096  ;;  %p6574_p6 = scmp.lt.s32.totalorder %s32_s13, %s32_s13 }
  0x2f   :  { %p6570_p5 = scmp.ne.s32.totalorder %s32_s13, %s6569_s7  ;;  %p6575_p7 = scmp.lt.s32.totalorder %s6569_s7, %s6569_s7 }
  0x31   :  { %p6576_p8 = por %p6575_p7, %p6574_p6 }
  0x33   :  { %p6577_p9 = pnand %p6576_p8, %p6570_p5 }
  0x35   :  { %6580 = shalt.err (!%p6577_p9)
}
  0x36   :  { %37 = dma.hbm_to_vmem [thread:$0]  %s9638_s2, 4096, %s32_s13, [#allocation4], %s6633_s16, %s6633_s16, %s6634_s17  }
  0x37   :  { %s6581_s29 = scalar_lea.hbm %s9641_s5, 4096 }
  0x38   :  { %p6582_p10 = scmp.ne.s32.totalorder %s9641_s5, %s6581_s29  ;;  %p6585_p11 = scmp.lt.u32.totalorder %s6581_s29, %s9641_s5 }
  0x3a   :  { %p6587_p12 = pnand %p6585_p11, %p6582_p10 }
  0x3c   :  { %6590 = shalt.err (!%p6587_p12)
}
  0x3d   :  { %s6591_s15 = scalar_lea.vmem %s6747_s14, 4096  ;;  %p6596_p0 = scmp.lt.s32.totalorder %s6747_s14, %s6747_s14 }
  0x3e   :  { %p6592_p13 = scmp.ne.s32.totalorder %s6747_s14, %s6591_s15  ;;  %p6597_p1 = scmp.lt.s32.totalorder %s6591_s15, %s6591_s15 }
  0x40   :  { %p6598_p2 = por %p6597_p1, %p6596_p0 }
  0x42   :  { %p6599_p3 = pnand %p6598_p2, %p6592_p13 }
  0x44   :  { %6602 = shalt.err (!%p6599_p3)
}
  0x45   :  { %63 = dma.hbm_to_vmem [thread:$0]  %s9641_s5, 4096, %s6747_s14, [#allocation6], %s6633_s16, %s6633_s16, %s6634_s17  }
  0x46   :  { %s6637_s18 = smov [#allocation10]   ;;  %s6603_s22 = scalar_lea.hbm %s9644_s8, 4096 }
  0x47   :  { %s83_s19 = sshll.u32 %s6637_s18, 4  ;;  %p6604_p4 = scmp.ne.s32.totalorder %s9644_s8, %s6603_s22  ;;  %s84_s19 = int_to_ptr.vmem [resolvable:$true] %s83_s19 }
  0x48   :  { %p6607_p5 = scmp.lt.u32.totalorder %s6603_s22, %s9644_s8 }
  0x4a   :  { %p6609_p6 = pnand %p6607_p5, %p6604_p4 }
  0x4c   :  { %6612 = shalt.err (!%p6609_p6)
}
  0x4d   :  { %s6613_s27 = scalar_lea.vmem %s84_s19, 4096  ;;  %p6618_p8 = scmp.lt.s32.totalorder %s84_s19, %s84_s19 }
  0x4e   :  { %p6614_p7 = scmp.ne.s32.totalorder %s84_s19, %s6613_s27  ;;  %p6619_p9 = scmp.lt.s32.totalorder %s6613_s27, %s6613_s27 }
  0x50   :  { %p6620_p10 = por %p6619_p9, %p6618_p8 }
  0x52   :  { %p6621_p11 = pnand %p6620_p10, %p6614_p7 }
  0x54   :  { %6624 = shalt.err (!%p6621_p11)
}
  0x55   :  { %89 = dma.hbm_to_vmem [thread:$0]  %s9644_s8, 4096, %s84_s19, [#allocation9], %s6633_s16, %s6633_s16, %s6634_s17  }
  0x56   :  { %6625 = dma.done.wait [#allocation4], 4096  }
  0x57   :  { %6626 = vsyncadd [#allocation4], 4294963200 }
  0x58   :  { %6627 = dma.done.wait [#allocation6], 8192  }
  0x59   :  { %6628 = vsyncadd [#allocation6], 4294959104 }
  0x5a   :  { %6629 = dma.done.wait [#allocation9], 8192  }
  0x5b   :  { %6630 = vsyncadd [#allocation9], 4294959104  ;;  %v9649_v1 = vmov 0.0   ;;  %v113_v2 = vld [vmem:[%s9637_s1 + $0x8] sm:$0xff]  ;;  %v112_v4 = vld [vmem:[%s9637_s1] sm:$0xff]  ;;  %vm354_vm0 = vcmask 130048   ;;  %v282_v57 = vlaneseq }
  0x5c   :  { %443 = vmatprep.mubr.f32.mxu0 %v9649_v1  ;;  %555 = vmatprep.mubr.f32.mxu1 %v9649_v1  ;;  %v117_v3 = vld [vmem:[%s9637_s1 + $0x28] sm:$0xff]  ;;  %v116_v6 = vld [vmem:[%s9637_s1 + $0x20] sm:$0xff]  ;;  %v115_v7 = vld [vmem:[%s9637_s1 + $0x18] sm:$0xff]  ;;  %v9650_v56 = vmov 0   ;;  %vm6641_vm1 = vmmov 0   ;;  %vm5112_vm2 = vcmask 7168  }
  0x5d   :  { %v5350_v5 = vpack.c.bf16 %v117_v3, %v113_v2  ;;  %v5352_v8 = vpack.c.bf16 %v116_v6, %v112_v4  ;;  %v119_v9 = vld [vmem:[%s9637_s1 + $0x38] sm:$0xff]  ;;  %v114_v10 = vld [vmem:[%s9637_s1 + $0x10] sm:$0xff]  ;;  %v324_v12 = vld [vmem:[%s9636_s0] sm:$0xff]  ;;  %v6983_v58 = vshrl.u32 %v282_v57, 7 }
  0x5e   :  { %v118_v11 = vld [vmem:[%s9637_s1 + $0x30] sm:$0xff]  ;;  %v5354_v13 = vpack.c.bf16 %v119_v9, %v115_v7  ;;  %v6838_v18 = vld [vmem:[#allocation5 + $0x8] ss:$16 sps:$4 sm:$0xff]   ;;  %v328_v36 = vld [vmem:[%s9636_s0 + $0x20] sm:$0xff] }
  0x5f   :  { %5351 = vmatprep.subr.bf16.mxu0 %v5350_v5  ;;  %v5356_v14 = vpack.c.bf16 %v118_v11, %v114_v10  ;;  %v6832_v15 = vld [vmem:[#allocation5 + $0x4] ss:$16 sps:$4 sm:$0xff]   ;;  %v6834_v16 = vld [vmem:[#allocation5 + $0xc] ss:$16 sps:$4 sm:$0xff]   ;;  %v6836_v17 = vld [vmem:[#allocation5] ss:$16 sps:$4 sm:$0xff]  }
  0x60   :  { %5353 = vmatpush1.bf16.msra.mxu0 %v5352_v8  ;;  %5355 = vmatprep.subr.bf16.mxu1 %v5354_v13  ;;  %v6844_v19 = vld [vmem:[#allocation5 + $0x24] ss:$16 sps:$4 sm:$0xff]   ;;  %v6846_v20 = vld [vmem:[#allocation5 + $0x2c] ss:$16 sps:$4 sm:$0xff]   ;;  %v6851_v22 = vld [vmem:[#allocation5 + $0x20] ss:$16 sps:$4 sm:$0xff]  }
  0x61   :  { %5357 = vmatpush1.bf16.msra.mxu1 %v5356_v14  ;;  %777 = vmatprep.subr.bf16.mxu0 %v6832_v15  ;;  %v325_v21 = vld [vmem:[%s9636_s0 + $0x8] sm:$0xff]  ;;  %v326_v26 = vld [vmem:[%s9636_s0 + $0x10] sm:$0xff]  ;;  %v327_v31 = vld [vmem:[%s9636_s0 + $0x18] sm:$0xff]  ;;  %v6986_v59 = vsub.s32 0, %v6983_v58  ;;  %v6994_v61 = vsub.s32 3, %v6983_v58  ;;  %v7001_v63 = vsub.s32 2, %v6983_v58 }
  0x62   :  { %817 = vmatprep.subr.bf16.mxu1 %v6834_v16  ;;  %v6853_v23 = vld [vmem:[#allocation5 + $0x28] ss:$16 sps:$4 sm:$0xff]   ;;  %v6861_v24 = vld [vmem:[#allocation5 + $0x44] ss:$16 sps:$4 sm:$0xff]   ;;  %v6863_v25 = vld [vmem:[#allocation5 + $0x4c] ss:$16 sps:$4 sm:$0xff]  }
  0x63   :  { %5121 = vmatmul.mubr.msk.f32.vlgmr.msra.gmra.mrb[0].mxu0 %vm354_vm0, %v324_v12  ;;  %v6870_v27 = vld [vmem:[#allocation5 + $0x40] ss:$16 sps:$4 sm:$0xff]   ;;  %v6872_v28 = vld [vmem:[#allocation5 + $0x48] ss:$16 sps:$4 sm:$0xff]   ;;  %v6880_v29 = vld [vmem:[#allocation5 + $0x64] ss:$16 sps:$4 sm:$0xff]  }
  0x64   :  { %448 = vmatprep.mubr.f32.mxu0 %v9649_v1  ;;  %5129 = vmatmul.mubr.msk.f32.vlgmr.msra.gmra.mrb[0].mxu1 %vm354_vm0, %v324_v12  ;;  %v6882_v30 = vld [vmem:[#allocation5 + $0x6c] ss:$16 sps:$4 sm:$0xff]   ;;  %v6889_v32 = vld [vmem:[#allocation5 + $0x60] ss:$16 sps:$4 sm:$0xff]   ;;  %v6891_v33 = vld [vmem:[#allocation5 + $0x68] ss:$16 sps:$4 sm:$0xff]  }
  0x65   :  { %561 = vmatprep.mubr.f32.mxu1 %v9649_v1  ;;  %778 = vmatpush1.bf16.msra.mxu0 %v6836_v17  ;;  %v6899_v34 = vld [vmem:[#allocation5 + $0x84] ss:$16 sps:$4 sm:$0xff]   ;;  %v6901_v35 = vld [vmem:[#allocation5 + $0x8c] ss:$16 sps:$4 sm:$0xff]   ;;  %v6908_v37 = vld [vmem:[#allocation5 + $0x80] ss:$16 sps:$4 sm:$0xff]  }
  0x66   :  { %818 = vmatpush1.bf16.msra.mxu1 %v6838_v18  ;;  %779 = vmatprep.subr.bf16.mxu0 %v6844_v19  ;;  %v6910_v38 = vld [vmem:[#allocation5 + $0x88] ss:$16 sps:$4 sm:$0xff]   ;;  %v6921_v40 = vld [vmem:[#allocation5 + $0xa4] ss:$16 sps:$4 sm:$0xff]   ;;  %v6923_v41 = vld [vmem:[#allocation5 + $0xac] ss:$16 sps:$4 sm:$0xff]  }
  0x67   :  { %5122 = vmatmul.mubr.msk.f32.gmra.mrb[2].mxu0 %vm354_vm0, %v325_v21  ;;  %819 = vmatprep.subr.bf16.mxu1 %v6846_v20  ;;  %v329_v39 = vld [vmem:[%s9636_s0 + $0x28] sm:$0xff]  ;;  %v6927_v42 = vld [vmem:[#allocation5 + $0xa0] ss:$16 sps:$4 sm:$0xff]   ;;  %v331_v50 = vld [vmem:[%s9636_s0 + $0x38] sm:$0xff]  ;;  %9987 = vst [vmem:[#allocation14_spill] sm:$0xff] %v6986_v59 }
  0x68   :  { %5130 = vmatmul.mubr.msk.f32.gmra.mrb[2].mxu1 %vm354_vm0, %v325_v21  ;;  %454 = vmatprep.mubr.f32.mxu0 %v9649_v1  ;;  %v6929_v43 = vld [vmem:[#allocation5 + $0xa8] ss:$16 sps:$4 sm:$0xff]   ;;  %v6933_v44 = vld [vmem:[#allocation5 + $0xc4] ss:$16 sps:$4 sm:$0xff]   ;;  %v6940_v46 = vld [vmem:[#allocation5 + $0xcc] ss:$16 sps:$4 sm:$0xff]  }
  0x69   :  { %780 = vmatpush1.bf16.msra.mxu0 %v6851_v22  ;;  %567 = vmatprep.mubr.f32.mxu1 %v9649_v1  ;;  %v330_v45 = vld [vmem:[%s9636_s0 + $0x30] sm:$0xff]  ;;  %v6946_v48 = vld [vmem:[#allocation5 + $0xc8] ss:$16 sps:$4 sm:$0xff]   ;;  %v6991_v60 = vld [vmem:[%s9639_s3] sm:$0xf]  ;;  %9988 = vst [vmem:[#allocation15_spill] sm:$0xff] %v6994_v61 }
  0x6a   :  { %820 = vmatpush1.bf16.msra.mxu1 %v6853_v23  ;;  %781 = vmatprep.subr.bf16.mxu0 %v6861_v24  ;;  %v6944_v47 = vld [vmem:[#allocation5 + $0xc0] ss:$16 sps:$4 sm:$0xff]   ;;  %v6952_v49 = vld [vmem:[#allocation5 + $0xe4] ss:$16 sps:$4 sm:$0xff]   ;;  %v6959_v51 = vld [vmem:[#allocation5 + $0xec] ss:$16 sps:$4 sm:$0xff]   ;;  %v6998_v62 = vrot.slane %v6991_v60, %v6986_v59  ;;  %v7005_v2 = vrot.slane %v6991_v60, %v6994_v61  ;;  %v7010_v5 = vrot.slane %v6991_v60, %v7001_v63 }
  0x6b   :  { %5123 = vmatmul.mubr.msk.f32.gmra.mrb[4].mxu0 %vm354_vm0, %v326_v26  ;;  %821 = vmatprep.subr.bf16.mxu1 %v6863_v25  ;;  %v6963_v52 = vld [vmem:[#allocation5 + $0xe0] ss:$16 sps:$4 sm:$0xff]   ;;  %v6965_v53 = vld [vmem:[#allocation5 + $0xe8] ss:$16 sps:$4 sm:$0xff]   ;;  %v6971_v54 = vld [vmem:[#allocation3 + $0x4] ss:$16 sps:$4 sm:$0xff]  }
  0x6c   :  { %5131 = vmatmul.mubr.msk.f32.gmra.mrb[4].mxu1 %vm354_vm0, %v326_v26  ;;  %460 = vmatprep.mubr.f32.mxu0 %v9649_v1  ;;  %v6973_v55 = vld [vmem:[#allocation3 + $0xc] ss:$16 sps:$4 sm:$0xff]   ;;  %9989 = vst [vmem:[#allocation16_spill] sm:$0xff] %v6998_v62  ;;  %9990 = vst [vmem:[#allocation17_spill] sm:$0xff] %v7001_v63  ;;  %v7017_v57 = vld [vmem:[#allocation3] ss:$16 sps:$4 sm:$0xff]  }
  0x6d   :  { %782 = vmatpush1.bf16.msra.mxu0 %v6870_v27  ;;  %573 = vmatprep.mubr.f32.mxu1 %v9649_v1  ;;  %9991 = vst [vmem:[#allocation18_spill] sm:$0xff] %v7005_v2  ;;  %9992 = vst [vmem:[#allocation19_spill] sm:$0xff] %v7010_v5 }
  0x6e   :  { %822 = vmatpush1.bf16.msra.mxu1 %v6872_v28  ;;  %783 = vmatprep.subr.bf16.mxu0 %v6880_v29 }
  0x6f   :  { %5124 = vmatmul.mubr.msk.f32.gmra.mrb[6].mxu0 %vm354_vm0, %v327_v31  ;;  %823 = vmatprep.subr.bf16.mxu1 %v6882_v30 }
  0x70   :  { %5132 = vmatmul.mubr.msk.f32.gmra.mrb[6].mxu1 %vm354_vm0, %v327_v31  ;;  %466 = vmatprep.mubr.f32.mxu0 %v9649_v1 }
  0x71   :  { %784 = vmatpush1.bf16.msra.mxu0 %v6889_v32  ;;  %579 = vmatprep.mubr.f32.mxu1 %v9649_v1 }
  0x72   :  { %824 = vmatpush1.bf16.msra.mxu1 %v6891_v33  ;;  %785 = vmatprep.subr.bf16.mxu0 %v6899_v34 }
  0x73   :  { %5125 = vmatmul.mubr.msk.f32.gmra.mrb[8].mxu0 %vm354_vm0, %v328_v36  ;;  %825 = vmatprep.subr.bf16.mxu1 %v6901_v35 }
  0x74   :  { %5133 = vmatmul.mubr.msk.f32.gmra.mrb[8].mxu1 %vm354_vm0, %v328_v36  ;;  %472 = vmatprep.mubr.f32.mxu0 %v9649_v1 }
  0x75   :  { %786 = vmatpush1.bf16.msra.mxu0 %v6908_v37  ;;  %585 = vmatprep.mubr.f32.mxu1 %v9649_v1 }
  0x76   :  { %826 = vmatpush1.bf16.msra.mxu1 %v6910_v38  ;;  %787 = vmatprep.subr.bf16.mxu0 %v6921_v40 }
  0x77   :  { %5126 = vmatmul.mubr.msk.f32.gmra.mrb[10].mxu0 %vm354_vm0, %v329_v39  ;;  %827 = vmatprep.subr.bf16.mxu1 %v6923_v41 }
  0x78   :  { %5134 = vmatmul.mubr.msk.f32.gmra.mrb[10].mxu1 %vm354_vm0, %v329_v39  ;;  %478 = vmatprep.mubr.f32.mxu0 %v9649_v1 }
  0x79   :  { %788 = vmatpush1.bf16.msra.mxu0 %v6927_v42  ;;  %591 = vmatprep.mubr.f32.mxu1 %v9649_v1 }
  0x7a   :  { %828 = vmatpush1.bf16.msra.mxu1 %v6929_v43  ;;  %789 = vmatprep.subr.bf16.mxu0 %v6933_v44 }
  0x7b   :  { %5127 = vmatmul.mubr.msk.f32.gmra.mrb[12].mxu0 %vm354_vm0, %v330_v45  ;;  %829 = vmatprep.subr.bf16.mxu1 %v6940_v46 }
  0x7c   :  { %5135 = vmatmul.mubr.msk.f32.gmra.mrb[12].mxu1 %vm354_vm0, %v330_v45  ;;  %484 = vmatprep.mubr.f32.mxu0 %v9649_v1 }
  0x7d   :  { %790 = vmatpush1.bf16.msra.mxu0 %v6944_v47  ;;  %597 = vmatprep.mubr.f32.mxu1 %v9649_v1  ;;  %v7075_v1 = vld [vmem:[#allocation3 + $0xa4] ss:$16 sps:$4 sm:$0xff]  }
  0x7e   :  { %830 = vmatpush1.bf16.msra.mxu1 %v6946_v48  ;;  %791 = vmatprep.subr.bf16.mxu0 %v6952_v49  ;;  %10009 = vst [vmem:[#allocation36_spill] sm:$0xff] %v7075_v1 }
  0x7f   :  { %5128 = vmatmul.mubr.msk.f32.gmra.mrb[14].mxu0 %vm354_vm0, %v331_v50  ;;  %831 = vmatprep.subr.bf16.mxu1 %v6959_v51 }
  0x80   :  { %5136 = vmatmul.mubr.msk.f32.gmra.mrb[14].mxu1 %vm354_vm0, %v331_v50  ;;  %809 = vmatprep.mubr.bf16.mxu0 %v9650_v56 }
  0x81   :  { %792 = vmatpush1.bf16.msra.mxu0 %v6963_v52  ;;  %849 = vmatprep.mubr.bf16.mxu1 %v9650_v56 }
  0x82   :  { %832 = vmatpush1.bf16.msra.mxu1 %v6965_v53  ;;  %1034 = vmatprep.subr.bf16.mxu0 %v6971_v54 }
  0x83   :  { %1075 = vmatprep.subr.bf16.mxu1 %v6973_v55 }
 0x136   :  { %v445_v0 = vpop.f32.mrb[0].mxu0 }
 0x137   :  { %v446_v3 = vadd.f32 %v445_v0, %v6998_v62  ;;  %v447_v4 = vpop.f32.mrb[1].mxu0  ;;  %v557_v6 = vpop.f32.mrb[0].mxu1  ;;  %v7019_v0 = vld [vmem:[#allocation3 + $0x8] ss:$16 sps:$4 sm:$0xff]  }
 0x138   :  { %v559_v8 = vpop.f32.mrb[1].mxu1  ;;  %v558_v10 = vadd.f32 %v557_v6, %v7010_v5  ;;  %v7023_v4 = vld [vmem:[#allocation3 + $0x24] ss:$16 sps:$4 sm:$0xff]   ;;  %v7025_v6 = vld [vmem:[#allocation3 + $0x2c] ss:$16 sps:$4 sm:$0xff]  }
 0x139   :  { %v604_v7 = vmul.f32 0.5, %v446_v3  ;;  %v560_v9 = vadd.f32 %v559_v8, %v7005_v2  ;;  %9993 = vst [vmem:[#allocation20_spill] sm:$0xff] %v7023_v4  ;;  %9994 = vst [vmem:[#allocation21_spill] sm:$0xff] %v7025_v6  ;;  %v7033_v8 = vld [vmem:[#allocation3 + $0x28] ss:$16 sps:$4 sm:$0xff]  }
 0x13a   :  { %v605_v11 = vmul.f32 0.5, %v558_v10  ;;  %9996 = vst [vmem:[#allocation23_spill] sm:$0xff] %v7033_v8  ;;  %v7039_v10 = vld [vmem:[#allocation3 + $0x4c] ss:$16 sps:$4 sm:$0xff]  }
 0x13b   :  { %5801 = vtanh.f32 %v604_v7  ;;  %v7031_v7 = vld [vmem:[#allocation3 + $0x20] ss:$16 sps:$4 sm:$0xff]   ;;  %9998 = vst [vmem:[#allocation25_spill] sm:$0xff] %v7039_v10 }
 0x13c   :  { %5803 = vtanh.f32 %v560_v9  ;;  %9995 = vst [vmem:[#allocation22_spill] sm:$0xff] %v7031_v7  ;;  %v7037_v9 = vld [vmem:[#allocation3 + $0x44] ss:$16 sps:$4 sm:$0xff]  }
 0x13d   :  { %5805 = vtanh.f32 %v605_v11  ;;  %9997 = vst [vmem:[#allocation24_spill] sm:$0xff] %v7037_v9  ;;  %v7045_v11 = vld [vmem:[#allocation3 + $0x40] ss:$16 sps:$4 sm:$0xff]  }
 0x13e   :  { %9999 = vst [vmem:[#allocation26_spill] sm:$0xff] %v7045_v11 }
 0x145   :  { %v5802_v12 = vpop.eup %5801 }
 0x146   :  { %v608_v13 = vadd.f32 1.0, %v5802_v12  ;;  %v5804_v14 = vpop.eup %5803  ;;  %v7047_v12 = vld [vmem:[#allocation3 + $0x48] ss:$16 sps:$4 sm:$0xff]  }
 0x147   :  { %v5806_v31 = vpop.eup %5805  ;;  %10000 = vst [vmem:[#allocation27_spill] sm:$0xff] %v7047_v12 }
 0x148   :  { %v610_v21 = vmul.f32 0.5, %v608_v13  ;;  %v609_v36 = vadd.f32 1.0, %v5806_v31  ;;  %v7051_v13 = vld [vmem:[#allocation3 + $0x64] ss:$16 sps:$4 sm:$0xff]   ;;  %v7059_v31 = vld [vmem:[#allocation3 + $0x68] ss:$16 sps:$4 sm:$0xff]  }
 0x149   :  { %10001 = vst [vmem:[#allocation28_spill] sm:$0xff] %v7051_v13  ;;  %10004 = vst [vmem:[#allocation31_spill] sm:$0xff] %v7059_v31 }
 0x14a   :  { %v7014_v26 = vmul.f32 %v5804_v14, %v610_v21  ;;  %v611_v39 = vmul.f32 0.5, %v609_v36  ;;  %v7053_v14 = vld [vmem:[#allocation3 + $0x6c] ss:$16 sps:$4 sm:$0xff]   ;;  %v7057_v21 = vld [vmem:[#allocation3 + $0x60] ss:$16 sps:$4 sm:$0xff]  }
 0x14b   :  { %10002 = vst [vmem:[#allocation29_spill] sm:$0xff] %v7053_v14  ;;  %10003 = vst [vmem:[#allocation30_spill] sm:$0xff] %v7057_v21  ;;  %v7063_v36 = vld [vmem:[#allocation3 + $0x84] ss:$16 sps:$4 sm:$0xff]  }
 0x14c   :  { %5807 = vtanh.f32 %v7014_v26  ;;  %10005 = vst [vmem:[#allocation32_spill] sm:$0xff] %v7063_v36 }
 0x156   :  { %v5808_v45 = vpop.eup %5807 }
 0x157   :  { %v615_v50 = vmul.f32 %v5808_v45, %v611_v39  ;;  %v7065_v39 = vld [vmem:[#allocation3 + $0x8c] ss:$16 sps:$4 sm:$0xff]   ;;  %v7069_v45 = vld [vmem:[#allocation3 + $0x80] ss:$16 sps:$4 sm:$0xff]  }
 0x158   :  { %10006 = vst [vmem:[#allocation33_spill] sm:$0xff] %v7065_v39  ;;  %10007 = vst [vmem:[#allocation34_spill] sm:$0xff] %v7069_v45 }
 0x159   :  { %v7021_v3 = vpack.c.bf16 %v615_v50, %v615_v50  ;;  %v7071_v50 = vld [vmem:[#allocation3 + $0x88] ss:$16 sps:$4 sm:$0xff]  }
 0x15a   :  { %10008 = vst [vmem:[#allocation35_spill] sm:$0xff] %v7071_v50 }
 0x15b   :  { %810 = vmatmul.mubr.bf16.vlgmr.msra.gmra.mrb[16].mxu0 %v7021_v3  ;;  %850 = vmatmul.mubr.bf16.vlgmr.msra.gmra.mrb[16].mxu1 %v7021_v3 }
 0x15c   :  { %1035 = vmatpush1.bf16.msra.mxu0 %v7017_v57  ;;  %1076 = vmatpush1.bf16.msra.mxu1 %v7019_v0 }
 0x15d   :  { %1036 = vmatprep.subr.bf16.mxu0 %v7023_v4  ;;  %1077 = vmatprep.subr.bf16.mxu1 %v7025_v6 }
 0x15e   :  { %1066 = vmatprep.mubr.bf16.mxu0 %v9650_v56  ;;  %1107 = vmatprep.mubr.bf16.mxu1 %v9650_v56  ;;  %v7077_v56 = vld [vmem:[#allocation3 + $0xac] ss:$16 sps:$4 sm:$0xff]  }
 0x15f   :  { %10010 = vst [vmem:[#allocation37_spill] sm:$0xff] %v7077_v56 }
 0x160   :  { %1037 = vmatpush1.bf16.msra.mxu0 %v7031_v7  ;;  %1078 = vmatpush1.bf16.msra.mxu1 %v7033_v8 }
 0x161   :  { %1038 = vmatprep.subr.bf16.mxu0 %v7037_v9  ;;  %1079 = vmatprep.subr.bf16.mxu1 %v7039_v10 }
 0x164   :  { %1039 = vmatpush1.bf16.msra.mxu0 %v7045_v11  ;;  %1080 = vmatpush1.bf16.msra.mxu1 %v7047_v12 }
 0x165   :  { %1040 = vmatprep.subr.bf16.mxu0 %v7051_v13  ;;  %1081 = vmatprep.subr.bf16.mxu1 %v7053_v14  ;;  %v7081_v14 = vld [vmem:[#allocation3 + $0xa0] ss:$16 sps:$4 sm:$0xff]  }
 0x166   :  { %10011 = vst [vmem:[#allocation38_spill] sm:$0xff] %v7081_v14 }
 0x168   :  { %1041 = vmatpush1.bf16.msra.mxu0 %v7057_v21  ;;  %1082 = vmatpush1.bf16.msra.mxu1 %v7059_v31  ;;  %v7083_v21 = vld [vmem:[#allocation3 + $0xa8] ss:$16 sps:$4 sm:$0xff]   ;;  %v7087_v31 = vld [vmem:[#allocation3 + $0xc4] ss:$16 sps:$4 sm:$0xff]  }
 0x169   :  { %1042 = vmatprep.subr.bf16.mxu0 %v7063_v36  ;;  %1083 = vmatprep.subr.bf16.mxu1 %v7065_v39  ;;  %10012 = vst [vmem:[#allocation39_spill] sm:$0xff] %v7083_v21  ;;  %10013 = vst [vmem:[#allocation40_spill] sm:$0xff] %v7087_v31  ;;  %v7089_v36 = vld [vmem:[#allocation3 + $0xcc] ss:$16 sps:$4 sm:$0xff]   ;;  %v7093_v39 = vld [vmem:[#allocation3 + $0xc0] ss:$16 sps:$4 sm:$0xff]  }
 0x16a   :  { %10014 = vst [vmem:[#allocation41_spill] sm:$0xff] %v7089_v36  ;;  %10015 = vst [vmem:[#allocation42_spill] sm:$0xff] %v7093_v39 }
 0x16c   :  { %1043 = vmatpush1.bf16.msra.mxu0 %v7069_v45  ;;  %1084 = vmatpush1.bf16.msra.mxu1 %v7071_v50  ;;  %v7095_v45 = vld [vmem:[#allocation3 + $0xc8] ss:$16 sps:$4 sm:$0xff]   ;;  %v7099_v50 = vld [vmem:[#allocation3 + $0xe4] ss:$16 sps:$4 sm:$0xff]  }
 0x16d   :  { %1044 = vmatprep.subr.bf16.mxu0 %v7075_v1  ;;  %1085 = vmatprep.subr.bf16.mxu1 %v7077_v56  ;;  %10016 = vst [vmem:[#allocation43_spill] sm:$0xff] %v7095_v45  ;;  %10017 = vst [vmem:[#allocation44_spill] sm:$0xff] %v7099_v50  ;;  %v7101_v1 = vld [vmem:[#allocation3 + $0xec] ss:$16 sps:$4 sm:$0xff]   ;;  %v7105_v56 = vld [vmem:[#allocation3 + $0xe0] ss:$16 sps:$4 sm:$0xff]  }
 0x16e   :  { %10018 = vst [vmem:[#allocation45_spill] sm:$0xff] %v7101_v1  ;;  %10019 = vst [vmem:[#allocation46_spill] sm:$0xff] %v7105_v56 }
 0x170   :  { %1045 = vmatpush1.bf16.msra.mxu0 %v7081_v14  ;;  %1086 = vmatpush1.bf16.msra.mxu1 %v7083_v21  ;;  %v7107_v14 = vld [vmem:[#allocation3 + $0xe8] ss:$16 sps:$4 sm:$0xff]  }
 0x171   :  { %1046 = vmatprep.subr.bf16.mxu0 %v7087_v31  ;;  %1087 = vmatprep.subr.bf16.mxu1 %v7089_v36  ;;  %10020 = vst [vmem:[#allocation47_spill] sm:$0xff] %v7107_v14  ;;  %v10021_v36 = vmov 0  }
 0x174   :  { %1047 = vmatpush1.bf16.msra.mxu0 %v7093_v39  ;;  %1088 = vmatpush1.bf16.msra.mxu1 %v7095_v45  ;;  %v7117_v45 = vpop.f32.mrb[2].mxu0  ;;  %v7120_v39 = vsub.s32 1, %v6983_v58 }
 0x175   :  { %1048 = vmatprep.subr.bf16.mxu0 %v7099_v50  ;;  %1089 = vmatprep.subr.bf16.mxu1 %v7101_v1  ;;  %v7122_v50 = vpop.f32.mrb[3].mxu0  ;;  %v7124_v1 = vpop.f32.mrb[2].mxu1 }
 0x176   :  { %10022 = vst [vmem:[#allocation48_spill] sm:$0xff] %v7120_v39 }
 0x178   :  { %1049 = vmatpush1.bf16.msra.mxu0 %v7105_v56  ;;  %1090 = vmatpush1.bf16.msra.mxu1 %v7107_v14  ;;  %v7126_v56 = vpop.f32.mrb[3].mxu1  ;;  %v7130_v14 = vrot.slane %v6991_v60, %v7120_v39 }
 0x179   :  { %v7134_v21 = vpop.f32.mrb[4].mxu1 }
 0x17a   :  { %10024 = vst [vmem:[#allocation50_spill] sm:$0xff] %v7134_v21  ;;  %v7139_v58 = vpop.f32.mrb[5].mxu1 }
 0x17b   :  { %1067 = vmatmul.mubr.bf16.vlgmr.msra.gmra.mrb[20].mxu0 %v7021_v3  ;;  %1108 = vmatmul.mubr.bf16.vlgmr.msra.gmra.mrb[20].mxu1 %v7021_v3  ;;  %v7132_v3 = vpop.f32.mrb[4].mxu0  ;;  %10026 = vst [vmem:[#allocation52_spill] sm:$0xff] %v7139_v58  ;;  %v7143_v10 = vpop.f32.mrb[6].mxu1 }
 0x17c   :  { %1331 = vmatprep.mubr.bf16.mxu0 %v10021_v36  ;;  %1371 = vmatprep.mubr.bf16.mxu1 %v10021_v36  ;;  %10023 = vst [vmem:[#allocation49_spill] sm:$0xff] %v7132_v3  ;;  %v458_v31 = vpop.f32.mrb[5].mxu0  ;;  %10028 = vst [vmem:[#allocation54_spill] sm:$0xff] %v7143_v10  ;;  %v7148_v60 = vpop.f32.mrb[7].mxu1 }
 0x17d   :  { %v7137_v13 = vadd.f32 %v458_v31, %v7130_v14  ;;  %v7141_v12 = vpop.f32.mrb[6].mxu0  ;;  %10030 = vst [vmem:[#allocation56_spill] sm:$0xff] %v7148_v60  ;;  %v7152_v8 = vpop.f32.mrb[8].mxu1 }
 0x17e   :  { %10027 = vst [vmem:[#allocation53_spill] sm:$0xff] %v7141_v12  ;;  %v464_v11 = vpop.f32.mrb[7].mxu0  ;;  %10032 = vst [vmem:[#allocation58_spill] sm:$0xff] %v7152_v8 }
 0x17f   :  { %10025 = vst [vmem:[#allocation51_spill] sm:$0xff] %v7137_v13  ;;  %v7146_v9 = vadd.f32 %v464_v11, %v7130_v14  ;;  %v7150_v39 = vpop.f32.mrb[8].mxu0  ;;  %v7157_v13 = vpop.f32.mrb[9].mxu1 }
 0x180   :  { %10031 = vst [vmem:[#allocation57_spill] sm:$0xff] %v7150_v39  ;;  %v470_v3 = vpop.f32.mrb[9].mxu0  ;;  %10034 = vst [vmem:[#allocation60_spill] sm:$0xff] %v7157_v13  ;;  %v7161_v21 = vpop.f32.mrb[10].mxu1 }
 0x181   :  { %10029 = vst [vmem:[#allocation55_spill] sm:$0xff] %v7146_v9  ;;  %v7155_v31 = vadd.f32 %v470_v3, %v7130_v14  ;;  %v7159_v58 = vpop.f32.mrb[10].mxu0  ;;  %10036 = vst [vmem:[#allocation62_spill] sm:$0xff] %v7161_v21  ;;  %v7166_v9 = vpop.f32.mrb[11].mxu1  ;;  %v7216_v21 = vld [vmem:[#allocation8 + $0x48] ss:$16 sps:$4 sm:$0xff]  }
 0x182   :  { %10035 = vst [vmem:[#allocation61_spill] sm:$0xff] %v7159_v58  ;;  %v476_v12 = vpop.f32.mrb[11].mxu0  ;;  %10038 = vst [vmem:[#allocation64_spill] sm:$0xff] %v7166_v9  ;;  %v7170_v10 = vpop.f32.mrb[12].mxu1  ;;  %v7186_v9 = vld [vmem:[#allocation8 + $0x4] ss:$16 sps:$4 sm:$0xff]  }
 0x183   :  { %10033 = vst [vmem:[#allocation59_spill] sm:$0xff] %v7155_v31  ;;  %v7164_v11 = vadd.f32 %v476_v12, %v7130_v14  ;;  %v7168_v60 = vpop.f32.mrb[12].mxu0  ;;  %10040 = vst [vmem:[#allocation66_spill] sm:$0xff] %v7170_v10  ;;  %v7175_v31 = vpop.f32.mrb[13].mxu1  ;;  %v7190_v10 = vld [vmem:[#allocation8] ss:$16 sps:$4 sm:$0xff]   ;;  %1299 = vmatprep.subr.bf16.mxu0 %v7186_v9 }
 0x184   :  { %10039 = vst [vmem:[#allocation65_spill] sm:$0xff] %v7168_v60  ;;  %v482_v39 = vpop.f32.mrb[13].mxu0  ;;  %10042 = vst [vmem:[#allocation68_spill] sm:$0xff] %v7175_v31  ;;  %v7179_v8 = vpop.f32.mrb[14].mxu1  ;;  %v7188_v60 = vld [vmem:[#allocation8 + $0xc] ss:$16 sps:$4 sm:$0xff]   ;;  %1300 = vmatpush1.bf16.msra.mxu0 %v7190_v10 }
 0x185   :  { %10037 = vst [vmem:[#allocation63_spill] sm:$0xff] %v7164_v11  ;;  %v7173_v3 = vadd.f32 %v482_v39, %v7130_v14  ;;  %v7177_v13 = vpop.f32.mrb[14].mxu0  ;;  %10044 = vst [vmem:[#allocation70_spill] sm:$0xff] %v7179_v8  ;;  %v7184_v11 = vpop.f32.mrb[15].mxu1  ;;  %v7192_v39 = vld [vmem:[#allocation8 + $0x8] ss:$16 sps:$4 sm:$0xff]   ;;  %1339 = vmatprep.subr.bf16.mxu1 %v7188_v60 }
 0x186   :  { %10043 = vst [vmem:[#allocation69_spill] sm:$0xff] %v7177_v13  ;;  %v488_v58 = vpop.f32.mrb[15].mxu0  ;;  %10046 = vst [vmem:[#allocation72_spill] sm:$0xff] %v7184_v11  ;;  %1340 = vmatpush1.bf16.msra.mxu1 %v7192_v39  ;;  %v7202_v11 = vld [vmem:[#allocation8 + $0x20] ss:$16 sps:$4 sm:$0xff]  }
 0x187   :  { %10041 = vst [vmem:[#allocation67_spill] sm:$0xff] %v7173_v3  ;;  %v7182_v12 = vadd.f32 %v488_v58, %v7130_v14  ;;  %10047 = vst [vmem:[#allocation73_spill] sm:$0xff] %v7186_v9  ;;  %v7198_v58 = vld [vmem:[#allocation8 + $0x24] ss:$16 sps:$4 sm:$0xff]   ;;  %v7204_v8 = vld [vmem:[#allocation8 + $0x28] ss:$16 sps:$4 sm:$0xff]  }
 0x188   :  { %10048 = vst [vmem:[#allocation74_spill] sm:$0xff] %v7188_v60  ;;  %10049 = vst [vmem:[#allocation75_spill] sm:$0xff] %v7190_v10  ;;  %1301 = vmatprep.subr.bf16.mxu0 %v7198_v58  ;;  %v7210_v13 = vld [vmem:[#allocation8 + $0x44] ss:$16 sps:$4 sm:$0xff]   ;;  %v7212_v3 = vld [vmem:[#allocation8 + $0x4c] ss:$16 sps:$4 sm:$0xff]  }
 0x189   :  { %10045 = vst [vmem:[#allocation71_spill] sm:$0xff] %v7182_v12  ;;  %10050 = vst [vmem:[#allocation76_spill] sm:$0xff] %v7192_v39  ;;  %v7200_v12 = vld [vmem:[#allocation8 + $0x2c] ss:$16 sps:$4 sm:$0xff]   ;;  %1302 = vmatpush1.bf16.msra.mxu0 %v7202_v11  ;;  %v7214_v31 = vld [vmem:[#allocation8 + $0x40] ss:$16 sps:$4 sm:$0xff]  }
 0x18a   :  { %10051 = vst [vmem:[#allocation77_spill] sm:$0xff] %v7198_v58  ;;  %10052 = vst [vmem:[#allocation78_spill] sm:$0xff] %v7200_v12  ;;  %1341 = vmatprep.subr.bf16.mxu1 %v7200_v12  ;;  %1303 = vmatprep.subr.bf16.mxu0 %v7210_v13  ;;  %v7222_v12 = vld [vmem:[#allocation8 + $0x64] ss:$16 sps:$4 sm:$0xff]   ;;  %v7228_v58 = vld [vmem:[#allocation8 + $0x68] ss:$16 sps:$4 sm:$0xff]  }
 0x18b   :  { %10053 = vst [vmem:[#allocation79_spill] sm:$0xff] %v7202_v11  ;;  %10054 = vst [vmem:[#allocation80_spill] sm:$0xff] %v7204_v8  ;;  %1342 = vmatpush1.bf16.msra.mxu1 %v7204_v8  ;;  %v7224_v11 = vld [vmem:[#allocation8 + $0x6c] ss:$16 sps:$4 sm:$0xff]   ;;  %v7226_v8 = vld [vmem:[#allocation8 + $0x60] ss:$16 sps:$4 sm:$0xff]  }
 0x18c   :  { %10055 = vst [vmem:[#allocation81_spill] sm:$0xff] %v7210_v13  ;;  %10056 = vst [vmem:[#allocation82_spill] sm:$0xff] %v7212_v3  ;;  %1343 = vmatprep.subr.bf16.mxu1 %v7212_v3  ;;  %v7234_v3 = vld [vmem:[#allocation8 + $0x84] ss:$16 sps:$4 sm:$0xff]   ;;  %v7240_v13 = vld [vmem:[#allocation8 + $0x88] ss:$16 sps:$4 sm:$0xff]  }
 0x18d   :  { %10057 = vst [vmem:[#allocation83_spill] sm:$0xff] %v7214_v31  ;;  %10058 = vst [vmem:[#allocation84_spill] sm:$0xff] %v7216_v21  ;;  %1304 = vmatpush1.bf16.msra.mxu0 %v7214_v31  ;;  %v7236_v31 = vld [vmem:[#allocation8 + $0x8c] ss:$16 sps:$4 sm:$0xff]   ;;  %v7244_v39 = vld [vmem:[#allocation8 + $0xa4] ss:$16 sps:$4 sm:$0xff]  }
 0x18e   :  { %10059 = vst [vmem:[#allocation85_spill] sm:$0xff] %v7222_v12  ;;  %10060 = vst [vmem:[#allocation86_spill] sm:$0xff] %v7224_v11  ;;  %1305 = vmatprep.subr.bf16.mxu0 %v7222_v12  ;;  %v7246_v12 = vld [vmem:[#allocation8 + $0xac] ss:$16 sps:$4 sm:$0xff]  }
 0x18f   :  { %1344 = vmatpush1.bf16.msra.mxu1 %v7216_v21  ;;  %10061 = vst [vmem:[#allocation87_spill] sm:$0xff] %v7226_v8  ;;  %10062 = vst [vmem:[#allocation88_spill] sm:$0xff] %v7228_v58  ;;  %v7238_v21 = vld [vmem:[#allocation8 + $0x80] ss:$16 sps:$4 sm:$0xff]  }
 0x190   :  { %1345 = vmatprep.subr.bf16.mxu1 %v7224_v11  ;;  %10063 = vst [vmem:[#allocation89_spill] sm:$0xff] %v7234_v3  ;;  %10064 = vst [vmem:[#allocation90_spill] sm:$0xff] %v7236_v31  ;;  %v7256_v11 = vld [vmem:[#allocation8 + $0xc4] ss:$16 sps:$4 sm:$0xff]  }
 0x191   :  { %1306 = vmatpush1.bf16.msra.mxu0 %v7226_v8  ;;  %10065 = vst [vmem:[#allocation91_spill] sm:$0xff] %v7238_v21  ;;  %10066 = vst [vmem:[#allocation92_spill] sm:$0xff] %v7240_v13  ;;  %v7252_v8 = vld [vmem:[#allocation8 + $0xa8] ss:$16 sps:$4 sm:$0xff]  }
 0x192   :  { %1307 = vmatprep.subr.bf16.mxu0 %v7234_v3  ;;  %10067 = vst [vmem:[#allocation93_spill] sm:$0xff] %v7244_v39  ;;  %10068 = vst [vmem:[#allocation94_spill] sm:$0xff] %v7246_v12  ;;  %v7258_v3 = vld [vmem:[#allocation8 + $0xcc] ss:$16 sps:$4 sm:$0xff]  }
 0x193   :  { %1346 = vmatpush1.bf16.msra.mxu1 %v7228_v58  ;;  %v7250_v58 = vld [vmem:[#allocation8 + $0xa0] ss:$16 sps:$4 sm:$0xff]   ;;  %10070 = vst [vmem:[#allocation96_spill] sm:$0xff] %v7252_v8  ;;  %10071 = vst [vmem:[#allocation97_spill] sm:$0xff] %v7256_v11 }
 0x194   :  { %1347 = vmatprep.subr.bf16.mxu1 %v7236_v31  ;;  %10069 = vst [vmem:[#allocation95_spill] sm:$0xff] %v7250_v58  ;;  %10072 = vst [vmem:[#allocation98_spill] sm:$0xff] %v7258_v3  ;;  %v7262_v31 = vld [vmem:[#allocation8 + $0xc0] ss:$16 sps:$4 sm:$0xff]  }
 0x195   :  { %1308 = vmatpush1.bf16.msra.mxu0 %v7238_v21  ;;  %10073 = vst [vmem:[#allocation99_spill] sm:$0xff] %v7262_v31  ;;  %v7264_v21 = vld [vmem:[#allocation8 + $0xc8] ss:$16 sps:$4 sm:$0xff]  }
 0x196   :  { %1309 = vmatprep.subr.bf16.mxu0 %v7244_v39  ;;  %10074 = vst [vmem:[#allocation100_spill] sm:$0xff] %v7264_v21  ;;  %v7272_v39 = vld [vmem:[#allocation8 + $0xec] ss:$16 sps:$4 sm:$0xff]  }
 0x197   :  { %1348 = vmatpush1.bf16.msra.mxu1 %v7240_v13  ;;  %10076 = vst [vmem:[#allocation102_spill] sm:$0xff] %v7272_v39  ;;  %v7274_v13 = vld [vmem:[#allocation8 + $0xe0] ss:$16 sps:$4 sm:$0xff]  }
 0x198   :  { %1349 = vmatprep.subr.bf16.mxu1 %v7246_v12  ;;  %v7270_v12 = vld [vmem:[#allocation8 + $0xe4] ss:$16 sps:$4 sm:$0xff]   ;;  %10077 = vst [vmem:[#allocation103_spill] sm:$0xff] %v7274_v13 }
 0x199   :  { %1310 = vmatpush1.bf16.msra.mxu0 %v7250_v58  ;;  %10075 = vst [vmem:[#allocation101_spill] sm:$0xff] %v7270_v12  ;;  %v7276_v58 = vld [vmem:[#allocation8 + $0xe8] ss:$16 sps:$4 sm:$0xff]  }
 0x19a   :  { %1311 = vmatprep.subr.bf16.mxu0 %v7256_v11  ;;  %10078 = vst [vmem:[#allocation104_spill] sm:$0xff] %v7276_v58 }
 0x19b   :  { %1350 = vmatpush1.bf16.msra.mxu1 %v7252_v8 }
 0x19c   :  { %1351 = vmatprep.subr.bf16.mxu1 %v7258_v3 }
 0x19d   :  { %1312 = vmatpush1.bf16.msra.mxu0 %v7262_v31 }
 0x19e   :  { %1313 = vmatprep.subr.bf16.mxu0 %v7270_v12 }
 0x19f   :  { %1352 = vmatpush1.bf16.msra.mxu1 %v7264_v21  ;;  %v7287_v21 = vld [vmem:[%s9642_s6] sm:$0xf] }
 0x1a0   :  { %1353 = vmatprep.subr.bf16.mxu1 %v7272_v39  ;;  %v7291_v31 = vrot.slane %v7287_v21, %v6986_v59 }
 0x1a1   :  { %1314 = vmatpush1.bf16.msra.mxu0 %v7274_v13 }
 0x1a2   :  { %1395 = vmatprep.subr.bf16.mxu0 %v6832_v15  ;;  %10079 = vst [vmem:[#allocation105_spill] sm:$0xff] %v7291_v31 }
 0x1a3   :  { %1354 = vmatpush1.bf16.msra.mxu1 %v7276_v58  ;;  %v7296_v58 = vrot.slane %v7287_v21, %v6994_v61 }
 0x1a4   :  { %1436 = vmatprep.subr.bf16.mxu1 %v6834_v16  ;;  %v7300_v16 = vrot.slane %v7287_v21, %v7001_v63 }
 0x1a5   :  { %10080 = vst [vmem:[#allocation106_spill] sm:$0xff] %v7296_v58 }
 0x1a6   :  { %10081 = vst [vmem:[#allocation107_spill] sm:$0xff] %v7300_v16 }
 0x22e   :  { %v811_v12 = vpop.f32.mrb[16].mxu0  ;;  %v851_v3 = vpop.f32.mrb[16].mxu1 }
 0x22f   :  { %v858_v39 = vadd.f32 %v811_v12, %v7291_v31  ;;  %v813_v13 = vpop.f32.mrb[17].mxu0  ;;  %v853_v15 = vpop.f32.mrb[17].mxu1  ;;  %v859_v12 = vadd.f32 %v851_v3, %v7300_v16  ;;  %v453_v3 = vadd.f32 %v7122_v50, %v7130_v14  ;;  %v7413_v50 = vld [vmem:[#allocation7 + $0x80] ss:$16 sps:$4 sm:$0xff]  }
 0x230   :  { %v814_v11 = vpop.f32.mrb[18].mxu0  ;;  %v855_v8 = vpop.f32.mrb[18].mxu1  ;;  %v860_v9 = vadd.f32 %v853_v15, %v7296_v58 }
 0x231   :  { %v861_v10 = vmul.f32 0.5, %v858_v39  ;;  %v815_v60 = vpop.f32.mrb[19].mxu0  ;;  %v856_v59 = vpop.f32.mrb[19].mxu1  ;;  %v862_v13 = vmul.f32 0.5, %v859_v12 }
 0x232   :  { %v451_v59 = vadd.f32 %v7117_v45, %v6998_v62 }
 0x233   :  { %5809 = vtanh.f32 %v861_v10  ;;  %v564_v10 = vadd.f32 %v7124_v1, %v7010_v5 }
 0x234   :  { %5811 = vtanh.f32 %v860_v9 }
 0x235   :  { %5813 = vtanh.f32 %v862_v13 }
 0x23d   :  { %v5810_v31 = vpop.eup %5809 }
 0x23e   :  { %v865_v61 = vadd.f32 1.0, %v5810_v31  ;;  %v5812_v6 = vpop.eup %5811 }
 0x23f   :  { %v5814_v8 = vpop.eup %5813 }
 0x240   :  { %v867_v7 = vmul.f32 0.5, %v865_v61  ;;  %v866_v11 = vadd.f32 1.0, %v5814_v8  ;;  %v566_v61 = vadd.f32 %v7126_v56, %v7005_v2 }
 0x242   :  { %v7304_v4 = vmul.f32 %v5812_v6, %v867_v7  ;;  %v868_v60 = vmul.f32 0.5, %v866_v11 }
 0x244   :  { %10082 = vst [vmem:[#allocation108_spill] sm:$0xff] %v7304_v4  ;;  %5815 = vtanh.f32 %v7304_v4 }
 0x24e   :  { %v5816_v9 = vpop.eup %5815  ;;  %v1068_v6 = vpop.f32.mrb[20].mxu0 }
 0x24f   :  { %v1109_v7 = vpop.f32.mrb[20].mxu1  ;;  %v1116_v31 = vadd.f32 %v1068_v6, %v451_v59  ;;  %v1070_v15 = vpop.f32.mrb[21].mxu0  ;;  %v872_v13 = vmul.f32 %v5816_v9, %v868_v60  ;;  %v7415_v59 = vld [vmem:[#allocation7 + $0x88] ss:$16 sps:$4 sm:$0xff]   ;;  %v7421_v60 = vld [vmem:[#allocation7 + $0xac] ss:$16 sps:$4 sm:$0xff]  }
 0x250   :  { %v1118_v39 = vadd.f32 %v1109_v7, %v564_v10  ;;  %v1111_v12 = vpop.f32.mrb[21].mxu1  ;;  %v1117_v8 = vadd.f32 %v1070_v15, %v453_v3  ;;  %v1072_v63 = vpop.f32.mrb[22].mxu0  ;;  %v7419_v10 = vld [vmem:[#allocation7 + $0xa4] ss:$16 sps:$4 sm:$0xff]   ;;  %v7425_v9 = vld [vmem:[#allocation7 + $0xa0] ss:$16 sps:$4 sm:$0xff]  }
 0x251   :  { %v1119_v45 = vadd.f32 %v1111_v12, %v566_v61  ;;  %v1113_v62 = vpop.f32.mrb[22].mxu1  ;;  %v1120_v1 = vmul.f32 0.5, %v1116_v31  ;;  %v1073_v11 = vpop.f32.mrb[23].mxu0  ;;  %v7315_v4 = vpack.c.bf16 %v872_v13, %v872_v13  ;;  %v7403_v63 = vld [vmem:[#allocation7 + $0x68] ss:$16 sps:$4 sm:$0xff]  }
 0x252   :  { %v1114_v5 = vpop.f32.mrb[23].mxu1  ;;  %v1121_v14 = vmul.f32 0.5, %v1117_v8  ;;  %v7401_v62 = vld [vmem:[#allocation7 + $0x60] ss:$16 sps:$4 sm:$0xff]   ;;  %v7427_v3 = vld [vmem:[#allocation7 + $0xa8] ss:$16 sps:$4 sm:$0xff]  }
 0x253   :  { %5817 = vtanh.f32 %v1120_v1  ;;  %1332 = vmatmul.mubr.bf16.vlgmr.msra.gmra.mrb[24].mxu0 %v7315_v4  ;;  %1372 = vmatmul.mubr.bf16.vlgmr.msra.gmra.mrb[24].mxu1 %v7315_v4  ;;  %v7407_v5 = vld [vmem:[#allocation7 + $0x84] ss:$16 sps:$4 sm:$0xff]   ;;  %v7433_v6 = vld [vmem:[#allocation7 + $0xcc] ss:$16 sps:$4 sm:$0xff]   ;;  %v7437_v7 = vld [vmem:[#allocation7 + $0xc0] ss:$16 sps:$4 sm:$0xff]  }
 0x254   :  { %1396 = vmatpush1.bf16.msra.mxu0 %v6836_v17  ;;  %1437 = vmatpush1.bf16.msra.mxu1 %v6838_v18  ;;  %5819 = vtanh.f32 %v1121_v14  ;;  %v1122_v17 = vmul.f32 0.5, %v1118_v39  ;;  %v7431_v61 = vld [vmem:[#allocation7 + $0xc4] ss:$16 sps:$4 sm:$0xff]   ;;  %v7439_v31 = vld [vmem:[#allocation7 + $0xc8] ss:$16 sps:$4 sm:$0xff]  }
 0x255   :  { %1397 = vmatprep.subr.bf16.mxu0 %v6844_v19  ;;  %1438 = vmatprep.subr.bf16.mxu1 %v6846_v20  ;;  %5821 = vtanh.f32 %v1119_v45  ;;  %v7443_v39 = vld [vmem:[#allocation7 + $0xe4] ss:$16 sps:$4 sm:$0xff]   ;;  %v7445_v15 = vld [vmem:[#allocation7 + $0xec] ss:$16 sps:$4 sm:$0xff]   ;;  %v7449_v12 = vld [vmem:[#allocation7 + $0xe0] ss:$16 sps:$4 sm:$0xff]  }
 0x256   :  { %1427 = vmatprep.mubr.bf16.mxu0 %v10021_v36  ;;  %1468 = vmatprep.mubr.bf16.mxu1 %v10021_v36  ;;  %5823 = vtanh.f32 %v1122_v17  ;;  %v7451_v13 = vld [vmem:[#allocation7 + $0xe8] ss:$16 sps:$4 sm:$0xff]   ;;  %v10083_v8 = vld [vmem:[#allocation20_spill] sm:$0xff]  ;;  %v10085_v1 = vld [vmem:[#allocation22_spill] sm:$0xff] }
 0x257   :  { %v10084_v45 = vld [vmem:[#allocation21_spill] sm:$0xff]  ;;  %v10093_v17 = vld [vmem:[#allocation30_spill] sm:$0xff] }
 0x258   :  { %1398 = vmatpush1.bf16.msra.mxu0 %v6851_v22  ;;  %1439 = vmatpush1.bf16.msra.mxu1 %v6853_v23  ;;  %v10088_v11 = vld [vmem:[#allocation25_spill] sm:$0xff] }
 0x259   :  { %1399 = vmatprep.subr.bf16.mxu0 %v6861_v24  ;;  %1440 = vmatprep.subr.bf16.mxu1 %v6863_v25  ;;  %v10092_v14 = vld [vmem:[#allocation29_spill] sm:$0xff] }
 0x25c   :  { %1400 = vmatpush1.bf16.msra.mxu0 %v6870_v27  ;;  %1441 = vmatpush1.bf16.msra.mxu1 %v6872_v28 }
 0x25d   :  { %v5818_v18 = vpop.eup %5817  ;;  %1401 = vmatprep.subr.bf16.mxu0 %v6880_v29  ;;  %1442 = vmatprep.subr.bf16.mxu1 %v6882_v30 }
 0x25e   :  { %v1126_v19 = vadd.f32 1.0, %v5818_v18  ;;  %v5820_v20 = vpop.eup %5819  ;;  %v10094_v18 = vld [vmem:[#allocation31_spill] sm:$0xff] }
 0x25f   :  { %v1127_v22 = vadd.f32 1.0, %v5820_v20  ;;  %v5822_v23 = vpop.eup %5821  ;;  %v10096_v20 = vld [vmem:[#allocation33_spill] sm:$0xff] }
 0x260   :  { %v1129_v56 = vmul.f32 0.5, %v1126_v19  ;;  %1402 = vmatpush1.bf16.msra.mxu0 %v6889_v32  ;;  %1443 = vmatpush1.bf16.msra.mxu1 %v6891_v33  ;;  %v5824_v29 = vpop.eup %5823  ;;  %v7353_v32 = vld [vmem:[#allocation7 + $0x4] ss:$16 sps:$4 sm:$0xff]   ;;  %v7355_v33 = vld [vmem:[#allocation7 + $0xc] ss:$16 sps:$4 sm:$0xff]  }
 0x261   :  { %1403 = vmatprep.subr.bf16.mxu0 %v6899_v34  ;;  %1444 = vmatprep.subr.bf16.mxu1 %v6901_v35  ;;  %v1130_v24 = vmul.f32 0.5, %v1127_v22  ;;  %v1128_v30 = vadd.f32 1.0, %v5824_v29  ;;  %v10095_v19 = vld [vmem:[#allocation32_spill] sm:$0xff]  ;;  %v10098_v22 = vld [vmem:[#allocation35_spill] sm:$0xff] }
 0x262   :  { %v1134_v25 = vmul.f32 %v5822_v23, %v1129_v56  ;;  %v10097_v56 = vld [vmem:[#allocation34_spill] sm:$0xff]  ;;  %v10099_v23 = vld [vmem:[#allocation36_spill] sm:$0xff] }
 0x263   :  { %v1133_v27 = vmul.f32 %v1130_v24, %v7014_v26  ;;  %v1131_v34 = vmul.f32 0.5, %v1128_v30  ;;  %v7409_v26 = vld [vmem:[#allocation7 + $0x8c] ss:$16 sps:$4 sm:$0xff]   ;;  %v10103_v29 = vld [vmem:[#allocation40_spill] sm:$0xff] }
 0x264   :  { %1404 = vmatpush1.bf16.msra.mxu0 %v6908_v37  ;;  %1445 = vmatpush1.bf16.msra.mxu1 %v6910_v38  ;;  %v7361_v38 = vld [vmem:[#allocation7] ss:$16 sps:$4 sm:$0xff]   ;;  %v10100_v24 = vld [vmem:[#allocation37_spill] sm:$0xff] }
 0x265   :  { %1405 = vmatprep.subr.bf16.mxu0 %v6921_v40  ;;  %1446 = vmatprep.subr.bf16.mxu1 %v6923_v41  ;;  %v7342_v28 = vadd.f32 %v1134_v25, %v1133_v27  ;;  %v7363_v40 = vld [vmem:[#allocation7 + $0x8] ss:$16 sps:$4 sm:$0xff]   ;;  %v10101_v25 = vld [vmem:[#allocation38_spill] sm:$0xff] }
 0x266   :  { %v10102_v27 = vld [vmem:[#allocation39_spill] sm:$0xff]  ;;  %v10104_v30 = vld [vmem:[#allocation41_spill] sm:$0xff] }
 0x267   :  { %5825 = vtanh.f32 %v7342_v28 }
 0x268   :  { %1406 = vmatpush1.bf16.msra.mxu0 %v6927_v42  ;;  %1447 = vmatpush1.bf16.msra.mxu1 %v6929_v43  ;;  %v7367_v42 = vld [vmem:[#allocation7 + $0x24] ss:$16 sps:$4 sm:$0xff]   ;;  %v7369_v43 = vld [vmem:[#allocation7 + $0x2c] ss:$16 sps:$4 sm:$0xff]  }
 0x269   :  { %1407 = vmatprep.subr.bf16.mxu0 %v6933_v44  ;;  %1448 = vmatprep.subr.bf16.mxu1 %v6940_v46  ;;  %v7375_v44 = vld [vmem:[#allocation7 + $0x20] ss:$16 sps:$4 sm:$0xff]   ;;  %v7377_v46 = vld [vmem:[#allocation7 + $0x28] ss:$16 sps:$4 sm:$0xff]  }
 0x26c   :  { %1408 = vmatpush1.bf16.msra.mxu0 %v6944_v47  ;;  %1449 = vmatpush1.bf16.msra.mxu1 %v6946_v48  ;;  %v7381_v47 = vld [vmem:[#allocation7 + $0x44] ss:$16 sps:$4 sm:$0xff]   ;;  %v7383_v48 = vld [vmem:[#allocation7 + $0x4c] ss:$16 sps:$4 sm:$0xff]  }
 0x26d   :  { %1409 = vmatprep.subr.bf16.mxu0 %v6952_v49  ;;  %1450 = vmatprep.subr.bf16.mxu1 %v6959_v51  ;;  %v7389_v49 = vld [vmem:[#allocation7 + $0x40] ss:$16 sps:$4 sm:$0xff]   ;;  %v7391_v51 = vld [vmem:[#allocation7 + $0x48] ss:$16 sps:$4 sm:$0xff]  }
 0x270   :  { %1410 = vmatpush1.bf16.msra.mxu0 %v6963_v52  ;;  %1451 = vmatpush1.bf16.msra.mxu1 %v6965_v53  ;;  %v7395_v52 = vld [vmem:[#allocation7 + $0x64] ss:$16 sps:$4 sm:$0xff]   ;;  %v7397_v53 = vld [vmem:[#allocation7 + $0x6c] ss:$16 sps:$4 sm:$0xff]  }
 0x271   :  { %1641 = vmatprep.subr.bf16.mxu0 %v7353_v32  ;;  %1682 = vmatprep.subr.bf16.mxu1 %v7355_v33  ;;  %v5826_v35 = vpop.eup %5825 }
 0x272   :  { %v1137_v37 = vmul.f32 %v5826_v35, %v1131_v34  ;;  %v10105_v34 = vld [vmem:[#allocation42_spill] sm:$0xff]  ;;  %v10106_v35 = vld [vmem:[#allocation43_spill] sm:$0xff] }
 0x274   :  { %v7365_v41 = vpack.c.bf16 %v1137_v37, %v1137_v37  ;;  %v10107_v37 = vld [vmem:[#allocation44_spill] sm:$0xff] }
 0x276   :  { %1428 = vmatmul.mubr.bf16.vlgmr.msra.gmra.mrb[28].mxu0 %v7365_v41  ;;  %1469 = vmatmul.mubr.bf16.vlgmr.msra.gmra.mrb[28].mxu1 %v7365_v41 }
 0x277   :  { %1642 = vmatpush1.bf16.msra.mxu0 %v7361_v38  ;;  %1683 = vmatpush1.bf16.msra.mxu1 %v7363_v40 }
 0x278   :  { %1643 = vmatprep.subr.bf16.mxu0 %v7367_v42  ;;  %1684 = vmatprep.subr.bf16.mxu1 %v7369_v43 }
 0x279   :  { %1673 = vmatprep.mubr.bf16.mxu0 %v10021_v36  ;;  %1714 = vmatprep.mubr.bf16.mxu1 %v10021_v36 }
 0x27b   :  { %1644 = vmatpush1.bf16.msra.mxu0 %v7375_v44  ;;  %1685 = vmatpush1.bf16.msra.mxu1 %v7377_v46 }
 0x27c   :  { %1645 = vmatprep.subr.bf16.mxu0 %v7381_v47  ;;  %1686 = vmatprep.subr.bf16.mxu1 %v7383_v48 }
 0x27f   :  { %1646 = vmatpush1.bf16.msra.mxu0 %v7389_v49  ;;  %1687 = vmatpush1.bf16.msra.mxu1 %v7391_v51 }
 0x280   :  { %1647 = vmatprep.subr.bf16.mxu0 %v7395_v52  ;;  %1688 = vmatprep.subr.bf16.mxu1 %v7397_v53 }
 0x283   :  { %1648 = vmatpush1.bf16.msra.mxu0 %v7401_v62  ;;  %1689 = vmatpush1.bf16.msra.mxu1 %v7403_v63 }
 0x284   :  { %1649 = vmatprep.subr.bf16.mxu0 %v7407_v5  ;;  %1690 = vmatprep.subr.bf16.mxu1 %v7409_v26 }
 0x287   :  { %1650 = vmatpush1.bf16.msra.mxu0 %v7413_v50  ;;  %1691 = vmatpush1.bf16.msra.mxu1 %v7415_v59 }
 0x288   :  { %1651 = vmatprep.subr.bf16.mxu0 %v7419_v10  ;;  %1692 = vmatprep.subr.bf16.mxu1 %v7421_v60 }
 0x28b   :  { %1652 = vmatpush1.bf16.msra.mxu0 %v7425_v9  ;;  %1693 = vmatpush1.bf16.msra.mxu1 %v7427_v3 }
 0x28c   :  { %1653 = vmatprep.subr.bf16.mxu0 %v7431_v61  ;;  %1694 = vmatprep.subr.bf16.mxu1 %v7433_v6 }
 0x28f   :  { %1654 = vmatpush1.bf16.msra.mxu0 %v7437_v7  ;;  %1695 = vmatpush1.bf16.msra.mxu1 %v7439_v31 }
 0x290   :  { %1655 = vmatprep.subr.bf16.mxu0 %v7443_v39  ;;  %1696 = vmatprep.subr.bf16.mxu1 %v7445_v15 }
 0x293   :  { %1656 = vmatpush1.bf16.msra.mxu0 %v7449_v12  ;;  %1697 = vmatpush1.bf16.msra.mxu1 %v7451_v13 }
 0x294   :  { %1746 = vmatprep.subr.bf16.mxu0 %v6971_v54  ;;  %1787 = vmatprep.subr.bf16.mxu1 %v6973_v55  ;;  %v10086_v54 = vld [vmem:[#allocation23_spill] sm:$0xff]  ;;  %v10087_v55 = vld [vmem:[#allocation24_spill] sm:$0xff] }
 0x296   :  { %1674 = vmatmul.mubr.bf16.vlgmr.msra.gmra.mrb[28].mxu0 %v7315_v4  ;;  %1715 = vmatmul.mubr.bf16.vlgmr.msra.gmra.mrb[28].mxu1 %v7315_v4  ;;  %v10089_v4 = vld [vmem:[#allocation26_spill] sm:$0xff] }
 0x297   :  { %1747 = vmatpush1.bf16.msra.mxu0 %v7017_v57  ;;  %1788 = vmatpush1.bf16.msra.mxu1 %v7019_v0  ;;  %v10090_v57 = vld [vmem:[#allocation27_spill] sm:$0xff]  ;;  %v10091_v0 = vld [vmem:[#allocation28_spill] sm:$0xff] }
 0x298   :  { %1748 = vmatprep.subr.bf16.mxu0 %v10083_v8  ;;  %1789 = vmatprep.subr.bf16.mxu1 %v10084_v45  ;;  %v10108_v8 = vld [vmem:[#allocation45_spill] sm:$0xff]  ;;  %v10109_v45 = vld [vmem:[#allocation46_spill] sm:$0xff] }
 0x299   :  { %1778 = vmatprep.mubr.bf16.mxu0 %v10021_v36  ;;  %1819 = vmatprep.mubr.bf16.mxu1 %v10021_v36 }
 0x29b   :  { %1749 = vmatpush1.bf16.msra.mxu0 %v10085_v1  ;;  %1790 = vmatpush1.bf16.msra.mxu1 %v10086_v54  ;;  %v10110_v1 = vld [vmem:[#allocation47_spill] sm:$0xff]  ;;  %v10111_v54 = vld [vmem:[#allocation73_spill] sm:$0xff] }
 0x29c   :  { %1750 = vmatprep.subr.bf16.mxu0 %v10087_v55  ;;  %1791 = vmatprep.subr.bf16.mxu1 %v10088_v11  ;;  %v10112_v55 = vld [vmem:[#allocation74_spill] sm:$0xff]  ;;  %v10113_v11 = vld [vmem:[#allocation75_spill] sm:$0xff] }
 0x29f   :  { %1751 = vmatpush1.bf16.msra.mxu0 %v10089_v4  ;;  %1792 = vmatpush1.bf16.msra.mxu1 %v10090_v57  ;;  %v10114_v4 = vld [vmem:[#allocation76_spill] sm:$0xff]  ;;  %v10115_v57 = vld [vmem:[#allocation77_spill] sm:$0xff] }
 0x2a0   :  { %1752 = vmatprep.subr.bf16.mxu0 %v10091_v0  ;;  %1793 = vmatprep.subr.bf16.mxu1 %v10092_v14  ;;  %v10116_v0 = vld [vmem:[#allocation78_spill] sm:$0xff]  ;;  %v10117_v14 = vld [vmem:[#allocation79_spill] sm:$0xff] }
 0x2a3   :  { %1753 = vmatpush1.bf16.msra.mxu0 %v10093_v17  ;;  %1794 = vmatpush1.bf16.msra.mxu1 %v10094_v18  ;;  %v10118_v17 = vld [vmem:[#allocation80_spill] sm:$0xff]  ;;  %v10119_v18 = vld [vmem:[#allocation81_spill] sm:$0xff] }
 0x2a4   :  { %1754 = vmatprep.subr.bf16.mxu0 %v10095_v19  ;;  %1795 = vmatprep.subr.bf16.mxu1 %v10096_v20  ;;  %v10120_v19 = vld [vmem:[#allocation82_spill] sm:$0xff]  ;;  %v10122_v20 = vld [vmem:[#allocation84_spill] sm:$0xff] }
 0x2a7   :  { %1755 = vmatpush1.bf16.msra.mxu0 %v10097_v56  ;;  %1796 = vmatpush1.bf16.msra.mxu1 %v10098_v22  ;;  %v10123_v56 = vld [vmem:[#allocation85_spill] sm:$0xff]  ;;  %v10124_v22 = vld [vmem:[#allocation86_spill] sm:$0xff] }
 0x2a8   :  { %1756 = vmatprep.subr.bf16.mxu0 %v10099_v23  ;;  %1797 = vmatprep.subr.bf16.mxu1 %v10100_v24  ;;  %v10125_v23 = vld [vmem:[#allocation87_spill] sm:$0xff]  ;;  %v10126_v24 = vld [vmem:[#allocation88_spill] sm:$0xff] }
 0x2ab   :  { %1757 = vmatpush1.bf16.msra.mxu0 %v10101_v25  ;;  %1798 = vmatpush1.bf16.msra.mxu1 %v10102_v27  ;;  %v10127_v25 = vld [vmem:[#allocation89_spill] sm:$0xff]  ;;  %v10128_v27 = vld [vmem:[#allocation90_spill] sm:$0xff] }
 0x2ac   :  { %1758 = vmatprep.subr.bf16.mxu0 %v10103_v29  ;;  %1799 = vmatprep.subr.bf16.mxu1 %v10104_v30  ;;  %v10129_v29 = vld [vmem:[#allocation91_spill] sm:$0xff]  ;;  %v10130_v30 = vld [vmem:[#allocation92_spill] sm:$0xff] }
 0x2af   :  { %1759 = vmatpush1.bf16.msra.mxu0 %v10105_v34  ;;  %1800 = vmatpush1.bf16.msra.mxu1 %v10106_v35  ;;  %v10131_v34 = vld [vmem:[#allocation93_spill] sm:$0xff]  ;;  %v10132_v35 = vld [vmem:[#allocation94_spill] sm:$0xff] }
 0x2b0   :  { %1760 = vmatprep.subr.bf16.mxu0 %v10107_v37  ;;  %1801 = vmatprep.subr.bf16.mxu1 %v10108_v8  ;;  %v10133_v37 = vld [vmem:[#allocation95_spill] sm:$0xff]  ;;  %v10134_v8 = vld [vmem:[#allocation96_spill] sm:$0xff] }
 0x2b3   :  { %1761 = vmatpush1.bf16.msra.mxu0 %v10109_v45  ;;  %1802 = vmatpush1.bf16.msra.mxu1 %v10110_v1  ;;  %v10135_v45 = vld [vmem:[#allocation97_spill] sm:$0xff]  ;;  %v10136_v1 = vld [vmem:[#allocation98_spill] sm:$0xff] }
 0x2b4   :  { %1851 = vmatprep.subr.bf16.mxu0 %v10111_v54  ;;  %1892 = vmatprep.subr.bf16.mxu1 %v10112_v55  ;;  %v10137_v54 = vld [vmem:[#allocation99_spill] sm:$0xff]  ;;  %v10138_v55 = vld [vmem:[#allocation100_spill] sm:$0xff] }
 0x2b6   :  { %1779 = vmatmul.mubr.bf16.vlgmr.msra.gmra.mrb[32].mxu0 %v7365_v41  ;;  %1820 = vmatmul.mubr.bf16.vlgmr.msra.gmra.mrb[32].mxu1 %v7365_v41  ;;  %v10121_v41 = vld [vmem:[#allocation83_spill] sm:$0xff] }
 0x2b7   :  { %1852 = vmatpush1.bf16.msra.mxu0 %v10113_v11  ;;  %1893 = vmatpush1.bf16.msra.mxu1 %v10114_v4  ;;  %v10139_v11 = vld [vmem:[#allocation101_spill] sm:$0xff]  ;;  %v10140_v4 = vld [vmem:[#allocation102_spill] sm:$0xff] }
 0x2b8   :  { %1853 = vmatprep.subr.bf16.mxu0 %v10115_v57  ;;  %1894 = vmatprep.subr.bf16.mxu1 %v10116_v0  ;;  %v10141_v57 = vld [vmem:[#allocation103_spill] sm:$0xff]  ;;  %v10142_v0 = vld [vmem:[#allocation104_spill] sm:$0xff] }
 0x2b9   :  { %1883 = vmatprep.mubr.bf16.mxu0 %v10021_v36  ;;  %1924 = vmatprep.mubr.bf16.mxu1 %v10021_v36 }
 0x2bb   :  { %1854 = vmatpush1.bf16.msra.mxu0 %v10117_v14  ;;  %1895 = vmatpush1.bf16.msra.mxu1 %v10118_v17  ;;  %v7529_v14 = vld [vmem:[#allocation10 + $0x4] ss:$16 sps:$4 sm:$0xff]   ;;  %v7531_v17 = vld [vmem:[#allocation10 + $0xc] ss:$16 sps:$4 sm:$0xff]  }
 0x2bc   :  { %1855 = vmatprep.subr.bf16.mxu0 %v10119_v18  ;;  %1896 = vmatprep.subr.bf16.mxu1 %v10120_v19  ;;  %v7538_v18 = vld [vmem:[%s9645_s9] sm:$0xf] }
 0x2bd   :  { %v10143_v19 = vld [vmem:[#allocation14_spill] sm:$0xff] }
 0x2bf   :  { %1856 = vmatpush1.bf16.msra.mxu0 %v10121_v41  ;;  %1897 = vmatpush1.bf16.msra.mxu1 %v10122_v20  ;;  %v7542_v41 = vrot.slane %v7538_v18, %v10143_v19 }
 0x2c0   :  { %1857 = vmatprep.subr.bf16.mxu0 %v10123_v56  ;;  %1898 = vmatprep.subr.bf16.mxu1 %v10124_v22 }
 0x2c1   :  { %10144 = vst [vmem:[#allocation20_spill] sm:$0xff] %v7542_v41 }
 0x2c3   :  { %1858 = vmatpush1.bf16.msra.mxu0 %v10125_v23  ;;  %1899 = vmatpush1.bf16.msra.mxu1 %v10126_v24  ;;  %v10145_v24 = vld [vmem:[#allocation15_spill] sm:$0xff] }
 0x2c4   :  { %1859 = vmatprep.subr.bf16.mxu0 %v10127_v25  ;;  %1900 = vmatprep.subr.bf16.mxu1 %v10128_v27  ;;  %v7549_v25 = vrot.slane %v7538_v18, %v10145_v24 }
 0x2c6   :  { %10146 = vst [vmem:[#allocation21_spill] sm:$0xff] %v7549_v25 }
 0x2c7   :  { %1860 = vmatpush1.bf16.msra.mxu0 %v10129_v29  ;;  %1901 = vmatpush1.bf16.msra.mxu1 %v10130_v30 }
 0x2c8   :  { %1861 = vmatprep.subr.bf16.mxu0 %v10131_v34  ;;  %1902 = vmatprep.subr.bf16.mxu1 %v10132_v35 }
 0x2cb   :  { %1862 = vmatpush1.bf16.msra.mxu0 %v10133_v37  ;;  %1903 = vmatpush1.bf16.msra.mxu1 %v10134_v8 }
 0x2cc   :  { %1863 = vmatprep.subr.bf16.mxu0 %v10135_v45  ;;  %1904 = vmatprep.subr.bf16.mxu1 %v10136_v1 }
 0x2cf   :  { %1864 = vmatpush1.bf16.msra.mxu0 %v10137_v54  ;;  %1905 = vmatpush1.bf16.msra.mxu1 %v10138_v55 }
 0x2d0   :  { %1865 = vmatprep.subr.bf16.mxu0 %v10139_v11  ;;  %1906 = vmatprep.subr.bf16.mxu1 %v10140_v4  ;;  %v10147_v4 = vld [vmem:[#allocation48_spill] sm:$0xff] }
 0x2d3   :  { %1866 = vmatpush1.bf16.msra.mxu0 %v10141_v57  ;;  %1907 = vmatpush1.bf16.msra.mxu1 %v10142_v0  ;;  %v7556_v57 = vrot.slane %v7287_v21, %v10147_v4 }
 0x2d4   :  { %2098 = vmatprep.subr.bf16.mxu0 %v7529_v14  ;;  %2139 = vmatprep.subr.bf16.mxu1 %v7531_v17 }
 0x2d5   :  { %10148 = vst [vmem:[#allocation22_spill] sm:$0xff] %v7556_v57 }
 0x326   :  { %v1333_v20 = vpop.f32.mrb[24].mxu0  ;;  %v7544_v56 = vpop.f32.mrb[24].mxu1 }
 0x327   :  { %v1380_v22 = vadd.f32 %v1333_v20, %v7542_v41  ;;  %v1335_v23 = vpop.f32.mrb[25].mxu0  ;;  %v1375_v27 = vpop.f32.mrb[25].mxu1  ;;  %v10149_v20 = vld [vmem:[#allocation105_spill] sm:$0xff] }
 0x328   :  { %v1336_v29 = vpop.f32.mrb[26].mxu0  ;;  %v1377_v30 = vpop.f32.mrb[26].mxu1  ;;  %v1382_v8 = vadd.f32 %v1375_v27, %v7549_v25 }
 0x329   :  { %v1383_v34 = vmul.f32 0.5, %v1380_v22  ;;  %v1337_v35 = vpop.f32.mrb[27].mxu0  ;;  %v1378_v37 = vpop.f32.mrb[27].mxu1 }
 0x32b   :  { %5827 = vtanh.f32 %v1383_v34 }
 0x32c   :  { %5829 = vtanh.f32 %v1382_v8 }
 0x335   :  { %v5828_v45 = vpop.eup %5827 }
 0x336   :  { %v1387_v1 = vadd.f32 1.0, %v5828_v45  ;;  %v5830_v55 = vpop.eup %5829 }
 0x338   :  { %v1389_v54 = vmul.f32 0.5, %v1387_v1 }
 0x33a   :  { %v7552_v11 = vmul.f32 %v5830_v55, %v1389_v54 }
 0x369   :  { %v1675_v0 = vpop.f32.mrb[28].mxu0  ;;  %v1716_v19 = vpop.f32.mrb[28].mxu1 }
 0x36a   :  { %v5382_v22 = vadd.f32 %v1675_v0, %v10149_v20  ;;  %v1677_v23 = vpop.f32.mrb[29].mxu0  ;;  %v1718_v24 = vpop.f32.mrb[29].mxu1  ;;  %v5384_v21 = vadd.f32 %v1716_v19, %v7300_v16 }
 0x36b   :  { %v5383_v29 = vadd.f32 %v1677_v23, %v7556_v57  ;;  %v1679_v27 = vpop.f32.mrb[30].mxu0  ;;  %v1720_v30 = vpop.f32.mrb[30].mxu1  ;;  %v5385_v45 = vadd.f32 %v1718_v24, %v7296_v58 }
 0x36c   :  { %v1727_v34 = vmul.f32 0.5, %v5382_v22  ;;  %v1680_v35 = vpop.f32.mrb[31].mxu0  ;;  %v1721_v37 = vpop.f32.mrb[31].mxu1  ;;  %v1729_v1 = vmul.f32 0.5, %v5384_v21  ;;  %v10155_v21 = vld [vmem:[#allocation50_spill] sm:$0xff] }
 0x36d   :  { %v1728_v8 = vmul.f32 0.5, %v5383_v29  ;;  %v10150_v35 = vld [vmem:[#allocation108_spill] sm:$0xff] }
 0x36e   :  { %5831 = vtanh.f32 %v1727_v34  ;;  %v10152_v34 = vld [vmem:[#allocation16_spill] sm:$0xff] }
 0x36f   :  { %5833 = vtanh.f32 %v1728_v8  ;;  %v10153_v8 = vld [vmem:[#allocation49_spill] sm:$0xff] }
 0x370   :  { %5835 = vtanh.f32 %v5385_v45  ;;  %v457_v19 = vadd.f32 %v10153_v8, %v10152_v34  ;;  %v10154_v45 = vld [vmem:[#allocation19_spill] sm:$0xff] }
 0x371   :  { %5837 = vtanh.f32 %v1729_v1  ;;  %v10156_v1 = vld [vmem:[#allocation52_spill] sm:$0xff] }
 0x378   :  { %v5832_v54 = vpop.eup %5831 }
 0x379   :  { %v1733_v55 = vadd.f32 1.0, %v5832_v54  ;;  %v5834_v0 = vpop.eup %5833  ;;  %v570_v54 = vadd.f32 %v10155_v21, %v10154_v45  ;;  %v10158_v45 = vld [vmem:[#allocation17_spill] sm:$0xff] }
 0x37a   :  { %v1734_v23 = vadd.f32 1.0, %v5834_v0  ;;  %v5836_v27 = vpop.eup %5835 }
 0x37b   :  { %v1736_v20 = vmul.f32 0.5, %v1733_v55  ;;  %v5838_v24 = vpop.eup %5837  ;;  %v572_v55 = vadd.f32 %v10156_v1, %v7005_v2  ;;  %v7577_v1 = vrot.slane %v7538_v18, %v10158_v45  ;;  %v7609_v45 = vld [vmem:[#allocation10 + $0x40] ss:$16 sps:$4 sm:$0xff]  }
 0x37c   :  { %v1737_v30 = vmul.f32 0.5, %v1734_v23  ;;  %v1735_v16 = vadd.f32 1.0, %v5838_v24  ;;  %10160 = vst [vmem:[#allocation25_spill] sm:$0xff] %v7609_v45 }
 0x37d   :  { %v1741_v22 = vmul.f32 %v5836_v27, %v1736_v20 }
 0x37e   :  { %v1740_v37 = vmul.f32 %v1737_v30, %v10150_v35  ;;  %v10157_v35 = vld [vmem:[#allocation51_spill] sm:$0xff]  ;;  %v1738_v8 = vmul.f32 0.5, %v1735_v16 }
 0x37f   :  { %v7587_v16 = vld [vmem:[#allocation10 + $0x2c] ss:$16 sps:$4 sm:$0xff]  }
 0x380   :  { %v7563_v29 = vadd.f32 %v1741_v22, %v1740_v37 }
 0x382   :  { %10151 = vst [vmem:[#allocation23_spill] sm:$0xff] %v7563_v29  ;;  %5839 = vtanh.f32 %v7563_v29 }
 0x389   :  { %v1780_v0 = vpop.f32.mrb[32].mxu0  ;;  %v1821_v23 = vpop.f32.mrb[32].mxu1 }
 0x38a   :  { %v1828_v20 = vadd.f32 %v1780_v0, %v457_v19  ;;  %v7572_v27 = vadd.f32 %v1821_v23, %v570_v54  ;;  %v1782_v30 = vpop.f32.mrb[33].mxu0  ;;  %v1823_v22 = vpop.f32.mrb[33].mxu1  ;;  %v7579_v54 = vld [vmem:[#allocation10] ss:$16 sps:$4 sm:$0xff]   ;;  %v7581_v0 = vld [vmem:[#allocation10 + $0x8] ss:$16 sps:$4 sm:$0xff]  }
 0x38b   :  { %v1829_v37 = vadd.f32 %v1782_v30, %v10157_v35  ;;  %v1831_v29 = vadd.f32 %v1823_v22, %v572_v55  ;;  %v1784_v58 = vpop.f32.mrb[34].mxu0  ;;  %v1825_v57 = vpop.f32.mrb[34].mxu1  ;;  %v7611_v23 = vld [vmem:[#allocation10 + $0x48] ss:$16 sps:$4 sm:$0xff]   ;;  %v7615_v30 = vld [vmem:[#allocation10 + $0x64] ss:$16 sps:$4 sm:$0xff]  }
 0x38c   :  { %v1832_v34 = vmul.f32 0.5, %v1828_v20  ;;  %v1785_v25 = vpop.f32.mrb[35].mxu0  ;;  %v1826_v21 = vpop.f32.mrb[35].mxu1  ;;  %v7585_v58 = vld [vmem:[#allocation10 + $0x24] ss:$16 sps:$4 sm:$0xff]   ;;  %10161 = vst [vmem:[#allocation26_spill] sm:$0xff] %v7611_v23 }
 0x38d   :  { %v5840_v24 = vpop.eup %5839  ;;  %v1833_v2 = vmul.f32 0.5, %v1829_v37  ;;  %v1381_v25 = vadd.f32 %v7544_v56, %v7577_v1  ;;  %v7595_v57 = vld [vmem:[#allocation10 + $0x20] ss:$16 sps:$4 sm:$0xff]   ;;  %v7603_v56 = vld [vmem:[#allocation10 + $0x4c] ss:$16 sps:$4 sm:$0xff]  }
 0x38e   :  { %5841 = vtanh.f32 %v1832_v34  ;;  %v1744_v19 = vmul.f32 %v5840_v24, %v1738_v8  ;;  %v7601_v34 = vld [vmem:[#allocation10 + $0x44] ss:$16 sps:$4 sm:$0xff]   ;;  %10159 = vst [vmem:[#allocation24_spill] sm:$0xff] %v7603_v56  ;;  %v7617_v22 = vld [vmem:[#allocation10 + $0x6c] ss:$16 sps:$4 sm:$0xff]  }
 0x38f   :  { %5843 = vtanh.f32 %v1833_v2  ;;  %v7597_v2 = vld [vmem:[#allocation10 + $0x28] ss:$16 sps:$4 sm:$0xff]   ;;  %10162 = vst [vmem:[#allocation27_spill] sm:$0xff] %v7617_v22  ;;  %v7621_v24 = vld [vmem:[#allocation10 + $0x60] ss:$16 sps:$4 sm:$0xff]  }
 0x390   :  { %v7583_v55 = vpack.c.bf16 %v1744_v19, %v1744_v19  ;;  %5845 = vtanh.f32 %v1831_v29  ;;  %v1384_v29 = vmul.f32 0.5, %v1381_v25  ;;  %v7623_v19 = vld [vmem:[#allocation10 + $0x68] ss:$16 sps:$4 sm:$0xff]  }
 0x391   :  { %10163 = vst [vmem:[#allocation28_spill] sm:$0xff] %v7623_v19 }
 0x392   :  { %1884 = vmatmul.mubr.bf16.vlgmr.msra.gmra.mrb[36].mxu0 %v7583_v55  ;;  %1925 = vmatmul.mubr.bf16.vlgmr.msra.gmra.mrb[36].mxu1 %v7583_v55  ;;  %5847 = vtanh.f32 %v1384_v29  ;;  %v7629_v29 = vld [vmem:[#allocation10 + $0x8c] ss:$16 sps:$4 sm:$0xff]  }
 0x393   :  { %2099 = vmatpush1.bf16.msra.mxu0 %v7579_v54  ;;  %2140 = vmatpush1.bf16.msra.mxu1 %v7581_v0  ;;  %10165 = vst [vmem:[#allocation30_spill] sm:$0xff] %v7629_v29  ;;  %5849 = vtanh.f32 %v7552_v11 }
 0x394   :  { %2100 = vmatprep.subr.bf16.mxu0 %v7585_v58  ;;  %2141 = vmatprep.subr.bf16.mxu1 %v7587_v16 }
 0x395   :  { %2130 = vmatprep.mubr.bf16.mxu0 %v10021_v36  ;;  %2171 = vmatprep.mubr.bf16.mxu1 %v10021_v36 }
 0x397   :  { %2101 = vmatpush1.bf16.msra.mxu0 %v7595_v57  ;;  %2142 = vmatpush1.bf16.msra.mxu1 %v7597_v2 }
 0x398   :  { %v5842_v20 = vpop.eup %5841  ;;  %2102 = vmatprep.subr.bf16.mxu0 %v7601_v34  ;;  %2143 = vmatprep.subr.bf16.mxu1 %v7603_v56  ;;  %v7627_v56 = vld [vmem:[#allocation10 + $0x84] ss:$16 sps:$4 sm:$0xff]  }
 0x399   :  { %v1838_v35 = vadd.f32 1.0, %v5842_v20  ;;  %v5844_v37 = vpop.eup %5843  ;;  %10164 = vst [vmem:[#allocation29_spill] sm:$0xff] %v7627_v56 }
 0x39a   :  { %v1839_v21 = vadd.f32 1.0, %v5844_v37  ;;  %v5846_v25 = vpop.eup %5845 }
 0x39b   :  { %v1841_v8 = vmul.f32 0.5, %v1838_v35  ;;  %2103 = vmatpush1.bf16.msra.mxu0 %v7609_v45  ;;  %2144 = vmatpush1.bf16.msra.mxu1 %v7611_v23  ;;  %v7635_v23 = vld [vmem:[#allocation10 + $0x80] ss:$16 sps:$4 sm:$0xff]   ;;  %v7637_v45 = vld [vmem:[#allocation10 + $0x88] ss:$16 sps:$4 sm:$0xff]  }
 0x39c   :  { %2104 = vmatprep.subr.bf16.mxu0 %v7615_v30  ;;  %2145 = vmatprep.subr.bf16.mxu1 %v7617_v22  ;;  %v1842_v20 = vmul.f32 0.5, %v1839_v21  ;;  %10166 = vst [vmem:[#allocation31_spill] sm:$0xff] %v7635_v23  ;;  %10167 = vst [vmem:[#allocation32_spill] sm:$0xff] %v7637_v45  ;;  %v7641_v22 = vld [vmem:[#allocation10 + $0xa4] ss:$16 sps:$4 sm:$0xff]  }
 0x39d   :  { %v1846_v35 = vmul.f32 %v5846_v25, %v1841_v8  ;;  %10168 = vst [vmem:[#allocation33_spill] sm:$0xff] %v7641_v22  ;;  %v7643_v21 = vld [vmem:[#allocation10 + $0xac] ss:$16 sps:$4 sm:$0xff]   ;;  %v5848_v25 = vpop.eup %5847 }
 0x39e   :  { %v1845_v37 = vmul.f32 %v1842_v20, %v7342_v28  ;;  %10169 = vst [vmem:[#allocation34_spill] sm:$0xff] %v7643_v21  ;;  %v7649_v28 = vld [vmem:[#allocation10 + $0xa0] ss:$16 sps:$4 sm:$0xff]   ;;  %v7651_v20 = vld [vmem:[#allocation10 + $0xa8] ss:$16 sps:$4 sm:$0xff]  }
 0x39f   :  { %2105 = vmatpush1.bf16.msra.mxu0 %v7621_v24  ;;  %2146 = vmatpush1.bf16.msra.mxu1 %v7623_v19  ;;  %10170 = vst [vmem:[#allocation35_spill] sm:$0xff] %v7649_v28  ;;  %10171 = vst [vmem:[#allocation36_spill] sm:$0xff] %v7651_v20  ;;  %v1388_v19 = vadd.f32 1.0, %v5848_v25  ;;  %v7673_v25 = vld [vmem:[#allocation10 + $0xe0] ss:$16 sps:$4 sm:$0xff]  }
 0x3a0   :  { %2106 = vmatprep.subr.bf16.mxu0 %v7627_v56  ;;  %2147 = vmatprep.subr.bf16.mxu1 %v7629_v29  ;;  %v7645_v8 = vadd.f32 %v1846_v35, %v1845_v37  ;;  %v7655_v29 = vld [vmem:[#allocation10 + $0xc4] ss:$16 sps:$4 sm:$0xff]   ;;  %v7657_v56 = vld [vmem:[#allocation10 + $0xcc] ss:$16 sps:$4 sm:$0xff]   ;;  %v7661_v35 = vld [vmem:[#allocation10 + $0xc0] ss:$16 sps:$4 sm:$0xff]  }
 0x3a1   :  { %10172 = vst [vmem:[#allocation37_spill] sm:$0xff] %v7655_v29  ;;  %10173 = vst [vmem:[#allocation38_spill] sm:$0xff] %v7657_v56  ;;  %v7663_v37 = vld [vmem:[#allocation10 + $0xc8] ss:$16 sps:$4 sm:$0xff]  }
 0x3a2   :  { %10174 = vst [vmem:[#allocation39_spill] sm:$0xff] %v7663_v37 }
 0x3a3   :  { %2107 = vmatpush1.bf16.msra.mxu0 %v7635_v23  ;;  %2148 = vmatpush1.bf16.msra.mxu1 %v7637_v45  ;;  %v5850_v45 = vpop.eup %5849  ;;  %v1390_v23 = vmul.f32 0.5, %v1388_v19  ;;  %v7684_v19 = vld [vmem:[#allocation5 + $0xc] ss:$16 sps:$4 sm:$0xff]  }
 0x3a4   :  { %2108 = vmatprep.subr.bf16.mxu0 %v7641_v22  ;;  %2149 = vmatprep.subr.bf16.mxu1 %v7643_v21  ;;  %v7667_v22 = vld [vmem:[#allocation10 + $0xe4] ss:$16 sps:$4 sm:$0xff]   ;;  %v7669_v21 = vld [vmem:[#allocation10 + $0xec] ss:$16 sps:$4 sm:$0xff]   ;;  %10177 = vst [vmem:[#allocation42_spill] sm:$0xff] %v7684_v19 }
 0x3a7   :  { %2109 = vmatpush1.bf16.msra.mxu0 %v7649_v28  ;;  %2150 = vmatpush1.bf16.msra.mxu1 %v7651_v20  ;;  %v7675_v20 = vld [vmem:[#allocation10 + $0xe8] ss:$16 sps:$4 sm:$0xff]   ;;  %v7681_v28 = vld [vmem:[#allocation5 + $0x4] ss:$16 sps:$4 sm:$0xff]  }
 0x3a8   :  { %2110 = vmatprep.subr.bf16.mxu0 %v7655_v29  ;;  %2151 = vmatprep.subr.bf16.mxu1 %v7657_v56  ;;  %10175 = vst [vmem:[#allocation40_spill] sm:$0xff] %v7675_v20  ;;  %v1394_v29 = vmul.f32 %v5850_v45, %v1390_v23  ;;  %10176 = vst [vmem:[#allocation41_spill] sm:$0xff] %v7681_v28  ;;  %v7690_v45 = vld [vmem:[#allocation5 + $0x8] ss:$16 sps:$4 sm:$0xff]   ;;  %v7693_v23 = vld [vmem:[#allocation5 + $0x24] ss:$16 sps:$4 sm:$0xff]  }
 0x3a9   :  { %10179 = vst [vmem:[#allocation44_spill] sm:$0xff] %v7690_v45  ;;  %10180 = vst [vmem:[#allocation45_spill] sm:$0xff] %v7693_v23 }
 0x3aa   :  { %v1937_v56 = vpack.c.bf16 %v1394_v29, %v1394_v29  ;;  %v7696_v29 = vld [vmem:[#allocation5 + $0x2c] ss:$16 sps:$4 sm:$0xff]  }
 0x3ab   :  { %2111 = vmatpush1.bf16.msra.mxu0 %v7661_v35  ;;  %2152 = vmatpush1.bf16.msra.mxu1 %v7663_v37  ;;  %v7687_v37 = vld [vmem:[#allocation5] ss:$16 sps:$4 sm:$0xff]   ;;  %10181 = vst [vmem:[#allocation46_spill] sm:$0xff] %v7696_v29 }
 0x3ac   :  { %2112 = vmatprep.subr.bf16.mxu0 %v7667_v22  ;;  %2153 = vmatprep.subr.bf16.mxu1 %v7669_v21  ;;  %10178 = vst [vmem:[#allocation43_spill] sm:$0xff] %v7687_v37 }
 0x3af   :  { %2113 = vmatpush1.bf16.msra.mxu0 %v7673_v25  ;;  %2154 = vmatpush1.bf16.msra.mxu1 %v7675_v20 }
 0x3b0   :  { %2202 = vmatprep.subr.bf16.mxu0 %v7681_v28  ;;  %2243 = vmatprep.subr.bf16.mxu1 %v7684_v19  ;;  %v1834_v19 = vmul.f32 0.5, %v7572_v27  ;;  %v7714_v27 = vld [vmem:[#allocation5 + $0x40] ss:$16 sps:$4 sm:$0xff]  }
 0x3b1   :  { %10186 = vst [vmem:[#allocation76_spill] sm:$0xff] %v7714_v27  ;;  %v7751_v28 = vld [vmem:[#allocation5 + $0xa0] ss:$16 sps:$4 sm:$0xff]  }
 0x3b2   :  { %2131 = vmatmul.mubr.bf16.vlgmr.msra.gmra.mrb[36].mxu0 %v1937_v56  ;;  %2172 = vmatmul.mubr.bf16.vlgmr.msra.gmra.mrb[36].mxu1 %v1937_v56  ;;  %v7702_v56 = vld [vmem:[#allocation5 + $0x20] ss:$16 sps:$4 sm:$0xff]   ;;  %5851 = vtanh.f32 %v1834_v19  ;;  %v7730_v19 = vld [vmem:[#allocation5 + $0x68] ss:$16 sps:$4 sm:$0xff]   ;;  %10198 = vst [vmem:[#allocation88_spill] sm:$0xff] %v7751_v28 }
 0x3b3   :  { %2203 = vmatpush1.bf16.msra.mxu0 %v7687_v37  ;;  %2244 = vmatpush1.bf16.msra.mxu1 %v7690_v45  ;;  %10182 = vst [vmem:[#allocation47_spill] sm:$0xff] %v7702_v56  ;;  %v7705_v37 = vld [vmem:[#allocation5 + $0x28] ss:$16 sps:$4 sm:$0xff]   ;;  %v7708_v45 = vld [vmem:[#allocation5 + $0x44] ss:$16 sps:$4 sm:$0xff]   ;;  %5853 = vtanh.f32 %v7645_v8  ;;  %10191 = vst [vmem:[#allocation81_spill] sm:$0xff] %v7730_v19 }
 0x3b4   :  { %2204 = vmatprep.subr.bf16.mxu0 %v7693_v23  ;;  %2245 = vmatprep.subr.bf16.mxu1 %v7696_v29  ;;  %10183 = vst [vmem:[#allocation73_spill] sm:$0xff] %v7705_v37  ;;  %10184 = vst [vmem:[#allocation74_spill] sm:$0xff] %v7708_v45  ;;  %v7711_v23 = vld [vmem:[#allocation5 + $0x4c] ss:$16 sps:$4 sm:$0xff]   ;;  %v7717_v29 = vld [vmem:[#allocation5 + $0x48] ss:$16 sps:$4 sm:$0xff]  }
 0x3b5   :  { %2234 = vmatprep.mubr.bf16.mxu0 %v10021_v36  ;;  %2275 = vmatprep.mubr.bf16.mxu1 %v10021_v36  ;;  %10185 = vst [vmem:[#allocation75_spill] sm:$0xff] %v7711_v23  ;;  %10187 = vst [vmem:[#allocation77_spill] sm:$0xff] %v7717_v29 }
 0x3b7   :  { %2205 = vmatpush1.bf16.msra.mxu0 %v7702_v56  ;;  %2246 = vmatpush1.bf16.msra.mxu1 %v7705_v37  ;;  %v7720_v56 = vld [vmem:[#allocation5 + $0x64] ss:$16 sps:$4 sm:$0xff]   ;;  %v7723_v37 = vld [vmem:[#allocation5 + $0x6c] ss:$16 sps:$4 sm:$0xff]  }
 0x3b8   :  { %2206 = vmatprep.subr.bf16.mxu0 %v7708_v45  ;;  %2247 = vmatprep.subr.bf16.mxu1 %v7711_v23  ;;  %10188 = vst [vmem:[#allocation78_spill] sm:$0xff] %v7720_v56  ;;  %10189 = vst [vmem:[#allocation79_spill] sm:$0xff] %v7723_v37  ;;  %v7727_v23 = vld [vmem:[#allocation5 + $0x60] ss:$16 sps:$4 sm:$0xff]   ;;  %v7742_v45 = vld [vmem:[#allocation5 + $0x88] ss:$16 sps:$4 sm:$0xff]  }
 0x3b9   :  { %10190 = vst [vmem:[#allocation80_spill] sm:$0xff] %v7727_v23  ;;  %10195 = vst [vmem:[#allocation85_spill] sm:$0xff] %v7742_v45 }
 0x3bb   :  { %2207 = vmatpush1.bf16.msra.mxu0 %v7714_v27  ;;  %2248 = vmatpush1.bf16.msra.mxu1 %v7717_v29  ;;  %v7733_v27 = vld [vmem:[#allocation5 + $0x84] ss:$16 sps:$4 sm:$0xff]   ;;  %v7736_v29 = vld [vmem:[#allocation5 + $0x8c] ss:$16 sps:$4 sm:$0xff]  }
 0x3bc   :  { %2208 = vmatprep.subr.bf16.mxu0 %v7720_v56  ;;  %2249 = vmatprep.subr.bf16.mxu1 %v7723_v37  ;;  %10192 = vst [vmem:[#allocation82_spill] sm:$0xff] %v7733_v27  ;;  %10193 = vst [vmem:[#allocation83_spill] sm:$0xff] %v7736_v29  ;;  %v5852_v56 = vpop.eup %5851  ;;  %v7739_v37 = vld [vmem:[#allocation5 + $0x80] ss:$16 sps:$4 sm:$0xff]  }
 0x3bd   :  { %10194 = vst [vmem:[#allocation84_spill] sm:$0xff] %v7739_v37 }
 0x3bf   :  { %2209 = vmatpush1.bf16.msra.mxu0 %v7727_v23  ;;  %2250 = vmatpush1.bf16.msra.mxu1 %v7730_v19  ;;  %v7745_v23 = vld [vmem:[#allocation5 + $0xa4] ss:$16 sps:$4 sm:$0xff]   ;;  %v7748_v19 = vld [vmem:[#allocation5 + $0xac] ss:$16 sps:$4 sm:$0xff]  }
 0x3c0   :  { %2210 = vmatprep.subr.bf16.mxu0 %v7733_v27  ;;  %2251 = vmatprep.subr.bf16.mxu1 %v7736_v29  ;;  %10196 = vst [vmem:[#allocation86_spill] sm:$0xff] %v7745_v23  ;;  %10197 = vst [vmem:[#allocation87_spill] sm:$0xff] %v7748_v19  ;;  %v1840_v27 = vadd.f32 1.0, %v5852_v56  ;;  %v7754_v29 = vld [vmem:[#allocation5 + $0xa8] ss:$16 sps:$4 sm:$0xff]  }
 0x3c1   :  { %10199 = vst [vmem:[#allocation89_spill] sm:$0xff] %v7754_v29  ;;  %v7766_v56 = vld [vmem:[#allocation5 + $0xc8] ss:$16 sps:$4 sm:$0xff]  }
 0x3c2   :  { %v1843_v20 = vmul.f32 0.5, %v1840_v27  ;;  %v7778_v27 = vld [vmem:[#allocation5 + $0xe8] ss:$16 sps:$4 sm:$0xff]  }
 0x3c3   :  { %2211 = vmatpush1.bf16.msra.mxu0 %v7739_v37  ;;  %2252 = vmatpush1.bf16.msra.mxu1 %v7742_v45  ;;  %v7757_v37 = vld [vmem:[#allocation5 + $0xc4] ss:$16 sps:$4 sm:$0xff]   ;;  %v7760_v45 = vld [vmem:[#allocation5 + $0xcc] ss:$16 sps:$4 sm:$0xff]  }
 0x3c4   :  { %2212 = vmatprep.subr.bf16.mxu0 %v7745_v23  ;;  %2253 = vmatprep.subr.bf16.mxu1 %v7748_v19  ;;  %10200 = vst [vmem:[#allocation90_spill] sm:$0xff] %v7757_v37  ;;  %10201 = vst [vmem:[#allocation91_spill] sm:$0xff] %v7760_v45  ;;  %v5854_v23 = vpop.eup %5853  ;;  %v7763_v19 = vld [vmem:[#allocation5 + $0xc0] ss:$16 sps:$4 sm:$0xff]  }
 0x3c5   :  { %10202 = vst [vmem:[#allocation92_spill] sm:$0xff] %v7763_v19 }
 0x3c7   :  { %2213 = vmatpush1.bf16.msra.mxu0 %v7751_v28  ;;  %2254 = vmatpush1.bf16.msra.mxu1 %v7754_v29  ;;  %v7769_v28 = vld [vmem:[#allocation5 + $0xe4] ss:$16 sps:$4 sm:$0xff]   ;;  %v7772_v29 = vld [vmem:[#allocation5 + $0xec] ss:$16 sps:$4 sm:$0xff]  }
 0x3c8   :  { %2214 = vmatprep.subr.bf16.mxu0 %v7757_v37  ;;  %2255 = vmatprep.subr.bf16.mxu1 %v7760_v45  ;;  %v1849_v37 = vmul.f32 %v5854_v23, %v1843_v20  ;;  %v7775_v45 = vld [vmem:[#allocation5 + $0xe0] ss:$16 sps:$4 sm:$0xff]   ;;  %v7922_v20 = vld [vmem:[#allocation8 + $0xc] ss:$16 sps:$4 sm:$0xff]   ;;  %v7930_v23 = vld [vmem:[#allocation8 + $0x8] ss:$16 sps:$4 sm:$0xff]  }
 0x3c9   :  { %10218 = vst [vmem:[#allocation108_spill] sm:$0xff] %v7922_v20  ;;  %10220 = vst [vmem:[#allocation50_spill] sm:$0xff] %v7930_v23 }
 0x3cb   :  { %2215 = vmatpush1.bf16.msra.mxu0 %v7763_v19  ;;  %2256 = vmatpush1.bf16.msra.mxu1 %v7766_v56  ;;  %v7781_v19 = vpack.c.bf16 %v1849_v37, %v1849_v37  ;;  %v7927_v37 = vld [vmem:[#allocation8] ss:$16 sps:$4 sm:$0xff]  }
 0x3cc   :  { %2216 = vmatprep.subr.bf16.mxu0 %v7769_v28  ;;  %2257 = vmatprep.subr.bf16.mxu1 %v7772_v29  ;;  %10219 = vst [vmem:[#allocation49_spill] sm:$0xff] %v7927_v37 }
 0x3cf   :  { %2217 = vmatpush1.bf16.msra.mxu0 %v7775_v45  ;;  %2258 = vmatpush1.bf16.msra.mxu1 %v7778_v27 }
 0x3d0   :  { %2288 = vmatprep.subr.bf16.mxu0 %v7353_v32  ;;  %2329 = vmatprep.subr.bf16.mxu1 %v7355_v33  ;;  %v7819_v32 = vld [vmem:[#allocation3 + $0x4] ss:$16 sps:$4 sm:$0xff]   ;;  %v7822_v33 = vld [vmem:[#allocation3 + $0xc] ss:$16 sps:$4 sm:$0xff]  }
 0x3d2   :  { %2235 = vmatmul.mubr.bf16.vlgmr.msra.gmra.mrb[40].mxu0 %v7781_v19  ;;  %2276 = vmatmul.mubr.bf16.vlgmr.msra.gmra.mrb[40].mxu1 %v7781_v19 }
 0x3d3   :  { %2289 = vmatpush1.bf16.msra.mxu0 %v7361_v38  ;;  %2330 = vmatpush1.bf16.msra.mxu1 %v7363_v40  ;;  %v7827_v38 = vld [vmem:[#allocation3] ss:$16 sps:$4 sm:$0xff]   ;;  %v7830_v40 = vld [vmem:[#allocation3 + $0x8] ss:$16 sps:$4 sm:$0xff]  }
 0x3d4   :  { %2290 = vmatprep.subr.bf16.mxu0 %v7367_v42  ;;  %2331 = vmatprep.subr.bf16.mxu1 %v7369_v43  ;;  %v7833_v42 = vld [vmem:[#allocation3 + $0x24] ss:$16 sps:$4 sm:$0xff]   ;;  %v7836_v43 = vld [vmem:[#allocation3 + $0x2c] ss:$16 sps:$4 sm:$0xff]  }
 0x3d5   :  { %2320 = vmatprep.mubr.bf16.mxu0 %v10021_v36  ;;  %2361 = vmatprep.mubr.bf16.mxu1 %v10021_v36 }
 0x3d7   :  { %2291 = vmatpush1.bf16.msra.mxu0 %v7375_v44  ;;  %2332 = vmatpush1.bf16.msra.mxu1 %v7377_v46  ;;  %v7841_v44 = vld [vmem:[#allocation3 + $0x20] ss:$16 sps:$4 sm:$0xff]   ;;  %v7844_v46 = vld [vmem:[#allocation3 + $0x28] ss:$16 sps:$4 sm:$0xff]  }
 0x3d8   :  { %2292 = vmatprep.subr.bf16.mxu0 %v7381_v47  ;;  %2333 = vmatprep.subr.bf16.mxu1 %v7383_v48  ;;  %v7847_v47 = vld [vmem:[#allocation3 + $0x44] ss:$16 sps:$4 sm:$0xff]   ;;  %v7850_v48 = vld [vmem:[#allocation3 + $0x4c] ss:$16 sps:$4 sm:$0xff]  }
 0x3db   :  { %2293 = vmatpush1.bf16.msra.mxu0 %v7389_v49  ;;  %2334 = vmatpush1.bf16.msra.mxu1 %v7391_v51  ;;  %v7853_v49 = vld [vmem:[#allocation3 + $0x40] ss:$16 sps:$4 sm:$0xff]   ;;  %v7856_v51 = vld [vmem:[#allocation3 + $0x48] ss:$16 sps:$4 sm:$0xff]  }
 0x3dc   :  { %2294 = vmatprep.subr.bf16.mxu0 %v7395_v52  ;;  %2335 = vmatprep.subr.bf16.mxu1 %v7397_v53  ;;  %v7859_v52 = vld [vmem:[#allocation3 + $0x64] ss:$16 sps:$4 sm:$0xff]   ;;  %v7862_v53 = vld [vmem:[#allocation3 + $0x6c] ss:$16 sps:$4 sm:$0xff]  }
 0x3df   :  { %2295 = vmatpush1.bf16.msra.mxu0 %v7401_v62  ;;  %2336 = vmatpush1.bf16.msra.mxu1 %v7403_v63  ;;  %v7865_v62 = vld [vmem:[#allocation3 + $0x60] ss:$16 sps:$4 sm:$0xff]   ;;  %v7868_v63 = vld [vmem:[#allocation3 + $0x68] ss:$16 sps:$4 sm:$0xff]  }
 0x3e0   :  { %2296 = vmatprep.subr.bf16.mxu0 %v7407_v5  ;;  %2337 = vmatprep.subr.bf16.mxu1 %v7409_v26  ;;  %v7871_v5 = vld [vmem:[#allocation3 + $0x84] ss:$16 sps:$4 sm:$0xff]   ;;  %v7874_v26 = vld [vmem:[#allocation3 + $0x8c] ss:$16 sps:$4 sm:$0xff]  }
 0x3e3   :  { %2297 = vmatpush1.bf16.msra.mxu0 %v7413_v50  ;;  %2338 = vmatpush1.bf16.msra.mxu1 %v7415_v59  ;;  %v7877_v50 = vld [vmem:[#allocation3 + $0x80] ss:$16 sps:$4 sm:$0xff]   ;;  %v7880_v59 = vld [vmem:[#allocation3 + $0x88] ss:$16 sps:$4 sm:$0xff]  }
 0x3e4   :  { %2298 = vmatprep.subr.bf16.mxu0 %v7419_v10  ;;  %2339 = vmatprep.subr.bf16.mxu1 %v7421_v60  ;;  %10203 = vst [vmem:[#allocation93_spill] sm:$0xff] %v7877_v50  ;;  %10204 = vst [vmem:[#allocation94_spill] sm:$0xff] %v7880_v59  ;;  %v7883_v10 = vld [vmem:[#allocation3 + $0xa4] ss:$16 sps:$4 sm:$0xff]   ;;  %v7886_v60 = vld [vmem:[#allocation3 + $0xac] ss:$16 sps:$4 sm:$0xff]  }
 0x3e5   :  { %10205 = vst [vmem:[#allocation95_spill] sm:$0xff] %v7883_v10  ;;  %10206 = vst [vmem:[#allocation96_spill] sm:$0xff] %v7886_v60 }
 0x3e7   :  { %2299 = vmatpush1.bf16.msra.mxu0 %v7425_v9  ;;  %2340 = vmatpush1.bf16.msra.mxu1 %v7427_v3  ;;  %v7889_v9 = vld [vmem:[#allocation3 + $0xa0] ss:$16 sps:$4 sm:$0xff]   ;;  %v7892_v3 = vld [vmem:[#allocation3 + $0xa8] ss:$16 sps:$4 sm:$0xff]  }
 0x3e8   :  { %2300 = vmatprep.subr.bf16.mxu0 %v7431_v61  ;;  %2341 = vmatprep.subr.bf16.mxu1 %v7433_v6  ;;  %10207 = vst [vmem:[#allocation97_spill] sm:$0xff] %v7889_v9  ;;  %10208 = vst [vmem:[#allocation98_spill] sm:$0xff] %v7892_v3  ;;  %v7895_v61 = vld [vmem:[#allocation3 + $0xc4] ss:$16 sps:$4 sm:$0xff]   ;;  %v7898_v6 = vld [vmem:[#allocation3 + $0xcc] ss:$16 sps:$4 sm:$0xff]  }
 0x3e9   :  { %10209 = vst [vmem:[#allocation99_spill] sm:$0xff] %v7895_v61  ;;  %10210 = vst [vmem:[#allocation100_spill] sm:$0xff] %v7898_v6 }
 0x3eb   :  { %2301 = vmatpush1.bf16.msra.mxu0 %v7437_v7  ;;  %2342 = vmatpush1.bf16.msra.mxu1 %v7439_v31  ;;  %v7901_v7 = vld [vmem:[#allocation3 + $0xc0] ss:$16 sps:$4 sm:$0xff]   ;;  %v7904_v31 = vld [vmem:[#allocation3 + $0xc8] ss:$16 sps:$4 sm:$0xff]  }
 0x3ec   :  { %2302 = vmatprep.subr.bf16.mxu0 %v7443_v39  ;;  %2343 = vmatprep.subr.bf16.mxu1 %v7445_v15  ;;  %10211 = vst [vmem:[#allocation101_spill] sm:$0xff] %v7901_v7  ;;  %10212 = vst [vmem:[#allocation102_spill] sm:$0xff] %v7904_v31  ;;  %v7907_v39 = vld [vmem:[#allocation3 + $0xe4] ss:$16 sps:$4 sm:$0xff]   ;;  %v7910_v15 = vld [vmem:[#allocation3 + $0xec] ss:$16 sps:$4 sm:$0xff]  }
 0x3ed   :  { %10213 = vst [vmem:[#allocation103_spill] sm:$0xff] %v7907_v39  ;;  %10214 = vst [vmem:[#allocation104_spill] sm:$0xff] %v7910_v15 }
 0x3ef   :  { %2303 = vmatpush1.bf16.msra.mxu0 %v7449_v12  ;;  %2344 = vmatpush1.bf16.msra.mxu1 %v7451_v13  ;;  %v7913_v12 = vld [vmem:[#allocation3 + $0xe0] ss:$16 sps:$4 sm:$0xff]   ;;  %v7916_v13 = vld [vmem:[#allocation3 + $0xe8] ss:$16 sps:$4 sm:$0xff]  }
 0x3f0   :  { %2393 = vmatprep.subr.bf16.mxu0 %v7819_v32  ;;  %2434 = vmatprep.subr.bf16.mxu1 %v7822_v33  ;;  %10215 = vst [vmem:[#allocation14_spill] sm:$0xff] %v7913_v12  ;;  %10216 = vst [vmem:[#allocation15_spill] sm:$0xff] %v7916_v13 }
 0x3f2   :  { %2321 = vmatmul.mubr.bf16.vlgmr.msra.gmra.mrb[40].mxu0 %v7583_v55  ;;  %2362 = vmatmul.mubr.bf16.vlgmr.msra.gmra.mrb[40].mxu1 %v7583_v55  ;;  %v7919_v55 = vld [vmem:[#allocation8 + $0x4] ss:$16 sps:$4 sm:$0xff]  }
 0x3f3   :  { %2394 = vmatpush1.bf16.msra.mxu0 %v7827_v38  ;;  %2435 = vmatpush1.bf16.msra.mxu1 %v7830_v40  ;;  %10217 = vst [vmem:[#allocation48_spill] sm:$0xff] %v7919_v55 }
 0x3f4   :  { %2395 = vmatprep.subr.bf16.mxu0 %v7833_v42  ;;  %2436 = vmatprep.subr.bf16.mxu1 %v7836_v43 }
 0x3f5   :  { %2425 = vmatprep.mubr.bf16.mxu0 %v10021_v36  ;;  %2466 = vmatprep.mubr.bf16.mxu1 %v10021_v36 }
 0x3f7   :  { %2396 = vmatpush1.bf16.msra.mxu0 %v7841_v44  ;;  %2437 = vmatpush1.bf16.msra.mxu1 %v7844_v46 }
 0x3f8   :  { %2397 = vmatprep.subr.bf16.mxu0 %v7847_v47  ;;  %2438 = vmatprep.subr.bf16.mxu1 %v7850_v48 }
 0x3fb   :  { %2398 = vmatpush1.bf16.msra.mxu0 %v7853_v49  ;;  %2439 = vmatpush1.bf16.msra.mxu1 %v7856_v51 }
 0x3fc   :  { %2399 = vmatprep.subr.bf16.mxu0 %v7859_v52  ;;  %2440 = vmatprep.subr.bf16.mxu1 %v7862_v53 }
 0x3ff   :  { %2400 = vmatpush1.bf16.msra.mxu0 %v7865_v62  ;;  %2441 = vmatpush1.bf16.msra.mxu1 %v7868_v63 }
 0x400   :  { %2401 = vmatprep.subr.bf16.mxu0 %v7871_v5  ;;  %2442 = vmatprep.subr.bf16.mxu1 %v7874_v26 }
 0x403   :  { %2402 = vmatpush1.bf16.msra.mxu0 %v7877_v50  ;;  %2443 = vmatpush1.bf16.msra.mxu1 %v7880_v59 }
 0x404   :  { %2403 = vmatprep.subr.bf16.mxu0 %v7883_v10  ;;  %2444 = vmatprep.subr.bf16.mxu1 %v7886_v60 }
 0x407   :  { %2404 = vmatpush1.bf16.msra.mxu0 %v7889_v9  ;;  %2445 = vmatpush1.bf16.msra.mxu1 %v7892_v3 }
 0x408   :  { %2405 = vmatprep.subr.bf16.mxu0 %v7895_v61  ;;  %2446 = vmatprep.subr.bf16.mxu1 %v7898_v6 }
 0x40b   :  { %2406 = vmatpush1.bf16.msra.mxu0 %v7901_v7  ;;  %2447 = vmatpush1.bf16.msra.mxu1 %v7904_v31 }
 0x40c   :  { %2407 = vmatprep.subr.bf16.mxu0 %v7907_v39  ;;  %2448 = vmatprep.subr.bf16.mxu1 %v7910_v15 }
 0x40f   :  { %2408 = vmatpush1.bf16.msra.mxu0 %v7913_v12  ;;  %2449 = vmatpush1.bf16.msra.mxu1 %v7916_v13  ;;  %v7933_v13 = vld [vmem:[#allocation8 + $0x24] ss:$16 sps:$4 sm:$0xff]  }
 0x410   :  { %2498 = vmatprep.subr.bf16.mxu0 %v7919_v55  ;;  %2539 = vmatprep.subr.bf16.mxu1 %v7922_v20  ;;  %10221 = vst [vmem:[#allocation52_spill] sm:$0xff] %v7933_v13  ;;  %v7936_v55 = vld [vmem:[#allocation8 + $0x2c] ss:$16 sps:$4 sm:$0xff]   ;;  %v7956_v20 = vld [vmem:[#allocation8 + $0x48] ss:$16 sps:$4 sm:$0xff]  }
 0x411   :  { %10222 = vst [vmem:[#allocation51_spill] sm:$0xff] %v7936_v55  ;;  %10228 = vst [vmem:[#allocation113_spill] sm:$0xff] %v7956_v20 }
 0x412   :  { %2426 = vmatmul.mubr.bf16.vlgmr.msra.gmra.mrb[44].mxu0 %v7781_v19  ;;  %2467 = vmatmul.mubr.bf16.vlgmr.msra.gmra.mrb[44].mxu1 %v7781_v19  ;;  %v7941_v19 = vld [vmem:[#allocation8 + $0x20] ss:$16 sps:$4 sm:$0xff]  }
 0x413   :  { %2499 = vmatpush1.bf16.msra.mxu0 %v7927_v37  ;;  %2540 = vmatpush1.bf16.msra.mxu1 %v7930_v23  ;;  %10223 = vst [vmem:[#allocation17_spill] sm:$0xff] %v7941_v19  ;;  %v7944_v37 = vld [vmem:[#allocation8 + $0x28] ss:$16 sps:$4 sm:$0xff]   ;;  %v7947_v23 = vld [vmem:[#allocation8 + $0x44] ss:$16 sps:$4 sm:$0xff]  }
 0x414   :  { %2500 = vmatprep.subr.bf16.mxu0 %v7933_v13  ;;  %2541 = vmatprep.subr.bf16.mxu1 %v7936_v55  ;;  %10224 = vst [vmem:[#allocation109_spill] sm:$0xff] %v7944_v37  ;;  %10225 = vst [vmem:[#allocation110_spill] sm:$0xff] %v7947_v23  ;;  %v7950_v13 = vld [vmem:[#allocation8 + $0x4c] ss:$16 sps:$4 sm:$0xff]   ;;  %v7953_v55 = vld [vmem:[#allocation8 + $0x40] ss:$16 sps:$4 sm:$0xff]  }
 0x415   :  { %2530 = vmatprep.mubr.bf16.mxu0 %v10021_v36  ;;  %2571 = vmatprep.mubr.bf16.mxu1 %v10021_v36  ;;  %10226 = vst [vmem:[#allocation111_spill] sm:$0xff] %v7950_v13  ;;  %10227 = vst [vmem:[#allocation112_spill] sm:$0xff] %v7953_v55 }
 0x417   :  { %2501 = vmatpush1.bf16.msra.mxu0 %v7941_v19  ;;  %2542 = vmatpush1.bf16.msra.mxu1 %v7944_v37  ;;  %v7959_v19 = vld [vmem:[#allocation8 + $0x64] ss:$16 sps:$4 sm:$0xff]   ;;  %v7962_v37 = vld [vmem:[#allocation8 + $0x6c] ss:$16 sps:$4 sm:$0xff]  }
 0x418   :  { %2502 = vmatprep.subr.bf16.mxu0 %v7947_v23  ;;  %2543 = vmatprep.subr.bf16.mxu1 %v7950_v13  ;;  %10229 = vst [vmem:[#allocation114_spill] sm:$0xff] %v7959_v19  ;;  %10230 = vst [vmem:[#allocation115_spill] sm:$0xff] %v7962_v37  ;;  %v7965_v23 = vld [vmem:[#allocation8 + $0x60] ss:$16 sps:$4 sm:$0xff]   ;;  %v7968_v13 = vld [vmem:[#allocation8 + $0x68] ss:$16 sps:$4 sm:$0xff]  }
 0x419   :  { %10231 = vst [vmem:[#allocation116_spill] sm:$0xff] %v7965_v23  ;;  %10232 = vst [vmem:[#allocation117_spill] sm:$0xff] %v7968_v13 }
 0x41b   :  { %2503 = vmatpush1.bf16.msra.mxu0 %v7953_v55  ;;  %2544 = vmatpush1.bf16.msra.mxu1 %v7956_v20  ;;  %v7971_v55 = vld [vmem:[#allocation8 + $0x84] ss:$16 sps:$4 sm:$0xff]   ;;  %v7974_v20 = vld [vmem:[#allocation8 + $0x8c] ss:$16 sps:$4 sm:$0xff]  }
 0x41c   :  { %2504 = vmatprep.subr.bf16.mxu0 %v7959_v19  ;;  %2545 = vmatprep.subr.bf16.mxu1 %v7962_v37  ;;  %10233 = vst [vmem:[#allocation118_spill] sm:$0xff] %v7971_v55  ;;  %10234 = vst [vmem:[#allocation119_spill] sm:$0xff] %v7974_v20  ;;  %v7977_v19 = vld [vmem:[#allocation8 + $0x80] ss:$16 sps:$4 sm:$0xff]   ;;  %v7980_v37 = vld [vmem:[#allocation8 + $0x88] ss:$16 sps:$4 sm:$0xff]  }
 0x41d   :  { %10235 = vst [vmem:[#allocation120_spill] sm:$0xff] %v7977_v19  ;;  %10236 = vst [vmem:[#allocation121_spill] sm:$0xff] %v7980_v37 }
 0x41f   :  { %2505 = vmatpush1.bf16.msra.mxu0 %v7965_v23  ;;  %2546 = vmatpush1.bf16.msra.mxu1 %v7968_v13  ;;  %v7983_v23 = vld [vmem:[#allocation8 + $0xa4] ss:$16 sps:$4 sm:$0xff]   ;;  %v7986_v13 = vld [vmem:[#allocation8 + $0xac] ss:$16 sps:$4 sm:$0xff]  }
 0x420   :  { %2506 = vmatprep.subr.bf16.mxu0 %v7971_v55  ;;  %2547 = vmatprep.subr.bf16.mxu1 %v7974_v20  ;;  %10237 = vst [vmem:[#allocation122_spill] sm:$0xff] %v7983_v23  ;;  %10238 = vst [vmem:[#allocation123_spill] sm:$0xff] %v7986_v13  ;;  %v7989_v55 = vld [vmem:[#allocation8 + $0xa0] ss:$16 sps:$4 sm:$0xff]   ;;  %v7992_v20 = vld [vmem:[#allocation8 + $0xa8] ss:$16 sps:$4 sm:$0xff]  }
 0x421   :  { %10239 = vst [vmem:[#allocation124_spill] sm:$0xff] %v7989_v55  ;;  %10240 = vst [vmem:[#allocation125_spill] sm:$0xff] %v7992_v20 }
 0x423   :  { %2507 = vmatpush1.bf16.msra.mxu0 %v7977_v19  ;;  %2548 = vmatpush1.bf16.msra.mxu1 %v7980_v37  ;;  %v7995_v19 = vld [vmem:[#allocation8 + $0xc4] ss:$16 sps:$4 sm:$0xff]   ;;  %v7998_v37 = vld [vmem:[#allocation8 + $0xcc] ss:$16 sps:$4 sm:$0xff]  }
 0x424   :  { %2508 = vmatprep.subr.bf16.mxu0 %v7983_v23  ;;  %2549 = vmatprep.subr.bf16.mxu1 %v7986_v13  ;;  %10241 = vst [vmem:[#allocation126_spill] sm:$0xff] %v7995_v19  ;;  %10242 = vst [vmem:[#allocation127_spill] sm:$0xff] %v7998_v37  ;;  %v8001_v23 = vld [vmem:[#allocation8 + $0xc0] ss:$16 sps:$4 sm:$0xff]   ;;  %v8004_v13 = vld [vmem:[#allocation8 + $0xc8] ss:$16 sps:$4 sm:$0xff]  }
 0x425   :  { %10243 = vst [vmem:[#allocation128_spill] sm:$0xff] %v8001_v23  ;;  %10244 = vst [vmem:[#allocation129_spill] sm:$0xff] %v8004_v13 }
 0x427   :  { %2509 = vmatpush1.bf16.msra.mxu0 %v7989_v55  ;;  %2550 = vmatpush1.bf16.msra.mxu1 %v7992_v20  ;;  %v8007_v55 = vld [vmem:[#allocation8 + $0xe4] ss:$16 sps:$4 sm:$0xff]   ;;  %v8010_v20 = vld [vmem:[#allocation8 + $0xec] ss:$16 sps:$4 sm:$0xff]  }
 0x428   :  { %2510 = vmatprep.subr.bf16.mxu0 %v7995_v19  ;;  %2551 = vmatprep.subr.bf16.mxu1 %v7998_v37  ;;  %10245 = vst [vmem:[#allocation130_spill] sm:$0xff] %v8007_v55  ;;  %10246 = vst [vmem:[#allocation131_spill] sm:$0xff] %v8010_v20  ;;  %v8013_v19 = vld [vmem:[#allocation8 + $0xe0] ss:$16 sps:$4 sm:$0xff]   ;;  %v8016_v37 = vld [vmem:[#allocation8 + $0xe8] ss:$16 sps:$4 sm:$0xff]  }
 0x429   :  { %10247 = vst [vmem:[#allocation132_spill] sm:$0xff] %v8013_v19  ;;  %10248 = vst [vmem:[#allocation133_spill] sm:$0xff] %v8016_v37 }
 0x42b   :  { %2511 = vmatpush1.bf16.msra.mxu0 %v8001_v23  ;;  %2552 = vmatpush1.bf16.msra.mxu1 %v8004_v13  ;;  %v8023_v13 = vrot.slane %v7538_v18, %v10147_v4 }
 0x42c   :  { %2512 = vmatprep.subr.bf16.mxu0 %v8007_v55  ;;  %2553 = vmatprep.subr.bf16.mxu1 %v8010_v20 }
 0x42d   :  { %10249 = vst [vmem:[#allocation134_spill] sm:$0xff] %v8023_v13 }
 0x42f   :  { %2513 = vmatpush1.bf16.msra.mxu0 %v8013_v19  ;;  %2554 = vmatpush1.bf16.msra.mxu1 %v8016_v37 }
 0x430   :  { %2585 = vmatprep.subr.bf16.mxu0 %v7529_v14  ;;  %2626 = vmatprep.subr.bf16.mxu1 %v7531_v17  ;;  %v10250_v17 = vld [vmem:[#allocation21_spill] sm:$0xff] }
 0x485   :  { %v2132_v55 = vpop.f32.mrb[36].mxu0  ;;  %v8025_v23 = vpop.f32.mrb[36].mxu1 }
 0x486   :  { %v5386_v20 = vadd.f32 %v2132_v55, %v7542_v41  ;;  %v2134_v12 = vpop.f32.mrb[37].mxu0  ;;  %v2175_v15 = vpop.f32.mrb[37].mxu1 }
 0x487   :  { %v5387_v19 = vadd.f32 %v2134_v12, %v8023_v13  ;;  %v2136_v39 = vpop.f32.mrb[38].mxu0  ;;  %v2177_v31 = vpop.f32.mrb[38].mxu1  ;;  %v5389_v61 = vadd.f32 %v2175_v15, %v10250_v17 }
 0x488   :  { %v2184_v37 = vmul.f32 0.5, %v5386_v20  ;;  %v2137_v7 = vpop.f32.mrb[39].mxu0  ;;  %v2178_v14 = vpop.f32.mrb[39].mxu1  ;;  %v10251_v20 = vld [vmem:[#allocation105_spill] sm:$0xff] }
 0x489   :  { %v2185_v6 = vmul.f32 0.5, %v5387_v19 }
 0x48a   :  { %5855 = vtanh.f32 %v2184_v37 }
 0x48b   :  { %5857 = vtanh.f32 %v2185_v6  ;;  %v10252_v6 = vld [vmem:[#allocation22_spill] sm:$0xff] }
 0x48c   :  { %5859 = vtanh.f32 %v5389_v61 }
 0x494   :  { %v5856_v18 = vpop.eup %5855 }
 0x495   :  { %v2190_v4 = vadd.f32 1.0, %v5856_v18  ;;  %v5858_v3 = vpop.eup %5857 }
 0x496   :  { %v2191_v55 = vadd.f32 1.0, %v5858_v3  ;;  %v5860_v41 = vpop.eup %5859 }
 0x497   :  { %v2193_v9 = vmul.f32 0.5, %v2190_v4 }
 0x498   :  { %v2194_v60 = vmul.f32 0.5, %v2191_v55 }
 0x499   :  { %v2198_v10 = vmul.f32 %v5860_v41, %v2193_v9  ;;  %v10253_v41 = vld [vmem:[#allocation106_spill] sm:$0xff] }
 0x49a   :  { %v2197_v39 = vmul.f32 %v2194_v60, %v7552_v11  ;;  %v10254_v11 = vld [vmem:[#allocation107_spill] sm:$0xff] }
 0x49c   :  { %v8031_v31 = vadd.f32 %v2198_v10, %v2197_v39 }
 0x4c5   :  { %v2322_v7 = vpop.f32.mrb[40].mxu0  ;;  %v2363_v12 = vpop.f32.mrb[40].mxu1 }
 0x4c6   :  { %v5390_v37 = vadd.f32 %v2322_v7, %v10251_v20  ;;  %v2324_v19 = vpop.f32.mrb[41].mxu0  ;;  %v2365_v15 = vpop.f32.mrb[41].mxu1  ;;  %v5392_v10 = vadd.f32 %v2363_v12, %v10254_v11 }
 0x4c7   :  { %v5391_v61 = vadd.f32 %v2324_v19, %v10252_v6  ;;  %v2326_v14 = vpop.f32.mrb[42].mxu0  ;;  %v2367_v18 = vpop.f32.mrb[42].mxu1  ;;  %v5393_v9 = vadd.f32 %v2365_v15, %v10253_v41  ;;  %v10258_v15 = vld [vmem:[#allocation53_spill] sm:$0xff] }
 0x4c8   :  { %v2374_v17 = vmul.f32 0.5, %v5390_v37  ;;  %v2327_v4 = vpop.f32.mrb[43].mxu0  ;;  %v2368_v3 = vpop.f32.mrb[43].mxu1  ;;  %v2376_v60 = vmul.f32 0.5, %v5392_v10  ;;  %v10260_v10 = vld [vmem:[#allocation54_spill] sm:$0xff] }
 0x4c9   :  { %v2375_v13 = vmul.f32 0.5, %v5391_v61  ;;  %v10255_v4 = vld [vmem:[#allocation23_spill] sm:$0xff] }
 0x4ca   :  { %5861 = vtanh.f32 %v2374_v17  ;;  %v10257_v17 = vld [vmem:[#allocation16_spill] sm:$0xff] }
 0x4cb   :  { %5863 = vtanh.f32 %v2375_v13  ;;  %v463_v12 = vadd.f32 %v10258_v15, %v10257_v17 }
 0x4cc   :  { %5865 = vtanh.f32 %v5393_v9  ;;  %v10259_v9 = vld [vmem:[#allocation19_spill] sm:$0xff] }
 0x4cd   :  { %5867 = vtanh.f32 %v2376_v60  ;;  %v10262_v60 = vld [vmem:[#allocation56_spill] sm:$0xff] }
 0x4d4   :  { %v5862_v55 = vpop.eup %5861 }
 0x4d5   :  { %v2380_v39 = vadd.f32 1.0, %v5862_v55  ;;  %v5864_v7 = vpop.eup %5863  ;;  %v576_v55 = vadd.f32 %v10260_v10, %v10259_v9 }
 0x4d6   :  { %v2381_v19 = vadd.f32 1.0, %v5864_v7  ;;  %v5866_v14 = vpop.eup %5865 }
 0x4d7   :  { %v2383_v20 = vmul.f32 0.5, %v2380_v39  ;;  %v5868_v13 = vpop.eup %5867  ;;  %v10261_v39 = vld [vmem:[#allocation18_spill] sm:$0xff] }
 0x4d8   :  { %v2384_v18 = vmul.f32 0.5, %v2381_v19  ;;  %v2382_v11 = vadd.f32 1.0, %v5868_v13  ;;  %v578_v7 = vadd.f32 %v10262_v60, %v10261_v39 }
 0x4d9   :  { %v2388_v37 = vmul.f32 %v5866_v14, %v2383_v20 }
 0x4da   :  { %v2387_v3 = vmul.f32 %v2384_v18, %v10255_v4  ;;  %v10263_v4 = vld [vmem:[#allocation55_spill] sm:$0xff]  ;;  %v2385_v15 = vmul.f32 0.5, %v2382_v11  ;;  %v10266_v11 = vld [vmem:[#allocation26_spill] sm:$0xff] }
 0x4dc   :  { %v8038_v61 = vadd.f32 %v2388_v37, %v2387_v3 }
 0x4de   :  { %10256 = vst [vmem:[#allocation23_spill] sm:$0xff] %v8038_v61  ;;  %5869 = vtanh.f32 %v8038_v61 }
 0x4e5   :  { %v2427_v41 = vpop.f32.mrb[44].mxu0  ;;  %v2468_v19 = vpop.f32.mrb[44].mxu1 }
 0x4e6   :  { %v2475_v20 = vadd.f32 %v2427_v41, %v463_v12  ;;  %v8047_v14 = vadd.f32 %v2468_v19, %v576_v55  ;;  %v2429_v18 = vpop.f32.mrb[45].mxu0  ;;  %v2470_v37 = vpop.f32.mrb[45].mxu1  ;;  %v5388_v41 = vadd.f32 %v8025_v23, %v7577_v1  ;;  %v10264_v23 = vld [vmem:[#allocation24_spill] sm:$0xff]  ;;  %v10270_v55 = vld [vmem:[#allocation30_spill] sm:$0xff] }
 0x4e7   :  { %v2476_v3 = vadd.f32 %v2429_v18, %v10263_v4  ;;  %v2478_v61 = vadd.f32 %v2470_v37, %v578_v7  ;;  %v2431_v6 = vpop.f32.mrb[46].mxu0  ;;  %v2472_v59 = vpop.f32.mrb[46].mxu1  ;;  %v10268_v12 = vld [vmem:[#allocation28_spill] sm:$0xff]  ;;  %v10273_v18 = vld [vmem:[#allocation33_spill] sm:$0xff]  ;;  %v10274_v37 = vld [vmem:[#allocation34_spill] sm:$0xff] }
 0x4e8   :  { %v2479_v17 = vmul.f32 0.5, %v2475_v20  ;;  %v2432_v50 = vpop.f32.mrb[47].mxu0  ;;  %v2473_v10 = vpop.f32.mrb[47].mxu1  ;;  %v10272_v20 = vld [vmem:[#allocation32_spill] sm:$0xff]  ;;  %v10275_v4 = vld [vmem:[#allocation35_spill] sm:$0xff] }
 0x4e9   :  { %v5870_v13 = vpop.eup %5869  ;;  %v2480_v9 = vmul.f32 0.5, %v2476_v3  ;;  %v2186_v50 = vmul.f32 0.5, %v5388_v41  ;;  %v10277_v3 = vld [vmem:[#allocation37_spill] sm:$0xff] }
 0x4ea   :  { %5871 = vtanh.f32 %v2479_v17  ;;  %v2391_v60 = vmul.f32 %v5870_v13, %v2385_v15  ;;  %v10278_v15 = vld [vmem:[#allocation38_spill] sm:$0xff] }
 0x4eb   :  { %5873 = vtanh.f32 %v2480_v9  ;;  %v10269_v9 = vld [vmem:[#allocation29_spill] sm:$0xff] }
 0x4ec   :  { %v8050_v39 = vpack.c.bf16 %v2391_v60, %v2391_v60  ;;  %5875 = vtanh.f32 %v2478_v61  ;;  %v10279_v60 = vld [vmem:[#allocation39_spill] sm:$0xff] }
 0x4ed   :  { %5877 = vtanh.f32 %v2186_v50  ;;  %v10280_v50 = vld [vmem:[#allocation40_spill] sm:$0xff] }
 0x4ee   :  { %2531 = vmatmul.mubr.bf16.vlgmr.msra.gmra.mrb[48].mxu0 %v8050_v39  ;;  %2572 = vmatmul.mubr.bf16.vlgmr.msra.gmra.mrb[48].mxu1 %v8050_v39  ;;  %5879 = vtanh.f32 %v8031_v31 }
 0x4ef   :  { %2586 = vmatpush1.bf16.msra.mxu0 %v7579_v54  ;;  %2627 = vmatpush1.bf16.msra.mxu1 %v7581_v0 }
 0x4f0   :  { %2587 = vmatprep.subr.bf16.mxu0 %v7585_v58  ;;  %2628 = vmatprep.subr.bf16.mxu1 %v7587_v16  ;;  %v10265_v16 = vld [vmem:[#allocation25_spill] sm:$0xff] }
 0x4f1   :  { %2617 = vmatprep.mubr.bf16.mxu0 %v10021_v36  ;;  %2658 = vmatprep.mubr.bf16.mxu1 %v10021_v36 }
 0x4f3   :  { %2588 = vmatpush1.bf16.msra.mxu0 %v7595_v57  ;;  %2629 = vmatpush1.bf16.msra.mxu1 %v7597_v2  ;;  %v10267_v57 = vld [vmem:[#allocation27_spill] sm:$0xff] }
 0x4f4   :  { %v5872_v59 = vpop.eup %5871  ;;  %2589 = vmatprep.subr.bf16.mxu0 %v7601_v34  ;;  %2630 = vmatprep.subr.bf16.mxu1 %v10264_v23  ;;  %v10281_v23 = vld [vmem:[#allocation41_spill] sm:$0xff] }
 0x4f5   :  { %v2485_v54 = vadd.f32 1.0, %v5872_v59  ;;  %v5874_v0 = vpop.eup %5873 }
 0x4f6   :  { %v2486_v6 = vadd.f32 1.0, %v5874_v0  ;;  %v5876_v61 = vpop.eup %5875  ;;  %v10283_v0 = vld [vmem:[#allocation43_spill] sm:$0xff] }
 0x4f7   :  { %v2488_v58 = vmul.f32 0.5, %v2485_v54  ;;  %2590 = vmatpush1.bf16.msra.mxu0 %v10265_v16  ;;  %2631 = vmatpush1.bf16.msra.mxu1 %v10266_v11  ;;  %v5878_v19 = vpop.eup %5877  ;;  %v10282_v54 = vld [vmem:[#allocation42_spill] sm:$0xff]  ;;  %v10290_v11 = vld [vmem:[#allocation75_spill] sm:$0xff] }
 0x4f8   :  { %2591 = vmatprep.subr.bf16.mxu0 %v7615_v30  ;;  %2632 = vmatprep.subr.bf16.mxu1 %v10267_v57  ;;  %v2489_v2 = vmul.f32 0.5, %v2486_v6  ;;  %v10271_v30 = vld [vmem:[#allocation31_spill] sm:$0xff]  ;;  %v5880_v10 = vpop.eup %5879  ;;  %v10288_v6 = vld [vmem:[#allocation73_spill] sm:$0xff]  ;;  %v10289_v16 = vld [vmem:[#allocation74_spill] sm:$0xff] }
 0x4f9   :  { %v2493_v17 = vmul.f32 %v5876_v61, %v2488_v58  ;;  %v10285_v58 = vld [vmem:[#allocation45_spill] sm:$0xff]  ;;  %v10291_v61 = vld [vmem:[#allocation76_spill] sm:$0xff] }
 0x4fa   :  { %v2492_v34 = vmul.f32 %v2489_v2, %v7645_v8  ;;  %v2192_v8 = vadd.f32 1.0, %v5878_v19  ;;  %v10292_v57 = vld [vmem:[#allocation77_spill] sm:$0xff]  ;;  %v10293_v2 = vld [vmem:[#allocation78_spill] sm:$0xff]  ;;  %v10299_v19 = vld [vmem:[#allocation84_spill] sm:$0xff] }
 0x4fb   :  { %2592 = vmatpush1.bf16.msra.mxu0 %v7621_v24  ;;  %2633 = vmatpush1.bf16.msra.mxu1 %v10268_v12  ;;  %v10276_v24 = vld [vmem:[#allocation36_spill] sm:$0xff]  ;;  %v10297_v12 = vld [vmem:[#allocation82_spill] sm:$0xff] }
 0x4fc   :  { %2593 = vmatprep.subr.bf16.mxu0 %v10269_v9  ;;  %2634 = vmatprep.subr.bf16.mxu1 %v10270_v55  ;;  %v8076_v7 = vadd.f32 %v2493_v17, %v2492_v34  ;;  %v2195_v13 = vmul.f32 0.5, %v2192_v8  ;;  %v10295_v17 = vld [vmem:[#allocation80_spill] sm:$0xff]  ;;  %v10296_v34 = vld [vmem:[#allocation81_spill] sm:$0xff]  ;;  %v10298_v9 = vld [vmem:[#allocation83_spill] sm:$0xff] }
 0x4fd   :  { %v10303_v8 = vld [vmem:[#allocation88_spill] sm:$0xff] }
 0x4fe   :  { %v2201_v41 = vmul.f32 %v5880_v10, %v2195_v13  ;;  %v10307_v13 = vld [vmem:[#allocation92_spill] sm:$0xff] }
 0x4ff   :  { %2594 = vmatpush1.bf16.msra.mxu0 %v10271_v30  ;;  %2635 = vmatpush1.bf16.msra.mxu1 %v10272_v20  ;;  %v10300_v30 = vld [vmem:[#allocation85_spill] sm:$0xff]  ;;  %v10301_v20 = vld [vmem:[#allocation86_spill] sm:$0xff] }
 0x500   :  { %2595 = vmatprep.subr.bf16.mxu0 %v10273_v18  ;;  %2636 = vmatprep.subr.bf16.mxu1 %v10274_v37  ;;  %v2584_v59 = vpack.c.bf16 %v2201_v41, %v2201_v41  ;;  %v10302_v18 = vld [vmem:[#allocation87_spill] sm:$0xff] }
 0x503   :  { %2596 = vmatpush1.bf16.msra.mxu0 %v10275_v4  ;;  %2637 = vmatpush1.bf16.msra.mxu1 %v10276_v24  ;;  %v10304_v4 = vld [vmem:[#allocation89_spill] sm:$0xff]  ;;  %v10305_v24 = vld [vmem:[#allocation90_spill] sm:$0xff] }
 0x504   :  { %2597 = vmatprep.subr.bf16.mxu0 %v10277_v3  ;;  %2638 = vmatprep.subr.bf16.mxu1 %v10278_v15  ;;  %v10306_v3 = vld [vmem:[#allocation91_spill] sm:$0xff] }
 0x507   :  { %2598 = vmatpush1.bf16.msra.mxu0 %v7661_v35  ;;  %2639 = vmatpush1.bf16.msra.mxu1 %v10279_v60  ;;  %v10284_v35 = vld [vmem:[#allocation44_spill] sm:$0xff] }
 0x508   :  { %2599 = vmatprep.subr.bf16.mxu0 %v7667_v22  ;;  %2640 = vmatprep.subr.bf16.mxu1 %v7669_v21  ;;  %v10286_v22 = vld [vmem:[#allocation46_spill] sm:$0xff]  ;;  %v2481_v21 = vmul.f32 0.5, %v8047_v14  ;;  %v10294_v14 = vld [vmem:[#allocation79_spill] sm:$0xff] }
 0x50a   :  { %5881 = vtanh.f32 %v2481_v21  ;;  %v8173_v21 = vld [vmem:[#allocation7 + $0x6c] ss:$16 sps:$4 sm:$0xff]  }
 0x50b   :  { %2600 = vmatpush1.bf16.msra.mxu0 %v7673_v25  ;;  %2641 = vmatpush1.bf16.msra.mxu1 %v10280_v50  ;;  %v10287_v25 = vld [vmem:[#allocation47_spill] sm:$0xff]  ;;  %5883 = vtanh.f32 %v8076_v7  ;;  %v8130_v50 = vld [vmem:[#allocation7 + $0x4] ss:$16 sps:$4 sm:$0xff]  }
 0x50c   :  { %2689 = vmatprep.subr.bf16.mxu0 %v10281_v23  ;;  %2730 = vmatprep.subr.bf16.mxu1 %v10282_v54  ;;  %v8155_v23 = vld [vmem:[#allocation7 + $0x28] ss:$16 sps:$4 sm:$0xff]   ;;  %v8158_v54 = vld [vmem:[#allocation7 + $0x44] ss:$16 sps:$4 sm:$0xff]  }
 0x50e   :  { %2618 = vmatmul.mubr.bf16.vlgmr.msra.gmra.mrb[48].mxu0 %v2584_v59  ;;  %2659 = vmatmul.mubr.bf16.vlgmr.msra.gmra.mrb[48].mxu1 %v2584_v59  ;;  %v8133_v59 = vld [vmem:[#allocation7 + $0xc] ss:$16 sps:$4 sm:$0xff]  }
 0x50f   :  { %2690 = vmatpush1.bf16.msra.mxu0 %v10283_v0  ;;  %2731 = vmatpush1.bf16.msra.mxu1 %v10284_v35  ;;  %v8161_v0 = vld [vmem:[#allocation7 + $0x4c] ss:$16 sps:$4 sm:$0xff]   ;;  %v8164_v35 = vld [vmem:[#allocation7 + $0x40] ss:$16 sps:$4 sm:$0xff]  }
 0x510   :  { %2691 = vmatprep.subr.bf16.mxu0 %v10285_v58  ;;  %2732 = vmatprep.subr.bf16.mxu1 %v10286_v22  ;;  %v8167_v58 = vld [vmem:[#allocation7 + $0x48] ss:$16 sps:$4 sm:$0xff]   ;;  %v8170_v22 = vld [vmem:[#allocation7 + $0x64] ss:$16 sps:$4 sm:$0xff]  }
 0x511   :  { %2721 = vmatprep.mubr.bf16.mxu0 %v10021_v36  ;;  %2762 = vmatprep.mubr.bf16.mxu1 %v10021_v36 }
 0x513   :  { %2692 = vmatpush1.bf16.msra.mxu0 %v10287_v25  ;;  %2733 = vmatpush1.bf16.msra.mxu1 %v10288_v6  ;;  %v8176_v25 = vld [vmem:[#allocation7 + $0x60] ss:$16 sps:$4 sm:$0xff]   ;;  %v8179_v6 = vld [vmem:[#allocation7 + $0x68] ss:$16 sps:$4 sm:$0xff]  }
 0x514   :  { %2693 = vmatprep.subr.bf16.mxu0 %v10289_v16  ;;  %2734 = vmatprep.subr.bf16.mxu1 %v10290_v11  ;;  %v5882_v55 = vpop.eup %5881  ;;  %v8182_v16 = vld [vmem:[#allocation7 + $0x84] ss:$16 sps:$4 sm:$0xff]   ;;  %v8185_v11 = vld [vmem:[#allocation7 + $0x8c] ss:$16 sps:$4 sm:$0xff]  }
 0x515   :  { %v2487_v37 = vadd.f32 1.0, %v5882_v55  ;;  %v5884_v15 = vpop.eup %5883  ;;  %v8212_v55 = vld [vmem:[#allocation7 + $0xc0] ss:$16 sps:$4 sm:$0xff]  }
 0x517   :  { %2694 = vmatpush1.bf16.msra.mxu0 %v10291_v61  ;;  %2735 = vmatpush1.bf16.msra.mxu1 %v10292_v57  ;;  %v2490_v10 = vmul.f32 0.5, %v2487_v37  ;;  %v8188_v61 = vld [vmem:[#allocation7 + $0x80] ss:$16 sps:$4 sm:$0xff]   ;;  %v8191_v57 = vld [vmem:[#allocation7 + $0x88] ss:$16 sps:$4 sm:$0xff]  }
 0x518   :  { %2695 = vmatprep.subr.bf16.mxu0 %v10293_v2  ;;  %2736 = vmatprep.subr.bf16.mxu1 %v10294_v14  ;;  %v8194_v2 = vld [vmem:[#allocation7 + $0xa4] ss:$16 sps:$4 sm:$0xff]   ;;  %v8197_v14 = vld [vmem:[#allocation7 + $0xac] ss:$16 sps:$4 sm:$0xff]   ;;  %v8227_v37 = vld [vmem:[#allocation7 + $0xe8] ss:$16 sps:$4 sm:$0xff]  }
 0x519   :  { %v2496_v60 = vmul.f32 %v5884_v15, %v2490_v10  ;;  %v10331_v15 = vld [vmem:[#allocation111_spill] sm:$0xff]  ;;  %v10332_v10 = vld [vmem:[#allocation112_spill] sm:$0xff] }
 0x51b   :  { %2696 = vmatpush1.bf16.msra.mxu0 %v10295_v17  ;;  %2737 = vmatpush1.bf16.msra.mxu1 %v10296_v34  ;;  %v8128_v41 = vpack.c.bf16 %v2496_v60, %v2496_v60  ;;  %v8200_v17 = vld [vmem:[#allocation7 + $0xa0] ss:$16 sps:$4 sm:$0xff]   ;;  %v8203_v34 = vld [vmem:[#allocation7 + $0xa8] ss:$16 sps:$4 sm:$0xff]  }
 0x51c   :  { %2697 = vmatprep.subr.bf16.mxu0 %v10297_v12  ;;  %2738 = vmatprep.subr.bf16.mxu1 %v10298_v9  ;;  %v8206_v12 = vld [vmem:[#allocation7 + $0xc4] ss:$16 sps:$4 sm:$0xff]   ;;  %v8209_v9 = vld [vmem:[#allocation7 + $0xcc] ss:$16 sps:$4 sm:$0xff]  }
 0x51d   :  { %v10334_v60 = vld [vmem:[#allocation114_spill] sm:$0xff] }
 0x51f   :  { %2698 = vmatpush1.bf16.msra.mxu0 %v10299_v19  ;;  %2739 = vmatpush1.bf16.msra.mxu1 %v10300_v30  ;;  %v8215_v19 = vld [vmem:[#allocation7 + $0xc8] ss:$16 sps:$4 sm:$0xff]   ;;  %v8218_v30 = vld [vmem:[#allocation7 + $0xe4] ss:$16 sps:$4 sm:$0xff]  }
 0x520   :  { %2699 = vmatprep.subr.bf16.mxu0 %v10301_v20  ;;  %2740 = vmatprep.subr.bf16.mxu1 %v10302_v18  ;;  %v8221_v20 = vld [vmem:[#allocation7 + $0xec] ss:$16 sps:$4 sm:$0xff]   ;;  %v8224_v18 = vld [vmem:[#allocation7 + $0xe0] ss:$16 sps:$4 sm:$0xff]  }
 0x523   :  { %2700 = vmatpush1.bf16.msra.mxu0 %v10303_v8  ;;  %2741 = vmatpush1.bf16.msra.mxu1 %v10304_v4  ;;  %v10327_v8 = vld [vmem:[#allocation51_spill] sm:$0xff]  ;;  %v10328_v4 = vld [vmem:[#allocation17_spill] sm:$0xff] }
 0x524   :  { %2701 = vmatprep.subr.bf16.mxu0 %v10305_v24  ;;  %2742 = vmatprep.subr.bf16.mxu1 %v10306_v3  ;;  %v10329_v24 = vld [vmem:[#allocation109_spill] sm:$0xff]  ;;  %v10330_v3 = vld [vmem:[#allocation110_spill] sm:$0xff] }
 0x527   :  { %2702 = vmatpush1.bf16.msra.mxu0 %v10307_v13  ;;  %2743 = vmatpush1.bf16.msra.mxu1 %v7766_v56  ;;  %v8147_v56 = vld [vmem:[#allocation7 + $0x2c] ss:$16 sps:$4 sm:$0xff]  }
 0x528   :  { %2703 = vmatprep.subr.bf16.mxu0 %v7769_v28  ;;  %2744 = vmatprep.subr.bf16.mxu1 %v7772_v29  ;;  %v8138_v28 = vld [vmem:[#allocation7] ss:$16 sps:$4 sm:$0xff]   ;;  %v8144_v29 = vld [vmem:[#allocation7 + $0x24] ss:$16 sps:$4 sm:$0xff]   ;;  %v10333_v13 = vld [vmem:[#allocation113_spill] sm:$0xff] }
 0x52b   :  { %2704 = vmatpush1.bf16.msra.mxu0 %v7775_v45  ;;  %2745 = vmatpush1.bf16.msra.mxu1 %v7778_v27  ;;  %v8141_v45 = vld [vmem:[#allocation7 + $0x8] ss:$16 sps:$4 sm:$0xff]   ;;  %v8152_v27 = vld [vmem:[#allocation7 + $0x20] ss:$16 sps:$4 sm:$0xff]  }
 0x52c   :  { %2775 = vmatprep.subr.bf16.mxu0 %v8130_v50  ;;  %2816 = vmatprep.subr.bf16.mxu1 %v8133_v59 }
 0x52e   :  { %2722 = vmatmul.mubr.bf16.vlgmr.msra.gmra.mrb[52].mxu0 %v8128_v41  ;;  %2763 = vmatmul.mubr.bf16.vlgmr.msra.gmra.mrb[52].mxu1 %v8128_v41 }
 0x52f   :  { %2776 = vmatpush1.bf16.msra.mxu0 %v8138_v28  ;;  %2817 = vmatpush1.bf16.msra.mxu1 %v8141_v45 }
 0x530   :  { %2777 = vmatprep.subr.bf16.mxu0 %v8144_v29  ;;  %2818 = vmatprep.subr.bf16.mxu1 %v8147_v56 }
 0x531   :  { %2807 = vmatprep.mubr.bf16.mxu0 %v10021_v36  ;;  %2848 = vmatprep.mubr.bf16.mxu1 %v10021_v36 }
 0x533   :  { %2778 = vmatpush1.bf16.msra.mxu0 %v8152_v27  ;;  %2819 = vmatpush1.bf16.msra.mxu1 %v8155_v23 }
 0x534   :  { %2779 = vmatprep.subr.bf16.mxu0 %v8158_v54  ;;  %2820 = vmatprep.subr.bf16.mxu1 %v8161_v0 }
 0x537   :  { %2780 = vmatpush1.bf16.msra.mxu0 %v8164_v35  ;;  %2821 = vmatpush1.bf16.msra.mxu1 %v8167_v58 }
 0x538   :  { %2781 = vmatprep.subr.bf16.mxu0 %v8170_v22  ;;  %2822 = vmatprep.subr.bf16.mxu1 %v8173_v21 }
 0x53b   :  { %2782 = vmatpush1.bf16.msra.mxu0 %v8176_v25  ;;  %2823 = vmatpush1.bf16.msra.mxu1 %v8179_v6 }
 0x53c   :  { %2783 = vmatprep.subr.bf16.mxu0 %v8182_v16  ;;  %2824 = vmatprep.subr.bf16.mxu1 %v8185_v11 }
 0x53f   :  { %2784 = vmatpush1.bf16.msra.mxu0 %v8188_v61  ;;  %2825 = vmatpush1.bf16.msra.mxu1 %v8191_v57 }
 0x540   :  { %2785 = vmatprep.subr.bf16.mxu0 %v8194_v2  ;;  %2826 = vmatprep.subr.bf16.mxu1 %v8197_v14 }
 0x543   :  { %2786 = vmatpush1.bf16.msra.mxu0 %v8200_v17  ;;  %2827 = vmatpush1.bf16.msra.mxu1 %v8203_v34 }
 0x544   :  { %2787 = vmatprep.subr.bf16.mxu0 %v8206_v12  ;;  %2828 = vmatprep.subr.bf16.mxu1 %v8209_v9 }
 0x547   :  { %2788 = vmatpush1.bf16.msra.mxu0 %v8212_v55  ;;  %2829 = vmatpush1.bf16.msra.mxu1 %v8215_v19 }
 0x548   :  { %2789 = vmatprep.subr.bf16.mxu0 %v8218_v30  ;;  %2830 = vmatprep.subr.bf16.mxu1 %v8221_v20 }
 0x54b   :  { %2790 = vmatpush1.bf16.msra.mxu0 %v8224_v18  ;;  %2831 = vmatpush1.bf16.msra.mxu1 %v8227_v37 }
 0x54c   :  { %2880 = vmatprep.subr.bf16.mxu0 %v7819_v32  ;;  %2921 = vmatprep.subr.bf16.mxu1 %v7822_v33  ;;  %v10308_v32 = vld [vmem:[#allocation93_spill] sm:$0xff]  ;;  %v10309_v33 = vld [vmem:[#allocation94_spill] sm:$0xff] }
 0x54e   :  { %2808 = vmatmul.mubr.bf16.vlgmr.msra.gmra.mrb[52].mxu0 %v8050_v39  ;;  %2849 = vmatmul.mubr.bf16.vlgmr.msra.gmra.mrb[52].mxu1 %v8050_v39  ;;  %v10326_v39 = vld [vmem:[#allocation52_spill] sm:$0xff] }
 0x54f   :  { %2881 = vmatpush1.bf16.msra.mxu0 %v7827_v38  ;;  %2922 = vmatpush1.bf16.msra.mxu1 %v7830_v40  ;;  %v10310_v38 = vld [vmem:[#allocation95_spill] sm:$0xff]  ;;  %v10311_v40 = vld [vmem:[#allocation96_spill] sm:$0xff] }
 0x550   :  { %2882 = vmatprep.subr.bf16.mxu0 %v7833_v42  ;;  %2923 = vmatprep.subr.bf16.mxu1 %v7836_v43  ;;  %v10312_v42 = vld [vmem:[#allocation97_spill] sm:$0xff]  ;;  %v10313_v43 = vld [vmem:[#allocation98_spill] sm:$0xff] }
 0x551   :  { %2912 = vmatprep.mubr.bf16.mxu0 %v10021_v36  ;;  %2953 = vmatprep.mubr.bf16.mxu1 %v10021_v36 }
 0x553   :  { %2883 = vmatpush1.bf16.msra.mxu0 %v7841_v44  ;;  %2924 = vmatpush1.bf16.msra.mxu1 %v7844_v46  ;;  %v10314_v44 = vld [vmem:[#allocation99_spill] sm:$0xff]  ;;  %v10315_v46 = vld [vmem:[#allocation100_spill] sm:$0xff] }
 0x554   :  { %2884 = vmatprep.subr.bf16.mxu0 %v7847_v47  ;;  %2925 = vmatprep.subr.bf16.mxu1 %v7850_v48  ;;  %v10316_v47 = vld [vmem:[#allocation101_spill] sm:$0xff]  ;;  %v10317_v48 = vld [vmem:[#allocation102_spill] sm:$0xff] }
 0x557   :  { %2885 = vmatpush1.bf16.msra.mxu0 %v7853_v49  ;;  %2926 = vmatpush1.bf16.msra.mxu1 %v7856_v51  ;;  %v10318_v49 = vld [vmem:[#allocation103_spill] sm:$0xff]  ;;  %v10319_v51 = vld [vmem:[#allocation104_spill] sm:$0xff] }
 0x558   :  { %2886 = vmatprep.subr.bf16.mxu0 %v7859_v52  ;;  %2927 = vmatprep.subr.bf16.mxu1 %v7862_v53  ;;  %v10320_v52 = vld [vmem:[#allocation14_spill] sm:$0xff]  ;;  %v10321_v53 = vld [vmem:[#allocation15_spill] sm:$0xff] }
 0x55b   :  { %2887 = vmatpush1.bf16.msra.mxu0 %v7865_v62  ;;  %2928 = vmatpush1.bf16.msra.mxu1 %v7868_v63  ;;  %v10322_v62 = vld [vmem:[#allocation48_spill] sm:$0xff] }
 0x55c   :  { %2888 = vmatprep.subr.bf16.mxu0 %v7871_v5  ;;  %2929 = vmatprep.subr.bf16.mxu1 %v7874_v26  ;;  %v10323_v63 = vld [vmem:[#allocation108_spill] sm:$0xff]  ;;  %v10324_v5 = vld [vmem:[#allocation49_spill] sm:$0xff]  ;;  %v10325_v26 = vld [vmem:[#allocation50_spill] sm:$0xff] }
 0x55f   :  { %2889 = vmatpush1.bf16.msra.mxu0 %v10308_v32  ;;  %2930 = vmatpush1.bf16.msra.mxu1 %v10309_v33  ;;  %v10336_v32 = vld [vmem:[#allocation116_spill] sm:$0xff]  ;;  %v10337_v33 = vld [vmem:[#allocation117_spill] sm:$0xff] }
 0x560   :  { %2890 = vmatprep.subr.bf16.mxu0 %v10310_v38  ;;  %2931 = vmatprep.subr.bf16.mxu1 %v10311_v40  ;;  %v10338_v38 = vld [vmem:[#allocation118_spill] sm:$0xff]  ;;  %v10339_v40 = vld [vmem:[#allocation119_spill] sm:$0xff] }
 0x563   :  { %2891 = vmatpush1.bf16.msra.mxu0 %v10312_v42  ;;  %2932 = vmatpush1.bf16.msra.mxu1 %v10313_v43  ;;  %v10340_v42 = vld [vmem:[#allocation120_spill] sm:$0xff]  ;;  %v10341_v43 = vld [vmem:[#allocation121_spill] sm:$0xff] }
 0x564   :  { %2892 = vmatprep.subr.bf16.mxu0 %v10314_v44  ;;  %2933 = vmatprep.subr.bf16.mxu1 %v10315_v46  ;;  %v10342_v44 = vld [vmem:[#allocation122_spill] sm:$0xff]  ;;  %v10343_v46 = vld [vmem:[#allocation123_spill] sm:$0xff] }
 0x567   :  { %2893 = vmatpush1.bf16.msra.mxu0 %v10316_v47  ;;  %2934 = vmatpush1.bf16.msra.mxu1 %v10317_v48  ;;  %v10344_v47 = vld [vmem:[#allocation124_spill] sm:$0xff]  ;;  %v10345_v48 = vld [vmem:[#allocation125_spill] sm:$0xff] }
 0x568   :  { %2894 = vmatprep.subr.bf16.mxu0 %v10318_v49  ;;  %2935 = vmatprep.subr.bf16.mxu1 %v10319_v51  ;;  %v10346_v49 = vld [vmem:[#allocation126_spill] sm:$0xff]  ;;  %v10347_v51 = vld [vmem:[#allocation127_spill] sm:$0xff] }
 0x56b   :  { %2895 = vmatpush1.bf16.msra.mxu0 %v10320_v52  ;;  %2936 = vmatpush1.bf16.msra.mxu1 %v10321_v53  ;;  %v10348_v52 = vld [vmem:[#allocation128_spill] sm:$0xff]  ;;  %v10349_v53 = vld [vmem:[#allocation129_spill] sm:$0xff] }
 0x56c   :  { %2985 = vmatprep.subr.bf16.mxu0 %v10322_v62  ;;  %3026 = vmatprep.subr.bf16.mxu1 %v10323_v63  ;;  %v10350_v62 = vld [vmem:[#allocation130_spill] sm:$0xff]  ;;  %v10351_v63 = vld [vmem:[#allocation131_spill] sm:$0xff] }
 0x56e   :  { %2913 = vmatmul.mubr.bf16.vlgmr.msra.gmra.mrb[56].mxu0 %v8128_v41  ;;  %2954 = vmatmul.mubr.bf16.vlgmr.msra.gmra.mrb[56].mxu1 %v8128_v41  ;;  %v10335_v41 = vld [vmem:[#allocation115_spill] sm:$0xff] }
 0x56f   :  { %2986 = vmatpush1.bf16.msra.mxu0 %v10324_v5  ;;  %3027 = vmatpush1.bf16.msra.mxu1 %v10325_v26  ;;  %v10352_v5 = vld [vmem:[#allocation132_spill] sm:$0xff]  ;;  %v10353_v26 = vld [vmem:[#allocation133_spill] sm:$0xff] }
 0x570   :  { %2987 = vmatprep.subr.bf16.mxu0 %v10326_v39  ;;  %3028 = vmatprep.subr.bf16.mxu1 %v10327_v8  ;;  %v8302_v39 = vld [vmem:[#allocation10 + $0x4] ss:$16 sps:$4 sm:$0xff]   ;;  %v8305_v8 = vld [vmem:[#allocation10 + $0xc] ss:$16 sps:$4 sm:$0xff]  }
 0x571   :  { %3017 = vmatprep.mubr.bf16.mxu0 %v10021_v36  ;;  %3058 = vmatprep.mubr.bf16.mxu1 %v10021_v36 }
 0x573   :  { %2988 = vmatpush1.bf16.msra.mxu0 %v10328_v4  ;;  %3029 = vmatpush1.bf16.msra.mxu1 %v10329_v24 }
 0x574   :  { %2989 = vmatprep.subr.bf16.mxu0 %v10330_v3  ;;  %3030 = vmatprep.subr.bf16.mxu1 %v10331_v15  ;;  %v10354_v3 = vld [vmem:[#allocation20_spill] sm:$0xff] }
 0x577   :  { %2990 = vmatpush1.bf16.msra.mxu0 %v10332_v10  ;;  %3031 = vmatpush1.bf16.msra.mxu1 %v10333_v13 }
 0x578   :  { %2991 = vmatprep.subr.bf16.mxu0 %v10334_v60  ;;  %3032 = vmatprep.subr.bf16.mxu1 %v10335_v41  ;;  %v10355_v60 = vld [vmem:[#allocation134_spill] sm:$0xff] }
 0x57b   :  { %2992 = vmatpush1.bf16.msra.mxu0 %v10336_v32  ;;  %3033 = vmatpush1.bf16.msra.mxu1 %v10337_v33 }
 0x57c   :  { %2993 = vmatprep.subr.bf16.mxu0 %v10338_v38  ;;  %3034 = vmatprep.subr.bf16.mxu1 %v10339_v40 }
 0x57f   :  { %2994 = vmatpush1.bf16.msra.mxu0 %v10340_v42  ;;  %3035 = vmatpush1.bf16.msra.mxu1 %v10341_v43 }
 0x580   :  { %2995 = vmatprep.subr.bf16.mxu0 %v10342_v44  ;;  %3036 = vmatprep.subr.bf16.mxu1 %v10343_v46  ;;  %v10356_v44 = vld [vmem:[#allocation21_spill] sm:$0xff] }
 0x583   :  { %2996 = vmatpush1.bf16.msra.mxu0 %v10344_v47  ;;  %3037 = vmatpush1.bf16.msra.mxu1 %v10345_v48 }
 0x584   :  { %2997 = vmatprep.subr.bf16.mxu0 %v10346_v49  ;;  %3038 = vmatprep.subr.bf16.mxu1 %v10347_v51 }
 0x587   :  { %2998 = vmatpush1.bf16.msra.mxu0 %v10348_v52  ;;  %3039 = vmatpush1.bf16.msra.mxu1 %v10349_v53 }
 0x588   :  { %2999 = vmatprep.subr.bf16.mxu0 %v10350_v62  ;;  %3040 = vmatprep.subr.bf16.mxu1 %v10351_v63 }
 0x58b   :  { %3000 = vmatpush1.bf16.msra.mxu0 %v10352_v5  ;;  %3041 = vmatpush1.bf16.msra.mxu1 %v10353_v26 }
 0x58c   :  { %3072 = vmatprep.subr.bf16.mxu0 %v8302_v39  ;;  %3113 = vmatprep.subr.bf16.mxu1 %v8305_v8 }
 0x5e1   :  { %v2619_v4 = vpop.f32.mrb[48].mxu0  ;;  %v8308_v24 = vpop.f32.mrb[48].mxu1 }
 0x5e2   :  { %v5394_v15 = vadd.f32 %v2619_v4, %v10354_v3  ;;  %v2621_v10 = vpop.f32.mrb[49].mxu0  ;;  %v2662_v13 = vpop.f32.mrb[49].mxu1 }
 0x5e3   :  { %v5395_v41 = vadd.f32 %v2621_v10, %v10355_v60  ;;  %v2623_v32 = vpop.f32.mrb[50].mxu0  ;;  %v2664_v33 = vpop.f32.mrb[50].mxu1  ;;  %v5397_v46 = vadd.f32 %v2662_v13, %v10356_v44  ;;  %v10357_v10 = vld [vmem:[#allocation105_spill] sm:$0xff] }
 0x5e4   :  { %v2671_v38 = vmul.f32 0.5, %v5394_v15  ;;  %v2624_v40 = vpop.f32.mrb[51].mxu0  ;;  %v2665_v42 = vpop.f32.mrb[51].mxu1  ;;  %v10358_v33 = vld [vmem:[#allocation22_spill] sm:$0xff] }
 0x5e5   :  { %v2672_v43 = vmul.f32 0.5, %v5395_v41 }
 0x5e6   :  { %5885 = vtanh.f32 %v2671_v38 }
 0x5e7   :  { %5887 = vtanh.f32 %v2672_v43 }
 0x5e8   :  { %5889 = vtanh.f32 %v5397_v46 }
 0x5f0   :  { %v5886_v47 = vpop.eup %5885 }
 0x5f1   :  { %v2677_v48 = vadd.f32 1.0, %v5886_v47  ;;  %v5888_v49 = vpop.eup %5887 }
 0x5f2   :  { %v2678_v52 = vadd.f32 1.0, %v5888_v49  ;;  %v5890_v53 = vpop.eup %5889  ;;  %v10359_v49 = vld [vmem:[#allocation106_spill] sm:$0xff] }
 0x5f3   :  { %v2680_v51 = vmul.f32 0.5, %v2677_v48 }
 0x5f4   :  { %v2681_v62 = vmul.f32 0.5, %v2678_v52 }
 0x5f5   :  { %v2685_v63 = vmul.f32 %v5890_v53, %v2680_v51 }
 0x5f6   :  { %v2684_v5 = vmul.f32 %v2681_v62, %v8031_v31  ;;  %v10360_v31 = vld [vmem:[#allocation107_spill] sm:$0xff] }
 0x5f8   :  { %v8314_v26 = vadd.f32 %v2685_v63, %v2684_v5 }
 0x621   :  { %v2809_v4 = vpop.f32.mrb[52].mxu0  ;;  %v2850_v15 = vpop.f32.mrb[52].mxu1 }
 0x622   :  { %v5398_v41 = vadd.f32 %v2809_v4, %v10357_v10  ;;  %v2811_v32 = vpop.f32.mrb[53].mxu0  ;;  %v2852_v13 = vpop.f32.mrb[53].mxu1  ;;  %v5400_v52 = vadd.f32 %v2850_v15, %v10360_v31 }
 0x623   :  { %v5399_v38 = vadd.f32 %v2811_v32, %v10358_v33  ;;  %v2813_v40 = vpop.f32.mrb[54].mxu0  ;;  %v2854_v42 = vpop.f32.mrb[54].mxu1  ;;  %v5401_v51 = vadd.f32 %v2852_v13, %v10359_v49 }
 0x624   :  { %v2861_v43 = vmul.f32 0.5, %v5398_v41  ;;  %v2814_v46 = vpop.f32.mrb[55].mxu0  ;;  %v2855_v47 = vpop.f32.mrb[55].mxu1  ;;  %v2863_v53 = vmul.f32 0.5, %v5400_v52  ;;  %v10366_v52 = vld [vmem:[#allocation58_spill] sm:$0xff] }
 0x625   :  { %v2862_v48 = vmul.f32 0.5, %v5399_v38  ;;  %v10361_v46 = vld [vmem:[#allocation23_spill] sm:$0xff] }
 0x626   :  { %5891 = vtanh.f32 %v2861_v43  ;;  %v10363_v43 = vld [vmem:[#allocation16_spill] sm:$0xff] }
 0x627   :  { %5893 = vtanh.f32 %v2862_v48  ;;  %v10364_v48 = vld [vmem:[#allocation57_spill] sm:$0xff] }
 0x628   :  { %5895 = vtanh.f32 %v5401_v51  ;;  %v469_v15 = vadd.f32 %v10364_v48, %v10363_v43  ;;  %v10365_v51 = vld [vmem:[#allocation19_spill] sm:$0xff] }
 0x629   :  { %5897 = vtanh.f32 %v2863_v53  ;;  %v10368_v53 = vld [vmem:[#allocation60_spill] sm:$0xff] }
 0x630   :  { %v5892_v62 = vpop.eup %5891 }
 0x631   :  { %v2867_v63 = vadd.f32 1.0, %v5892_v62  ;;  %v5894_v5 = vpop.eup %5893  ;;  %v582_v62 = vadd.f32 %v10366_v52, %v10365_v51 }
 0x632   :  { %v2868_v32 = vadd.f32 1.0, %v5894_v5  ;;  %v5896_v40 = vpop.eup %5895 }
 0x633   :  { %v2870_v4 = vmul.f32 0.5, %v2867_v63  ;;  %v5898_v13 = vpop.eup %5897  ;;  %v10367_v63 = vld [vmem:[#allocation18_spill] sm:$0xff] }
 0x634   :  { %v2871_v42 = vmul.f32 0.5, %v2868_v32  ;;  %v2869_v31 = vadd.f32 1.0, %v5898_v13  ;;  %v584_v5 = vadd.f32 %v10368_v53, %v10367_v63 }
 0x635   :  { %v2875_v41 = vmul.f32 %v5896_v40, %v2870_v4 }
 0x636   :  { %v2874_v47 = vmul.f32 %v2871_v42, %v10361_v46  ;;  %v10369_v46 = vld [vmem:[#allocation59_spill] sm:$0xff]  ;;  %v2872_v48 = vmul.f32 0.5, %v2869_v31 }
 0x637   :  { %v8348_v31 = vld [vmem:[#allocation10 + $0x2c] ss:$16 sps:$4 sm:$0xff]  }
 0x638   :  { %v8321_v38 = vadd.f32 %v2875_v41, %v2874_v47 }
 0x63a   :  { %10362 = vst [vmem:[#allocation53_spill] sm:$0xff] %v8321_v38  ;;  %5899 = vtanh.f32 %v8321_v38 }
 0x641   :  { %v2914_v49 = vpop.f32.mrb[56].mxu0  ;;  %v2955_v32 = vpop.f32.mrb[56].mxu1 }
 0x642   :  { %v2962_v4 = vadd.f32 %v2914_v49, %v469_v15  ;;  %v8330_v40 = vadd.f32 %v2955_v32, %v582_v62  ;;  %v2916_v42 = vpop.f32.mrb[57].mxu0  ;;  %v2957_v41 = vpop.f32.mrb[57].mxu1  ;;  %v5396_v49 = vadd.f32 %v8308_v24, %v7577_v1  ;;  %v8362_v62 = vld [vmem:[#allocation10 + $0x4c] ss:$16 sps:$4 sm:$0xff]  }
 0x643   :  { %v2963_v47 = vadd.f32 %v2916_v42, %v10369_v46  ;;  %v2965_v38 = vadd.f32 %v2957_v41, %v584_v5  ;;  %v2918_v33 = vpop.f32.mrb[58].mxu0  ;;  %v2959_v10 = vpop.f32.mrb[58].mxu1  ;;  %v8365_v41 = vld [vmem:[#allocation10 + $0x40] ss:$16 sps:$4 sm:$0xff]   ;;  %v8368_v46 = vld [vmem:[#allocation10 + $0x48] ss:$16 sps:$4 sm:$0xff]  }
 0x644   :  { %v2966_v43 = vmul.f32 0.5, %v2962_v4  ;;  %v2919_v44 = vpop.f32.mrb[59].mxu0  ;;  %v2960_v52 = vpop.f32.mrb[59].mxu1  ;;  %v8339_v10 = vld [vmem:[#allocation10] ss:$16 sps:$4 sm:$0xff]   ;;  %v2673_v24 = vmul.f32 0.5, %v5396_v49 }
 0x645   :  { %v5900_v13 = vpop.eup %5899  ;;  %v2967_v51 = vmul.f32 0.5, %v2963_v47  ;;  %v8342_v44 = vld [vmem:[#allocation10 + $0x8] ss:$16 sps:$4 sm:$0xff]   ;;  %v8345_v33 = vld [vmem:[#allocation10 + $0x24] ss:$16 sps:$4 sm:$0xff]  }
 0x646   :  { %5901 = vtanh.f32 %v2966_v43  ;;  %v2878_v53 = vmul.f32 %v5900_v13, %v2872_v48  ;;  %v8356_v43 = vld [vmem:[#allocation10 + $0x28] ss:$16 sps:$4 sm:$0xff]   ;;  %v8371_v48 = vld [vmem:[#allocation10 + $0x64] ss:$16 sps:$4 sm:$0xff]   ;;  %v8374_v52 = vld [vmem:[#allocation10 + $0x6c] ss:$16 sps:$4 sm:$0xff]  }
 0x647   :  { %5903 = vtanh.f32 %v2967_v51  ;;  %v8359_v51 = vld [vmem:[#allocation10 + $0x44] ss:$16 sps:$4 sm:$0xff]  }
 0x648   :  { %v8333_v63 = vpack.c.bf16 %v2878_v53, %v2878_v53  ;;  %5905 = vtanh.f32 %v2965_v38  ;;  %v8353_v38 = vld [vmem:[#allocation10 + $0x20] ss:$16 sps:$4 sm:$0xff]  }
 0x649   :  { %5907 = vtanh.f32 %v2673_v24  ;;  %v8379_v24 = vld [vmem:[#allocation10 + $0x60] ss:$16 sps:$4 sm:$0xff]  }
 0x64a   :  { %3018 = vmatmul.mubr.bf16.vlgmr.msra.gmra.mrb[60].mxu0 %v8333_v63  ;;  %3059 = vmatmul.mubr.bf16.vlgmr.msra.gmra.mrb[60].mxu1 %v8333_v63  ;;  %5909 = vtanh.f32 %v8314_v26  ;;  %10370 = vst [vmem:[#allocation54_spill] sm:$0xff] %v8379_v24 }
 0x64b   :  { %3073 = vmatpush1.bf16.msra.mxu0 %v8339_v10  ;;  %3114 = vmatpush1.bf16.msra.mxu1 %v8342_v44 }
 0x64c   :  { %3074 = vmatprep.subr.bf16.mxu0 %v8345_v33  ;;  %3115 = vmatprep.subr.bf16.mxu1 %v8348_v31 }
 0x64d   :  { %3104 = vmatprep.mubr.bf16.mxu0 %v10021_v36  ;;  %3145 = vmatprep.mubr.bf16.mxu1 %v10021_v36 }
 0x64f   :  { %3075 = vmatpush1.bf16.msra.mxu0 %v8353_v38  ;;  %3116 = vmatpush1.bf16.msra.mxu1 %v8356_v43 }
 0x650   :  { %v5902_v15 = vpop.eup %5901  ;;  %3076 = vmatprep.subr.bf16.mxu0 %v8359_v51  ;;  %3117 = vmatprep.subr.bf16.mxu1 %v8362_v62 }
 0x651   :  { %v2972_v5 = vadd.f32 1.0, %v5902_v15  ;;  %v5904_v32 = vpop.eup %5903  ;;  %v8382_v15 = vld [vmem:[#allocation10 + $0x68] ss:$16 sps:$4 sm:$0xff]  }
 0x652   :  { %v2973_v42 = vadd.f32 1.0, %v5904_v32  ;;  %v5906_v47 = vpop.eup %5905  ;;  %10371 = vst [vmem:[#allocation56_spill] sm:$0xff] %v8382_v15  ;;  %v8388_v32 = vld [vmem:[#allocation10 + $0x8c] ss:$16 sps:$4 sm:$0xff]  }
 0x653   :  { %v2975_v4 = vmul.f32 0.5, %v2972_v5  ;;  %3077 = vmatpush1.bf16.msra.mxu0 %v8365_v41  ;;  %3118 = vmatpush1.bf16.msra.mxu1 %v8368_v46  ;;  %v8385_v5 = vld [vmem:[#allocation10 + $0x84] ss:$16 sps:$4 sm:$0xff]   ;;  %10373 = vst [vmem:[#allocation24_spill] sm:$0xff] %v8388_v32 }
 0x654   :  { %3078 = vmatprep.subr.bf16.mxu0 %v8371_v48  ;;  %3119 = vmatprep.subr.bf16.mxu1 %v8374_v52  ;;  %v2976_v13 = vmul.f32 0.5, %v2973_v42  ;;  %10372 = vst [vmem:[#allocation55_spill] sm:$0xff] %v8385_v5  ;;  %v5908_v42 = vpop.eup %5907 }
 0x655   :  { %v2980_v53 = vmul.f32 %v5906_v47, %v2975_v4  ;;  %v8396_v47 = vld [vmem:[#allocation10 + $0x88] ss:$16 sps:$4 sm:$0xff]  }
 0x656   :  { %v2979_v49 = vmul.f32 %v2976_v13, %v8076_v7  ;;  %v8393_v7 = vld [vmem:[#allocation10 + $0x80] ss:$16 sps:$4 sm:$0xff]   ;;  %10375 = vst [vmem:[#allocation26_spill] sm:$0xff] %v8396_v47  ;;  %v8399_v13 = vld [vmem:[#allocation10 + $0xa4] ss:$16 sps:$4 sm:$0xff]  }
 0x657   :  { %3079 = vmatpush1.bf16.msra.mxu0 %v8379_v24  ;;  %3120 = vmatpush1.bf16.msra.mxu1 %v8382_v15  ;;  %10374 = vst [vmem:[#allocation25_spill] sm:$0xff] %v8393_v7  ;;  %10376 = vst [vmem:[#allocation27_spill] sm:$0xff] %v8399_v13  ;;  %v8435_v24 = vld [vmem:[#allocation5 + $0x4] ss:$16 sps:$4 sm:$0xff]  }
 0x658   :  { %3080 = vmatprep.subr.bf16.mxu0 %v8385_v5  ;;  %3121 = vmatprep.subr.bf16.mxu1 %v8388_v32  ;;  %v8391_v4 = vadd.f32 %v2980_v53, %v2979_v49  ;;  %v8402_v5 = vld [vmem:[#allocation10 + $0xac] ss:$16 sps:$4 sm:$0xff]   ;;  %v2679_v32 = vadd.f32 1.0, %v5908_v42  ;;  %v8405_v53 = vld [vmem:[#allocation10 + $0xa0] ss:$16 sps:$4 sm:$0xff]   ;;  %10386 = vst [vmem:[#allocation37_spill] sm:$0xff] %v8435_v24 }
 0x659   :  { %10377 = vst [vmem:[#allocation28_spill] sm:$0xff] %v8402_v5  ;;  %10378 = vst [vmem:[#allocation29_spill] sm:$0xff] %v8405_v53  ;;  %v8408_v49 = vld [vmem:[#allocation10 + $0xa8] ss:$16 sps:$4 sm:$0xff]  }
 0x65a   :  { %10379 = vst [vmem:[#allocation30_spill] sm:$0xff] %v8408_v49  ;;  %v2682_v15 = vmul.f32 0.5, %v2679_v32  ;;  %v8420_v42 = vld [vmem:[#allocation10 + $0xc8] ss:$16 sps:$4 sm:$0xff]  }
 0x65b   :  { %3081 = vmatpush1.bf16.msra.mxu0 %v8393_v7  ;;  %3122 = vmatpush1.bf16.msra.mxu1 %v8396_v47  ;;  %v8411_v7 = vld [vmem:[#allocation10 + $0xc4] ss:$16 sps:$4 sm:$0xff]   ;;  %v8414_v47 = vld [vmem:[#allocation10 + $0xcc] ss:$16 sps:$4 sm:$0xff]   ;;  %10383 = vst [vmem:[#allocation34_spill] sm:$0xff] %v8420_v42 }
 0x65c   :  { %3082 = vmatprep.subr.bf16.mxu0 %v8399_v13  ;;  %3123 = vmatprep.subr.bf16.mxu1 %v8402_v5  ;;  %10380 = vst [vmem:[#allocation31_spill] sm:$0xff] %v8411_v7  ;;  %10381 = vst [vmem:[#allocation32_spill] sm:$0xff] %v8414_v47  ;;  %v5910_v13 = vpop.eup %5909  ;;  %v8417_v5 = vld [vmem:[#allocation10 + $0xc0] ss:$16 sps:$4 sm:$0xff]   ;;  %v8432_v32 = vld [vmem:[#allocation10 + $0xe8] ss:$16 sps:$4 sm:$0xff]  }
 0x65d   :  { %10382 = vst [vmem:[#allocation33_spill] sm:$0xff] %v8417_v5  ;;  %10385 = vst [vmem:[#allocation36_spill] sm:$0xff] %v8432_v32 }
 0x65f   :  { %3083 = vmatpush1.bf16.msra.mxu0 %v8405_v53  ;;  %3124 = vmatpush1.bf16.msra.mxu1 %v8408_v49  ;;  %v8423_v53 = vld [vmem:[#allocation10 + $0xe4] ss:$16 sps:$4 sm:$0xff]   ;;  %v8426_v49 = vld [vmem:[#allocation10 + $0xec] ss:$16 sps:$4 sm:$0xff]  }
 0x660   :  { %3084 = vmatprep.subr.bf16.mxu0 %v8411_v7  ;;  %3125 = vmatprep.subr.bf16.mxu1 %v8414_v47  ;;  %v2688_v7 = vmul.f32 %v5910_v13, %v2682_v15  ;;  %v8429_v47 = vld [vmem:[#allocation10 + $0xe0] ss:$16 sps:$4 sm:$0xff]   ;;  %v8444_v13 = vld [vmem:[#allocation5 + $0x8] ss:$16 sps:$4 sm:$0xff]  }
 0x661   :  { %10384 = vst [vmem:[#allocation35_spill] sm:$0xff] %v8429_v47  ;;  %v8441_v15 = vld [vmem:[#allocation5] ss:$16 sps:$4 sm:$0xff]   ;;  %10389 = vst [vmem:[#allocation40_spill] sm:$0xff] %v8444_v13 }
 0x662   :  { %10388 = vst [vmem:[#allocation39_spill] sm:$0xff] %v8441_v15 }
 0x663   :  { %3085 = vmatpush1.bf16.msra.mxu0 %v8417_v5  ;;  %3126 = vmatpush1.bf16.msra.mxu1 %v8420_v42  ;;  %v3071_v5 = vpack.c.bf16 %v2688_v7, %v2688_v7  ;;  %v8438_v42 = vld [vmem:[#allocation5 + $0xc] ss:$16 sps:$4 sm:$0xff]  }
 0x664   :  { %3086 = vmatprep.subr.bf16.mxu0 %v8423_v53  ;;  %3127 = vmatprep.subr.bf16.mxu1 %v8426_v49  ;;  %10387 = vst [vmem:[#allocation38_spill] sm:$0xff] %v8438_v42  ;;  %v8450_v7 = vld [vmem:[#allocation5 + $0x2c] ss:$16 sps:$4 sm:$0xff]  }
 0x665   :  { %10391 = vst [vmem:[#allocation42_spill] sm:$0xff] %v8450_v7 }
 0x667   :  { %3087 = vmatpush1.bf16.msra.mxu0 %v8429_v47  ;;  %3128 = vmatpush1.bf16.msra.mxu1 %v8432_v32  ;;  %v8447_v32 = vld [vmem:[#allocation5 + $0x24] ss:$16 sps:$4 sm:$0xff]  }
 0x668   :  { %3176 = vmatprep.subr.bf16.mxu0 %v8435_v24  ;;  %3217 = vmatprep.subr.bf16.mxu1 %v8438_v42  ;;  %10390 = vst [vmem:[#allocation41_spill] sm:$0xff] %v8447_v32  ;;  %v2968_v42 = vmul.f32 0.5, %v8330_v40  ;;  %v8468_v40 = vld [vmem:[#allocation5 + $0x40] ss:$16 sps:$4 sm:$0xff]  }
 0x669   :  { %10396 = vst [vmem:[#allocation47_spill] sm:$0xff] %v8468_v40  ;;  %v8505_v24 = vld [vmem:[#allocation5 + $0xa0] ss:$16 sps:$4 sm:$0xff]  }
 0x66a   :  { %3105 = vmatmul.mubr.bf16.vlgmr.msra.gmra.mrb[60].mxu0 %v3071_v5  ;;  %3146 = vmatmul.mubr.bf16.vlgmr.msra.gmra.mrb[60].mxu1 %v3071_v5  ;;  %v8456_v5 = vld [vmem:[#allocation5 + $0x20] ss:$16 sps:$4 sm:$0xff]   ;;  %5911 = vtanh.f32 %v2968_v42  ;;  %v8484_v42 = vld [vmem:[#allocation5 + $0x68] ss:$16 sps:$4 sm:$0xff]   ;;  %10408 = vst [vmem:[#allocation84_spill] sm:$0xff] %v8505_v24 }
 0x66b   :  { %3177 = vmatpush1.bf16.msra.mxu0 %v8441_v15  ;;  %3218 = vmatpush1.bf16.msra.mxu1 %v8444_v13  ;;  %10392 = vst [vmem:[#allocation43_spill] sm:$0xff] %v8456_v5  ;;  %v8459_v15 = vld [vmem:[#allocation5 + $0x28] ss:$16 sps:$4 sm:$0xff]   ;;  %v8462_v13 = vld [vmem:[#allocation5 + $0x44] ss:$16 sps:$4 sm:$0xff]   ;;  %5913 = vtanh.f32 %v8391_v4  ;;  %10401 = vst [vmem:[#allocation77_spill] sm:$0xff] %v8484_v42 }
 0x66c   :  { %3178 = vmatprep.subr.bf16.mxu0 %v8447_v32  ;;  %3219 = vmatprep.subr.bf16.mxu1 %v8450_v7  ;;  %10393 = vst [vmem:[#allocation44_spill] sm:$0xff] %v8459_v15  ;;  %10394 = vst [vmem:[#allocation45_spill] sm:$0xff] %v8462_v13  ;;  %v8465_v32 = vld [vmem:[#allocation5 + $0x4c] ss:$16 sps:$4 sm:$0xff]   ;;  %v8471_v7 = vld [vmem:[#allocation5 + $0x48] ss:$16 sps:$4 sm:$0xff]  }
 0x66d   :  { %3208 = vmatprep.mubr.bf16.mxu0 %v10021_v36  ;;  %3249 = vmatprep.mubr.bf16.mxu1 %v10021_v36  ;;  %10395 = vst [vmem:[#allocation46_spill] sm:$0xff] %v8465_v32  ;;  %10397 = vst [vmem:[#allocation73_spill] sm:$0xff] %v8471_v7 }
 0x66f   :  { %3179 = vmatpush1.bf16.msra.mxu0 %v8456_v5  ;;  %3220 = vmatpush1.bf16.msra.mxu1 %v8459_v15  ;;  %v8474_v5 = vld [vmem:[#allocation5 + $0x64] ss:$16 sps:$4 sm:$0xff]   ;;  %v8477_v15 = vld [vmem:[#allocation5 + $0x6c] ss:$16 sps:$4 sm:$0xff]  }
 0x670   :  { %3180 = vmatprep.subr.bf16.mxu0 %v8462_v13  ;;  %3221 = vmatprep.subr.bf16.mxu1 %v8465_v32  ;;  %10398 = vst [vmem:[#allocation74_spill] sm:$0xff] %v8474_v5  ;;  %10399 = vst [vmem:[#allocation75_spill] sm:$0xff] %v8477_v15  ;;  %v8481_v32 = vld [vmem:[#allocation5 + $0x60] ss:$16 sps:$4 sm:$0xff]   ;;  %v8496_v13 = vld [vmem:[#allocation5 + $0x88] ss:$16 sps:$4 sm:$0xff]  }
 0x671   :  { %10400 = vst [vmem:[#allocation76_spill] sm:$0xff] %v8481_v32  ;;  %10405 = vst [vmem:[#allocation81_spill] sm:$0xff] %v8496_v13 }
 0x673   :  { %3181 = vmatpush1.bf16.msra.mxu0 %v8468_v40  ;;  %3222 = vmatpush1.bf16.msra.mxu1 %v8471_v7  ;;  %v8487_v40 = vld [vmem:[#allocation5 + $0x84] ss:$16 sps:$4 sm:$0xff]   ;;  %v8490_v7 = vld [vmem:[#allocation5 + $0x8c] ss:$16 sps:$4 sm:$0xff]  }
 0x674   :  { %3182 = vmatprep.subr.bf16.mxu0 %v8474_v5  ;;  %3223 = vmatprep.subr.bf16.mxu1 %v8477_v15  ;;  %10402 = vst [vmem:[#allocation78_spill] sm:$0xff] %v8487_v40  ;;  %10403 = vst [vmem:[#allocation79_spill] sm:$0xff] %v8490_v7  ;;  %v5912_v5 = vpop.eup %5911  ;;  %v8493_v15 = vld [vmem:[#allocation5 + $0x80] ss:$16 sps:$4 sm:$0xff]  }
 0x675   :  { %10404 = vst [vmem:[#allocation80_spill] sm:$0xff] %v8493_v15 }
 0x677   :  { %3183 = vmatpush1.bf16.msra.mxu0 %v8481_v32  ;;  %3224 = vmatpush1.bf16.msra.mxu1 %v8484_v42  ;;  %v8499_v32 = vld [vmem:[#allocation5 + $0xa4] ss:$16 sps:$4 sm:$0xff]   ;;  %v8502_v42 = vld [vmem:[#allocation5 + $0xac] ss:$16 sps:$4 sm:$0xff]  }
 0x678   :  { %3184 = vmatprep.subr.bf16.mxu0 %v8487_v40  ;;  %3225 = vmatprep.subr.bf16.mxu1 %v8490_v7  ;;  %10406 = vst [vmem:[#allocation82_spill] sm:$0xff] %v8499_v32  ;;  %10407 = vst [vmem:[#allocation83_spill] sm:$0xff] %v8502_v42  ;;  %v2974_v40 = vadd.f32 1.0, %v5912_v5  ;;  %v8508_v7 = vld [vmem:[#allocation5 + $0xa8] ss:$16 sps:$4 sm:$0xff]  }
 0x679   :  { %10409 = vst [vmem:[#allocation85_spill] sm:$0xff] %v8508_v7  ;;  %v8520_v5 = vld [vmem:[#allocation5 + $0xc8] ss:$16 sps:$4 sm:$0xff]  }
 0x67a   :  { %v2977_v47 = vmul.f32 0.5, %v2974_v40  ;;  %v8532_v40 = vld [vmem:[#allocation5 + $0xe8] ss:$16 sps:$4 sm:$0xff]  }
 0x67b   :  { %3185 = vmatpush1.bf16.msra.mxu0 %v8493_v15  ;;  %3226 = vmatpush1.bf16.msra.mxu1 %v8496_v13  ;;  %v8511_v15 = vld [vmem:[#allocation5 + $0xc4] ss:$16 sps:$4 sm:$0xff]   ;;  %v8514_v13 = vld [vmem:[#allocation5 + $0xcc] ss:$16 sps:$4 sm:$0xff]  }
 0x67c   :  { %3186 = vmatprep.subr.bf16.mxu0 %v8499_v32  ;;  %3227 = vmatprep.subr.bf16.mxu1 %v8502_v42  ;;  %10410 = vst [vmem:[#allocation86_spill] sm:$0xff] %v8511_v15  ;;  %10411 = vst [vmem:[#allocation87_spill] sm:$0xff] %v8514_v13  ;;  %v5914_v32 = vpop.eup %5913  ;;  %v8517_v42 = vld [vmem:[#allocation5 + $0xc0] ss:$16 sps:$4 sm:$0xff]  }
 0x67d   :  { %10412 = vst [vmem:[#allocation88_spill] sm:$0xff] %v8517_v42 }
 0x67f   :  { %3187 = vmatpush1.bf16.msra.mxu0 %v8505_v24  ;;  %3228 = vmatpush1.bf16.msra.mxu1 %v8508_v7  ;;  %v8523_v24 = vld [vmem:[#allocation5 + $0xe4] ss:$16 sps:$4 sm:$0xff]   ;;  %v8526_v7 = vld [vmem:[#allocation5 + $0xec] ss:$16 sps:$4 sm:$0xff]  }
 0x680   :  { %3188 = vmatprep.subr.bf16.mxu0 %v8511_v15  ;;  %3229 = vmatprep.subr.bf16.mxu1 %v8514_v13  ;;  %v2983_v15 = vmul.f32 %v5914_v32, %v2977_v47  ;;  %v8529_v13 = vld [vmem:[#allocation5 + $0xe0] ss:$16 sps:$4 sm:$0xff]   ;;  %v8676_v47 = vld [vmem:[#allocation8 + $0xc] ss:$16 sps:$4 sm:$0xff]  }
 0x681   :  { %10429 = vst [vmem:[#allocation14_spill] sm:$0xff] %v8676_v47  ;;  %v8681_v32 = vld [vmem:[#allocation8] ss:$16 sps:$4 sm:$0xff]  }
 0x682   :  { %10430 = vst [vmem:[#allocation15_spill] sm:$0xff] %v8681_v32 }
 0x683   :  { %3189 = vmatpush1.bf16.msra.mxu0 %v8517_v42  ;;  %3230 = vmatpush1.bf16.msra.mxu1 %v8520_v5  ;;  %v8535_v42 = vpack.c.bf16 %v2983_v15, %v2983_v15  ;;  %v8684_v15 = vld [vmem:[#allocation8 + $0x8] ss:$16 sps:$4 sm:$0xff]  }
 0x684   :  { %3190 = vmatprep.subr.bf16.mxu0 %v8523_v24  ;;  %3231 = vmatprep.subr.bf16.mxu1 %v8526_v7  ;;  %10431 = vst [vmem:[#allocation48_spill] sm:$0xff] %v8684_v15 }
 0x687   :  { %3191 = vmatpush1.bf16.msra.mxu0 %v8529_v13  ;;  %3232 = vmatpush1.bf16.msra.mxu1 %v8532_v40 }
 0x688   :  { %3262 = vmatprep.subr.bf16.mxu0 %v8130_v50  ;;  %3303 = vmatprep.subr.bf16.mxu1 %v8133_v59  ;;  %v8573_v50 = vld [vmem:[#allocation3 + $0x4] ss:$16 sps:$4 sm:$0xff]   ;;  %v8576_v59 = vld [vmem:[#allocation3 + $0xc] ss:$16 sps:$4 sm:$0xff]  }
 0x68a   :  { %3209 = vmatmul.mubr.bf16.vlgmr.msra.gmra.mrb[64].mxu0 %v8535_v42  ;;  %3250 = vmatmul.mubr.bf16.vlgmr.msra.gmra.mrb[64].mxu1 %v8535_v42 }
 0x68b   :  { %3263 = vmatpush1.bf16.msra.mxu0 %v8138_v28  ;;  %3304 = vmatpush1.bf16.msra.mxu1 %v8141_v45  ;;  %v8581_v28 = vld [vmem:[#allocation3] ss:$16 sps:$4 sm:$0xff]   ;;  %v8584_v45 = vld [vmem:[#allocation3 + $0x8] ss:$16 sps:$4 sm:$0xff]  }
 0x68c   :  { %3264 = vmatprep.subr.bf16.mxu0 %v8144_v29  ;;  %3305 = vmatprep.subr.bf16.mxu1 %v8147_v56  ;;  %v8587_v29 = vld [vmem:[#allocation3 + $0x24] ss:$16 sps:$4 sm:$0xff]   ;;  %v8590_v56 = vld [vmem:[#allocation3 + $0x2c] ss:$16 sps:$4 sm:$0xff]  }
 0x68d   :  { %3294 = vmatprep.mubr.bf16.mxu0 %v10021_v36  ;;  %3335 = vmatprep.mubr.bf16.mxu1 %v10021_v36 }
 0x68f   :  { %3265 = vmatpush1.bf16.msra.mxu0 %v8152_v27  ;;  %3306 = vmatpush1.bf16.msra.mxu1 %v8155_v23  ;;  %v8595_v27 = vld [vmem:[#allocation3 + $0x20] ss:$16 sps:$4 sm:$0xff]   ;;  %v8598_v23 = vld [vmem:[#allocation3 + $0x28] ss:$16 sps:$4 sm:$0xff]  }
 0x690   :  { %3266 = vmatprep.subr.bf16.mxu0 %v8158_v54  ;;  %3307 = vmatprep.subr.bf16.mxu1 %v8161_v0  ;;  %v8601_v54 = vld [vmem:[#allocation3 + $0x44] ss:$16 sps:$4 sm:$0xff]   ;;  %v8604_v0 = vld [vmem:[#allocation3 + $0x4c] ss:$16 sps:$4 sm:$0xff]  }
 0x693   :  { %3267 = vmatpush1.bf16.msra.mxu0 %v8164_v35  ;;  %3308 = vmatpush1.bf16.msra.mxu1 %v8167_v58  ;;  %v8607_v35 = vld [vmem:[#allocation3 + $0x40] ss:$16 sps:$4 sm:$0xff]   ;;  %v8610_v58 = vld [vmem:[#allocation3 + $0x48] ss:$16 sps:$4 sm:$0xff]  }
 0x694   :  { %3268 = vmatprep.subr.bf16.mxu0 %v8170_v22  ;;  %3309 = vmatprep.subr.bf16.mxu1 %v8173_v21  ;;  %v8613_v22 = vld [vmem:[#allocation3 + $0x64] ss:$16 sps:$4 sm:$0xff]   ;;  %v8616_v21 = vld [vmem:[#allocation3 + $0x6c] ss:$16 sps:$4 sm:$0xff]  }
 0x697   :  { %3269 = vmatpush1.bf16.msra.mxu0 %v8176_v25  ;;  %3310 = vmatpush1.bf16.msra.mxu1 %v8179_v6  ;;  %v8619_v25 = vld [vmem:[#allocation3 + $0x60] ss:$16 sps:$4 sm:$0xff]   ;;  %v8622_v6 = vld [vmem:[#allocation3 + $0x68] ss:$16 sps:$4 sm:$0xff]  }
 0x698   :  { %3270 = vmatprep.subr.bf16.mxu0 %v8182_v16  ;;  %3311 = vmatprep.subr.bf16.mxu1 %v8185_v11  ;;  %v8625_v16 = vld [vmem:[#allocation3 + $0x84] ss:$16 sps:$4 sm:$0xff]   ;;  %v8628_v11 = vld [vmem:[#allocation3 + $0x8c] ss:$16 sps:$4 sm:$0xff]  }
 0x699   :  { %10413 = vst [vmem:[#allocation89_spill] sm:$0xff] %v8628_v11 }
 0x69b   :  { %3271 = vmatpush1.bf16.msra.mxu0 %v8188_v61  ;;  %3312 = vmatpush1.bf16.msra.mxu1 %v8191_v57  ;;  %v8631_v61 = vld [vmem:[#allocation3 + $0x80] ss:$16 sps:$4 sm:$0xff]   ;;  %v8634_v57 = vld [vmem:[#allocation3 + $0x88] ss:$16 sps:$4 sm:$0xff]  }
 0x69c   :  { %3272 = vmatprep.subr.bf16.mxu0 %v8194_v2  ;;  %3313 = vmatprep.subr.bf16.mxu1 %v8197_v14  ;;  %10414 = vst [vmem:[#allocation90_spill] sm:$0xff] %v8631_v61  ;;  %10415 = vst [vmem:[#allocation91_spill] sm:$0xff] %v8634_v57  ;;  %v8637_v2 = vld [vmem:[#allocation3 + $0xa4] ss:$16 sps:$4 sm:$0xff]   ;;  %v8640_v14 = vld [vmem:[#allocation3 + $0xac] ss:$16 sps:$4 sm:$0xff]  }
 0x69d   :  { %10416 = vst [vmem:[#allocation92_spill] sm:$0xff] %v8637_v2  ;;  %10417 = vst [vmem:[#allocation93_spill] sm:$0xff] %v8640_v14 }
 0x69f   :  { %3273 = vmatpush1.bf16.msra.mxu0 %v8200_v17  ;;  %3314 = vmatpush1.bf16.msra.mxu1 %v8203_v34  ;;  %v8643_v17 = vld [vmem:[#allocation3 + $0xa0] ss:$16 sps:$4 sm:$0xff]   ;;  %v8646_v34 = vld [vmem:[#allocation3 + $0xa8] ss:$16 sps:$4 sm:$0xff]  }
 0x6a0   :  { %3274 = vmatprep.subr.bf16.mxu0 %v8206_v12  ;;  %3315 = vmatprep.subr.bf16.mxu1 %v8209_v9  ;;  %10418 = vst [vmem:[#allocation94_spill] sm:$0xff] %v8643_v17  ;;  %10419 = vst [vmem:[#allocation95_spill] sm:$0xff] %v8646_v34  ;;  %v8649_v12 = vld [vmem:[#allocation3 + $0xc4] ss:$16 sps:$4 sm:$0xff]   ;;  %v8652_v9 = vld [vmem:[#allocation3 + $0xcc] ss:$16 sps:$4 sm:$0xff]  }
 0x6a1   :  { %10420 = vst [vmem:[#allocation96_spill] sm:$0xff] %v8649_v12  ;;  %10421 = vst [vmem:[#allocation97_spill] sm:$0xff] %v8652_v9 }
 0x6a3   :  { %3275 = vmatpush1.bf16.msra.mxu0 %v8212_v55  ;;  %3316 = vmatpush1.bf16.msra.mxu1 %v8215_v19  ;;  %v8655_v55 = vld [vmem:[#allocation3 + $0xc0] ss:$16 sps:$4 sm:$0xff]   ;;  %v8658_v19 = vld [vmem:[#allocation3 + $0xc8] ss:$16 sps:$4 sm:$0xff]  }
 0x6a4   :  { %3276 = vmatprep.subr.bf16.mxu0 %v8218_v30  ;;  %3317 = vmatprep.subr.bf16.mxu1 %v8221_v20  ;;  %10422 = vst [vmem:[#allocation98_spill] sm:$0xff] %v8655_v55  ;;  %10423 = vst [vmem:[#allocation99_spill] sm:$0xff] %v8658_v19  ;;  %v8661_v30 = vld [vmem:[#allocation3 + $0xe4] ss:$16 sps:$4 sm:$0xff]   ;;  %v8664_v20 = vld [vmem:[#allocation3 + $0xec] ss:$16 sps:$4 sm:$0xff]  }
 0x6a5   :  { %10424 = vst [vmem:[#allocation100_spill] sm:$0xff] %v8661_v30  ;;  %10425 = vst [vmem:[#allocation101_spill] sm:$0xff] %v8664_v20 }
 0x6a7   :  { %3277 = vmatpush1.bf16.msra.mxu0 %v8224_v18  ;;  %3318 = vmatpush1.bf16.msra.mxu1 %v8227_v37  ;;  %v8667_v18 = vld [vmem:[#allocation3 + $0xe0] ss:$16 sps:$4 sm:$0xff]   ;;  %v8670_v37 = vld [vmem:[#allocation3 + $0xe8] ss:$16 sps:$4 sm:$0xff]  }
 0x6a8   :  { %3367 = vmatprep.subr.bf16.mxu0 %v8573_v50  ;;  %3408 = vmatprep.subr.bf16.mxu1 %v8576_v59  ;;  %10426 = vst [vmem:[#allocation102_spill] sm:$0xff] %v8667_v18  ;;  %10427 = vst [vmem:[#allocation103_spill] sm:$0xff] %v8670_v37 }
 0x6aa   :  { %3295 = vmatmul.mubr.bf16.vlgmr.msra.gmra.mrb[64].mxu0 %v8333_v63  ;;  %3336 = vmatmul.mubr.bf16.vlgmr.msra.gmra.mrb[64].mxu1 %v8333_v63  ;;  %v8673_v63 = vld [vmem:[#allocation8 + $0x4] ss:$16 sps:$4 sm:$0xff]  }
 0x6ab   :  { %3368 = vmatpush1.bf16.msra.mxu0 %v8581_v28  ;;  %3409 = vmatpush1.bf16.msra.mxu1 %v8584_v45  ;;  %10428 = vst [vmem:[#allocation104_spill] sm:$0xff] %v8673_v63 }
 0x6ac   :  { %3369 = vmatprep.subr.bf16.mxu0 %v8587_v29  ;;  %3410 = vmatprep.subr.bf16.mxu1 %v8590_v56 }
 0x6ad   :  { %3399 = vmatprep.mubr.bf16.mxu0 %v10021_v36  ;;  %3440 = vmatprep.mubr.bf16.mxu1 %v10021_v36 }
 0x6af   :  { %3370 = vmatpush1.bf16.msra.mxu0 %v8595_v27  ;;  %3411 = vmatpush1.bf16.msra.mxu1 %v8598_v23 }
 0x6b0   :  { %3371 = vmatprep.subr.bf16.mxu0 %v8601_v54  ;;  %3412 = vmatprep.subr.bf16.mxu1 %v8604_v0 }
 0x6b3   :  { %3372 = vmatpush1.bf16.msra.mxu0 %v8607_v35  ;;  %3413 = vmatpush1.bf16.msra.mxu1 %v8610_v58 }
 0x6b4   :  { %3373 = vmatprep.subr.bf16.mxu0 %v8613_v22  ;;  %3414 = vmatprep.subr.bf16.mxu1 %v8616_v21 }
 0x6b7   :  { %3374 = vmatpush1.bf16.msra.mxu0 %v8619_v25  ;;  %3415 = vmatpush1.bf16.msra.mxu1 %v8622_v6 }
 0x6b8   :  { %3375 = vmatprep.subr.bf16.mxu0 %v8625_v16  ;;  %3416 = vmatprep.subr.bf16.mxu1 %v8628_v11 }
 0x6bb   :  { %3376 = vmatpush1.bf16.msra.mxu0 %v8631_v61  ;;  %3417 = vmatpush1.bf16.msra.mxu1 %v8634_v57 }
 0x6bc   :  { %3377 = vmatprep.subr.bf16.mxu0 %v8637_v2  ;;  %3418 = vmatprep.subr.bf16.mxu1 %v8640_v14 }
 0x6bf   :  { %3378 = vmatpush1.bf16.msra.mxu0 %v8643_v17  ;;  %3419 = vmatpush1.bf16.msra.mxu1 %v8646_v34 }
 0x6c0   :  { %3379 = vmatprep.subr.bf16.mxu0 %v8649_v12  ;;  %3420 = vmatprep.subr.bf16.mxu1 %v8652_v9 }
 0x6c3   :  { %3380 = vmatpush1.bf16.msra.mxu0 %v8655_v55  ;;  %3421 = vmatpush1.bf16.msra.mxu1 %v8658_v19 }
 0x6c4   :  { %3381 = vmatprep.subr.bf16.mxu0 %v8661_v30  ;;  %3422 = vmatprep.subr.bf16.mxu1 %v8664_v20 }
 0x6c7   :  { %3382 = vmatpush1.bf16.msra.mxu0 %v8667_v18  ;;  %3423 = vmatpush1.bf16.msra.mxu1 %v8670_v37  ;;  %v8687_v37 = vld [vmem:[#allocation8 + $0x24] ss:$16 sps:$4 sm:$0xff]  }
 0x6c8   :  { %3472 = vmatprep.subr.bf16.mxu0 %v8673_v63  ;;  %3513 = vmatprep.subr.bf16.mxu1 %v8676_v47  ;;  %10432 = vst [vmem:[#allocation108_spill] sm:$0xff] %v8687_v37  ;;  %v8690_v63 = vld [vmem:[#allocation8 + $0x2c] ss:$16 sps:$4 sm:$0xff]   ;;  %v8710_v47 = vld [vmem:[#allocation8 + $0x48] ss:$16 sps:$4 sm:$0xff]  }
 0x6c9   :  { %10433 = vst [vmem:[#allocation49_spill] sm:$0xff] %v8690_v63  ;;  %10439 = vst [vmem:[#allocation110_spill] sm:$0xff] %v8710_v47 }
 0x6ca   :  { %3400 = vmatmul.mubr.bf16.vlgmr.msra.gmra.mrb[68].mxu0 %v8535_v42  ;;  %3441 = vmatmul.mubr.bf16.vlgmr.msra.gmra.mrb[68].mxu1 %v8535_v42  ;;  %v8695_v42 = vld [vmem:[#allocation8 + $0x20] ss:$16 sps:$4 sm:$0xff]  }
 0x6cb   :  { %3473 = vmatpush1.bf16.msra.mxu0 %v8681_v32  ;;  %3514 = vmatpush1.bf16.msra.mxu1 %v8684_v15  ;;  %10434 = vst [vmem:[#allocation50_spill] sm:$0xff] %v8695_v42  ;;  %v8698_v32 = vld [vmem:[#allocation8 + $0x28] ss:$16 sps:$4 sm:$0xff]   ;;  %v8701_v15 = vld [vmem:[#allocation8 + $0x44] ss:$16 sps:$4 sm:$0xff]  }
 0x6cc   :  { %3474 = vmatprep.subr.bf16.mxu0 %v8687_v37  ;;  %3515 = vmatprep.subr.bf16.mxu1 %v8690_v63  ;;  %10435 = vst [vmem:[#allocation52_spill] sm:$0xff] %v8698_v32  ;;  %10436 = vst [vmem:[#allocation51_spill] sm:$0xff] %v8701_v15  ;;  %v8704_v37 = vld [vmem:[#allocation8 + $0x4c] ss:$16 sps:$4 sm:$0xff]   ;;  %v8707_v63 = vld [vmem:[#allocation8 + $0x40] ss:$16 sps:$4 sm:$0xff]  }
 0x6cd   :  { %3504 = vmatprep.mubr.bf16.mxu0 %v10021_v36  ;;  %3545 = vmatprep.mubr.bf16.mxu1 %v10021_v36  ;;  %10437 = vst [vmem:[#allocation17_spill] sm:$0xff] %v8704_v37  ;;  %10438 = vst [vmem:[#allocation109_spill] sm:$0xff] %v8707_v63 }
 0x6cf   :  { %3475 = vmatpush1.bf16.msra.mxu0 %v8695_v42  ;;  %3516 = vmatpush1.bf16.msra.mxu1 %v8698_v32  ;;  %v8713_v42 = vld [vmem:[#allocation8 + $0x64] ss:$16 sps:$4 sm:$0xff]   ;;  %v8716_v32 = vld [vmem:[#allocation8 + $0x6c] ss:$16 sps:$4 sm:$0xff]  }
 0x6d0   :  { %3476 = vmatprep.subr.bf16.mxu0 %v8701_v15  ;;  %3517 = vmatprep.subr.bf16.mxu1 %v8704_v37  ;;  %10440 = vst [vmem:[#allocation111_spill] sm:$0xff] %v8713_v42  ;;  %10441 = vst [vmem:[#allocation112_spill] sm:$0xff] %v8716_v32  ;;  %v8719_v15 = vld [vmem:[#allocation8 + $0x60] ss:$16 sps:$4 sm:$0xff]   ;;  %v8722_v37 = vld [vmem:[#allocation8 + $0x68] ss:$16 sps:$4 sm:$0xff]  }
 0x6d1   :  { %10442 = vst [vmem:[#allocation113_spill] sm:$0xff] %v8719_v15  ;;  %10443 = vst [vmem:[#allocation114_spill] sm:$0xff] %v8722_v37 }
 0x6d3   :  { %3477 = vmatpush1.bf16.msra.mxu0 %v8707_v63  ;;  %3518 = vmatpush1.bf16.msra.mxu1 %v8710_v47  ;;  %v8725_v63 = vld [vmem:[#allocation8 + $0x84] ss:$16 sps:$4 sm:$0xff]   ;;  %v8728_v47 = vld [vmem:[#allocation8 + $0x8c] ss:$16 sps:$4 sm:$0xff]  }
 0x6d4   :  { %3478 = vmatprep.subr.bf16.mxu0 %v8713_v42  ;;  %3519 = vmatprep.subr.bf16.mxu1 %v8716_v32  ;;  %10444 = vst [vmem:[#allocation115_spill] sm:$0xff] %v8725_v63  ;;  %10445 = vst [vmem:[#allocation116_spill] sm:$0xff] %v8728_v47  ;;  %v8731_v42 = vld [vmem:[#allocation8 + $0x80] ss:$16 sps:$4 sm:$0xff]   ;;  %v8734_v32 = vld [vmem:[#allocation8 + $0x88] ss:$16 sps:$4 sm:$0xff]  }
 0x6d5   :  { %10446 = vst [vmem:[#allocation117_spill] sm:$0xff] %v8731_v42  ;;  %10447 = vst [vmem:[#allocation118_spill] sm:$0xff] %v8734_v32 }
 0x6d7   :  { %3479 = vmatpush1.bf16.msra.mxu0 %v8719_v15  ;;  %3520 = vmatpush1.bf16.msra.mxu1 %v8722_v37  ;;  %v8737_v15 = vld [vmem:[#allocation8 + $0xa4] ss:$16 sps:$4 sm:$0xff]   ;;  %v8740_v37 = vld [vmem:[#allocation8 + $0xac] ss:$16 sps:$4 sm:$0xff]  }
 0x6d8   :  { %3480 = vmatprep.subr.bf16.mxu0 %v8725_v63  ;;  %3521 = vmatprep.subr.bf16.mxu1 %v8728_v47  ;;  %10448 = vst [vmem:[#allocation119_spill] sm:$0xff] %v8737_v15  ;;  %10449 = vst [vmem:[#allocation120_spill] sm:$0xff] %v8740_v37  ;;  %v8743_v63 = vld [vmem:[#allocation8 + $0xa0] ss:$16 sps:$4 sm:$0xff]   ;;  %v8746_v47 = vld [vmem:[#allocation8 + $0xa8] ss:$16 sps:$4 sm:$0xff]  }
 0x6d9   :  { %10450 = vst [vmem:[#allocation121_spill] sm:$0xff] %v8743_v63  ;;  %10451 = vst [vmem:[#allocation122_spill] sm:$0xff] %v8746_v47 }
 0x6db   :  { %3481 = vmatpush1.bf16.msra.mxu0 %v8731_v42  ;;  %3522 = vmatpush1.bf16.msra.mxu1 %v8734_v32  ;;  %v8749_v42 = vld [vmem:[#allocation8 + $0xc4] ss:$16 sps:$4 sm:$0xff]   ;;  %v8752_v32 = vld [vmem:[#allocation8 + $0xcc] ss:$16 sps:$4 sm:$0xff]  }
 0x6dc   :  { %3482 = vmatprep.subr.bf16.mxu0 %v8737_v15  ;;  %3523 = vmatprep.subr.bf16.mxu1 %v8740_v37  ;;  %10452 = vst [vmem:[#allocation123_spill] sm:$0xff] %v8749_v42  ;;  %10453 = vst [vmem:[#allocation124_spill] sm:$0xff] %v8752_v32  ;;  %v8755_v15 = vld [vmem:[#allocation8 + $0xc0] ss:$16 sps:$4 sm:$0xff]   ;;  %v8758_v37 = vld [vmem:[#allocation8 + $0xc8] ss:$16 sps:$4 sm:$0xff]  }
 0x6dd   :  { %10454 = vst [vmem:[#allocation125_spill] sm:$0xff] %v8755_v15  ;;  %10455 = vst [vmem:[#allocation126_spill] sm:$0xff] %v8758_v37 }
 0x6df   :  { %3483 = vmatpush1.bf16.msra.mxu0 %v8743_v63  ;;  %3524 = vmatpush1.bf16.msra.mxu1 %v8746_v47  ;;  %v8761_v63 = vld [vmem:[#allocation8 + $0xe4] ss:$16 sps:$4 sm:$0xff]   ;;  %v8764_v47 = vld [vmem:[#allocation8 + $0xec] ss:$16 sps:$4 sm:$0xff]  }
 0x6e0   :  { %3484 = vmatprep.subr.bf16.mxu0 %v8749_v42  ;;  %3525 = vmatprep.subr.bf16.mxu1 %v8752_v32  ;;  %10456 = vst [vmem:[#allocation127_spill] sm:$0xff] %v8761_v63  ;;  %10457 = vst [vmem:[#allocation128_spill] sm:$0xff] %v8764_v47  ;;  %v8767_v42 = vld [vmem:[#allocation8 + $0xe0] ss:$16 sps:$4 sm:$0xff]   ;;  %v8770_v32 = vld [vmem:[#allocation8 + $0xe8] ss:$16 sps:$4 sm:$0xff]  }
 0x6e1   :  { %10458 = vst [vmem:[#allocation129_spill] sm:$0xff] %v8767_v42  ;;  %10459 = vst [vmem:[#allocation130_spill] sm:$0xff] %v8770_v32 }
 0x6e3   :  { %3485 = vmatpush1.bf16.msra.mxu0 %v8755_v15  ;;  %3526 = vmatpush1.bf16.msra.mxu1 %v8758_v37 }
 0x6e4   :  { %3486 = vmatprep.subr.bf16.mxu0 %v8761_v63  ;;  %3527 = vmatprep.subr.bf16.mxu1 %v8764_v47 }
 0x6e7   :  { %3487 = vmatpush1.bf16.msra.mxu0 %v8767_v42  ;;  %3528 = vmatpush1.bf16.msra.mxu1 %v8770_v32  ;;  %v10460_v32 = vld [vmem:[#allocation21_spill] sm:$0xff] }
 0x6e8   :  { %3559 = vmatprep.subr.bf16.mxu0 %v8302_v39  ;;  %3600 = vmatprep.subr.bf16.mxu1 %v8305_v8 }
 0x73d   :  { %v3106_v37 = vpop.f32.mrb[60].mxu0  ;;  %v8775_v15 = vpop.f32.mrb[60].mxu1 }
 0x73e   :  { %v5402_v63 = vadd.f32 %v3106_v37, %v10354_v3  ;;  %v3108_v18 = vpop.f32.mrb[61].mxu0  ;;  %v3149_v20 = vpop.f32.mrb[61].mxu1 }
 0x73f   :  { %v5403_v47 = vadd.f32 %v3108_v18, %v10355_v60  ;;  %v3110_v30 = vpop.f32.mrb[62].mxu0  ;;  %v3151_v19 = vpop.f32.mrb[62].mxu1  ;;  %v5405_v39 = vadd.f32 %v3149_v20, %v10460_v32  ;;  %v10461_v18 = vld [vmem:[#allocation105_spill] sm:$0xff] }
 0x740   :  { %v3158_v42 = vmul.f32 0.5, %v5402_v63  ;;  %v3111_v55 = vpop.f32.mrb[63].mxu0  ;;  %v3152_v9 = vpop.f32.mrb[63].mxu1 }
 0x741   :  { %v3159_v12 = vmul.f32 0.5, %v5403_v47 }
 0x742   :  { %5915 = vtanh.f32 %v3158_v42 }
 0x743   :  { %5917 = vtanh.f32 %v3159_v12  ;;  %v10462_v12 = vld [vmem:[#allocation22_spill] sm:$0xff] }
 0x744   :  { %5919 = vtanh.f32 %v5405_v39 }
 0x74c   :  { %v5916_v8 = vpop.eup %5915 }
 0x74d   :  { %v3164_v34 = vadd.f32 1.0, %v5916_v8  ;;  %v5918_v17 = vpop.eup %5917 }
 0x74e   :  { %v3165_v37 = vadd.f32 1.0, %v5918_v17  ;;  %v5920_v3 = vpop.eup %5919 }
 0x74f   :  { %v3167_v14 = vmul.f32 0.5, %v3164_v34 }
 0x750   :  { %v3168_v2 = vmul.f32 0.5, %v3165_v37 }
 0x751   :  { %v3172_v57 = vmul.f32 %v5920_v3, %v3167_v14  ;;  %v10463_v3 = vld [vmem:[#allocation106_spill] sm:$0xff] }
 0x752   :  { %v3171_v30 = vmul.f32 %v3168_v2, %v8314_v26  ;;  %v10464_v26 = vld [vmem:[#allocation107_spill] sm:$0xff] }
 0x754   :  { %v8781_v19 = vadd.f32 %v3172_v57, %v3171_v30 }
 0x77d   :  { %v3296_v55 = vpop.f32.mrb[64].mxu0  ;;  %v3337_v9 = vpop.f32.mrb[64].mxu1 }
 0x77e   :  { %v5406_v63 = vadd.f32 %v3296_v55, %v10461_v18  ;;  %v3298_v47 = vpop.f32.mrb[65].mxu0  ;;  %v3339_v20 = vpop.f32.mrb[65].mxu1  ;;  %v5408_v57 = vadd.f32 %v3337_v9, %v10464_v26 }
 0x77f   :  { %v5407_v42 = vadd.f32 %v3298_v47, %v10462_v12  ;;  %v3300_v39 = vpop.f32.mrb[66].mxu0  ;;  %v3341_v8 = vpop.f32.mrb[66].mxu1  ;;  %v5409_v14 = vadd.f32 %v3339_v20, %v10463_v3  ;;  %v10468_v20 = vld [vmem:[#allocation61_spill] sm:$0xff] }
 0x780   :  { %v3348_v32 = vmul.f32 0.5, %v5406_v63  ;;  %v3301_v34 = vpop.f32.mrb[67].mxu0  ;;  %v3342_v17 = vpop.f32.mrb[67].mxu1  ;;  %v3350_v2 = vmul.f32 0.5, %v5408_v57  ;;  %v10470_v57 = vld [vmem:[#allocation62_spill] sm:$0xff] }
 0x781   :  { %v3349_v60 = vmul.f32 0.5, %v5407_v42  ;;  %v10465_v34 = vld [vmem:[#allocation53_spill] sm:$0xff] }
 0x782   :  { %5921 = vtanh.f32 %v3348_v32  ;;  %v10467_v32 = vld [vmem:[#allocation16_spill] sm:$0xff] }
 0x783   :  { %5923 = vtanh.f32 %v3349_v60  ;;  %v475_v9 = vadd.f32 %v10468_v20, %v10467_v32 }
 0x784   :  { %5925 = vtanh.f32 %v5409_v14  ;;  %v10469_v14 = vld [vmem:[#allocation19_spill] sm:$0xff] }
 0x785   :  { %5927 = vtanh.f32 %v3350_v2  ;;  %v10472_v2 = vld [vmem:[#allocation64_spill] sm:$0xff] }
 0x78c   :  { %v5922_v37 = vpop.eup %5921 }
 0x78d   :  { %v3354_v30 = vadd.f32 1.0, %v5922_v37  ;;  %v5924_v55 = vpop.eup %5923  ;;  %v588_v37 = vadd.f32 %v10470_v57, %v10469_v14 }
 0x78e   :  { %v3355_v47 = vadd.f32 1.0, %v5924_v55  ;;  %v5926_v39 = vpop.eup %5925 }
 0x78f   :  { %v3357_v18 = vmul.f32 0.5, %v3354_v30  ;;  %v5928_v60 = vpop.eup %5927  ;;  %v10471_v30 = vld [vmem:[#allocation18_spill] sm:$0xff] }
 0x790   :  { %v3358_v8 = vmul.f32 0.5, %v3355_v47  ;;  %v3356_v26 = vadd.f32 1.0, %v5928_v60  ;;  %v590_v55 = vadd.f32 %v10472_v2, %v10471_v30 }
 0x791   :  { %v3362_v63 = vmul.f32 %v5926_v39, %v3357_v18 }
 0x792   :  { %v3361_v17 = vmul.f32 %v3358_v8, %v10465_v34  ;;  %v10473_v34 = vld [vmem:[#allocation63_spill] sm:$0xff]  ;;  %v3359_v20 = vmul.f32 0.5, %v3356_v26 }
 0x793   :  { %v10476_v26 = vld [vmem:[#allocation55_spill] sm:$0xff] }
 0x794   :  { %v8788_v42 = vadd.f32 %v3362_v63, %v3361_v17 }
 0x796   :  { %10466 = vst [vmem:[#allocation131_spill] sm:$0xff] %v8788_v42  ;;  %5929 = vtanh.f32 %v8788_v42 }
 0x79d   :  { %v3401_v3 = vpop.f32.mrb[68].mxu0  ;;  %v3442_v47 = vpop.f32.mrb[68].mxu1 }
 0x79e   :  { %v3449_v18 = vadd.f32 %v3401_v3, %v475_v9  ;;  %v8797_v39 = vadd.f32 %v3442_v47, %v588_v37  ;;  %v3403_v8 = vpop.f32.mrb[69].mxu0  ;;  %v3444_v63 = vpop.f32.mrb[69].mxu1  ;;  %v5404_v3 = vadd.f32 %v8775_v15, %v7577_v1  ;;  %v10481_v9 = vld [vmem:[#allocation28_spill] sm:$0xff]  ;;  %v10483_v37 = vld [vmem:[#allocation30_spill] sm:$0xff] }
 0x79f   :  { %v3450_v17 = vadd.f32 %v3403_v8, %v10473_v34  ;;  %v3452_v42 = vadd.f32 %v3444_v63, %v590_v55  ;;  %v3405_v12 = vpop.f32.mrb[70].mxu0  ;;  %v3446_v61 = vpop.f32.mrb[70].mxu1  ;;  %v10484_v55 = vld [vmem:[#allocation31_spill] sm:$0xff]  ;;  %v10485_v47 = vld [vmem:[#allocation32_spill] sm:$0xff]  ;;  %v10486_v63 = vld [vmem:[#allocation33_spill] sm:$0xff] }
 0x7a0   :  { %v3453_v32 = vmul.f32 0.5, %v3449_v18  ;;  %v3406_v11 = vpop.f32.mrb[71].mxu0  ;;  %v3447_v57 = vpop.f32.mrb[71].mxu1  ;;  %v10475_v12 = vld [vmem:[#allocation56_spill] sm:$0xff]  ;;  %v10487_v34 = vld [vmem:[#allocation34_spill] sm:$0xff] }
 0x7a1   :  { %v5930_v60 = vpop.eup %5929  ;;  %v3454_v14 = vmul.f32 0.5, %v3450_v17  ;;  %v3160_v11 = vmul.f32 0.5, %v5404_v3  ;;  %v10489_v57 = vld [vmem:[#allocation36_spill] sm:$0xff]  ;;  %v10491_v3 = vld [vmem:[#allocation38_spill] sm:$0xff] }
 0x7a2   :  { %5931 = vtanh.f32 %v3453_v32  ;;  %v3365_v2 = vmul.f32 %v5930_v60, %v3359_v20  ;;  %v10480_v32 = vld [vmem:[#allocation27_spill] sm:$0xff] }
 0x7a3   :  { %5933 = vtanh.f32 %v3454_v14  ;;  %v10482_v14 = vld [vmem:[#allocation29_spill] sm:$0xff]  ;;  %v10488_v20 = vld [vmem:[#allocation35_spill] sm:$0xff] }
 0x7a4   :  { %v8800_v30 = vpack.c.bf16 %v3365_v2, %v3365_v2  ;;  %5935 = vtanh.f32 %v3452_v42  ;;  %v10490_v2 = vld [vmem:[#allocation37_spill] sm:$0xff] }
 0x7a5   :  { %5937 = vtanh.f32 %v3160_v11  ;;  %v10492_v11 = vld [vmem:[#allocation39_spill] sm:$0xff] }
 0x7a6   :  { %3505 = vmatmul.mubr.bf16.vlgmr.msra.gmra.mrb[72].mxu0 %v8800_v30  ;;  %3546 = vmatmul.mubr.bf16.vlgmr.msra.gmra.mrb[72].mxu1 %v8800_v30  ;;  %5939 = vtanh.f32 %v8781_v19 }
 0x7a7   :  { %3560 = vmatpush1.bf16.msra.mxu0 %v8339_v10  ;;  %3601 = vmatpush1.bf16.msra.mxu1 %v8342_v44 }
 0x7a8   :  { %3561 = vmatprep.subr.bf16.mxu0 %v8345_v33  ;;  %3602 = vmatprep.subr.bf16.mxu1 %v8348_v31 }
 0x7a9   :  { %3591 = vmatprep.mubr.bf16.mxu0 %v10021_v36  ;;  %3632 = vmatprep.mubr.bf16.mxu1 %v10021_v36 }
 0x7ab   :  { %3562 = vmatpush1.bf16.msra.mxu0 %v8353_v38  ;;  %3603 = vmatpush1.bf16.msra.mxu1 %v8356_v43 }
 0x7ac   :  { %v5932_v61 = vpop.eup %5931  ;;  %3563 = vmatprep.subr.bf16.mxu0 %v8359_v51  ;;  %3604 = vmatprep.subr.bf16.mxu1 %v8362_v62  ;;  %v10474_v62 = vld [vmem:[#allocation54_spill] sm:$0xff] }
 0x7ad   :  { %v3459_v10 = vadd.f32 1.0, %v5932_v61  ;;  %v5934_v44 = vpop.eup %5933  ;;  %v10493_v61 = vld [vmem:[#allocation40_spill] sm:$0xff] }
 0x7ae   :  { %v3460_v15 = vadd.f32 1.0, %v5934_v44  ;;  %v5936_v31 = vpop.eup %5935  ;;  %v10496_v44 = vld [vmem:[#allocation43_spill] sm:$0xff] }
 0x7af   :  { %v3462_v33 = vmul.f32 0.5, %v3459_v10  ;;  %3564 = vmatpush1.bf16.msra.mxu0 %v8365_v41  ;;  %3605 = vmatpush1.bf16.msra.mxu1 %v8368_v46  ;;  %v10477_v41 = vld [vmem:[#allocation24_spill] sm:$0xff]  ;;  %v5938_v42 = vpop.eup %5937  ;;  %v10494_v10 = vld [vmem:[#allocation41_spill] sm:$0xff] }
 0x7b0   :  { %3565 = vmatprep.subr.bf16.mxu0 %v8371_v48  ;;  %3606 = vmatprep.subr.bf16.mxu1 %v8374_v52  ;;  %v3463_v38 = vmul.f32 0.5, %v3460_v15  ;;  %v10478_v48 = vld [vmem:[#allocation25_spill] sm:$0xff]  ;;  %v10479_v52 = vld [vmem:[#allocation26_spill] sm:$0xff]  ;;  %v5940_v18 = vpop.eup %5939 }
 0x7b1   :  { %v3467_v43 = vmul.f32 %v5936_v31, %v3462_v33  ;;  %v10497_v33 = vld [vmem:[#allocation44_spill] sm:$0xff]  ;;  %v10498_v15 = vld [vmem:[#allocation45_spill] sm:$0xff]  ;;  %v10499_v31 = vld [vmem:[#allocation46_spill] sm:$0xff] }
 0x7b2   :  { %v3466_v51 = vmul.f32 %v3463_v38, %v8391_v4  ;;  %v3166_v4 = vadd.f32 1.0, %v5938_v42  ;;  %v10500_v38 = vld [vmem:[#allocation47_spill] sm:$0xff] }
 0x7b3   :  { %3566 = vmatpush1.bf16.msra.mxu0 %v10474_v62  ;;  %3607 = vmatpush1.bf16.msra.mxu1 %v10475_v12  ;;  %v10504_v62 = vld [vmem:[#allocation76_spill] sm:$0xff]  ;;  %v10505_v12 = vld [vmem:[#allocation77_spill] sm:$0xff] }
 0x7b4   :  { %3567 = vmatprep.subr.bf16.mxu0 %v10476_v26  ;;  %3608 = vmatprep.subr.bf16.mxu1 %v10477_v41  ;;  %v8826_v46 = vadd.f32 %v3467_v43, %v3466_v51  ;;  %v3169_v8 = vmul.f32 0.5, %v3166_v4  ;;  %v10501_v43 = vld [vmem:[#allocation73_spill] sm:$0xff]  ;;  %v10502_v51 = vld [vmem:[#allocation74_spill] sm:$0xff]  ;;  %v10507_v41 = vld [vmem:[#allocation79_spill] sm:$0xff] }
 0x7b5   :  { %v10506_v26 = vld [vmem:[#allocation78_spill] sm:$0xff] }
 0x7b6   :  { %v3175_v17 = vmul.f32 %v5940_v18, %v3169_v8 }
 0x7b7   :  { %3568 = vmatpush1.bf16.msra.mxu0 %v10478_v48  ;;  %3609 = vmatpush1.bf16.msra.mxu1 %v10479_v52  ;;  %v10508_v48 = vld [vmem:[#allocation80_spill] sm:$0xff]  ;;  %v10509_v52 = vld [vmem:[#allocation81_spill] sm:$0xff] }
 0x7b8   :  { %3569 = vmatprep.subr.bf16.mxu0 %v10480_v32  ;;  %3610 = vmatprep.subr.bf16.mxu1 %v10481_v9  ;;  %v3558_v60 = vpack.c.bf16 %v3175_v17, %v3175_v17  ;;  %v10510_v32 = vld [vmem:[#allocation82_spill] sm:$0xff]  ;;  %v10511_v9 = vld [vmem:[#allocation83_spill] sm:$0xff] }
 0x7bb   :  { %3570 = vmatpush1.bf16.msra.mxu0 %v10482_v14  ;;  %3611 = vmatpush1.bf16.msra.mxu1 %v10483_v37  ;;  %v10512_v14 = vld [vmem:[#allocation84_spill] sm:$0xff]  ;;  %v10513_v37 = vld [vmem:[#allocation85_spill] sm:$0xff] }
 0x7bc   :  { %3571 = vmatprep.subr.bf16.mxu0 %v10484_v55  ;;  %3612 = vmatprep.subr.bf16.mxu1 %v10485_v47  ;;  %v10514_v55 = vld [vmem:[#allocation86_spill] sm:$0xff]  ;;  %v10515_v47 = vld [vmem:[#allocation87_spill] sm:$0xff] }
 0x7bf   :  { %3572 = vmatpush1.bf16.msra.mxu0 %v10486_v63  ;;  %3613 = vmatpush1.bf16.msra.mxu1 %v10487_v34  ;;  %v10516_v63 = vld [vmem:[#allocation88_spill] sm:$0xff] }
 0x7c0   :  { %3573 = vmatprep.subr.bf16.mxu0 %v8423_v53  ;;  %3614 = vmatprep.subr.bf16.mxu1 %v8426_v49  ;;  %v10495_v53 = vld [vmem:[#allocation42_spill] sm:$0xff]  ;;  %v3455_v49 = vmul.f32 0.5, %v8797_v39  ;;  %v10503_v39 = vld [vmem:[#allocation75_spill] sm:$0xff] }
 0x7c2   :  { %5941 = vtanh.f32 %v3455_v49  ;;  %v8926_v49 = vld [vmem:[#allocation7 + $0x60] ss:$16 sps:$4 sm:$0xff]  }
 0x7c3   :  { %3574 = vmatpush1.bf16.msra.mxu0 %v10488_v20  ;;  %3615 = vmatpush1.bf16.msra.mxu1 %v10489_v57  ;;  %5943 = vtanh.f32 %v8826_v46  ;;  %v8880_v20 = vld [vmem:[#allocation7 + $0x4] ss:$16 sps:$4 sm:$0xff]   ;;  %v8883_v57 = vld [vmem:[#allocation7 + $0xc] ss:$16 sps:$4 sm:$0xff]  }
 0x7c4   :  { %3663 = vmatprep.subr.bf16.mxu0 %v10490_v2  ;;  %3704 = vmatprep.subr.bf16.mxu1 %v10491_v3  ;;  %v8908_v2 = vld [vmem:[#allocation7 + $0x44] ss:$16 sps:$4 sm:$0xff]   ;;  %v8911_v3 = vld [vmem:[#allocation7 + $0x4c] ss:$16 sps:$4 sm:$0xff]  }
 0x7c6   :  { %3592 = vmatmul.mubr.bf16.vlgmr.msra.gmra.mrb[72].mxu0 %v3558_v60  ;;  %3633 = vmatmul.mubr.bf16.vlgmr.msra.gmra.mrb[72].mxu1 %v3558_v60  ;;  %v8905_v60 = vld [vmem:[#allocation7 + $0x28] ss:$16 sps:$4 sm:$0xff]  }
 0x7c7   :  { %3664 = vmatpush1.bf16.msra.mxu0 %v10492_v11  ;;  %3705 = vmatpush1.bf16.msra.mxu1 %v10493_v61  ;;  %v8914_v11 = vld [vmem:[#allocation7 + $0x40] ss:$16 sps:$4 sm:$0xff]   ;;  %v8917_v61 = vld [vmem:[#allocation7 + $0x48] ss:$16 sps:$4 sm:$0xff]  }
 0x7c8   :  { %3665 = vmatprep.subr.bf16.mxu0 %v10494_v10  ;;  %3706 = vmatprep.subr.bf16.mxu1 %v10495_v53  ;;  %v8920_v10 = vld [vmem:[#allocation7 + $0x64] ss:$16 sps:$4 sm:$0xff]   ;;  %v8923_v53 = vld [vmem:[#allocation7 + $0x6c] ss:$16 sps:$4 sm:$0xff]  }
 0x7c9   :  { %3695 = vmatprep.mubr.bf16.mxu0 %v10021_v36  ;;  %3736 = vmatprep.mubr.bf16.mxu1 %v10021_v36 }
 0x7cb   :  { %3666 = vmatpush1.bf16.msra.mxu0 %v10496_v44  ;;  %3707 = vmatpush1.bf16.msra.mxu1 %v10497_v33  ;;  %v8929_v44 = vld [vmem:[#allocation7 + $0x68] ss:$16 sps:$4 sm:$0xff]   ;;  %v8932_v33 = vld [vmem:[#allocation7 + $0x84] ss:$16 sps:$4 sm:$0xff]  }
 0x7cc   :  { %3667 = vmatprep.subr.bf16.mxu0 %v10498_v15  ;;  %3708 = vmatprep.subr.bf16.mxu1 %v10499_v31  ;;  %v5942_v42 = vpop.eup %5941  ;;  %v8935_v15 = vld [vmem:[#allocation7 + $0x8c] ss:$16 sps:$4 sm:$0xff]   ;;  %v8938_v31 = vld [vmem:[#allocation7 + $0x80] ss:$16 sps:$4 sm:$0xff]  }
 0x7cd   :  { %v3461_v4 = vadd.f32 1.0, %v5942_v42  ;;  %v5944_v18 = vpop.eup %5943  ;;  %v8965_v42 = vld [vmem:[#allocation7 + $0xc8] ss:$16 sps:$4 sm:$0xff]  }
 0x7cf   :  { %3668 = vmatpush1.bf16.msra.mxu0 %v10500_v38  ;;  %3709 = vmatpush1.bf16.msra.mxu1 %v10501_v43  ;;  %v3464_v8 = vmul.f32 0.5, %v3461_v4  ;;  %v8941_v38 = vld [vmem:[#allocation7 + $0x88] ss:$16 sps:$4 sm:$0xff]   ;;  %v8944_v43 = vld [vmem:[#allocation7 + $0xa4] ss:$16 sps:$4 sm:$0xff]  }
 0x7d0   :  { %3669 = vmatprep.subr.bf16.mxu0 %v10502_v51  ;;  %3710 = vmatprep.subr.bf16.mxu1 %v10503_v39  ;;  %v8947_v51 = vld [vmem:[#allocation7 + $0xac] ss:$16 sps:$4 sm:$0xff]   ;;  %v8950_v39 = vld [vmem:[#allocation7 + $0xa0] ss:$16 sps:$4 sm:$0xff]  }
 0x7d1   :  { %v3470_v34 = vmul.f32 %v5944_v18, %v3464_v8  ;;  %v10535_v4 = vld [vmem:[#allocation48_spill] sm:$0xff]  ;;  %v10540_v18 = vld [vmem:[#allocation51_spill] sm:$0xff]  ;;  %v10541_v8 = vld [vmem:[#allocation17_spill] sm:$0xff] }
 0x7d3   :  { %3670 = vmatpush1.bf16.msra.mxu0 %v10504_v62  ;;  %3711 = vmatpush1.bf16.msra.mxu1 %v10505_v12  ;;  %v8878_v17 = vpack.c.bf16 %v3470_v34, %v3470_v34  ;;  %v8953_v62 = vld [vmem:[#allocation7 + $0xa8] ss:$16 sps:$4 sm:$0xff]   ;;  %v8956_v12 = vld [vmem:[#allocation7 + $0xc4] ss:$16 sps:$4 sm:$0xff]  }
 0x7d4   :  { %3671 = vmatprep.subr.bf16.mxu0 %v10506_v26  ;;  %3712 = vmatprep.subr.bf16.mxu1 %v10507_v41  ;;  %v8959_v26 = vld [vmem:[#allocation7 + $0xcc] ss:$16 sps:$4 sm:$0xff]   ;;  %v8962_v41 = vld [vmem:[#allocation7 + $0xc0] ss:$16 sps:$4 sm:$0xff]  }
 0x7d5   :  { %v10543_v34 = vld [vmem:[#allocation110_spill] sm:$0xff] }
 0x7d7   :  { %3672 = vmatpush1.bf16.msra.mxu0 %v10508_v48  ;;  %3713 = vmatpush1.bf16.msra.mxu1 %v10509_v52  ;;  %v8968_v48 = vld [vmem:[#allocation7 + $0xe4] ss:$16 sps:$4 sm:$0xff]   ;;  %v8971_v52 = vld [vmem:[#allocation7 + $0xec] ss:$16 sps:$4 sm:$0xff]  }
 0x7d8   :  { %3673 = vmatprep.subr.bf16.mxu0 %v10510_v32  ;;  %3714 = vmatprep.subr.bf16.mxu1 %v10511_v9  ;;  %v8974_v32 = vld [vmem:[#allocation7 + $0xe0] ss:$16 sps:$4 sm:$0xff]   ;;  %v8977_v9 = vld [vmem:[#allocation7 + $0xe8] ss:$16 sps:$4 sm:$0xff]  }
 0x7db   :  { %3674 = vmatpush1.bf16.msra.mxu0 %v10512_v14  ;;  %3715 = vmatpush1.bf16.msra.mxu1 %v10513_v37  ;;  %v10536_v14 = vld [vmem:[#allocation108_spill] sm:$0xff]  ;;  %v10537_v37 = vld [vmem:[#allocation49_spill] sm:$0xff] }
 0x7dc   :  { %3675 = vmatprep.subr.bf16.mxu0 %v10514_v55  ;;  %3716 = vmatprep.subr.bf16.mxu1 %v10515_v47  ;;  %v10538_v55 = vld [vmem:[#allocation50_spill] sm:$0xff]  ;;  %v10539_v47 = vld [vmem:[#allocation52_spill] sm:$0xff] }
 0x7df   :  { %3676 = vmatpush1.bf16.msra.mxu0 %v10516_v63  ;;  %3717 = vmatpush1.bf16.msra.mxu1 %v8520_v5  ;;  %v8897_v5 = vld [vmem:[#allocation7 + $0x2c] ss:$16 sps:$4 sm:$0xff]  }
 0x7e0   :  { %3677 = vmatprep.subr.bf16.mxu0 %v8523_v24  ;;  %3718 = vmatprep.subr.bf16.mxu1 %v8526_v7  ;;  %v8888_v24 = vld [vmem:[#allocation7] ss:$16 sps:$4 sm:$0xff]   ;;  %v8894_v7 = vld [vmem:[#allocation7 + $0x24] ss:$16 sps:$4 sm:$0xff]   ;;  %v10542_v63 = vld [vmem:[#allocation109_spill] sm:$0xff] }
 0x7e3   :  { %3678 = vmatpush1.bf16.msra.mxu0 %v8529_v13  ;;  %3719 = vmatpush1.bf16.msra.mxu1 %v8532_v40  ;;  %v8891_v13 = vld [vmem:[#allocation7 + $0x8] ss:$16 sps:$4 sm:$0xff]   ;;  %v8902_v40 = vld [vmem:[#allocation7 + $0x20] ss:$16 sps:$4 sm:$0xff]  }
 0x7e4   :  { %3749 = vmatprep.subr.bf16.mxu0 %v8880_v20  ;;  %3790 = vmatprep.subr.bf16.mxu1 %v8883_v57 }
 0x7e6   :  { %3696 = vmatmul.mubr.bf16.vlgmr.msra.gmra.mrb[76].mxu0 %v8878_v17  ;;  %3737 = vmatmul.mubr.bf16.vlgmr.msra.gmra.mrb[76].mxu1 %v8878_v17 }
 0x7e7   :  { %3750 = vmatpush1.bf16.msra.mxu0 %v8888_v24  ;;  %3791 = vmatpush1.bf16.msra.mxu1 %v8891_v13 }
 0x7e8   :  { %3751 = vmatprep.subr.bf16.mxu0 %v8894_v7  ;;  %3792 = vmatprep.subr.bf16.mxu1 %v8897_v5 }
 0x7e9   :  { %3781 = vmatprep.mubr.bf16.mxu0 %v10021_v36  ;;  %3822 = vmatprep.mubr.bf16.mxu1 %v10021_v36 }
 0x7eb   :  { %3752 = vmatpush1.bf16.msra.mxu0 %v8902_v40  ;;  %3793 = vmatpush1.bf16.msra.mxu1 %v8905_v60 }
 0x7ec   :  { %3753 = vmatprep.subr.bf16.mxu0 %v8908_v2  ;;  %3794 = vmatprep.subr.bf16.mxu1 %v8911_v3 }
 0x7ef   :  { %3754 = vmatpush1.bf16.msra.mxu0 %v8914_v11  ;;  %3795 = vmatpush1.bf16.msra.mxu1 %v8917_v61 }
 0x7f0   :  { %3755 = vmatprep.subr.bf16.mxu0 %v8920_v10  ;;  %3796 = vmatprep.subr.bf16.mxu1 %v8923_v53 }
 0x7f3   :  { %3756 = vmatpush1.bf16.msra.mxu0 %v8926_v49  ;;  %3797 = vmatpush1.bf16.msra.mxu1 %v8929_v44 }
 0x7f4   :  { %3757 = vmatprep.subr.bf16.mxu0 %v8932_v33  ;;  %3798 = vmatprep.subr.bf16.mxu1 %v8935_v15 }
 0x7f7   :  { %3758 = vmatpush1.bf16.msra.mxu0 %v8938_v31  ;;  %3799 = vmatpush1.bf16.msra.mxu1 %v8941_v38 }
 0x7f8   :  { %3759 = vmatprep.subr.bf16.mxu0 %v8944_v43  ;;  %3800 = vmatprep.subr.bf16.mxu1 %v8947_v51 }
 0x7fb   :  { %3760 = vmatpush1.bf16.msra.mxu0 %v8950_v39  ;;  %3801 = vmatpush1.bf16.msra.mxu1 %v8953_v62 }
 0x7fc   :  { %3761 = vmatprep.subr.bf16.mxu0 %v8956_v12  ;;  %3802 = vmatprep.subr.bf16.mxu1 %v8959_v26 }
 0x7ff   :  { %3762 = vmatpush1.bf16.msra.mxu0 %v8962_v41  ;;  %3803 = vmatpush1.bf16.msra.mxu1 %v8965_v42 }
 0x800   :  { %3763 = vmatprep.subr.bf16.mxu0 %v8968_v48  ;;  %3804 = vmatprep.subr.bf16.mxu1 %v8971_v52 }
 0x803   :  { %3764 = vmatpush1.bf16.msra.mxu0 %v8974_v32  ;;  %3805 = vmatpush1.bf16.msra.mxu1 %v8977_v9 }
 0x804   :  { %3854 = vmatprep.subr.bf16.mxu0 %v8573_v50  ;;  %3895 = vmatprep.subr.bf16.mxu1 %v8576_v59  ;;  %v10517_v50 = vld [vmem:[#allocation89_spill] sm:$0xff]  ;;  %v10518_v59 = vld [vmem:[#allocation90_spill] sm:$0xff] }
 0x806   :  { %3782 = vmatmul.mubr.bf16.vlgmr.msra.gmra.mrb[76].mxu0 %v8800_v30  ;;  %3823 = vmatmul.mubr.bf16.vlgmr.msra.gmra.mrb[76].mxu1 %v8800_v30  ;;  %v10534_v30 = vld [vmem:[#allocation15_spill] sm:$0xff] }
 0x807   :  { %3855 = vmatpush1.bf16.msra.mxu0 %v8581_v28  ;;  %3896 = vmatpush1.bf16.msra.mxu1 %v8584_v45  ;;  %v10519_v28 = vld [vmem:[#allocation91_spill] sm:$0xff]  ;;  %v10520_v45 = vld [vmem:[#allocation92_spill] sm:$0xff] }
 0x808   :  { %3856 = vmatprep.subr.bf16.mxu0 %v8587_v29  ;;  %3897 = vmatprep.subr.bf16.mxu1 %v8590_v56  ;;  %v10521_v29 = vld [vmem:[#allocation93_spill] sm:$0xff]  ;;  %v10522_v56 = vld [vmem:[#allocation94_spill] sm:$0xff] }
 0x809   :  { %3886 = vmatprep.mubr.bf16.mxu0 %v10021_v36  ;;  %3927 = vmatprep.mubr.bf16.mxu1 %v10021_v36 }
 0x80b   :  { %3857 = vmatpush1.bf16.msra.mxu0 %v8595_v27  ;;  %3898 = vmatpush1.bf16.msra.mxu1 %v8598_v23  ;;  %v10523_v27 = vld [vmem:[#allocation95_spill] sm:$0xff]  ;;  %v10524_v23 = vld [vmem:[#allocation96_spill] sm:$0xff] }
 0x80c   :  { %3858 = vmatprep.subr.bf16.mxu0 %v8601_v54  ;;  %3899 = vmatprep.subr.bf16.mxu1 %v8604_v0  ;;  %v10525_v54 = vld [vmem:[#allocation97_spill] sm:$0xff]  ;;  %v10526_v0 = vld [vmem:[#allocation98_spill] sm:$0xff] }
 0x80f   :  { %3859 = vmatpush1.bf16.msra.mxu0 %v8607_v35  ;;  %3900 = vmatpush1.bf16.msra.mxu1 %v8610_v58  ;;  %v10527_v35 = vld [vmem:[#allocation99_spill] sm:$0xff]  ;;  %v10528_v58 = vld [vmem:[#allocation100_spill] sm:$0xff] }
 0x810   :  { %3860 = vmatprep.subr.bf16.mxu0 %v8613_v22  ;;  %3901 = vmatprep.subr.bf16.mxu1 %v8616_v21  ;;  %v10529_v22 = vld [vmem:[#allocation101_spill] sm:$0xff]  ;;  %v10530_v21 = vld [vmem:[#allocation102_spill] sm:$0xff] }
 0x813   :  { %3861 = vmatpush1.bf16.msra.mxu0 %v8619_v25  ;;  %3902 = vmatpush1.bf16.msra.mxu1 %v8622_v6  ;;  %v10531_v25 = vld [vmem:[#allocation103_spill] sm:$0xff]  ;;  %v10532_v6 = vld [vmem:[#allocation104_spill] sm:$0xff] }
 0x814   :  { %3862 = vmatprep.subr.bf16.mxu0 %v8625_v16  ;;  %3903 = vmatprep.subr.bf16.mxu1 %v10517_v50  ;;  %v10533_v16 = vld [vmem:[#allocation14_spill] sm:$0xff]  ;;  %v10545_v50 = vld [vmem:[#allocation112_spill] sm:$0xff] }
 0x817   :  { %3863 = vmatpush1.bf16.msra.mxu0 %v10518_v59  ;;  %3904 = vmatpush1.bf16.msra.mxu1 %v10519_v28  ;;  %v10546_v59 = vld [vmem:[#allocation113_spill] sm:$0xff]  ;;  %v10547_v28 = vld [vmem:[#allocation114_spill] sm:$0xff] }
 0x818   :  { %3864 = vmatprep.subr.bf16.mxu0 %v10520_v45  ;;  %3905 = vmatprep.subr.bf16.mxu1 %v10521_v29  ;;  %v10548_v45 = vld [vmem:[#allocation115_spill] sm:$0xff]  ;;  %v10549_v29 = vld [vmem:[#allocation116_spill] sm:$0xff] }
 0x81b   :  { %3865 = vmatpush1.bf16.msra.mxu0 %v10522_v56  ;;  %3906 = vmatpush1.bf16.msra.mxu1 %v10523_v27  ;;  %v10550_v56 = vld [vmem:[#allocation117_spill] sm:$0xff]  ;;  %v10551_v27 = vld [vmem:[#allocation118_spill] sm:$0xff] }
 0x81c   :  { %3866 = vmatprep.subr.bf16.mxu0 %v10524_v23  ;;  %3907 = vmatprep.subr.bf16.mxu1 %v10525_v54  ;;  %v10552_v23 = vld [vmem:[#allocation119_spill] sm:$0xff]  ;;  %v10553_v54 = vld [vmem:[#allocation120_spill] sm:$0xff] }
 0x81f   :  { %3867 = vmatpush1.bf16.msra.mxu0 %v10526_v0  ;;  %3908 = vmatpush1.bf16.msra.mxu1 %v10527_v35  ;;  %v10554_v0 = vld [vmem:[#allocation121_spill] sm:$0xff]  ;;  %v10555_v35 = vld [vmem:[#allocation122_spill] sm:$0xff] }
 0x820   :  { %3868 = vmatprep.subr.bf16.mxu0 %v10528_v58  ;;  %3909 = vmatprep.subr.bf16.mxu1 %v10529_v22  ;;  %v10556_v58 = vld [vmem:[#allocation123_spill] sm:$0xff]  ;;  %v10557_v22 = vld [vmem:[#allocation124_spill] sm:$0xff] }
 0x823   :  { %3869 = vmatpush1.bf16.msra.mxu0 %v10530_v21  ;;  %3910 = vmatpush1.bf16.msra.mxu1 %v10531_v25  ;;  %v10558_v21 = vld [vmem:[#allocation125_spill] sm:$0xff]  ;;  %v10559_v25 = vld [vmem:[#allocation126_spill] sm:$0xff] }
 0x824   :  { %3959 = vmatprep.subr.bf16.mxu0 %v10532_v6  ;;  %4000 = vmatprep.subr.bf16.mxu1 %v10533_v16  ;;  %v10560_v6 = vld [vmem:[#allocation127_spill] sm:$0xff]  ;;  %v10561_v16 = vld [vmem:[#allocation128_spill] sm:$0xff] }
 0x826   :  { %3887 = vmatmul.mubr.bf16.vlgmr.msra.gmra.mrb[80].mxu0 %v8878_v17  ;;  %3928 = vmatmul.mubr.bf16.vlgmr.msra.gmra.mrb[80].mxu1 %v8878_v17  ;;  %v10544_v17 = vld [vmem:[#allocation111_spill] sm:$0xff] }
 0x827   :  { %3960 = vmatpush1.bf16.msra.mxu0 %v10534_v30  ;;  %4001 = vmatpush1.bf16.msra.mxu1 %v10535_v4  ;;  %v10562_v30 = vld [vmem:[#allocation129_spill] sm:$0xff]  ;;  %v10563_v4 = vld [vmem:[#allocation130_spill] sm:$0xff] }
 0x828   :  { %3961 = vmatprep.subr.bf16.mxu0 %v10536_v14  ;;  %4002 = vmatprep.subr.bf16.mxu1 %v10537_v37  ;;  %v9052_v14 = vld [vmem:[#allocation10 + $0x4] ss:$16 sps:$4 sm:$0xff]   ;;  %v9055_v37 = vld [vmem:[#allocation10 + $0xc] ss:$16 sps:$4 sm:$0xff]  }
 0x829   :  { %3991 = vmatprep.mubr.bf16.mxu0 %v10021_v36  ;;  %4032 = vmatprep.mubr.bf16.mxu1 %v10021_v36 }
 0x82b   :  { %3962 = vmatpush1.bf16.msra.mxu0 %v10538_v55  ;;  %4003 = vmatpush1.bf16.msra.mxu1 %v10539_v47 }
 0x82c   :  { %3963 = vmatprep.subr.bf16.mxu0 %v10540_v18  ;;  %4004 = vmatprep.subr.bf16.mxu1 %v10541_v8  ;;  %v10564_v18 = vld [vmem:[#allocation20_spill] sm:$0xff] }
 0x82f   :  { %3964 = vmatpush1.bf16.msra.mxu0 %v10542_v63  ;;  %4005 = vmatpush1.bf16.msra.mxu1 %v10543_v34 }
 0x830   :  { %3965 = vmatprep.subr.bf16.mxu0 %v10544_v17  ;;  %4006 = vmatprep.subr.bf16.mxu1 %v10545_v50  ;;  %v10565_v17 = vld [vmem:[#allocation134_spill] sm:$0xff] }
 0x833   :  { %3966 = vmatpush1.bf16.msra.mxu0 %v10546_v59  ;;  %4007 = vmatpush1.bf16.msra.mxu1 %v10547_v28 }
 0x834   :  { %3967 = vmatprep.subr.bf16.mxu0 %v10548_v45  ;;  %4008 = vmatprep.subr.bf16.mxu1 %v10549_v29 }
 0x837   :  { %3968 = vmatpush1.bf16.msra.mxu0 %v10550_v56  ;;  %4009 = vmatpush1.bf16.msra.mxu1 %v10551_v27 }
 0x838   :  { %3969 = vmatprep.subr.bf16.mxu0 %v10552_v23  ;;  %4010 = vmatprep.subr.bf16.mxu1 %v10553_v54  ;;  %v10566_v23 = vld [vmem:[#allocation21_spill] sm:$0xff] }
 0x83b   :  { %3970 = vmatpush1.bf16.msra.mxu0 %v10554_v0  ;;  %4011 = vmatpush1.bf16.msra.mxu1 %v10555_v35 }
 0x83c   :  { %3971 = vmatprep.subr.bf16.mxu0 %v10556_v58  ;;  %4012 = vmatprep.subr.bf16.mxu1 %v10557_v22 }
 0x83f   :  { %3972 = vmatpush1.bf16.msra.mxu0 %v10558_v21  ;;  %4013 = vmatpush1.bf16.msra.mxu1 %v10559_v25 }
 0x840   :  { %3973 = vmatprep.subr.bf16.mxu0 %v10560_v6  ;;  %4014 = vmatprep.subr.bf16.mxu1 %v10561_v16 }
 0x843   :  { %3974 = vmatpush1.bf16.msra.mxu0 %v10562_v30  ;;  %4015 = vmatpush1.bf16.msra.mxu1 %v10563_v4 }
 0x844   :  { %4046 = vmatprep.subr.bf16.mxu0 %v9052_v14  ;;  %4087 = vmatprep.subr.bf16.mxu1 %v9055_v37 }
 0x899   :  { %v3593_v55 = vpop.f32.mrb[72].mxu0  ;;  %v9058_v47 = vpop.f32.mrb[72].mxu1 }
 0x89a   :  { %v5410_v8 = vadd.f32 %v3593_v55, %v10564_v18  ;;  %v3595_v63 = vpop.f32.mrb[73].mxu0  ;;  %v3636_v34 = vpop.f32.mrb[73].mxu1 }
 0x89b   :  { %v5411_v50 = vadd.f32 %v3595_v63, %v10565_v17  ;;  %v3597_v59 = vpop.f32.mrb[74].mxu0  ;;  %v3638_v28 = vpop.f32.mrb[74].mxu1  ;;  %v5413_v54 = vadd.f32 %v3636_v34, %v10566_v23  ;;  %v10567_v63 = vld [vmem:[#allocation105_spill] sm:$0xff] }
 0x89c   :  { %v3645_v45 = vmul.f32 0.5, %v5410_v8  ;;  %v3598_v29 = vpop.f32.mrb[75].mxu0  ;;  %v3639_v56 = vpop.f32.mrb[75].mxu1  ;;  %v10568_v28 = vld [vmem:[#allocation22_spill] sm:$0xff] }
 0x89d   :  { %v3646_v27 = vmul.f32 0.5, %v5411_v50 }
 0x89e   :  { %5945 = vtanh.f32 %v3645_v45 }
 0x89f   :  { %5947 = vtanh.f32 %v3646_v27 }
 0x8a0   :  { %5949 = vtanh.f32 %v5413_v54 }
 0x8a8   :  { %v5946_v0 = vpop.eup %5945 }
 0x8a9   :  { %v3651_v35 = vadd.f32 1.0, %v5946_v0  ;;  %v5948_v58 = vpop.eup %5947 }
 0x8aa   :  { %v3652_v21 = vadd.f32 1.0, %v5948_v58  ;;  %v5950_v25 = vpop.eup %5949  ;;  %v10569_v58 = vld [vmem:[#allocation106_spill] sm:$0xff] }
 0x8ab   :  { %v3654_v22 = vmul.f32 0.5, %v3651_v35 }
 0x8ac   :  { %v3655_v6 = vmul.f32 0.5, %v3652_v21 }
 0x8ad   :  { %v3659_v16 = vmul.f32 %v5950_v25, %v3654_v22 }
 0x8ae   :  { %v3658_v30 = vmul.f32 %v3655_v6, %v8781_v19  ;;  %v10570_v19 = vld [vmem:[#allocation107_spill] sm:$0xff] }
 0x8b0   :  { %v9064_v4 = vadd.f32 %v3659_v16, %v3658_v30 }
 0x8d9   :  { %v3783_v55 = vpop.f32.mrb[76].mxu0  ;;  %v3824_v8 = vpop.f32.mrb[76].mxu1 }
 0x8da   :  { %v5414_v50 = vadd.f32 %v3783_v55, %v10567_v63  ;;  %v3785_v59 = vpop.f32.mrb[77].mxu0  ;;  %v3826_v34 = vpop.f32.mrb[77].mxu1  ;;  %v5416_v21 = vadd.f32 %v3824_v8, %v10570_v19 }
 0x8db   :  { %v5415_v45 = vadd.f32 %v3785_v59, %v10568_v28  ;;  %v3787_v29 = vpop.f32.mrb[78].mxu0  ;;  %v3828_v56 = vpop.f32.mrb[78].mxu1  ;;  %v5417_v22 = vadd.f32 %v3826_v34, %v10569_v58 }
 0x8dc   :  { %v3835_v27 = vmul.f32 0.5, %v5414_v50  ;;  %v3788_v54 = vpop.f32.mrb[79].mxu0  ;;  %v3829_v0 = vpop.f32.mrb[79].mxu1  ;;  %v3837_v25 = vmul.f32 0.5, %v5416_v21  ;;  %v10576_v21 = vld [vmem:[#allocation66_spill] sm:$0xff] }
 0x8dd   :  { %v3836_v35 = vmul.f32 0.5, %v5415_v45  ;;  %v10571_v54 = vld [vmem:[#allocation131_spill] sm:$0xff] }
 0x8de   :  { %5951 = vtanh.f32 %v3835_v27  ;;  %v10573_v27 = vld [vmem:[#allocation16_spill] sm:$0xff] }
 0x8df   :  { %5953 = vtanh.f32 %v3836_v35  ;;  %v10574_v35 = vld [vmem:[#allocation65_spill] sm:$0xff] }
 0x8e0   :  { %5955 = vtanh.f32 %v5417_v22  ;;  %v481_v8 = vadd.f32 %v10574_v35, %v10573_v27  ;;  %v10575_v22 = vld [vmem:[#allocation19_spill] sm:$0xff] }
 0x8e1   :  { %5957 = vtanh.f32 %v3837_v25  ;;  %v10578_v25 = vld [vmem:[#allocation68_spill] sm:$0xff] }
 0x8e8   :  { %v5952_v6 = vpop.eup %5951 }
 0x8e9   :  { %v3841_v16 = vadd.f32 1.0, %v5952_v6  ;;  %v5954_v30 = vpop.eup %5953  ;;  %v594_v6 = vadd.f32 %v10576_v21, %v10575_v22 }
 0x8ea   :  { %v3842_v59 = vadd.f32 1.0, %v5954_v30  ;;  %v5956_v29 = vpop.eup %5955 }
 0x8eb   :  { %v3844_v55 = vmul.f32 0.5, %v3841_v16  ;;  %v5958_v34 = vpop.eup %5957  ;;  %v10577_v16 = vld [vmem:[#allocation18_spill] sm:$0xff] }
 0x8ec   :  { %v3845_v56 = vmul.f32 0.5, %v3842_v59  ;;  %v3843_v19 = vadd.f32 1.0, %v5958_v34  ;;  %v596_v30 = vadd.f32 %v10578_v25, %v10577_v16 }
 0x8ed   :  { %v3849_v50 = vmul.f32 %v5956_v29, %v3844_v55 }
 0x8ee   :  { %v3848_v0 = vmul.f32 %v3845_v56, %v10571_v54  ;;  %v10579_v54 = vld [vmem:[#allocation67_spill] sm:$0xff]  ;;  %v3846_v35 = vmul.f32 0.5, %v3843_v19 }
 0x8ef   :  { %v9098_v19 = vld [vmem:[#allocation10 + $0x2c] ss:$16 sps:$4 sm:$0xff]  }
 0x8f0   :  { %v9071_v45 = vadd.f32 %v3849_v50, %v3848_v0 }
 0x8f2   :  { %10572 = vst [vmem:[#allocation132_spill] sm:$0xff] %v9071_v45  ;;  %5959 = vtanh.f32 %v9071_v45 }
 0x8f9   :  { %v3888_v58 = vpop.f32.mrb[80].mxu0  ;;  %v3929_v59 = vpop.f32.mrb[80].mxu1 }
 0x8fa   :  { %v3936_v55 = vadd.f32 %v3888_v58, %v481_v8  ;;  %v9080_v29 = vadd.f32 %v3929_v59, %v594_v6  ;;  %v3890_v56 = vpop.f32.mrb[81].mxu0  ;;  %v3931_v50 = vpop.f32.mrb[81].mxu1  ;;  %v5412_v58 = vadd.f32 %v9058_v47, %v7577_v1  ;;  %v9112_v6 = vld [vmem:[#allocation10 + $0x4c] ss:$16 sps:$4 sm:$0xff]  }
 0x8fb   :  { %v3937_v0 = vadd.f32 %v3890_v56, %v10579_v54  ;;  %v3939_v45 = vadd.f32 %v3931_v50, %v596_v30  ;;  %v3892_v28 = vpop.f32.mrb[82].mxu0  ;;  %v3933_v63 = vpop.f32.mrb[82].mxu1  ;;  %v9115_v50 = vld [vmem:[#allocation10 + $0x40] ss:$16 sps:$4 sm:$0xff]   ;;  %v9118_v54 = vld [vmem:[#allocation10 + $0x48] ss:$16 sps:$4 sm:$0xff]  }
 0x8fc   :  { %v3940_v27 = vmul.f32 0.5, %v3936_v55  ;;  %v3893_v23 = vpop.f32.mrb[83].mxu0  ;;  %v3934_v21 = vpop.f32.mrb[83].mxu1  ;;  %v9089_v63 = vld [vmem:[#allocation10] ss:$16 sps:$4 sm:$0xff]   ;;  %v3647_v47 = vmul.f32 0.5, %v5412_v58 }
 0x8fd   :  { %v5960_v34 = vpop.eup %5959  ;;  %v3941_v22 = vmul.f32 0.5, %v3937_v0  ;;  %v9092_v23 = vld [vmem:[#allocation10 + $0x8] ss:$16 sps:$4 sm:$0xff]   ;;  %v9095_v28 = vld [vmem:[#allocation10 + $0x24] ss:$16 sps:$4 sm:$0xff]  }
 0x8fe   :  { %5961 = vtanh.f32 %v3940_v27  ;;  %v3852_v25 = vmul.f32 %v5960_v34, %v3846_v35  ;;  %v9106_v27 = vld [vmem:[#allocation10 + $0x28] ss:$16 sps:$4 sm:$0xff]   ;;  %v9121_v35 = vld [vmem:[#allocation10 + $0x64] ss:$16 sps:$4 sm:$0xff]   ;;  %v9124_v21 = vld [vmem:[#allocation10 + $0x6c] ss:$16 sps:$4 sm:$0xff]  }
 0x8ff   :  { %5963 = vtanh.f32 %v3941_v22  ;;  %v9109_v22 = vld [vmem:[#allocation10 + $0x44] ss:$16 sps:$4 sm:$0xff]  }
 0x900   :  { %v9083_v16 = vpack.c.bf16 %v3852_v25, %v3852_v25  ;;  %5965 = vtanh.f32 %v3939_v45  ;;  %v9103_v45 = vld [vmem:[#allocation10 + $0x20] ss:$16 sps:$4 sm:$0xff]  }
 0x901   :  { %5967 = vtanh.f32 %v3647_v47  ;;  %v9129_v47 = vld [vmem:[#allocation10 + $0x60] ss:$16 sps:$4 sm:$0xff]  }
 0x902   :  { %3992 = vmatmul.mubr.bf16.vlgmr.msra.gmra.mrb[84].mxu0 %v9083_v16  ;;  %4033 = vmatmul.mubr.bf16.vlgmr.msra.gmra.mrb[84].mxu1 %v9083_v16  ;;  %5969 = vtanh.f32 %v9064_v4  ;;  %10580 = vst [vmem:[#allocation133_spill] sm:$0xff] %v9129_v47 }
 0x903   :  { %4047 = vmatpush1.bf16.msra.mxu0 %v9089_v63  ;;  %4088 = vmatpush1.bf16.msra.mxu1 %v9092_v23 }
 0x904   :  { %4048 = vmatprep.subr.bf16.mxu0 %v9095_v28  ;;  %4089 = vmatprep.subr.bf16.mxu1 %v9098_v19 }
 0x905   :  { %4078 = vmatprep.mubr.bf16.mxu0 %v10021_v36  ;;  %4119 = vmatprep.mubr.bf16.mxu1 %v10021_v36 }
 0x907   :  { %4049 = vmatpush1.bf16.msra.mxu0 %v9103_v45  ;;  %4090 = vmatpush1.bf16.msra.mxu1 %v9106_v27 }
 0x908   :  { %v5962_v8 = vpop.eup %5961  ;;  %4050 = vmatprep.subr.bf16.mxu0 %v9109_v22  ;;  %4091 = vmatprep.subr.bf16.mxu1 %v9112_v6 }
 0x909   :  { %v3946_v30 = vadd.f32 1.0, %v5962_v8  ;;  %v5964_v59 = vpop.eup %5963  ;;  %v9132_v8 = vld [vmem:[#allocation10 + $0x68] ss:$16 sps:$4 sm:$0xff]  }
 0x90a   :  { %v3947_v56 = vadd.f32 1.0, %v5964_v59  ;;  %v5966_v0 = vpop.eup %5965  ;;  %10581 = vst [vmem:[#allocation23_spill] sm:$0xff] %v9132_v8  ;;  %v9138_v59 = vld [vmem:[#allocation10 + $0x8c] ss:$16 sps:$4 sm:$0xff]  }
 0x90b   :  { %v3949_v55 = vmul.f32 0.5, %v3946_v30  ;;  %4051 = vmatpush1.bf16.msra.mxu0 %v9115_v50  ;;  %4092 = vmatpush1.bf16.msra.mxu1 %v9118_v54  ;;  %v9135_v30 = vld [vmem:[#allocation10 + $0x84] ss:$16 sps:$4 sm:$0xff]   ;;  %10583 = vst [vmem:[#allocation58_spill] sm:$0xff] %v9138_v59 }
 0x90c   :  { %4052 = vmatprep.subr.bf16.mxu0 %v9121_v35  ;;  %4093 = vmatprep.subr.bf16.mxu1 %v9124_v21  ;;  %v3950_v34 = vmul.f32 0.5, %v3947_v56  ;;  %10582 = vst [vmem:[#allocation57_spill] sm:$0xff] %v9135_v30  ;;  %v5968_v56 = vpop.eup %5967 }
 0x90d   :  { %v3954_v25 = vmul.f32 %v5966_v0, %v3949_v55  ;;  %v9146_v0 = vld [vmem:[#allocation10 + $0x88] ss:$16 sps:$4 sm:$0xff]  }
 0x90e   :  { %v3953_v58 = vmul.f32 %v3950_v34, %v8826_v46  ;;  %v9143_v46 = vld [vmem:[#allocation10 + $0x80] ss:$16 sps:$4 sm:$0xff]   ;;  %10585 = vst [vmem:[#allocation59_spill] sm:$0xff] %v9146_v0  ;;  %v9149_v34 = vld [vmem:[#allocation10 + $0xa4] ss:$16 sps:$4 sm:$0xff]  }
 0x90f   :  { %4053 = vmatpush1.bf16.msra.mxu0 %v9129_v47  ;;  %4094 = vmatpush1.bf16.msra.mxu1 %v9132_v8  ;;  %10584 = vst [vmem:[#allocation60_spill] sm:$0xff] %v9143_v46  ;;  %10586 = vst [vmem:[#allocation53_spill] sm:$0xff] %v9149_v34  ;;  %v9185_v47 = vld [vmem:[#allocation5 + $0x4] ss:$16 sps:$4 sm:$0xff]  }
 0x910   :  { %4054 = vmatprep.subr.bf16.mxu0 %v9135_v30  ;;  %4095 = vmatprep.subr.bf16.mxu1 %v9138_v59  ;;  %v9141_v55 = vadd.f32 %v3954_v25, %v3953_v58  ;;  %v9152_v30 = vld [vmem:[#allocation10 + $0xac] ss:$16 sps:$4 sm:$0xff]   ;;  %v3653_v59 = vadd.f32 1.0, %v5968_v56  ;;  %v9155_v25 = vld [vmem:[#allocation10 + $0xa0] ss:$16 sps:$4 sm:$0xff]   ;;  %10596 = vst [vmem:[#allocation26_spill] sm:$0xff] %v9185_v47 }
 0x911   :  { %10587 = vst [vmem:[#allocation61_spill] sm:$0xff] %v9152_v30  ;;  %10588 = vst [vmem:[#allocation62_spill] sm:$0xff] %v9155_v25  ;;  %v9158_v58 = vld [vmem:[#allocation10 + $0xa8] ss:$16 sps:$4 sm:$0xff]  }
 0x912   :  { %10589 = vst [vmem:[#allocation64_spill] sm:$0xff] %v9158_v58  ;;  %v3656_v8 = vmul.f32 0.5, %v3653_v59  ;;  %v9170_v56 = vld [vmem:[#allocation10 + $0xc8] ss:$16 sps:$4 sm:$0xff]  }
 0x913   :  { %4055 = vmatpush1.bf16.msra.mxu0 %v9143_v46  ;;  %4096 = vmatpush1.bf16.msra.mxu1 %v9146_v0  ;;  %v9161_v46 = vld [vmem:[#allocation10 + $0xc4] ss:$16 sps:$4 sm:$0xff]   ;;  %v9164_v0 = vld [vmem:[#allocation10 + $0xcc] ss:$16 sps:$4 sm:$0xff]   ;;  %10593 = vst [vmem:[#allocation55_spill] sm:$0xff] %v9170_v56 }
 0x914   :  { %4056 = vmatprep.subr.bf16.mxu0 %v9149_v34  ;;  %4097 = vmatprep.subr.bf16.mxu1 %v9152_v30  ;;  %10590 = vst [vmem:[#allocation63_spill] sm:$0xff] %v9161_v46  ;;  %10591 = vst [vmem:[#allocation54_spill] sm:$0xff] %v9164_v0  ;;  %v5970_v34 = vpop.eup %5969  ;;  %v9167_v30 = vld [vmem:[#allocation10 + $0xc0] ss:$16 sps:$4 sm:$0xff]   ;;  %v9182_v59 = vld [vmem:[#allocation10 + $0xe8] ss:$16 sps:$4 sm:$0xff]  }
 0x915   :  { %10592 = vst [vmem:[#allocation56_spill] sm:$0xff] %v9167_v30  ;;  %10595 = vst [vmem:[#allocation25_spill] sm:$0xff] %v9182_v59 }
 0x917   :  { %4057 = vmatpush1.bf16.msra.mxu0 %v9155_v25  ;;  %4098 = vmatpush1.bf16.msra.mxu1 %v9158_v58  ;;  %v9173_v25 = vld [vmem:[#allocation10 + $0xe4] ss:$16 sps:$4 sm:$0xff]   ;;  %v9176_v58 = vld [vmem:[#allocation10 + $0xec] ss:$16 sps:$4 sm:$0xff]  }
 0x918   :  { %4058 = vmatprep.subr.bf16.mxu0 %v9161_v46  ;;  %4099 = vmatprep.subr.bf16.mxu1 %v9164_v0  ;;  %v3662_v46 = vmul.f32 %v5970_v34, %v3656_v8  ;;  %v9179_v0 = vld [vmem:[#allocation10 + $0xe0] ss:$16 sps:$4 sm:$0xff]   ;;  %v9194_v34 = vld [vmem:[#allocation5 + $0x8] ss:$16 sps:$4 sm:$0xff]  }
 0x919   :  { %10594 = vst [vmem:[#allocation24_spill] sm:$0xff] %v9179_v0  ;;  %v9191_v8 = vld [vmem:[#allocation5] ss:$16 sps:$4 sm:$0xff]   ;;  %10599 = vst [vmem:[#allocation29_spill] sm:$0xff] %v9194_v34 }
 0x91a   :  { %10598 = vst [vmem:[#allocation28_spill] sm:$0xff] %v9191_v8 }
 0x91b   :  { %4059 = vmatpush1.bf16.msra.mxu0 %v9167_v30  ;;  %4100 = vmatpush1.bf16.msra.mxu1 %v9170_v56  ;;  %v4045_v30 = vpack.c.bf16 %v3662_v46, %v3662_v46  ;;  %v9188_v56 = vld [vmem:[#allocation5 + $0xc] ss:$16 sps:$4 sm:$0xff]  }
 0x91c   :  { %4060 = vmatprep.subr.bf16.mxu0 %v9173_v25  ;;  %4101 = vmatprep.subr.bf16.mxu1 %v9176_v58  ;;  %10597 = vst [vmem:[#allocation27_spill] sm:$0xff] %v9188_v56  ;;  %v9200_v46 = vld [vmem:[#allocation5 + $0x2c] ss:$16 sps:$4 sm:$0xff]  }
 0x91d   :  { %10601 = vst [vmem:[#allocation31_spill] sm:$0xff] %v9200_v46 }
 0x91f   :  { %4061 = vmatpush1.bf16.msra.mxu0 %v9179_v0  ;;  %4102 = vmatpush1.bf16.msra.mxu1 %v9182_v59  ;;  %v9197_v59 = vld [vmem:[#allocation5 + $0x24] ss:$16 sps:$4 sm:$0xff]  }
 0x920   :  { %4150 = vmatprep.subr.bf16.mxu0 %v9185_v47  ;;  %4191 = vmatprep.subr.bf16.mxu1 %v9188_v56  ;;  %10600 = vst [vmem:[#allocation30_spill] sm:$0xff] %v9197_v59  ;;  %v3942_v56 = vmul.f32 0.5, %v9080_v29  ;;  %v9218_v29 = vld [vmem:[#allocation5 + $0x40] ss:$16 sps:$4 sm:$0xff]  }
 0x921   :  { %10606 = vst [vmem:[#allocation36_spill] sm:$0xff] %v9218_v29  ;;  %v9255_v47 = vld [vmem:[#allocation5 + $0xa0] ss:$16 sps:$4 sm:$0xff]  }
 0x922   :  { %4079 = vmatmul.mubr.bf16.vlgmr.msra.gmra.mrb[84].mxu0 %v4045_v30  ;;  %4120 = vmatmul.mubr.bf16.vlgmr.msra.gmra.mrb[84].mxu1 %v4045_v30  ;;  %v9206_v30 = vld [vmem:[#allocation5 + $0x20] ss:$16 sps:$4 sm:$0xff]   ;;  %5971 = vtanh.f32 %v3942_v56  ;;  %v9234_v56 = vld [vmem:[#allocation5 + $0x68] ss:$16 sps:$4 sm:$0xff]   ;;  %10618 = vst [vmem:[#allocation73_spill] sm:$0xff] %v9255_v47 }
 0x923   :  { %4151 = vmatpush1.bf16.msra.mxu0 %v9191_v8  ;;  %4192 = vmatpush1.bf16.msra.mxu1 %v9194_v34  ;;  %10602 = vst [vmem:[#allocation32_spill] sm:$0xff] %v9206_v30  ;;  %v9209_v8 = vld [vmem:[#allocation5 + $0x28] ss:$16 sps:$4 sm:$0xff]   ;;  %v9212_v34 = vld [vmem:[#allocation5 + $0x44] ss:$16 sps:$4 sm:$0xff]   ;;  %5973 = vtanh.f32 %v9141_v55  ;;  %10611 = vst [vmem:[#allocation41_spill] sm:$0xff] %v9234_v56 }
 0x924   :  { %4152 = vmatprep.subr.bf16.mxu0 %v9197_v59  ;;  %4193 = vmatprep.subr.bf16.mxu1 %v9200_v46  ;;  %10603 = vst [vmem:[#allocation33_spill] sm:$0xff] %v9209_v8  ;;  %10604 = vst [vmem:[#allocation34_spill] sm:$0xff] %v9212_v34  ;;  %v9215_v59 = vld [vmem:[#allocation5 + $0x4c] ss:$16 sps:$4 sm:$0xff]   ;;  %v9221_v46 = vld [vmem:[#allocation5 + $0x48] ss:$16 sps:$4 sm:$0xff]  }
 0x925   :  { %4182 = vmatprep.mubr.bf16.mxu0 %v10021_v36  ;;  %4223 = vmatprep.mubr.bf16.mxu1 %v10021_v36  ;;  %10605 = vst [vmem:[#allocation35_spill] sm:$0xff] %v9215_v59  ;;  %10607 = vst [vmem:[#allocation37_spill] sm:$0xff] %v9221_v46 }
 0x927   :  { %4153 = vmatpush1.bf16.msra.mxu0 %v9206_v30  ;;  %4194 = vmatpush1.bf16.msra.mxu1 %v9209_v8  ;;  %v9224_v30 = vld [vmem:[#allocation5 + $0x64] ss:$16 sps:$4 sm:$0xff]   ;;  %v9227_v8 = vld [vmem:[#allocation5 + $0x6c] ss:$16 sps:$4 sm:$0xff]  }
 0x928   :  { %4154 = vmatprep.subr.bf16.mxu0 %v9212_v34  ;;  %4195 = vmatprep.subr.bf16.mxu1 %v9215_v59  ;;  %10608 = vst [vmem:[#allocation38_spill] sm:$0xff] %v9224_v30  ;;  %10609 = vst [vmem:[#allocation39_spill] sm:$0xff] %v9227_v8  ;;  %v9231_v59 = vld [vmem:[#allocation5 + $0x60] ss:$16 sps:$4 sm:$0xff]   ;;  %v9246_v34 = vld [vmem:[#allocation5 + $0x88] ss:$16 sps:$4 sm:$0xff]  }
 0x929   :  { %10610 = vst [vmem:[#allocation40_spill] sm:$0xff] %v9231_v59  ;;  %10615 = vst [vmem:[#allocation45_spill] sm:$0xff] %v9246_v34 }
 0x92b   :  { %4155 = vmatpush1.bf16.msra.mxu0 %v9218_v29  ;;  %4196 = vmatpush1.bf16.msra.mxu1 %v9221_v46  ;;  %v9237_v29 = vld [vmem:[#allocation5 + $0x84] ss:$16 sps:$4 sm:$0xff]   ;;  %v9240_v46 = vld [vmem:[#allocation5 + $0x8c] ss:$16 sps:$4 sm:$0xff]  }
 0x92c   :  { %4156 = vmatprep.subr.bf16.mxu0 %v9224_v30  ;;  %4197 = vmatprep.subr.bf16.mxu1 %v9227_v8  ;;  %10612 = vst [vmem:[#allocation42_spill] sm:$0xff] %v9237_v29  ;;  %10613 = vst [vmem:[#allocation43_spill] sm:$0xff] %v9240_v46  ;;  %v5972_v30 = vpop.eup %5971  ;;  %v9243_v8 = vld [vmem:[#allocation5 + $0x80] ss:$16 sps:$4 sm:$0xff]  }
 0x92d   :  { %10614 = vst [vmem:[#allocation44_spill] sm:$0xff] %v9243_v8 }
 0x92f   :  { %4157 = vmatpush1.bf16.msra.mxu0 %v9231_v59  ;;  %4198 = vmatpush1.bf16.msra.mxu1 %v9234_v56  ;;  %v9249_v59 = vld [vmem:[#allocation5 + $0xa4] ss:$16 sps:$4 sm:$0xff]   ;;  %v9252_v56 = vld [vmem:[#allocation5 + $0xac] ss:$16 sps:$4 sm:$0xff]  }
 0x930   :  { %4158 = vmatprep.subr.bf16.mxu0 %v9237_v29  ;;  %4199 = vmatprep.subr.bf16.mxu1 %v9240_v46  ;;  %10616 = vst [vmem:[#allocation46_spill] sm:$0xff] %v9249_v59  ;;  %10617 = vst [vmem:[#allocation47_spill] sm:$0xff] %v9252_v56  ;;  %v3948_v29 = vadd.f32 1.0, %v5972_v30  ;;  %v9258_v46 = vld [vmem:[#allocation5 + $0xa8] ss:$16 sps:$4 sm:$0xff]  }
 0x931   :  { %10619 = vst [vmem:[#allocation74_spill] sm:$0xff] %v9258_v46  ;;  %v9270_v30 = vld [vmem:[#allocation5 + $0xc8] ss:$16 sps:$4 sm:$0xff]  }
 0x932   :  { %v3951_v0 = vmul.f32 0.5, %v3948_v29  ;;  %v9282_v29 = vld [vmem:[#allocation5 + $0xe8] ss:$16 sps:$4 sm:$0xff]  }
 0x933   :  { %4159 = vmatpush1.bf16.msra.mxu0 %v9243_v8  ;;  %4200 = vmatpush1.bf16.msra.mxu1 %v9246_v34  ;;  %v9261_v8 = vld [vmem:[#allocation5 + $0xc4] ss:$16 sps:$4 sm:$0xff]   ;;  %v9264_v34 = vld [vmem:[#allocation5 + $0xcc] ss:$16 sps:$4 sm:$0xff]  }
 0x934   :  { %4160 = vmatprep.subr.bf16.mxu0 %v9249_v59  ;;  %4201 = vmatprep.subr.bf16.mxu1 %v9252_v56  ;;  %10620 = vst [vmem:[#allocation75_spill] sm:$0xff] %v9261_v8  ;;  %10621 = vst [vmem:[#allocation76_spill] sm:$0xff] %v9264_v34  ;;  %v5974_v59 = vpop.eup %5973  ;;  %v9267_v56 = vld [vmem:[#allocation5 + $0xc0] ss:$16 sps:$4 sm:$0xff]  }
 0x935   :  { %10622 = vst [vmem:[#allocation77_spill] sm:$0xff] %v9267_v56 }
 0x937   :  { %4161 = vmatpush1.bf16.msra.mxu0 %v9255_v47  ;;  %4202 = vmatpush1.bf16.msra.mxu1 %v9258_v46  ;;  %v9273_v47 = vld [vmem:[#allocation5 + $0xe4] ss:$16 sps:$4 sm:$0xff]   ;;  %v9276_v46 = vld [vmem:[#allocation5 + $0xec] ss:$16 sps:$4 sm:$0xff]  }
 0x938   :  { %4162 = vmatprep.subr.bf16.mxu0 %v9261_v8  ;;  %4203 = vmatprep.subr.bf16.mxu1 %v9264_v34  ;;  %v3957_v8 = vmul.f32 %v5974_v59, %v3951_v0  ;;  %v9279_v34 = vld [vmem:[#allocation5 + $0xe0] ss:$16 sps:$4 sm:$0xff]   ;;  %v9330_v0 = vld [vmem:[#allocation8 + $0xc] ss:$16 sps:$4 sm:$0xff]  }
 0x939   :  { %v9335_v59 = vld [vmem:[#allocation8] ss:$16 sps:$4 sm:$0xff]  }
 0x93b   :  { %4163 = vmatpush1.bf16.msra.mxu0 %v9267_v56  ;;  %4204 = vmatpush1.bf16.msra.mxu1 %v9270_v30  ;;  %v9285_v56 = vpack.c.bf16 %v3957_v8, %v3957_v8  ;;  %v9338_v8 = vld [vmem:[#allocation8 + $0x8] ss:$16 sps:$4 sm:$0xff]  }
 0x93c   :  { %4164 = vmatprep.subr.bf16.mxu0 %v9273_v47  ;;  %4205 = vmatprep.subr.bf16.mxu1 %v9276_v46 }
 0x93f   :  { %4165 = vmatpush1.bf16.msra.mxu0 %v9279_v34  ;;  %4206 = vmatpush1.bf16.msra.mxu1 %v9282_v29 }
 0x940   :  { %4236 = vmatprep.subr.bf16.mxu0 %v8880_v20  ;;  %4277 = vmatprep.subr.bf16.mxu1 %v8883_v57  ;;  %v6387_v20 = vld [vmem:[#allocation3 + $0x4] ss:$16 sps:$4 sm:$0xff]   ;;  %v6388_v57 = vld [vmem:[#allocation3 + $0xc] ss:$16 sps:$4 sm:$0xff]  }
 0x942   :  { %4183 = vmatmul.mubr.bf16.vlgmr.msra.gmra.mrb[88].mxu0 %v9285_v56  ;;  %4224 = vmatmul.mubr.bf16.vlgmr.msra.gmra.mrb[88].mxu1 %v9285_v56 }
 0x943   :  { %4237 = vmatpush1.bf16.msra.mxu0 %v8888_v24  ;;  %4278 = vmatpush1.bf16.msra.mxu1 %v8891_v13  ;;  %v6389_v24 = vld [vmem:[#allocation3] ss:$16 sps:$4 sm:$0xff]   ;;  %v6390_v13 = vld [vmem:[#allocation3 + $0x8] ss:$16 sps:$4 sm:$0xff]  }
 0x944   :  { %4238 = vmatprep.subr.bf16.mxu0 %v8894_v7  ;;  %4279 = vmatprep.subr.bf16.mxu1 %v8897_v5  ;;  %v6391_v7 = vld [vmem:[#allocation3 + $0x24] ss:$16 sps:$4 sm:$0xff]   ;;  %v6392_v5 = vld [vmem:[#allocation3 + $0x2c] ss:$16 sps:$4 sm:$0xff]  }
 0x945   :  { %4268 = vmatprep.mubr.bf16.mxu0 %v10021_v36  ;;  %4309 = vmatprep.mubr.bf16.mxu1 %v10021_v36 }
 0x947   :  { %4239 = vmatpush1.bf16.msra.mxu0 %v8902_v40  ;;  %4280 = vmatpush1.bf16.msra.mxu1 %v8905_v60  ;;  %v6393_v40 = vld [vmem:[#allocation3 + $0x20] ss:$16 sps:$4 sm:$0xff]   ;;  %v6394_v60 = vld [vmem:[#allocation3 + $0x28] ss:$16 sps:$4 sm:$0xff]  }
 0x948   :  { %4240 = vmatprep.subr.bf16.mxu0 %v8908_v2  ;;  %4281 = vmatprep.subr.bf16.mxu1 %v8911_v3  ;;  %v6395_v2 = vld [vmem:[#allocation3 + $0x44] ss:$16 sps:$4 sm:$0xff]   ;;  %v6396_v3 = vld [vmem:[#allocation3 + $0x4c] ss:$16 sps:$4 sm:$0xff]  }
 0x94b   :  { %4241 = vmatpush1.bf16.msra.mxu0 %v8914_v11  ;;  %4282 = vmatpush1.bf16.msra.mxu1 %v8917_v61  ;;  %v6397_v11 = vld [vmem:[#allocation3 + $0x40] ss:$16 sps:$4 sm:$0xff]   ;;  %v6398_v61 = vld [vmem:[#allocation3 + $0x48] ss:$16 sps:$4 sm:$0xff]  }
 0x94c   :  { %4242 = vmatprep.subr.bf16.mxu0 %v8920_v10  ;;  %4283 = vmatprep.subr.bf16.mxu1 %v8923_v53  ;;  %v6399_v10 = vld [vmem:[#allocation3 + $0x64] ss:$16 sps:$4 sm:$0xff]   ;;  %v6400_v53 = vld [vmem:[#allocation3 + $0x6c] ss:$16 sps:$4 sm:$0xff]  }
 0x94f   :  { %4243 = vmatpush1.bf16.msra.mxu0 %v8926_v49  ;;  %4284 = vmatpush1.bf16.msra.mxu1 %v8929_v44  ;;  %v6401_v49 = vld [vmem:[#allocation3 + $0x60] ss:$16 sps:$4 sm:$0xff]   ;;  %v6402_v44 = vld [vmem:[#allocation3 + $0x68] ss:$16 sps:$4 sm:$0xff]  }
 0x950   :  { %4244 = vmatprep.subr.bf16.mxu0 %v8932_v33  ;;  %4285 = vmatprep.subr.bf16.mxu1 %v8935_v15  ;;  %v6403_v33 = vld [vmem:[#allocation3 + $0x84] ss:$16 sps:$4 sm:$0xff]   ;;  %v6404_v15 = vld [vmem:[#allocation3 + $0x8c] ss:$16 sps:$4 sm:$0xff]  }
 0x953   :  { %4245 = vmatpush1.bf16.msra.mxu0 %v8938_v31  ;;  %4286 = vmatpush1.bf16.msra.mxu1 %v8941_v38  ;;  %v6405_v31 = vld [vmem:[#allocation3 + $0x80] ss:$16 sps:$4 sm:$0xff]   ;;  %v6406_v38 = vld [vmem:[#allocation3 + $0x88] ss:$16 sps:$4 sm:$0xff]  }
 0x954   :  { %4246 = vmatprep.subr.bf16.mxu0 %v8944_v43  ;;  %4287 = vmatprep.subr.bf16.mxu1 %v8947_v51  ;;  %v6407_v43 = vld [vmem:[#allocation3 + $0xa4] ss:$16 sps:$4 sm:$0xff]   ;;  %v6408_v51 = vld [vmem:[#allocation3 + $0xac] ss:$16 sps:$4 sm:$0xff]  }
 0x957   :  { %4247 = vmatpush1.bf16.msra.mxu0 %v8950_v39  ;;  %4288 = vmatpush1.bf16.msra.mxu1 %v8953_v62  ;;  %v6409_v39 = vld [vmem:[#allocation3 + $0xa0] ss:$16 sps:$4 sm:$0xff]   ;;  %v6410_v62 = vld [vmem:[#allocation3 + $0xa8] ss:$16 sps:$4 sm:$0xff]  }
 0x958   :  { %4248 = vmatprep.subr.bf16.mxu0 %v8956_v12  ;;  %4289 = vmatprep.subr.bf16.mxu1 %v8959_v26  ;;  %v6411_v12 = vld [vmem:[#allocation3 + $0xc4] ss:$16 sps:$4 sm:$0xff]   ;;  %v6412_v26 = vld [vmem:[#allocation3 + $0xcc] ss:$16 sps:$4 sm:$0xff]  }
 0x95b   :  { %4249 = vmatpush1.bf16.msra.mxu0 %v8962_v41  ;;  %4290 = vmatpush1.bf16.msra.mxu1 %v8965_v42  ;;  %v6413_v41 = vld [vmem:[#allocation3 + $0xc0] ss:$16 sps:$4 sm:$0xff]   ;;  %v6414_v42 = vld [vmem:[#allocation3 + $0xc8] ss:$16 sps:$4 sm:$0xff]  }
 0x95c   :  { %4250 = vmatprep.subr.bf16.mxu0 %v8968_v48  ;;  %4291 = vmatprep.subr.bf16.mxu1 %v8971_v52  ;;  %v6415_v48 = vld [vmem:[#allocation3 + $0xe4] ss:$16 sps:$4 sm:$0xff]   ;;  %v6416_v52 = vld [vmem:[#allocation3 + $0xec] ss:$16 sps:$4 sm:$0xff]  }
 0x95f   :  { %4251 = vmatpush1.bf16.msra.mxu0 %v8974_v32  ;;  %4292 = vmatpush1.bf16.msra.mxu1 %v8977_v9  ;;  %v6417_v32 = vld [vmem:[#allocation3 + $0xe0] ss:$16 sps:$4 sm:$0xff]   ;;  %v6418_v9 = vld [vmem:[#allocation3 + $0xe8] ss:$16 sps:$4 sm:$0xff]  }
 0x960   :  { %4341 = vmatprep.subr.bf16.mxu0 %v6387_v20  ;;  %4382 = vmatprep.subr.bf16.mxu1 %v6388_v57  ;;  %v9341_v20 = vld [vmem:[#allocation8 + $0x24] ss:$16 sps:$4 sm:$0xff]   ;;  %v9344_v57 = vld [vmem:[#allocation8 + $0x2c] ss:$16 sps:$4 sm:$0xff]  }
 0x962   :  { %4269 = vmatmul.mubr.bf16.vlgmr.msra.gmra.mrb[88].mxu0 %v9083_v16  ;;  %4310 = vmatmul.mubr.bf16.vlgmr.msra.gmra.mrb[88].mxu1 %v9083_v16  ;;  %v9327_v16 = vld [vmem:[#allocation8 + $0x4] ss:$16 sps:$4 sm:$0xff]  }
 0x963   :  { %4342 = vmatpush1.bf16.msra.mxu0 %v6389_v24  ;;  %4383 = vmatpush1.bf16.msra.mxu1 %v6390_v13  ;;  %v9352_v24 = vld [vmem:[#allocation8 + $0x28] ss:$16 sps:$4 sm:$0xff]   ;;  %v9355_v13 = vld [vmem:[#allocation8 + $0x44] ss:$16 sps:$4 sm:$0xff]  }
 0x964   :  { %4343 = vmatprep.subr.bf16.mxu0 %v6391_v7  ;;  %4384 = vmatprep.subr.bf16.mxu1 %v6392_v5  ;;  %v9358_v7 = vld [vmem:[#allocation8 + $0x4c] ss:$16 sps:$4 sm:$0xff]   ;;  %v9361_v5 = vld [vmem:[#allocation8 + $0x40] ss:$16 sps:$4 sm:$0xff]  }
 0x965   :  { %4373 = vmatprep.mubr.bf16.mxu0 %v10021_v36  ;;  %4414 = vmatprep.mubr.bf16.mxu1 %v10021_v36 }
 0x967   :  { %4344 = vmatpush1.bf16.msra.mxu0 %v6393_v40  ;;  %4385 = vmatpush1.bf16.msra.mxu1 %v6394_v60  ;;  %v9364_v40 = vld [vmem:[#allocation8 + $0x48] ss:$16 sps:$4 sm:$0xff]   ;;  %v9367_v60 = vld [vmem:[#allocation8 + $0x64] ss:$16 sps:$4 sm:$0xff]  }
 0x968   :  { %4345 = vmatprep.subr.bf16.mxu0 %v6395_v2  ;;  %4386 = vmatprep.subr.bf16.mxu1 %v6396_v3  ;;  %v9370_v2 = vld [vmem:[#allocation8 + $0x6c] ss:$16 sps:$4 sm:$0xff]   ;;  %v9373_v3 = vld [vmem:[#allocation8 + $0x60] ss:$16 sps:$4 sm:$0xff]  }
 0x96b   :  { %4346 = vmatpush1.bf16.msra.mxu0 %v6397_v11  ;;  %4387 = vmatpush1.bf16.msra.mxu1 %v6398_v61  ;;  %v9376_v11 = vld [vmem:[#allocation8 + $0x68] ss:$16 sps:$4 sm:$0xff]   ;;  %v9379_v61 = vld [vmem:[#allocation8 + $0x84] ss:$16 sps:$4 sm:$0xff]  }
 0x96c   :  { %4347 = vmatprep.subr.bf16.mxu0 %v6399_v10  ;;  %4388 = vmatprep.subr.bf16.mxu1 %v6400_v53  ;;  %10623 = vst [vmem:[#allocation78_spill] sm:$0xff] %v9379_v61  ;;  %v9382_v10 = vld [vmem:[#allocation8 + $0x8c] ss:$16 sps:$4 sm:$0xff]   ;;  %v9385_v53 = vld [vmem:[#allocation8 + $0x80] ss:$16 sps:$4 sm:$0xff]  }
 0x96d   :  { %10624 = vst [vmem:[#allocation79_spill] sm:$0xff] %v9382_v10  ;;  %10625 = vst [vmem:[#allocation80_spill] sm:$0xff] %v9385_v53 }
 0x96f   :  { %4348 = vmatpush1.bf16.msra.mxu0 %v6401_v49  ;;  %4389 = vmatpush1.bf16.msra.mxu1 %v6402_v44  ;;  %v9388_v49 = vld [vmem:[#allocation8 + $0x88] ss:$16 sps:$4 sm:$0xff]   ;;  %v9391_v44 = vld [vmem:[#allocation8 + $0xa4] ss:$16 sps:$4 sm:$0xff]  }
 0x970   :  { %4349 = vmatprep.subr.bf16.mxu0 %v6403_v33  ;;  %4390 = vmatprep.subr.bf16.mxu1 %v6404_v15  ;;  %10626 = vst [vmem:[#allocation81_spill] sm:$0xff] %v9388_v49  ;;  %10627 = vst [vmem:[#allocation82_spill] sm:$0xff] %v9391_v44  ;;  %v9394_v33 = vld [vmem:[#allocation8 + $0xac] ss:$16 sps:$4 sm:$0xff]   ;;  %v9397_v15 = vld [vmem:[#allocation8 + $0xa0] ss:$16 sps:$4 sm:$0xff]  }
 0x971   :  { %10628 = vst [vmem:[#allocation83_spill] sm:$0xff] %v9394_v33  ;;  %10629 = vst [vmem:[#allocation84_spill] sm:$0xff] %v9397_v15 }
 0x973   :  { %4350 = vmatpush1.bf16.msra.mxu0 %v6405_v31  ;;  %4391 = vmatpush1.bf16.msra.mxu1 %v6406_v38  ;;  %v9400_v31 = vld [vmem:[#allocation8 + $0xa8] ss:$16 sps:$4 sm:$0xff]   ;;  %v9403_v38 = vld [vmem:[#allocation8 + $0xc4] ss:$16 sps:$4 sm:$0xff]  }
 0x974   :  { %4351 = vmatprep.subr.bf16.mxu0 %v6407_v43  ;;  %4392 = vmatprep.subr.bf16.mxu1 %v6408_v51  ;;  %10630 = vst [vmem:[#allocation85_spill] sm:$0xff] %v9400_v31  ;;  %10631 = vst [vmem:[#allocation86_spill] sm:$0xff] %v9403_v38  ;;  %v9406_v43 = vld [vmem:[#allocation8 + $0xcc] ss:$16 sps:$4 sm:$0xff]   ;;  %v9409_v51 = vld [vmem:[#allocation8 + $0xc0] ss:$16 sps:$4 sm:$0xff]  }
 0x975   :  { %10632 = vst [vmem:[#allocation87_spill] sm:$0xff] %v9406_v43  ;;  %10633 = vst [vmem:[#allocation88_spill] sm:$0xff] %v9409_v51 }
 0x977   :  { %4352 = vmatpush1.bf16.msra.mxu0 %v6409_v39  ;;  %4393 = vmatpush1.bf16.msra.mxu1 %v6410_v62  ;;  %v9412_v39 = vld [vmem:[#allocation8 + $0xc8] ss:$16 sps:$4 sm:$0xff]   ;;  %v9415_v62 = vld [vmem:[#allocation8 + $0xe4] ss:$16 sps:$4 sm:$0xff]  }
 0x978   :  { %4353 = vmatprep.subr.bf16.mxu0 %v6411_v12  ;;  %4394 = vmatprep.subr.bf16.mxu1 %v6412_v26  ;;  %10634 = vst [vmem:[#allocation89_spill] sm:$0xff] %v9412_v39  ;;  %10635 = vst [vmem:[#allocation90_spill] sm:$0xff] %v9415_v62  ;;  %v9418_v12 = vld [vmem:[#allocation8 + $0xec] ss:$16 sps:$4 sm:$0xff]   ;;  %v9421_v26 = vld [vmem:[#allocation8 + $0xe0] ss:$16 sps:$4 sm:$0xff]  }
 0x979   :  { %10636 = vst [vmem:[#allocation91_spill] sm:$0xff] %v9418_v12  ;;  %10637 = vst [vmem:[#allocation92_spill] sm:$0xff] %v9421_v26 }
 0x97b   :  { %4354 = vmatpush1.bf16.msra.mxu0 %v6413_v41  ;;  %4395 = vmatpush1.bf16.msra.mxu1 %v6414_v42  ;;  %v9424_v41 = vld [vmem:[#allocation8 + $0xe8] ss:$16 sps:$4 sm:$0xff]  }
 0x97c   :  { %4355 = vmatprep.subr.bf16.mxu0 %v6415_v48  ;;  %4396 = vmatprep.subr.bf16.mxu1 %v6416_v52  ;;  %10638 = vst [vmem:[#allocation93_spill] sm:$0xff] %v9424_v41 }
 0x97f   :  { %4356 = vmatpush1.bf16.msra.mxu0 %v6417_v32  ;;  %4397 = vmatpush1.bf16.msra.mxu1 %v6418_v9 }
 0x980   :  { %4446 = vmatprep.subr.bf16.mxu0 %v9327_v16  ;;  %4487 = vmatprep.subr.bf16.mxu1 %v9330_v0 }
 0x982   :  { %4374 = vmatmul.mubr.bf16.vlgmr.msra.gmra.mrb[92].mxu0 %v9285_v56  ;;  %4415 = vmatmul.mubr.bf16.vlgmr.msra.gmra.mrb[92].mxu1 %v9285_v56  ;;  %v9349_v56 = vld [vmem:[#allocation8 + $0x20] ss:$16 sps:$4 sm:$0xff]  }
 0x983   :  { %4447 = vmatpush1.bf16.msra.mxu0 %v9335_v59  ;;  %4488 = vmatpush1.bf16.msra.mxu1 %v9338_v8 }
 0x984   :  { %4448 = vmatprep.subr.bf16.mxu0 %v9341_v20  ;;  %4489 = vmatprep.subr.bf16.mxu1 %v9344_v57 }
 0x985   :  { %4478 = vmatprep.mubr.bf16.mxu0 %v10021_v36  ;;  %4519 = vmatprep.mubr.bf16.mxu1 %v10021_v36 }
 0x987   :  { %4449 = vmatpush1.bf16.msra.mxu0 %v9349_v56  ;;  %4490 = vmatpush1.bf16.msra.mxu1 %v9352_v24 }
 0x988   :  { %4450 = vmatprep.subr.bf16.mxu0 %v9355_v13  ;;  %4491 = vmatprep.subr.bf16.mxu1 %v9358_v7 }
 0x98b   :  { %4451 = vmatpush1.bf16.msra.mxu0 %v9361_v5  ;;  %4492 = vmatpush1.bf16.msra.mxu1 %v9364_v40 }
 0x98c   :  { %4452 = vmatprep.subr.bf16.mxu0 %v9367_v60  ;;  %4493 = vmatprep.subr.bf16.mxu1 %v9370_v2 }
 0x98f   :  { %4453 = vmatpush1.bf16.msra.mxu0 %v9373_v3  ;;  %4494 = vmatpush1.bf16.msra.mxu1 %v9376_v11 }
 0x990   :  { %4454 = vmatprep.subr.bf16.mxu0 %v9379_v61  ;;  %4495 = vmatprep.subr.bf16.mxu1 %v9382_v10 }
 0x993   :  { %4455 = vmatpush1.bf16.msra.mxu0 %v9385_v53  ;;  %4496 = vmatpush1.bf16.msra.mxu1 %v9388_v49 }
 0x994   :  { %4456 = vmatprep.subr.bf16.mxu0 %v9391_v44  ;;  %4497 = vmatprep.subr.bf16.mxu1 %v9394_v33 }
 0x997   :  { %4457 = vmatpush1.bf16.msra.mxu0 %v9397_v15  ;;  %4498 = vmatpush1.bf16.msra.mxu1 %v9400_v31 }
 0x998   :  { %4458 = vmatprep.subr.bf16.mxu0 %v9403_v38  ;;  %4499 = vmatprep.subr.bf16.mxu1 %v9406_v43 }
 0x99b   :  { %4459 = vmatpush1.bf16.msra.mxu0 %v9409_v51  ;;  %4500 = vmatpush1.bf16.msra.mxu1 %v9412_v39 }
 0x99c   :  { %4460 = vmatprep.subr.bf16.mxu0 %v9415_v62  ;;  %4501 = vmatprep.subr.bf16.mxu1 %v9418_v12 }
 0x99f   :  { %4461 = vmatpush1.bf16.msra.mxu0 %v9421_v26  ;;  %4502 = vmatpush1.bf16.msra.mxu1 %v9424_v41  ;;  %v10639_v41 = vld [vmem:[#allocation21_spill] sm:$0xff] }
 0x9a0   :  { %4533 = vmatprep.subr.bf16.mxu0 %v9052_v14  ;;  %4574 = vmatprep.subr.bf16.mxu1 %v9055_v37 }
 0x9f5   :  { %v4080_v42 = vpop.f32.mrb[84].mxu0  ;;  %v9429_v48 = vpop.f32.mrb[84].mxu1 }
 0x9f6   :  { %v5418_v52 = vadd.f32 %v4080_v42, %v10564_v18  ;;  %v4082_v32 = vpop.f32.mrb[85].mxu0  ;;  %v4123_v9 = vpop.f32.mrb[85].mxu1 }
 0x9f7   :  { %v5419_v12 = vadd.f32 %v4082_v32, %v10565_v17  ;;  %v4084_v62 = vpop.f32.mrb[86].mxu0  ;;  %v4125_v39 = vpop.f32.mrb[86].mxu1  ;;  %v5421_v14 = vadd.f32 %v4123_v9, %v10639_v41 }
 0x9f8   :  { %v4132_v26 = vmul.f32 0.5, %v5418_v52  ;;  %v4085_v51 = vpop.f32.mrb[87].mxu0  ;;  %v4126_v43 = vpop.f32.mrb[87].mxu1 }
 0x9f9   :  { %v4133_v38 = vmul.f32 0.5, %v5419_v12  ;;  %v10640_v12 = vld [vmem:[#allocation105_spill] sm:$0xff] }
 0x9fa   :  { %5975 = vtanh.f32 %v4132_v26 }
 0x9fb   :  { %5977 = vtanh.f32 %v4133_v38  ;;  %v10641_v38 = vld [vmem:[#allocation22_spill] sm:$0xff] }
 0x9fc   :  { %5979 = vtanh.f32 %v5421_v14 }
 0xa04   :  { %v5976_v37 = vpop.eup %5975 }
 0xa05   :  { %v4138_v31 = vadd.f32 1.0, %v5976_v37  ;;  %v5978_v15 = vpop.eup %5977 }
 0xa06   :  { %v4139_v42 = vadd.f32 1.0, %v5978_v15  ;;  %v5980_v18 = vpop.eup %5979 }
 0xa07   :  { %v4141_v33 = vmul.f32 0.5, %v4138_v31 }
 0xa08   :  { %v4142_v44 = vmul.f32 0.5, %v4139_v42 }
 0xa09   :  { %v4146_v49 = vmul.f32 %v5980_v18, %v4141_v33  ;;  %v10642_v18 = vld [vmem:[#allocation106_spill] sm:$0xff] }
 0xa0a   :  { %v4145_v62 = vmul.f32 %v4142_v44, %v9064_v4  ;;  %v10643_v4 = vld [vmem:[#allocation107_spill] sm:$0xff] }
 0xa0c   :  { %v9435_v39 = vadd.f32 %v4146_v49, %v4145_v62 }
 0xa35   :  { %v4270_v51 = vpop.f32.mrb[88].mxu0  ;;  %v4311_v43 = vpop.f32.mrb[88].mxu1 }
 0xa36   :  { %v5422_v26 = vadd.f32 %v4270_v51, %v10640_v12  ;;  %v4272_v52 = vpop.f32.mrb[89].mxu0  ;;  %v4313_v32 = vpop.f32.mrb[89].mxu1  ;;  %v5424_v49 = vadd.f32 %v4311_v43, %v10643_v4 }
 0xa37   :  { %v5423_v9 = vadd.f32 %v4272_v52, %v10641_v38  ;;  %v4274_v14 = vpop.f32.mrb[90].mxu0  ;;  %v4315_v37 = vpop.f32.mrb[90].mxu1  ;;  %v5425_v33 = vadd.f32 %v4313_v32, %v10642_v18  ;;  %v10647_v32 = vld [vmem:[#allocation69_spill] sm:$0xff] }
 0xa38   :  { %v4322_v41 = vmul.f32 0.5, %v5422_v26  ;;  %v4275_v31 = vpop.f32.mrb[91].mxu0  ;;  %v4316_v15 = vpop.f32.mrb[91].mxu1  ;;  %v4324_v44 = vmul.f32 0.5, %v5424_v49  ;;  %v10649_v49 = vld [vmem:[#allocation70_spill] sm:$0xff] }
 0xa39   :  { %v4323_v17 = vmul.f32 0.5, %v5423_v9  ;;  %v10644_v31 = vld [vmem:[#allocation132_spill] sm:$0xff] }
 0xa3a   :  { %5981 = vtanh.f32 %v4322_v41  ;;  %v10646_v41 = vld [vmem:[#allocation16_spill] sm:$0xff] }
 0xa3b   :  { %5983 = vtanh.f32 %v4323_v17  ;;  %v487_v43 = vadd.f32 %v10647_v32, %v10646_v41 }
 0xa3c   :  { %5985 = vtanh.f32 %v5425_v33  ;;  %v10648_v33 = vld [vmem:[#allocation19_spill] sm:$0xff] }
 0xa3d   :  { %5987 = vtanh.f32 %v4324_v44  ;;  %v10651_v44 = vld [vmem:[#allocation72_spill] sm:$0xff] }
 0xa44   :  { %v5982_v42 = vpop.eup %5981 }
 0xa45   :  { %v4328_v62 = vadd.f32 1.0, %v5982_v42  ;;  %v5984_v51 = vpop.eup %5983  ;;  %v600_v42 = vadd.f32 %v10649_v49, %v10648_v33 }
 0xa46   :  { %v4329_v52 = vadd.f32 1.0, %v5984_v51  ;;  %v5986_v14 = vpop.eup %5985 }
 0xa47   :  { %v4331_v12 = vmul.f32 0.5, %v4328_v62  ;;  %v5988_v17 = vpop.eup %5987  ;;  %v10650_v62 = vld [vmem:[#allocation18_spill] sm:$0xff] }
 0xa48   :  { %v4332_v37 = vmul.f32 0.5, %v4329_v52  ;;  %v4330_v4 = vadd.f32 1.0, %v5988_v17  ;;  %v602_v51 = vadd.f32 %v10651_v44, %v10650_v62 }
 0xa49   :  { %v4336_v26 = vmul.f32 %v5986_v14, %v4331_v12 }
 0xa4a   :  { %v4335_v15 = vmul.f32 %v4332_v37, %v10644_v31  ;;  %v10652_v31 = vld [vmem:[#allocation71_spill] sm:$0xff]  ;;  %v4333_v10 = vmul.f32 0.5, %v4330_v4  ;;  %v10655_v4 = vld [vmem:[#allocation57_spill] sm:$0xff] }
 0xa4c   :  { %v9442_v9 = vadd.f32 %v4336_v26, %v4335_v15 }
 0xa4e   :  { %10645 = vst [vmem:[#allocation94_spill] sm:$0xff] %v9442_v9  ;;  %5989 = vtanh.f32 %v9442_v9 }
 0xa55   :  { %v4375_v18 = vpop.f32.mrb[92].mxu0  ;;  %v4416_v52 = vpop.f32.mrb[92].mxu1 }
 0xa56   :  { %v4423_v12 = vadd.f32 %v4375_v18, %v487_v43  ;;  %v4425_v14 = vadd.f32 %v4416_v52, %v600_v42  ;;  %v4377_v37 = vpop.f32.mrb[93].mxu0  ;;  %v4418_v26 = vpop.f32.mrb[93].mxu1  ;;  %v5420_v18 = vadd.f32 %v9429_v48, %v7577_v1  ;;  %v10659_v43 = vld [vmem:[#allocation53_spill] sm:$0xff]  ;;  %v10662_v52 = vld [vmem:[#allocation64_spill] sm:$0xff] }
 0xa57   :  { %v4424_v15 = vadd.f32 %v4377_v37, %v10652_v31  ;;  %v4426_v9 = vadd.f32 %v4418_v26, %v602_v51  ;;  %v4379_v38 = vpop.f32.mrb[94].mxu0  ;;  %v4420_v53 = vpop.f32.mrb[94].mxu1  ;;  %v10660_v42 = vld [vmem:[#allocation61_spill] sm:$0xff]  ;;  %v10661_v51 = vld [vmem:[#allocation62_spill] sm:$0xff] }
 0xa58   :  { %v4427_v41 = vmul.f32 0.5, %v4423_v12  ;;  %v4380_v32 = vpop.f32.mrb[95].mxu0  ;;  %v4421_v61 = vpop.f32.mrb[95].mxu1  ;;  %v10654_v38 = vld [vmem:[#allocation23_spill] sm:$0xff]  ;;  %v10664_v37 = vld [vmem:[#allocation54_spill] sm:$0xff] }
 0xa59   :  { %v5990_v33 = vpop.eup %5989  ;;  %v4428_v17 = vmul.f32 0.5, %v4424_v15  ;;  %v4134_v61 = vmul.f32 0.5, %v5420_v18  ;;  %v10665_v15 = vld [vmem:[#allocation56_spill] sm:$0xff] }
 0xa5a   :  { %5991 = vtanh.f32 %v4427_v41  ;;  %v4339_v49 = vmul.f32 %v5990_v33, %v4333_v10  ;;  %v4429_v10 = vmul.f32 0.5, %v4425_v14  ;;  %v10663_v14 = vld [vmem:[#allocation63_spill] sm:$0xff]  ;;  %v10667_v18 = vld [vmem:[#allocation24_spill] sm:$0xff] }
 0xa5b   :  { %5993 = vtanh.f32 %v4428_v17  ;;  %v10666_v41 = vld [vmem:[#allocation55_spill] sm:$0xff] }
 0xa5c   :  { %v9452_v62 = vpack.c.bf16 %v4339_v49, %v4339_v49  ;;  %5995 = vtanh.f32 %v4426_v9 }
 0xa5d   :  { %5997 = vtanh.f32 %v4134_v61  ;;  %v10668_v61 = vld [vmem:[#allocation25_spill] sm:$0xff] }
 0xa5e   :  { %4479 = vmatmul.mubr.bf16.vlgmr.msra.gmra.mrb[96].mxu0 %v9452_v62  ;;  %4520 = vmatmul.mubr.bf16.vlgmr.msra.gmra.mrb[96].mxu1 %v9452_v62  ;;  %5999 = vtanh.f32 %v4429_v10 }
 0xa5f   :  { %4534 = vmatpush1.bf16.msra.mxu0 %v9089_v63  ;;  %4575 = vmatpush1.bf16.msra.mxu1 %v9092_v23  ;;  %6001 = vtanh.f32 %v9435_v39 }
 0xa60   :  { %4535 = vmatprep.subr.bf16.mxu0 %v9095_v28  ;;  %4576 = vmatprep.subr.bf16.mxu1 %v9098_v19 }
 0xa61   :  { %4565 = vmatprep.mubr.bf16.mxu0 %v10021_v36  ;;  %4606 = vmatprep.mubr.bf16.mxu1 %v10021_v36 }
 0xa63   :  { %4536 = vmatpush1.bf16.msra.mxu0 %v9103_v45  ;;  %4577 = vmatpush1.bf16.msra.mxu1 %v9106_v27 }
 0xa64   :  { %v5992_v53 = vpop.eup %5991  ;;  %4537 = vmatprep.subr.bf16.mxu0 %v9109_v22  ;;  %4578 = vmatprep.subr.bf16.mxu1 %v9112_v6  ;;  %v10653_v6 = vld [vmem:[#allocation133_spill] sm:$0xff] }
 0xa65   :  { %v4433_v63 = vadd.f32 1.0, %v5992_v53  ;;  %v5994_v23 = vpop.eup %5993  ;;  %v10669_v53 = vld [vmem:[#allocation26_spill] sm:$0xff] }
 0xa66   :  { %v4434_v19 = vadd.f32 1.0, %v5994_v23  ;;  %v5996_v48 = vpop.eup %5995  ;;  %v10671_v23 = vld [vmem:[#allocation28_spill] sm:$0xff] }
 0xa67   :  { %v4436_v28 = vmul.f32 0.5, %v4433_v63  ;;  %4538 = vmatpush1.bf16.msra.mxu0 %v9115_v50  ;;  %4579 = vmatpush1.bf16.msra.mxu1 %v9118_v54  ;;  %v10656_v50 = vld [vmem:[#allocation58_spill] sm:$0xff]  ;;  %v5998_v9 = vpop.eup %5997  ;;  %v10670_v63 = vld [vmem:[#allocation27_spill] sm:$0xff] }
 0xa68   :  { %4539 = vmatprep.subr.bf16.mxu0 %v9121_v35  ;;  %4580 = vmatprep.subr.bf16.mxu1 %v9124_v21  ;;  %v4437_v45 = vmul.f32 0.5, %v4434_v19  ;;  %v10657_v35 = vld [vmem:[#allocation60_spill] sm:$0xff]  ;;  %v10658_v21 = vld [vmem:[#allocation59_spill] sm:$0xff]  ;;  %v4140_v44 = vadd.f32 1.0, %v5998_v9  ;;  %v10685_v9 = vld [vmem:[#allocation42_spill] sm:$0xff] }
 0xa69   :  { %v4441_v27 = vmul.f32 %v5996_v48, %v4436_v28  ;;  %v10672_v28 = vld [vmem:[#allocation29_spill] sm:$0xff]  ;;  %v10675_v19 = vld [vmem:[#allocation32_spill] sm:$0xff] }
 0xa6a   :  { %v4440_v22 = vmul.f32 %v4437_v45, %v9141_v55  ;;  %v6000_v55 = vpop.eup %5999  ;;  %v4143_v31 = vmul.f32 0.5, %v4140_v44  ;;  %v10676_v48 = vld [vmem:[#allocation33_spill] sm:$0xff]  ;;  %v10677_v45 = vld [vmem:[#allocation34_spill] sm:$0xff] }
 0xa6b   :  { %4540 = vmatpush1.bf16.msra.mxu0 %v10653_v6  ;;  %4581 = vmatpush1.bf16.msra.mxu1 %v10654_v38  ;;  %v4435_v12 = vadd.f32 1.0, %v6000_v55  ;;  %v6002_v26 = vpop.eup %6001  ;;  %v10680_v6 = vld [vmem:[#allocation37_spill] sm:$0xff]  ;;  %v10681_v38 = vld [vmem:[#allocation38_spill] sm:$0xff]  ;;  %v10690_v55 = vld [vmem:[#allocation47_spill] sm:$0xff] }
 0xa6c   :  { %4541 = vmatprep.subr.bf16.mxu0 %v10655_v4  ;;  %4582 = vmatprep.subr.bf16.mxu1 %v10656_v50  ;;  %v4442_v54 = vadd.f32 %v4441_v27, %v4440_v22  ;;  %v4149_v33 = vmul.f32 %v6002_v26, %v4143_v31  ;;  %v10678_v27 = vld [vmem:[#allocation35_spill] sm:$0xff]  ;;  %v10679_v22 = vld [vmem:[#allocation36_spill] sm:$0xff]  ;;  %v10691_v44 = vld [vmem:[#allocation73_spill] sm:$0xff] }
 0xa6d   :  { %v4438_v32 = vmul.f32 0.5, %v4435_v12  ;;  %v10682_v4 = vld [vmem:[#allocation39_spill] sm:$0xff]  ;;  %v10683_v50 = vld [vmem:[#allocation40_spill] sm:$0xff] }
 0xa6e   :  { %6003 = vtanh.f32 %v4442_v54  ;;  %v4532_v10 = vpack.c.bf16 %v4149_v33, %v4149_v33  ;;  %v10684_v54 = vld [vmem:[#allocation41_spill] sm:$0xff]  ;;  %v10694_v12 = vld [vmem:[#allocation76_spill] sm:$0xff] }
 0xa6f   :  { %4542 = vmatpush1.bf16.msra.mxu0 %v10657_v35  ;;  %4583 = vmatpush1.bf16.msra.mxu1 %v10658_v21  ;;  %v10686_v35 = vld [vmem:[#allocation43_spill] sm:$0xff]  ;;  %v10687_v21 = vld [vmem:[#allocation44_spill] sm:$0xff] }
 0xa70   :  { %4543 = vmatprep.subr.bf16.mxu0 %v10659_v43  ;;  %4584 = vmatprep.subr.bf16.mxu1 %v10660_v42  ;;  %v10688_v43 = vld [vmem:[#allocation45_spill] sm:$0xff]  ;;  %v10689_v42 = vld [vmem:[#allocation46_spill] sm:$0xff] }
 0xa71   :  { %v6451_v26 = vld [vmem:[#allocation7 + $0x4] ss:$16 sps:$4 sm:$0xff]   ;;  %v6452_v31 = vld [vmem:[#allocation7 + $0xc] ss:$16 sps:$4 sm:$0xff]   ;;  %v6461_v33 = vld [vmem:[#allocation7 + $0x40] ss:$16 sps:$4 sm:$0xff]  }
 0xa73   :  { %4544 = vmatpush1.bf16.msra.mxu0 %v10661_v51  ;;  %4585 = vmatpush1.bf16.msra.mxu1 %v10662_v52  ;;  %v10692_v51 = vld [vmem:[#allocation74_spill] sm:$0xff]  ;;  %v10693_v52 = vld [vmem:[#allocation75_spill] sm:$0xff] }
 0xa74   :  { %4545 = vmatprep.subr.bf16.mxu0 %v10663_v14  ;;  %4586 = vmatprep.subr.bf16.mxu1 %v10664_v37  ;;  %v10695_v14 = vld [vmem:[#allocation77_spill] sm:$0xff] }
 0xa77   :  { %4546 = vmatpush1.bf16.msra.mxu0 %v10665_v15  ;;  %4587 = vmatpush1.bf16.msra.mxu1 %v10666_v41  ;;  %v6453_v15 = vld [vmem:[#allocation7] ss:$16 sps:$4 sm:$0xff]   ;;  %v6454_v41 = vld [vmem:[#allocation7 + $0x8] ss:$16 sps:$4 sm:$0xff]  }
 0xa78   :  { %4547 = vmatprep.subr.bf16.mxu0 %v9173_v25  ;;  %4588 = vmatprep.subr.bf16.mxu1 %v9176_v58  ;;  %v6004_v17 = vpop.eup %6003  ;;  %v10673_v25 = vld [vmem:[#allocation30_spill] sm:$0xff]  ;;  %v10674_v58 = vld [vmem:[#allocation31_spill] sm:$0xff] }
 0xa79   :  { %v4444_v49 = vmul.f32 %v6004_v17, %v4438_v32  ;;  %v6460_v32 = vld [vmem:[#allocation7 + $0x4c] ss:$16 sps:$4 sm:$0xff]   ;;  %v6462_v17 = vld [vmem:[#allocation7 + $0x48] ss:$16 sps:$4 sm:$0xff]  }
 0xa7b   :  { %4548 = vmatpush1.bf16.msra.mxu0 %v10667_v18  ;;  %4589 = vmatpush1.bf16.msra.mxu1 %v10668_v61  ;;  %v4445_v37 = vpack.c.bf16 %v4444_v49, %v4444_v49  ;;  %v6463_v49 = vld [vmem:[#allocation7 + $0x64] ss:$16 sps:$4 sm:$0xff]   ;;  %v6464_v18 = vld [vmem:[#allocation7 + $0x6c] ss:$16 sps:$4 sm:$0xff]   ;;  %v6465_v61 = vld [vmem:[#allocation7 + $0x60] ss:$16 sps:$4 sm:$0xff]  }
 0xa7c   :  { %4637 = vmatprep.subr.bf16.mxu0 %v10669_v53  ;;  %4678 = vmatprep.subr.bf16.mxu1 %v10670_v63  ;;  %v6467_v53 = vld [vmem:[#allocation7 + $0x84] ss:$16 sps:$4 sm:$0xff]   ;;  %v6468_v63 = vld [vmem:[#allocation7 + $0x8c] ss:$16 sps:$4 sm:$0xff]  }
 0xa7e   :  { %4566 = vmatmul.mubr.bf16.vlgmr.msra.gmra.mrb[96].mxu0 %v4532_v10  ;;  %4607 = vmatmul.mubr.bf16.vlgmr.msra.gmra.mrb[96].mxu1 %v4532_v10  ;;  %v6466_v10 = vld [vmem:[#allocation7 + $0x68] ss:$16 sps:$4 sm:$0xff]  }
 0xa7f   :  { %4638 = vmatpush1.bf16.msra.mxu0 %v10671_v23  ;;  %4679 = vmatpush1.bf16.msra.mxu1 %v10672_v28  ;;  %v6469_v23 = vld [vmem:[#allocation7 + $0x80] ss:$16 sps:$4 sm:$0xff]   ;;  %v6470_v28 = vld [vmem:[#allocation7 + $0x88] ss:$16 sps:$4 sm:$0xff]  }
 0xa80   :  { %4639 = vmatprep.subr.bf16.mxu0 %v10673_v25  ;;  %4680 = vmatprep.subr.bf16.mxu1 %v10674_v58  ;;  %v6471_v25 = vld [vmem:[#allocation7 + $0xa4] ss:$16 sps:$4 sm:$0xff]   ;;  %v6472_v58 = vld [vmem:[#allocation7 + $0xac] ss:$16 sps:$4 sm:$0xff]  }
 0xa81   :  { %4669 = vmatprep.mubr.bf16.mxu0 %v10021_v36  ;;  %4710 = vmatprep.mubr.bf16.mxu1 %v10021_v36 }
 0xa83   :  { %4640 = vmatpush1.bf16.msra.mxu0 %v10675_v19  ;;  %4681 = vmatpush1.bf16.msra.mxu1 %v10676_v48  ;;  %v6473_v19 = vld [vmem:[#allocation7 + $0xa0] ss:$16 sps:$4 sm:$0xff]   ;;  %v6474_v48 = vld [vmem:[#allocation7 + $0xa8] ss:$16 sps:$4 sm:$0xff]  }
 0xa84   :  { %4641 = vmatprep.subr.bf16.mxu0 %v10677_v45  ;;  %4682 = vmatprep.subr.bf16.mxu1 %v10678_v27  ;;  %v6475_v45 = vld [vmem:[#allocation7 + $0xc4] ss:$16 sps:$4 sm:$0xff]   ;;  %v6476_v27 = vld [vmem:[#allocation7 + $0xcc] ss:$16 sps:$4 sm:$0xff]  }
 0xa87   :  { %4642 = vmatpush1.bf16.msra.mxu0 %v10679_v22  ;;  %4683 = vmatpush1.bf16.msra.mxu1 %v10680_v6  ;;  %v6477_v22 = vld [vmem:[#allocation7 + $0xc0] ss:$16 sps:$4 sm:$0xff]   ;;  %v6478_v6 = vld [vmem:[#allocation7 + $0xc8] ss:$16 sps:$4 sm:$0xff]  }
 0xa88   :  { %4643 = vmatprep.subr.bf16.mxu0 %v10681_v38  ;;  %4684 = vmatprep.subr.bf16.mxu1 %v10682_v4  ;;  %v6479_v38 = vld [vmem:[#allocation7 + $0xe4] ss:$16 sps:$4 sm:$0xff]   ;;  %v6480_v4 = vld [vmem:[#allocation7 + $0xec] ss:$16 sps:$4 sm:$0xff]  }
 0xa8b   :  { %4644 = vmatpush1.bf16.msra.mxu0 %v10683_v50  ;;  %4685 = vmatpush1.bf16.msra.mxu1 %v10684_v54  ;;  %v6481_v50 = vld [vmem:[#allocation7 + $0xe0] ss:$16 sps:$4 sm:$0xff]   ;;  %v6482_v54 = vld [vmem:[#allocation7 + $0xe8] ss:$16 sps:$4 sm:$0xff]  }
 0xa8c   :  { %4645 = vmatprep.subr.bf16.mxu0 %v10685_v9  ;;  %4686 = vmatprep.subr.bf16.mxu1 %v10686_v35  ;;  %v6484_v9 = vld [vmem:[#allocation10 + $0xc] ss:$16 sps:$4 sm:$0xff]  }
 0xa8f   :  { %4646 = vmatpush1.bf16.msra.mxu0 %v10687_v21  ;;  %4687 = vmatpush1.bf16.msra.mxu1 %v10688_v43  ;;  %v10712_v43 = vld [vmem:[#allocation20_spill] sm:$0xff] }
 0xa90   :  { %4647 = vmatprep.subr.bf16.mxu0 %v10689_v42  ;;  %4688 = vmatprep.subr.bf16.mxu1 %v10690_v55 }
 0xa93   :  { %4648 = vmatpush1.bf16.msra.mxu0 %v10691_v44  ;;  %4689 = vmatpush1.bf16.msra.mxu1 %v10692_v51  ;;  %v10713_v51 = vld [vmem:[#allocation134_spill] sm:$0xff] }
 0xa94   :  { %4649 = vmatprep.subr.bf16.mxu0 %v10693_v52  ;;  %4690 = vmatprep.subr.bf16.mxu1 %v10694_v12 }
 0xa97   :  { %4650 = vmatpush1.bf16.msra.mxu0 %v10695_v14  ;;  %4691 = vmatpush1.bf16.msra.mxu1 %v9270_v30  ;;  %v6455_v30 = vld [vmem:[#allocation7 + $0x24] ss:$16 sps:$4 sm:$0xff]  }
 0xa98   :  { %4651 = vmatprep.subr.bf16.mxu0 %v9273_v47  ;;  %4692 = vmatprep.subr.bf16.mxu1 %v9276_v46  ;;  %v6456_v47 = vld [vmem:[#allocation7 + $0x2c] ss:$16 sps:$4 sm:$0xff]   ;;  %v6458_v46 = vld [vmem:[#allocation7 + $0x28] ss:$16 sps:$4 sm:$0xff]  }
 0xa9b   :  { %4652 = vmatpush1.bf16.msra.mxu0 %v9279_v34  ;;  %4693 = vmatpush1.bf16.msra.mxu1 %v9282_v29  ;;  %v6457_v34 = vld [vmem:[#allocation7 + $0x20] ss:$16 sps:$4 sm:$0xff]   ;;  %v6459_v29 = vld [vmem:[#allocation7 + $0x44] ss:$16 sps:$4 sm:$0xff]  }
 0xa9c   :  { %4723 = vmatprep.subr.bf16.mxu0 %v6451_v26  ;;  %4764 = vmatprep.subr.bf16.mxu1 %v6452_v31 }
 0xa9e   :  { %4670 = vmatmul.mubr.bf16.vlgmr.msra.gmra.mrb[100].mxu0 %v4445_v37  ;;  %4711 = vmatmul.mubr.bf16.vlgmr.msra.gmra.mrb[100].mxu1 %v4445_v37 }
 0xa9f   :  { %4724 = vmatpush1.bf16.msra.mxu0 %v6453_v15  ;;  %4765 = vmatpush1.bf16.msra.mxu1 %v6454_v41  ;;  %v10714_v41 = vld [vmem:[#allocation21_spill] sm:$0xff] }
 0xaa0   :  { %4725 = vmatprep.subr.bf16.mxu0 %v6455_v30  ;;  %4766 = vmatprep.subr.bf16.mxu1 %v6456_v47 }
 0xaa1   :  { %4755 = vmatprep.mubr.bf16.mxu0 %v10021_v36  ;;  %4796 = vmatprep.mubr.bf16.mxu1 %v10021_v36 }
 0xaa3   :  { %4726 = vmatpush1.bf16.msra.mxu0 %v6457_v34  ;;  %4767 = vmatpush1.bf16.msra.mxu1 %v6458_v46 }
 0xaa4   :  { %4727 = vmatprep.subr.bf16.mxu0 %v6459_v29  ;;  %4768 = vmatprep.subr.bf16.mxu1 %v6460_v32 }
 0xaa7   :  { %4728 = vmatpush1.bf16.msra.mxu0 %v6461_v33  ;;  %4769 = vmatpush1.bf16.msra.mxu1 %v6462_v17 }
 0xaa8   :  { %4729 = vmatprep.subr.bf16.mxu0 %v6463_v49  ;;  %4770 = vmatprep.subr.bf16.mxu1 %v6464_v18 }
 0xaab   :  { %4730 = vmatpush1.bf16.msra.mxu0 %v6465_v61  ;;  %4771 = vmatpush1.bf16.msra.mxu1 %v6466_v10 }
 0xaac   :  { %4731 = vmatprep.subr.bf16.mxu0 %v6467_v53  ;;  %4772 = vmatprep.subr.bf16.mxu1 %v6468_v63  ;;  %v10715_v63 = vld [vmem:[#allocation105_spill] sm:$0xff] }
 0xaaf   :  { %4732 = vmatpush1.bf16.msra.mxu0 %v6469_v23  ;;  %4773 = vmatpush1.bf16.msra.mxu1 %v6470_v28 }
 0xab0   :  { %4733 = vmatprep.subr.bf16.mxu0 %v6471_v25  ;;  %4774 = vmatprep.subr.bf16.mxu1 %v6472_v58  ;;  %v10716_v58 = vld [vmem:[#allocation22_spill] sm:$0xff] }
 0xab3   :  { %4734 = vmatpush1.bf16.msra.mxu0 %v6473_v19  ;;  %4775 = vmatpush1.bf16.msra.mxu1 %v6474_v48 }
 0xab4   :  { %4735 = vmatprep.subr.bf16.mxu0 %v6475_v45  ;;  %4776 = vmatprep.subr.bf16.mxu1 %v6476_v27 }
 0xab7   :  { %4736 = vmatpush1.bf16.msra.mxu0 %v6477_v22  ;;  %4777 = vmatpush1.bf16.msra.mxu1 %v6478_v6 }
 0xab8   :  { %4737 = vmatprep.subr.bf16.mxu0 %v6479_v38  ;;  %4778 = vmatprep.subr.bf16.mxu1 %v6480_v4  ;;  %v10717_v4 = vld [vmem:[#allocation106_spill] sm:$0xff] }
 0xabb   :  { %4738 = vmatpush1.bf16.msra.mxu0 %v6481_v50  ;;  %4779 = vmatpush1.bf16.msra.mxu1 %v6482_v54 }
 0xabc   :  { %4828 = vmatprep.subr.bf16.mxu0 %v9327_v16  ;;  %4869 = vmatprep.subr.bf16.mxu1 %v9330_v0  ;;  %v10696_v16 = vld [vmem:[#allocation78_spill] sm:$0xff]  ;;  %v10697_v0 = vld [vmem:[#allocation79_spill] sm:$0xff] }
 0xabe   :  { %4756 = vmatmul.mubr.bf16.vlgmr.msra.gmra.mrb[100].mxu0 %v9452_v62  ;;  %4797 = vmatmul.mubr.bf16.vlgmr.msra.gmra.mrb[100].mxu1 %v9452_v62  ;;  %v6483_v62 = vld [vmem:[#allocation10 + $0x4] ss:$16 sps:$4 sm:$0xff]  }
 0xabf   :  { %4829 = vmatpush1.bf16.msra.mxu0 %v9335_v59  ;;  %4870 = vmatpush1.bf16.msra.mxu1 %v9338_v8  ;;  %v10698_v59 = vld [vmem:[#allocation80_spill] sm:$0xff]  ;;  %v10699_v8 = vld [vmem:[#allocation81_spill] sm:$0xff] }
 0xac0   :  { %4830 = vmatprep.subr.bf16.mxu0 %v9341_v20  ;;  %4871 = vmatprep.subr.bf16.mxu1 %v9344_v57  ;;  %v10700_v20 = vld [vmem:[#allocation82_spill] sm:$0xff]  ;;  %v10701_v57 = vld [vmem:[#allocation83_spill] sm:$0xff] }
 0xac1   :  { %4860 = vmatprep.mubr.bf16.mxu0 %v10021_v36  ;;  %4901 = vmatprep.mubr.bf16.mxu1 %v10021_v36 }
 0xac3   :  { %4831 = vmatpush1.bf16.msra.mxu0 %v9349_v56  ;;  %4872 = vmatpush1.bf16.msra.mxu1 %v9352_v24  ;;  %v10702_v56 = vld [vmem:[#allocation84_spill] sm:$0xff]  ;;  %v10703_v24 = vld [vmem:[#allocation85_spill] sm:$0xff] }
 0xac4   :  { %4832 = vmatprep.subr.bf16.mxu0 %v9355_v13  ;;  %4873 = vmatprep.subr.bf16.mxu1 %v9358_v7  ;;  %v10704_v13 = vld [vmem:[#allocation86_spill] sm:$0xff]  ;;  %v10705_v7 = vld [vmem:[#allocation87_spill] sm:$0xff] }
 0xac7   :  { %4833 = vmatpush1.bf16.msra.mxu0 %v9361_v5  ;;  %4874 = vmatpush1.bf16.msra.mxu1 %v9364_v40  ;;  %v10706_v5 = vld [vmem:[#allocation88_spill] sm:$0xff]  ;;  %v10707_v40 = vld [vmem:[#allocation89_spill] sm:$0xff] }
 0xac8   :  { %4834 = vmatprep.subr.bf16.mxu0 %v9367_v60  ;;  %4875 = vmatprep.subr.bf16.mxu1 %v9370_v2  ;;  %v10708_v60 = vld [vmem:[#allocation90_spill] sm:$0xff]  ;;  %v10709_v2 = vld [vmem:[#allocation91_spill] sm:$0xff] }
 0xacb   :  { %4835 = vmatpush1.bf16.msra.mxu0 %v9373_v3  ;;  %4876 = vmatpush1.bf16.msra.mxu1 %v9376_v11  ;;  %v10710_v3 = vld [vmem:[#allocation92_spill] sm:$0xff]  ;;  %v10711_v11 = vld [vmem:[#allocation93_spill] sm:$0xff] }
 0xacc   :  { %4836 = vmatprep.subr.bf16.mxu0 %v10696_v16  ;;  %4877 = vmatprep.subr.bf16.mxu1 %v10697_v0 }
 0xacf   :  { %4837 = vmatpush1.bf16.msra.mxu0 %v10698_v59  ;;  %4878 = vmatpush1.bf16.msra.mxu1 %v10699_v8 }
 0xad0   :  { %4838 = vmatprep.subr.bf16.mxu0 %v10700_v20  ;;  %4879 = vmatprep.subr.bf16.mxu1 %v10701_v57 }
 0xad3   :  { %4839 = vmatpush1.bf16.msra.mxu0 %v10702_v56  ;;  %4880 = vmatpush1.bf16.msra.mxu1 %v10703_v24 }
 0xad4   :  { %4840 = vmatprep.subr.bf16.mxu0 %v10704_v13  ;;  %4881 = vmatprep.subr.bf16.mxu1 %v10705_v7  ;;  %v10719_v7 = vld [vmem:[#allocation94_spill] sm:$0xff] }
 0xad7   :  { %4841 = vmatpush1.bf16.msra.mxu0 %v10706_v5  ;;  %4882 = vmatpush1.bf16.msra.mxu1 %v10707_v40 }
 0xad8   :  { %4842 = vmatprep.subr.bf16.mxu0 %v10708_v60  ;;  %4883 = vmatprep.subr.bf16.mxu1 %v10709_v2 }
 0xadb   :  { %4843 = vmatpush1.bf16.msra.mxu0 %v10710_v3  ;;  %4884 = vmatpush1.bf16.msra.mxu1 %v10711_v11 }
 0xadc   :  { %4915 = vmatprep.subr.bf16.mxu0 %v6483_v62  ;;  %4956 = vmatprep.subr.bf16.mxu1 %v6484_v9 }
 0xb51   :  { %v4567_v35 = vpop.f32.mrb[96].mxu0  ;;  %v4608_v21 = vpop.f32.mrb[96].mxu1 }
 0xb52   :  { %v5426_v42 = vadd.f32 %v4567_v35, %v10712_v43  ;;  %v4569_v55 = vpop.f32.mrb[97].mxu0  ;;  %v4610_v44 = vpop.f32.mrb[97].mxu1  ;;  %v5428_v35 = vadd.f32 %v4608_v21, %v7577_v1  ;;  %v6491_v21 = vld [vmem:[#allocation10 + $0x44] ss:$16 sps:$4 sm:$0xff]  }
 0xb53   :  { %v5427_v52 = vadd.f32 %v4569_v55, %v10713_v51  ;;  %v4571_v12 = vpop.f32.mrb[98].mxu0  ;;  %v4612_v14 = vpop.f32.mrb[98].mxu1  ;;  %v5429_v30 = vadd.f32 %v4610_v44, %v10714_v41  ;;  %v6486_v55 = vld [vmem:[#allocation10 + $0x8] ss:$16 sps:$4 sm:$0xff]   ;;  %v6487_v44 = vld [vmem:[#allocation10 + $0x24] ss:$16 sps:$4 sm:$0xff]  }
 0xb54   :  { %v4619_v37 = vmul.f32 0.5, %v5426_v42  ;;  %v4572_v26 = vpop.f32.mrb[99].mxu0  ;;  %v4613_v31 = vpop.f32.mrb[99].mxu1  ;;  %v6485_v42 = vld [vmem:[#allocation10] ss:$16 sps:$4 sm:$0xff]   ;;  %v4621_v12 = vmul.f32 0.5, %v5428_v35 }
 0xb55   :  { %v4620_v15 = vmul.f32 0.5, %v5427_v52  ;;  %v6488_v52 = vld [vmem:[#allocation10 + $0x2c] ss:$16 sps:$4 sm:$0xff]   ;;  %v6489_v14 = vld [vmem:[#allocation10 + $0x20] ss:$16 sps:$4 sm:$0xff]   ;;  %v10720_v35 = vmov 0.0  }
 0xb56   :  { %6005 = vtanh.f32 %v4619_v37  ;;  %v6490_v37 = vld [vmem:[#allocation10 + $0x28] ss:$16 sps:$4 sm:$0xff]   ;;  %v6492_v26 = vld [vmem:[#allocation10 + $0x4c] ss:$16 sps:$4 sm:$0xff]   ;;  %v6493_v31 = vld [vmem:[#allocation10 + $0x40] ss:$16 sps:$4 sm:$0xff]  }
 0xb57   :  { %6007 = vtanh.f32 %v4620_v15  ;;  %v6494_v15 = vld [vmem:[#allocation10 + $0x48] ss:$16 sps:$4 sm:$0xff]  }
 0xb58   :  { %6009 = vtanh.f32 %v5429_v30  ;;  %v6495_v30 = vld [vmem:[#allocation10 + $0x64] ss:$16 sps:$4 sm:$0xff]  }
 0xb60   :  { %v6006_v47 = vpop.eup %6005 }
 0xb61   :  { %v4625_v34 = vadd.f32 1.0, %v6006_v47  ;;  %v6008_v46 = vpop.eup %6007  ;;  %v6496_v47 = vld [vmem:[#allocation10 + $0x6c] ss:$16 sps:$4 sm:$0xff]  }
 0xb62   :  { %v4626_v32 = vadd.f32 1.0, %v6008_v46  ;;  %v6010_v33 = vpop.eup %6009  ;;  %v6499_v46 = vld [vmem:[#allocation10 + $0x84] ss:$16 sps:$4 sm:$0xff]  }
 0xb63   :  { %v4628_v29 = vmul.f32 0.5, %v4625_v34  ;;  %v6498_v34 = vld [vmem:[#allocation10 + $0x68] ss:$16 sps:$4 sm:$0xff]  }
 0xb64   :  { %v4629_v17 = vmul.f32 0.5, %v4626_v32 }
 0xb65   :  { %v4633_v49 = vmul.f32 %v6010_v33, %v4628_v29  ;;  %v6500_v29 = vld [vmem:[#allocation10 + $0x8c] ss:$16 sps:$4 sm:$0xff]   ;;  %v6501_v33 = vld [vmem:[#allocation10 + $0x80] ss:$16 sps:$4 sm:$0xff]  }
 0xb66   :  { %v4632_v18 = vmul.f32 %v4629_v17, %v9435_v39  ;;  %v10718_v39 = vld [vmem:[#allocation107_spill] sm:$0xff] }
 0xb67   :  { %v6502_v17 = vld [vmem:[#allocation10 + $0x88] ss:$16 sps:$4 sm:$0xff]  }
 0xb68   :  { %v9568_v61 = vadd.f32 %v4633_v49, %v4632_v18  ;;  %v6503_v49 = vld [vmem:[#allocation10 + $0xa4] ss:$16 sps:$4 sm:$0xff]   ;;  %v6504_v18 = vld [vmem:[#allocation10 + $0xac] ss:$16 sps:$4 sm:$0xff]  }
 0xb91   :  { %v4757_v10 = vpop.f32.mrb[100].mxu0  ;;  %v4798_v53 = vpop.f32.mrb[100].mxu1 }
 0xb92   :  { %v5430_v23 = vadd.f32 %v4757_v10, %v10715_v63  ;;  %v4759_v28 = vpop.f32.mrb[101].mxu0  ;;  %v4800_v25 = vpop.f32.mrb[101].mxu1  ;;  %v5432_v54 = vadd.f32 %v4798_v53, %v10718_v39  ;;  %v6505_v53 = vld [vmem:[#allocation10 + $0xa0] ss:$16 sps:$4 sm:$0xff]   ;;  %v6506_v63 = vld [vmem:[#allocation10 + $0xa8] ss:$16 sps:$4 sm:$0xff]  }
 0xb93   :  { %v5431_v19 = vadd.f32 %v4759_v28, %v10716_v58  ;;  %v4761_v48 = vpop.f32.mrb[102].mxu0  ;;  %v4802_v45 = vpop.f32.mrb[102].mxu1  ;;  %v5433_v50 = vadd.f32 %v4800_v25, %v10717_v4  ;;  %v6508_v28 = vld [vmem:[#allocation10 + $0xcc] ss:$16 sps:$4 sm:$0xff]  }
 0xb94   :  { %v4809_v27 = vmul.f32 0.5, %v5430_v23  ;;  %v4762_v22 = vpop.f32.mrb[103].mxu0  ;;  %v4803_v6 = vpop.f32.mrb[103].mxu1  ;;  %v4811_v16 = vmul.f32 0.5, %v5432_v54  ;;  %v6507_v23 = vld [vmem:[#allocation10 + $0xc4] ss:$16 sps:$4 sm:$0xff]  }
 0xb95   :  { %v4810_v38 = vmul.f32 0.5, %v5431_v19  ;;  %v6509_v19 = vld [vmem:[#allocation10 + $0xc0] ss:$16 sps:$4 sm:$0xff]   ;;  %v6510_v48 = vld [vmem:[#allocation10 + $0xc8] ss:$16 sps:$4 sm:$0xff]  }
 0xb96   :  { %6011 = vtanh.f32 %v4809_v27  ;;  %v6511_v45 = vld [vmem:[#allocation10 + $0xe4] ss:$16 sps:$4 sm:$0xff]   ;;  %v6512_v27 = vld [vmem:[#allocation10 + $0xec] ss:$16 sps:$4 sm:$0xff]   ;;  %v6513_v6 = vld [vmem:[#allocation10 + $0xe0] ss:$16 sps:$4 sm:$0xff]  }
 0xb97   :  { %6013 = vtanh.f32 %v4810_v38  ;;  %v6514_v38 = vld [vmem:[#allocation10 + $0xe8] ss:$16 sps:$4 sm:$0xff]  }
 0xb98   :  { %6015 = vtanh.f32 %v5433_v50  ;;  %v5019_v50 = vld [vmem:[%s9646_s10] sm:$0xff]  ;;  %v5020_v39 = vld [vmem:[%s9646_s10 + $0x8] sm:$0xff] }
 0xb99   :  { %6017 = vtanh.f32 %v4811_v16  ;;  %v5359_v54 = vpack.c.bf16 %v5020_v39, %v5019_v50  ;;  %v6640_v16 = vmov 0.0|0.0  }
 0xba0   :  { %v6012_v0 = vpop.eup %6011 }
 0xba1   :  { %v4815_v59 = vadd.f32 1.0, %v6012_v0  ;;  %v6014_v8 = vpop.eup %6013  ;;  %v5021_v0 = vld [vmem:[%s9646_s10 + $0x10] sm:$0xff] }
 0xba2   :  { %v4816_v57 = vadd.f32 1.0, %v6014_v8  ;;  %v6016_v56 = vpop.eup %6015 }
 0xba3   :  { %v4818_v20 = vmul.f32 0.5, %v4815_v59  ;;  %v6018_v60 = vpop.eup %6017  ;;  %v5022_v59 = vld [vmem:[%s9646_s10 + $0x18] sm:$0xff] }
 0xba4   :  { %v4819_v24 = vmul.f32 0.5, %v4816_v57  ;;  %v4817_v2 = vadd.f32 1.0, %v6018_v60  ;;  %v5362_v8 = vpack.c.bf16 %v5022_v59, %v5021_v0  ;;  %v5024_v57 = vld [vmem:[%s9646_s10 + $0x28] sm:$0xff] }
 0xba5   :  { %v4823_v13 = vmul.f32 %v6016_v56, %v4818_v20  ;;  %v5023_v20 = vld [vmem:[%s9646_s10 + $0x20] sm:$0xff] }
 0xba6   :  { %v4822_v5 = vmul.f32 %v4819_v24, %v10719_v7  ;;  %v4820_v3 = vmul.f32 0.5, %v4817_v2  ;;  %v5365_v56 = vpack.c.bf16 %v5024_v57, %v5023_v20  ;;  %v5025_v24 = vld [vmem:[%s9646_s10 + $0x30] sm:$0xff] }
 0xba7   :  { %v5029_v2 = vld [vmem:[%s9646_s10 + $0x50] sm:$0xff] }
 0xba8   :  { %v4824_v40 = vadd.f32 %v4823_v13, %v4822_v5  ;;  %v5026_v13 = vld [vmem:[%s9646_s10 + $0x38] sm:$0xff]  ;;  %v5027_v5 = vld [vmem:[%s9646_s10 + $0x40] sm:$0xff] }
 0xba9   :  { %v5368_v7 = vpack.c.bf16 %v5026_v13, %v5025_v24 }
 0xbaa   :  { %6019 = vtanh.f32 %v4824_v40  ;;  %v5028_v40 = vld [vmem:[%s9646_s10 + $0x48] sm:$0xff] }
 0xbab   :  { %6021 = vtanh.f32 %v4621_v12  ;;  %v5371_v60 = vpack.c.bf16 %v5028_v40, %v5027_v5 }
 0xbac   :  { %6023 = vtanh.f32 %v9568_v61 }
 0xbb4   :  { %v6020_v11 = vpop.eup %6019 }
 0xbb5   :  { %v4826_v62 = vmul.f32 %v6020_v11, %v4820_v3  ;;  %v6022_v32 = vpop.eup %6021  ;;  %v5030_v3 = vld [vmem:[%s9646_s10 + $0x58] sm:$0xff] }
 0xbb6   :  { %v4627_v10 = vadd.f32 1.0, %v6022_v32  ;;  %v6024_v25 = vpop.eup %6023  ;;  %v5374_v11 = vpack.c.bf16 %v5030_v3, %v5029_v2 }
 0xbb7   :  { %v4827_v9 = vpack.c.bf16 %v4826_v62, %v4826_v62  ;;  %v5031_v62 = vld [vmem:[%s9646_s10 + $0x60] sm:$0xff] }
 0xbb8   :  { %v4630_v58 = vmul.f32 0.5, %v4627_v10 }
 0xbb9   :  { %4861 = vmatmul.mubr.bf16.vlgmr.msra.gmra.mrb[104].mxu0 %v4827_v9  ;;  %4902 = vmatmul.mubr.bf16.vlgmr.msra.gmra.mrb[104].mxu1 %v4827_v9  ;;  %v5032_v9 = vld [vmem:[%s9646_s10 + $0x68] sm:$0xff] }
 0xbba   :  { %4916 = vmatpush1.bf16.msra.mxu0 %v6485_v42  ;;  %4957 = vmatpush1.bf16.msra.mxu1 %v6486_v55  ;;  %v4636_v22 = vmul.f32 %v6024_v25, %v4630_v58  ;;  %v5377_v42 = vpack.c.bf16 %v5032_v9, %v5031_v62  ;;  %v5033_v55 = vld [vmem:[%s9646_s10 + $0x70] sm:$0xff] }
 0xbbb   :  { %4917 = vmatprep.subr.bf16.mxu0 %v6487_v44  ;;  %4958 = vmatprep.subr.bf16.mxu1 %v6488_v52  ;;  %v5034_v44 = vld [vmem:[%s9646_s10 + $0x78] sm:$0xff] }
 0xbbc   :  { %4947 = vmatprep.mubr.bf16.mxu0 %v10021_v36  ;;  %4988 = vmatprep.mubr.bf16.mxu1 %v10021_v36  ;;  %v6497_v36 = vld [vmem:[#allocation10 + $0x60] ss:$16 sps:$4 sm:$0xff]   ;;  %v4914_v4 = vpack.c.bf16 %v4636_v22, %v4636_v22  ;;  %v5380_v52 = vpack.c.bf16 %v5034_v44, %v5033_v55 }
 0xbbe   :  { %4918 = vmatpush1.bf16.msra.mxu0 %v6489_v14  ;;  %4959 = vmatpush1.bf16.msra.mxu1 %v6490_v37 }
 0xbbf   :  { %4919 = vmatprep.subr.bf16.mxu0 %v6491_v21  ;;  %4960 = vmatprep.subr.bf16.mxu1 %v6492_v26 }
 0xbc2   :  { %4920 = vmatpush1.bf16.msra.mxu0 %v6493_v31  ;;  %4961 = vmatpush1.bf16.msra.mxu1 %v6494_v15 }
 0xbc3   :  { %4921 = vmatprep.subr.bf16.mxu0 %v6495_v30  ;;  %4962 = vmatprep.subr.bf16.mxu1 %v6496_v47 }
 0xbc6   :  { %4922 = vmatpush1.bf16.msra.mxu0 %v6497_v36  ;;  %4963 = vmatpush1.bf16.msra.mxu1 %v6498_v34 }
 0xbc7   :  { %4923 = vmatprep.subr.bf16.mxu0 %v6499_v46  ;;  %4964 = vmatprep.subr.bf16.mxu1 %v6500_v29 }
 0xbca   :  { %4924 = vmatpush1.bf16.msra.mxu0 %v6501_v33  ;;  %4965 = vmatpush1.bf16.msra.mxu1 %v6502_v17 }
 0xbcb   :  { %4925 = vmatprep.subr.bf16.mxu0 %v6503_v49  ;;  %4966 = vmatprep.subr.bf16.mxu1 %v6504_v18 }
 0xbce   :  { %4926 = vmatpush1.bf16.msra.mxu0 %v6505_v53  ;;  %4967 = vmatpush1.bf16.msra.mxu1 %v6506_v63 }
 0xbcf   :  { %4927 = vmatprep.subr.bf16.mxu0 %v6507_v23  ;;  %4968 = vmatprep.subr.bf16.mxu1 %v6508_v28 }
 0xbd2   :  { %4928 = vmatpush1.bf16.msra.mxu0 %v6509_v19  ;;  %4969 = vmatpush1.bf16.msra.mxu1 %v6510_v48 }
 0xbd3   :  { %4929 = vmatprep.subr.bf16.mxu0 %v6511_v45  ;;  %4970 = vmatprep.subr.bf16.mxu1 %v6512_v27 }
 0xbd6   :  { %4930 = vmatpush1.bf16.msra.mxu0 %v6513_v6  ;;  %4971 = vmatpush1.bf16.msra.mxu1 %v6514_v38 }
 0xbd7   :  { %5358 = vmatprep.subr.bf16.mxu0 %v6640_v16 }
 0xbd9   :  { %4948 = vmatmul.mubr.bf16.vlgmr.msra.gmra.mrb[104].mxu0 %v4914_v4  ;;  %4989 = vmatmul.mubr.bf16.vlgmr.msra.gmra.mrb[104].mxu1 %v4914_v4 }
 0xbda   :  { %5360 = vmatpush3.bf16.msra.mxu0 %v5359_v54  ;;  %5347 = vmatprep.mubr.msk.f32.mxu0 %vm6641_vm1, %v10720_v35 }
 0xbdb   :  { %5361 = vmatprep.subr.bf16.mxu0 %v6640_v16 }
 0xbde   :  { %5363 = vmatpush3.bf16.msra.mxu0 %v5362_v8 }
 0xbdf   :  { %5364 = vmatprep.subr.bf16.mxu0 %v6640_v16 }
 0xbe2   :  { %5366 = vmatpush3.bf16.msra.mxu0 %v5365_v56 }
 0xbe3   :  { %5367 = vmatprep.subr.bf16.mxu0 %v6640_v16 }
 0xbe6   :  { %5369 = vmatpush3.bf16.msra.mxu0 %v5368_v7 }
 0xbe7   :  { %5370 = vmatprep.subr.bf16.mxu0 %v6640_v16 }
 0xbea   :  { %5372 = vmatpush3.bf16.msra.mxu0 %v5371_v60 }
 0xbeb   :  { %5373 = vmatprep.subr.bf16.mxu0 %v6640_v16 }
 0xbee   :  { %5375 = vmatpush3.bf16.msra.mxu0 %v5374_v11 }
 0xbef   :  { %5376 = vmatprep.subr.bf16.mxu0 %v6640_v16 }
 0xbf2   :  { %5378 = vmatpush3.bf16.msra.mxu0 %v5377_v42 }
 0xbf3   :  { %5379 = vmatprep.subr.bf16.mxu0 %v6640_v16 }
 0xbf6   :  { %5381 = vmatpush3.bf16.msra.mxu0 %v5380_v52 }
 0xcac   :  { %v4949_v12 = vpop.f32.mrb[104].mxu0  ;;  %v4990_v14 = vpop.f32.mrb[104].mxu1 }
 0xcad   :  { %v5434_v37 = vadd.f32 %v4949_v12, %v10712_v43  ;;  %v4951_v21 = vpop.f32.mrb[105].mxu0  ;;  %v4992_v26 = vpop.f32.mrb[105].mxu1  ;;  %v5436_v32 = vadd.f32 %v4990_v14, %v7577_v1  ;;  %v5297_v1 = vld [vmem:[#allocation2] ss:$0 sm:$0xff] }
 0xcae   :  { %v5435_v31 = vadd.f32 %v4951_v21, %v10713_v51  ;;  %v4953_v15 = vpop.f32.mrb[106].mxu0  ;;  %v4994_v30 = vpop.f32.mrb[106].mxu1  ;;  %v5437_v29 = vadd.f32 %v4992_v26, %v10714_v41 }
 0xcaf   :  { %v5001_v47 = vmul.f32 0.5, %v5434_v37  ;;  %v4954_v36 = vpop.f32.mrb[107].mxu0  ;;  %v4995_v34 = vpop.f32.mrb[107].mxu1  ;;  %v5003_v33 = vmul.f32 0.5, %v5436_v32 }
 0xcb0   :  { %v5002_v46 = vmul.f32 0.5, %v5435_v31 }
 0xcb1   :  { %6025 = vtanh.f32 %v5001_v47 }
 0xcb2   :  { %6027 = vtanh.f32 %v5002_v46 }
 0xcb3   :  { %6029 = vtanh.f32 %v5437_v29 }
 0xcb4   :  { %6031 = vtanh.f32 %v5003_v33 }
 0xcbb   :  { %v6026_v17 = vpop.eup %6025 }
 0xcbc   :  { %v5007_v43 = vadd.f32 1.0, %v6026_v17  ;;  %v6028_v49 = vpop.eup %6027 }
 0xcbd   :  { %v5008_v51 = vadd.f32 1.0, %v6028_v49  ;;  %v6030_v10 = vpop.eup %6029 }
 0xcbe   :  { %v5010_v18 = vmul.f32 0.5, %v5007_v43  ;;  %v6032_v25 = vpop.eup %6031 }
 0xcbf   :  { %v5011_v53 = vmul.f32 0.5, %v5008_v51  ;;  %v5009_v41 = vadd.f32 1.0, %v6032_v25 }
 0xcc0   :  { %v5015_v63 = vmul.f32 %v6030_v10, %v5010_v18 }
 0xcc1   :  { %v5014_v23 = vmul.f32 %v5011_v53, %v9568_v61  ;;  %v5012_v58 = vmul.f32 0.5, %v5009_v41 }
 0xcc3   :  { %v5016_v28 = vadd.f32 %v5015_v63, %v5014_v23 }
 0xcc5   :  { %6033 = vtanh.f32 %v5016_v28 }
 0xccf   :  { %v6034_v19 = vpop.eup %6033 }
 0xcd0   :  { %v5018_v48 = vmul.f32 %v6034_v19, %v5012_v58 }
 0xcd2   :  { %5348 = vmatmul.mubr.f32.vlgmr.msra.gmra.mrb[108].mxu0 %v5018_v48 }
 0xda5   :  { %v5108_v45 = vpop.f32.mrb[108].mxu0 }
 0xda6   :  { %v5109_v27 = vadd.f32 %v5297_v1, %v5108_v45  ;;  %v5349_v22 = vpop.f32.mrb[109].mxu0 }
 0xda8   :  { %5113 = vst.msk [vmem:[%s9648_s12] sm:$0xff] %vm5112_vm2, %v5109_v27 }
 0xda9   :  { %5118 = vsyncpa [#allocation4], 1 }
 0xdaa   :  { %5119 = vsyncpa [#allocation6], 1 }
 0xdab   :  { %5120 = vsyncpa [#allocation9], 1 }

</bundles_post_ra>
